<compile_context>
chip_gen: v7x
topology: tpu7x:2x2x1
jax: 0.10.0
libtpu: 0.0.40
codegen_flags: <defaults>
</compile_context>

<pallas_src>
import functools

import jax
import jax.numpy as jnp
from jax import lax
from jax.experimental import pallas as pl
from jax.experimental.pallas import tpu as pltpu

C_MID = 32  # the module always maps c_in -> 32


def _dilations(rate):
    # PyTorch: dilation_i = rate*i if rate >= 1 else 1
    return (rate, 2 * rate, 3 * rate) if rate >= 1 else (1, 1, 1)


def _pick_strip(h):
    """Rows per grid step: a multiple of 8 dividing H (statically unrolled)."""
    if h % 8 != 0:
        return h
    cap = max(8, h // 4)
    rs = 8
    for cand in range(8, cap + 1, 8):
        if h % cand == 0:
            rs = cand
    return rs


def _rup(a, b):
    return -(-a // b) * b


def _padded_bytes(shape, dtype):
    """Approximate VMEM footprint of a buffer after (sublane, lane) padding."""
    item = jnp.dtype(dtype).itemsize
    if len(shape) < 2:
        n = shape[0] if shape else 1
        return _rup(max(n, 1) * item, 512)
    sub = {4: 8, 2: 16, 1: 32}.get(item, 8)
    lead = 1
    for d in shape[:-2]:
        lead *= d
    return lead * _rup(shape[-2], sub) * _rup(shape[-1], 128) * item


# ----------------------------------------------------------------------------
# Fused MSBlock kernel: grid = (image, row-strip)
# ----------------------------------------------------------------------------
def _msblock_kernel(cols0_ref, w0_ref, b0_ref, w1_ref, b1_ref, w2_ref, b2_ref,
                    w3_ref, b3_ref, out_ref, o_pad_ref, *, H, W, pad,
                    dilations, rs):
    # cols0_ref : (H, 9*Cin, W)  bf16   stem im2col (built in the wrapper)
    # wN_ref    : (32, 9*K)      bf16   conv weights, channel-major im2col
    # bN_ref    : (32, 1)        f32
    # out_ref   : (32, rs, W)    f32    NCHW output rows of this strip
    # o_pad_ref : (Hp, 32, Wp)   bf16   scratch: `o` with a zero halo of `pad`
    C = C_MID
    Hp = H + 2 * pad
    Wp = W + 2 * pad
    s = pl.program_id(1)

    # ---- once per image (first strip): zero halos + stem conv fills o_pad --
    @pl.when(s == 0)
    def _():
        zdt = o_pad_ref.dtype
        # Halo-only zeroing (interior is fully overwritten by the stem).
        o_pad_ref[0:pad, :, :] = jnp.zeros((pad, C, Wp), zdt)
        o_pad_ref[pad + H:Hp, :, :] = jnp.zeros((pad, C, Wp), zdt)
        o_pad_ref[:, :, 0:pad] = jnp.zeros((Hp, C, pad), zdt)
        o_pad_ref[:, :, pad + W:Wp] = jnp.zeros((Hp, C, pad), zdt)

        w0 = w0_ref[...]            # (32, 9*Cin) bf16
        b0 = b0_ref[...]            # (32, 1)     f32

        def stem_row(y, carry):
            c0 = cols0_ref[y]       # (9*Cin, W) bf16, leading-dim dynamic idx
            o_row = jnp.dot(w0, c0, preferred_element_type=jnp.float32)
            o_row = jnp.maximum(o_row + b0, 0.0)           # (32, W) f32
            o_pad_ref[pad + y, :, pad:pad + W] = o_row.astype(zdt)
            return carry

        lax.fori_loop(0, H, stem_row, 0)

    # ---- every strip: 3 dilated convs + skip sum for `rs` output rows ------
    convs = ((w1_ref[...], b1_ref[...], dilations[0]),
             (w2_ref[...], b2_ref[...], dilations[1]),
             (w3_ref[...], b3_ref[...], dilations[2]))

    for r in range(rs):                       # static unroll, static out index
        y = s * rs + r                        # global output row (traced)
        # skip term `o` (read back from o_pad, cast to f32 for the sum)
        total = o_pad_ref[pad + y, :, pad:pad + W].astype(jnp.float32)

        for w_mat, b_vec, d in convs:
            # Per-row im2col: nine clean (32, W) slices stacked on sublanes
            # (32 % bf16-tile == 0 -> no shuffles), then one K=288 matmul.
            taps = []
            for ky in range(3):
                row = pad + y + (ky - 1) * d        # dynamic leading-dim index
                for kx in range(3):
                    c0 = pad + (kx - 1) * d
                    taps.append(o_pad_ref[row, :, c0:c0 + W])
            cols = jnp.concatenate(taps, axis=0)            # (288, W) bf16
            conv = jnp.dot(w_mat, cols, preferred_element_type=jnp.float32)
            total = total + jnp.maximum(conv + b_vec, 0.0)  # f32

        out_ref[:, r, :] = total


def msblock_pallas(x_nchw, params, rate):
    N, Cin, H, W = x_nchw.shape
    C = C_MID
    dils = _dilations(rate)
    pad = max(dils)
    rs = _pick_strip(H)
    S = H // rs
    Hp, Wp = H + 2 * pad, W + 2 * pad

    # ---- stem im2col in the wrapper (channel-major): (N, H, 9*Cin, W) ------
    x = x_nchw.astype(jnp.float32)
    xp = jnp.pad(x, ((0, 0), (0, 0), (1, 1), (1, 1)))
    taps = []
    for ky in range(3):
        for kx in range(3):
            taps.append(
                jnp.transpose(xp[:, :, ky:ky + H, kx:kx + W], (0, 2, 1, 3)))
    cols0 = jnp.stack(taps, axis=2).reshape(N, H, 9 * Cin, W)
    cols0 = cols0.astype(jnp.bfloat16)

    # ---- weights: OIHW -> (Cout, (ky*3+kx)*Ci + ci), bf16 for the MXU ------
    def w_mat(w):
        co, ci = w.shape[0], w.shape[1]
        return jnp.transpose(w, (0, 2, 3, 1)).reshape(co, 9 * ci).astype(
            jnp.bfloat16)

    w0 = w_mat(params["w0"])            # (32, 9*Cin)
    w1 = w_mat(params["w1"])            # (32, 288)
    w2 = w_mat(params["w2"])
    w3 = w_mat(params["w3"])
    b0 = params["b0"].reshape(C, 1).astype(jnp.float32)
    b1 = params["b1"].reshape(C, 1).astype(jnp.float32)
    b2 = params["b2"].reshape(C, 1).astype(jnp.float32)
    b3 = params["b3"].reshape(C, 1).astype(jnp.float32)

    kernel = functools.partial(_msblock_kernel, H=H, W=W, pad=pad,
                               dilations=dils, rs=rs)
    rep = lambda n, s: (0, 0)  # weights / biases: same whole-array block

    # Explicit scoped-VMEM budget: double-buffered blocks + scratch + slack.
    est = (2 * _padded_bytes((H, 9 * Cin, W), jnp.bfloat16)      # cols0 block
           + 2 * _padded_bytes((C, rs, W), jnp.float32)          # out block
           + _padded_bytes((Hp, C, Wp), jnp.bfloat16)            # o_pad
           + 2 * (_padded_bytes((C, 9 * Cin), jnp.bfloat16)
                  + 3 * _padded_bytes((C, 9 * C), jnp.bfloat16)
                  + 4 * _padded_bytes((C, 1), jnp.float32)))
    vmem_limit = int(min(max(est + (16 << 20), 32 << 20), 100 << 20))

    out = pl.pallas_call(
        kernel,
        out_shape=jax.ShapeDtypeStruct((N, C, H, W), jnp.float32),
        grid=(N, S),
        in_specs=[
            pl.BlockSpec((None, H, 9 * Cin, W), lambda n, s: (n, 0, 0, 0)),
            pl.BlockSpec((C, 9 * Cin), rep), pl.BlockSpec((C, 1), rep),
            pl.BlockSpec((C, 9 * C), rep), pl.BlockSpec((C, 1), rep),
            pl.BlockSpec((C, 9 * C), rep), pl.BlockSpec((C, 1), rep),
            pl.BlockSpec((C, 9 * C), rep), pl.BlockSpec((C, 1), rep),
        ],
        out_specs=pl.BlockSpec((None, C, rs, W), lambda n, s: (n, 0, s, 0)),
        scratch_shapes=[pltpu.VMEM((Hp, C, Wp), jnp.bfloat16)],
        compiler_params=pltpu.CompilerParams(
            # strip axis carries the o_pad dependence -> must be "arbitrary"
            dimension_semantics=("parallel", "arbitrary"),
            vmem_limit_bytes=vmem_limit),
    )(cols0, w0, b0, w1, b1, w2, b2, w3, b3)
    return out


@functools.partial(jax.jit, static_argnames=("rate",))
def msblock_forward(x_nchw, params, rate=4):
    # NCHW in / NCHW out; the kernel is NCHW-native so no layout transposes
    # are needed around the pallas_call.
    return msblock_pallas(x_nchw.astype(jnp.float32), params, rate)


# ----------------------------------------------------------------------------
# Parameter init (matches PyTorch: weight ~ N(0, 0.01), bias = 0), OIHW layout
# ----------------------------------------------------------------------------
def init_msblock_params(key, c_in, c_mid=C_MID):
    k0, k1, k2, k3 = jax.random.split(key, 4)
    return {
        "w0": 0.01 * jax.random.normal(k0, (c_mid, c_in, 3, 3), jnp.float32),
        "b0": jnp.zeros((c_mid,), jnp.float32),
        "w1": 0.01 * jax.random.normal(k1, (c_mid, c_mid, 3, 3), jnp.float32),
        "b1": jnp.zeros((c_mid,), jnp.float32),
        "w2": 0.01 * jax.random.normal(k2, (c_mid, c_mid, 3, 3), jnp.float32),
        "b2": jnp.zeros((c_mid,), jnp.float32),
        "w3": 0.01 * jax.random.normal(k3, (c_mid, c_mid, 3, 3), jnp.float32),
        "b3": jnp.zeros((c_mid,), jnp.float32),
    }


# ----------------------------------------------------------------------------
# Pure-JAX reference (f32, HIGHEST precision) for validation
# ----------------------------------------------------------------------------
def _conv_ref(x, w, b, dilation):
    y = lax.conv_general_dilated(
        x, w, window_strides=(1, 1),
        padding=[(dilation, dilation), (dilation, dilation)],
        rhs_dilation=(dilation, dilation),
        dimension_numbers=("NCHW", "OIHW", "NCHW"),
        precision=lax.Precision.HIGHEST)
    return jnp.maximum(y + b.reshape(1, -1, 1, 1), 0.0)


def msblock_ref(x_nchw, params, rate=4):
    x = x_nchw.astype(jnp.float32)
    d1, d2, d3 = _dilations(rate)
    o = _conv_ref(x, params["w0"], params["b0"], 1)
    o1 = _conv_ref(o, params["w1"], params["b1"], d1)
    o2 = _conv_ref(o, params["w2"], params["b2"], d2)
    o3 = _conv_ref(o, params["w3"], params["b3"], d3)
    return o + o1 + o2 + o3


if __name__ == "__main__":
    key = jax.random.PRNGKey(0)
    k_param, k_x = jax.random.split(key)

    N, C_IN, H, W = 2, 4, 16, 16
    RATE = 4

    params = init_msblock_params(k_param, C_IN)
    x = jax.random.normal(k_x, (N, C_IN, H, W), jnp.float32)

    out = jax.block_until_ready(msblock_forward(x, params, rate=RATE))
    ref = jax.block_until_ready(msblock_ref(x, params, rate=RATE))

    assert out.shape == (N, C_MID, H, W), out.shape
    # bf16 MXU operands vs f32 reference -> loosened (review-sanctioned) tol.
    if not jnp.allclose(out, ref, rtol=5e-2, atol=5e-3):
        max_err = float(jnp.max(jnp.abs(out - ref)))
        raise AssertionError(f"mismatch vs reference, max abs err = {max_err}")

    print("KERNEL_OK")
</pallas_src>

<mosaic_0001>
module attributes {stable_mosaic.version = 11 : i64} {
  func.func @_msblock_kernel(%arg0: i32, %arg1: i32, %arg2: memref<1x16x36x16xbf16, #tpu.memory_space<vmem>>, %arg3: memref<32x36xbf16, #tpu.memory_space<vmem>>, %arg4: memref<32x1xf32, #tpu.memory_space<vmem>>, %arg5: memref<32x288xbf16, #tpu.memory_space<vmem>>, %arg6: memref<32x1xf32, #tpu.memory_space<vmem>>, %arg7: memref<32x288xbf16, #tpu.memory_space<vmem>>, %arg8: memref<32x1xf32, #tpu.memory_space<vmem>>, %arg9: memref<32x288xbf16, #tpu.memory_space<vmem>>, %arg10: memref<32x1xf32, #tpu.memory_space<vmem>>, %arg11: memref<1x32x8x16xf32, #tpu.memory_space<vmem>>, %arg12: memref<40x32x40xbf16, #tpu.memory_space<vmem>>) attributes {dimension_semantics = [#tpu.dimension_semantics<parallel>, #tpu.dimension_semantics<arbitrary>], iteration_bounds = array<i64: 2, 2>, scalar_prefetch = 0 : i64, scratch_operands = 1 : i64, tpu.core_type = #tpu.core_type<tc>, window_params = [{transform_indices = @transform_0, window_bounds = array<i64: 1, 16, 36, 16>}, {pipeline_mode = #tpu.pipeline_mode<synchronous>, transform_indices = @transform_1, window_bounds = array<i64: 32, 36>}, {pipeline_mode = #tpu.pipeline_mode<synchronous>, transform_indices = @transform_2, window_bounds = array<i64: 32, 1>}, {pipeline_mode = #tpu.pipeline_mode<synchronous>, transform_indices = @transform_3, window_bounds = array<i64: 32, 288>}, {pipeline_mode = #tpu.pipeline_mode<synchronous>, transform_indices = @transform_4, window_bounds = array<i64: 32, 1>}, {pipeline_mode = #tpu.pipeline_mode<synchronous>, transform_indices = @transform_5, window_bounds = array<i64: 32, 288>}, {pipeline_mode = #tpu.pipeline_mode<synchronous>, transform_indices = @transform_6, window_bounds = array<i64: 32, 1>}, {pipeline_mode = #tpu.pipeline_mode<synchronous>, transform_indices = @transform_7, window_bounds = array<i64: 32, 288>}, {pipeline_mode = #tpu.pipeline_mode<synchronous>, transform_indices = @transform_8, window_bounds = array<i64: 32, 1>}, {transform_indices = @transform_9, window_bounds = array<i64: 1, 32, 8, 16>}]} {
    %c0_i32 = arith.constant 0 : i32
    %0 = arith.cmpi eq, %arg1, %c0_i32 : i32
    %1 = arith.extui %0 : i1 to i32
    %c0_i32_0 = arith.constant 0 : i32
    %2 = arith.cmpi ne, %1, %c0_i32_0 : i32
    scf.if %2 {
      %cst_683 = arith.constant 0.000000e+00 : bf16
      %1049 = vector.broadcast %cst_683 : bf16 to vector<12x32x40xbf16>
      %c0_684 = arith.constant 0 : index
      %c0_685 = arith.constant 0 : index
      %c0_686 = arith.constant 0 : index
      %1050 = vector.load %arg12[%c0_684, %c0_685, %c0_686] : memref<40x32x40xbf16, #tpu.memory_space<vmem>>, vector<12x32x40xbf16>
      tpu.vector_store %arg12[%c0_684, %c0_685, %c0_686], %1049 {strides = array<i32>} : memref<40x32x40xbf16, #tpu.memory_space<vmem>>, vector<12x32x40xbf16>,
      %cst_687 = arith.constant 0.000000e+00 : bf16
      %1051 = vector.broadcast %cst_687 : bf16 to vector<12x32x40xbf16>
      %c28 = arith.constant 28 : index
      %c0_688 = arith.constant 0 : index
      %c0_689 = arith.constant 0 : index
      %1052 = vector.load %arg12[%c28, %c0_688, %c0_689] : memref<40x32x40xbf16, #tpu.memory_space<vmem>>, vector<12x32x40xbf16>
      tpu.vector_store %arg12[%c28, %c0_688, %c0_689], %1051 {strides = array<i32>} : memref<40x32x40xbf16, #tpu.memory_space<vmem>>, vector<12x32x40xbf16>,
      %cst_690 = arith.constant 0.000000e+00 : bf16
      %1053 = vector.broadcast %cst_690 : bf16 to vector<40x32x12xbf16>
      %c0_691 = arith.constant 0 : index
      %c0_692 = arith.constant 0 : index
      %c0_693 = arith.constant 0 : index
      %1054 = vector.load %arg12[%c0_691, %c0_692, %c0_693] : memref<40x32x40xbf16, #tpu.memory_space<vmem>>, vector<40x32x12xbf16>
      tpu.vector_store %arg12[%c0_691, %c0_692, %c0_693], %1053 {strides = array<i32>} : memref<40x32x40xbf16, #tpu.memory_space<vmem>>, vector<40x32x12xbf16>,
      %cst_694 = arith.constant 0.000000e+00 : bf16
      %1055 = vector.broadcast %cst_694 : bf16 to vector<40x32x12xbf16>
      %c0_695 = arith.constant 0 : index
      %c0_696 = arith.constant 0 : index
      %c28_697 = arith.constant 28 : index
      %1056 = vector.load %arg12[%c0_695, %c0_696, %c28_697] : memref<40x32x40xbf16, #tpu.memory_space<vmem>>, vector<40x32x12xbf16>
      tpu.vector_store %arg12[%c0_695, %c0_696, %c28_697], %1055 {strides = array<i32>} : memref<40x32x40xbf16, #tpu.memory_space<vmem>>, vector<40x32x12xbf16>,
      %c0_698 = arith.constant 0 : index
      %c0_699 = arith.constant 0 : index
      %1057 = vector.load %arg3[%c0_698, %c0_699] : memref<32x36xbf16, #tpu.memory_space<vmem>>, vector<32x36xbf16>
      %c0_700 = arith.constant 0 : index
      %c0_701 = arith.constant 0 : index
      %1058 = vector.load %arg4[%c0_700, %c0_701] : memref<32x1xf32, #tpu.memory_space<vmem>>, vector<32x1xf32>
      %c0_i32_702 = arith.constant 0 : i32
      %c16_i32 = arith.constant 16 : i32
      %1059 = arith.addi %c0_i32_702, %c16_i32 : i32
      %c1_i32_703 = arith.constant 1 : i32
      scf.for %arg13 = %c0_i32_702 to %1059 step %c1_i32_703  : i32 {
        %c0_705 = arith.constant 0 : index
        %1060 = arith.index_cast %arg13 : i32 to index
        %c0_706 = arith.constant 0 : index
        %c0_707 = arith.constant 0 : index
        %1061 = vector.load %arg2[%c0_705, %1060, %c0_706, %c0_707] : memref<1x16x36x16xbf16, #tpu.memory_space<vmem>>, vector<1x1x36x16xbf16>
        %1062 = vector.shape_cast %1061 : vector<1x1x36x16xbf16> to vector<36x16xbf16>
        %cst_708 = arith.constant dense<0.000000e+00> : vector<32x16xf32>
        %1063 = tpu.matmul %1057, %1062, %cst_708 {dimension_numbers = #tpu.dot_dimension_numbers<[1], [0], [0], [1], [0, 0, 1, 1], [], []>} : vector<32x36xbf16>, vector<36x16xbf16>, vector<32x16xf32> -> vector<32x16xf32>
        %1064 = vector.broadcast %1058 : vector<32x1xf32> to vector<32x16xf32>
        %1065 = arith.addf %1063, %1064 : vector<32x16xf32>
        %cst_709 = arith.constant 0.000000e+00 : f32
        %1066 = vector.broadcast %cst_709 : f32 to vector<32x16xf32>
        %1067 = arith.maximumf %1065, %1066 : vector<32x16xf32>
        %1068 = arith.truncf %1067 : vector<32x16xf32> to vector<32x16xbf16>
        %c12_i32_710 = arith.constant 12 : i32
        %1069 = arith.addi %c12_i32_710, %arg13 : i32
        %1070 = arith.index_cast %1069 : i32 to index
        %c0_711 = arith.constant 0 : index
        %c12_712 = arith.constant 12 : index
        %1071 = vector.load %arg12[%1070, %c0_711, %c12_712] : memref<40x32x40xbf16, #tpu.memory_space<vmem>>, vector<1x32x16xbf16>
        %1072 = vector.shape_cast %1071 : vector<1x32x16xbf16> to vector<32x16xbf16>
        %1073 = vector.shape_cast %1068 : vector<32x16xbf16> to vector<1x32x16xbf16>
        tpu.vector_store %arg12[%1070, %c0_711, %c12_712], %1073 {strides = array<i32>} : memref<40x32x40xbf16, #tpu.memory_space<vmem>>, vector<1x32x16xbf16>,
      }
      %c16_i32_704 = arith.constant 16 : i32
    } else {
    }
    %c0 = arith.constant 0 : index
    %c0_1 = arith.constant 0 : index
    %3 = vector.load %arg5[%c0, %c0_1] : memref<32x288xbf16, #tpu.memory_space<vmem>>, vector<32x288xbf16>
    %c0_2 = arith.constant 0 : index
    %c0_3 = arith.constant 0 : index
    %4 = vector.load %arg6[%c0_2, %c0_3] : memref<32x1xf32, #tpu.memory_space<vmem>>, vector<32x1xf32>
    %c0_4 = arith.constant 0 : index
    %c0_5 = arith.constant 0 : index
    %5 = vector.load %arg7[%c0_4, %c0_5] : memref<32x288xbf16, #tpu.memory_space<vmem>>, vector<32x288xbf16>
    %c0_6 = arith.constant 0 : index
    %c0_7 = arith.constant 0 : index
    %6 = vector.load %arg8[%c0_6, %c0_7] : memref<32x1xf32, #tpu.memory_space<vmem>>, vector<32x1xf32>
    %c0_8 = arith.constant 0 : index
    %c0_9 = arith.constant 0 : index
    %7 = vector.load %arg9[%c0_8, %c0_9] : memref<32x288xbf16, #tpu.memory_space<vmem>>, vector<32x288xbf16>
    %c0_10 = arith.constant 0 : index
    %c0_11 = arith.constant 0 : index
    %8 = vector.load %arg10[%c0_10, %c0_11] : memref<32x1xf32, #tpu.memory_space<vmem>>, vector<32x1xf32>
    %c8_i32 = arith.constant 8 : i32
    %9 = arith.muli %arg1, %c8_i32 : i32
    %c0_i32_12 = arith.constant 0 : i32
    %10 = arith.addi %9, %c0_i32_12 : i32
    %c12_i32 = arith.constant 12 : i32
    %11 = arith.addi %c12_i32, %10 : i32
    %12 = arith.index_cast %11 : i32 to index
    %c0_13 = arith.constant 0 : index
    %c12 = arith.constant 12 : index
    %13 = vector.load %arg12[%12, %c0_13, %c12] : memref<40x32x40xbf16, #tpu.memory_space<vmem>>, vector<1x32x16xbf16>
    %14 = vector.shape_cast %13 : vector<1x32x16xbf16> to vector<32x16xbf16>
    %15 = arith.extf %14 : vector<32x16xbf16> to vector<32x16xf32>
    %c12_i32_14 = arith.constant 12 : i32
    %16 = arith.addi %c12_i32_14, %10 : i32
    %c-4_i32 = arith.constant -4 : i32
    %17 = arith.addi %16, %c-4_i32 : i32
    %18 = arith.index_cast %17 : i32 to index
    %c0_15 = arith.constant 0 : index
    %c8 = arith.constant 8 : index
    %19 = vector.load %arg12[%18, %c0_15, %c8] : memref<40x32x40xbf16, #tpu.memory_space<vmem>>, vector<1x32x16xbf16>
    %20 = vector.shape_cast %19 : vector<1x32x16xbf16> to vector<32x16xbf16>
    %21 = arith.index_cast %17 : i32 to index
    %c0_16 = arith.constant 0 : index
    %c12_17 = arith.constant 12 : index
    %22 = vector.load %arg12[%21, %c0_16, %c12_17] : memref<40x32x40xbf16, #tpu.memory_space<vmem>>, vector<1x32x16xbf16>
    %23 = vector.shape_cast %22 : vector<1x32x16xbf16> to vector<32x16xbf16>
    %24 = arith.index_cast %17 : i32 to index
    %c0_18 = arith.constant 0 : index
    %c16 = arith.constant 16 : index
    %25 = vector.load %arg12[%24, %c0_18, %c16] : memref<40x32x40xbf16, #tpu.memory_space<vmem>>, vector<1x32x16xbf16>
    %26 = vector.shape_cast %25 : vector<1x32x16xbf16> to vector<32x16xbf16>
    %c12_i32_19 = arith.constant 12 : i32
    %27 = arith.addi %c12_i32_19, %10 : i32
    %c0_i32_20 = arith.constant 0 : i32
    %28 = arith.addi %27, %c0_i32_20 : i32
    %29 = arith.index_cast %28 : i32 to index
    %c0_21 = arith.constant 0 : index
    %c8_22 = arith.constant 8 : index
    %30 = vector.load %arg12[%29, %c0_21, %c8_22] : memref<40x32x40xbf16, #tpu.memory_space<vmem>>, vector<1x32x16xbf16>
    %31 = vector.shape_cast %30 : vector<1x32x16xbf16> to vector<32x16xbf16>
    %32 = arith.index_cast %28 : i32 to index
    %c0_23 = arith.constant 0 : index
    %c12_24 = arith.constant 12 : index
    %33 = vector.load %arg12[%32, %c0_23, %c12_24] : memref<40x32x40xbf16, #tpu.memory_space<vmem>>, vector<1x32x16xbf16>
    %34 = vector.shape_cast %33 : vector<1x32x16xbf16> to vector<32x16xbf16>
    %35 = arith.index_cast %28 : i32 to index
    %c0_25 = arith.constant 0 : index
    %c16_26 = arith.constant 16 : index
    %36 = vector.load %arg12[%35, %c0_25, %c16_26] : memref<40x32x40xbf16, #tpu.memory_space<vmem>>, vector<1x32x16xbf16>
    %37 = vector.shape_cast %36 : vector<1x32x16xbf16> to vector<32x16xbf16>
    %c12_i32_27 = arith.constant 12 : i32
    %38 = arith.addi %c12_i32_27, %10 : i32
    %c4_i32 = arith.constant 4 : i32
    %39 = arith.addi %38, %c4_i32 : i32
    %40 = arith.index_cast %39 : i32 to index
    %c0_28 = arith.constant 0 : index
    %c8_29 = arith.constant 8 : index
    %41 = vector.load %arg12[%40, %c0_28, %c8_29] : memref<40x32x40xbf16, #tpu.memory_space<vmem>>, vector<1x32x16xbf16>
    %42 = vector.shape_cast %41 : vector<1x32x16xbf16> to vector<32x16xbf16>
    %43 = arith.index_cast %39 : i32 to index
    %c0_30 = arith.constant 0 : index
    %c12_31 = arith.constant 12 : index
    %44 = vector.load %arg12[%43, %c0_30, %c12_31] : memref<40x32x40xbf16, #tpu.memory_space<vmem>>, vector<1x32x16xbf16>
    %45 = vector.shape_cast %44 : vector<1x32x16xbf16> to vector<32x16xbf16>
    %46 = arith.index_cast %39 : i32 to index
    %c0_32 = arith.constant 0 : index
    %c16_33 = arith.constant 16 : index
    %47 = vector.load %arg12[%46, %c0_32, %c16_33] : memref<40x32x40xbf16, #tpu.memory_space<vmem>>, vector<1x32x16xbf16>
    %48 = vector.shape_cast %47 : vector<1x32x16xbf16> to vector<32x16xbf16>
    %49 = tpu.concatenate %20, %23, %26, %31, %34, %37, %42, %45, %48 in 0 : vector<32x16xbf16>, vector<32x16xbf16>, vector<32x16xbf16>, vector<32x16xbf16>, vector<32x16xbf16>, vector<32x16xbf16>, vector<32x16xbf16>, vector<32x16xbf16>, vector<32x16xbf16> -> vector<288x16xbf16>
    %cst = arith.constant dense<0.000000e+00> : vector<32x16xf32>
    %50 = tpu.matmul %3, %49, %cst {dimension_numbers = #tpu.dot_dimension_numbers<[1], [0], [0], [1], [0, 0, 1, 1], [], []>} : vector<32x288xbf16>, vector<288x16xbf16>, vector<32x16xf32> -> vector<32x16xf32>
    %51 = vector.broadcast %4 : vector<32x1xf32> to vector<32x16xf32>
    %52 = arith.addf %50, %51 : vector<32x16xf32>
    %cst_34 = arith.constant 0.000000e+00 : f32
    %53 = vector.broadcast %cst_34 : f32 to vector<32x16xf32>
    %54 = arith.maximumf %52, %53 : vector<32x16xf32>
    %55 = arith.addf %15, %54 : vector<32x16xf32>
    %c12_i32_35 = arith.constant 12 : i32
    %56 = arith.addi %c12_i32_35, %10 : i32
    %c-8_i32 = arith.constant -8 : i32
    %57 = arith.addi %56, %c-8_i32 : i32
    %58 = arith.index_cast %57 : i32 to index
    %c0_36 = arith.constant 0 : index
    %c4 = arith.constant 4 : index
    %59 = vector.load %arg12[%58, %c0_36, %c4] : memref<40x32x40xbf16, #tpu.memory_space<vmem>>, vector<1x32x16xbf16>
    %60 = vector.shape_cast %59 : vector<1x32x16xbf16> to vector<32x16xbf16>
    %61 = arith.index_cast %57 : i32 to index
    %c0_37 = arith.constant 0 : index
    %c12_38 = arith.constant 12 : index
    %62 = vector.load %arg12[%61, %c0_37, %c12_38] : memref<40x32x40xbf16, #tpu.memory_space<vmem>>, vector<1x32x16xbf16>
    %63 = vector.shape_cast %62 : vector<1x32x16xbf16> to vector<32x16xbf16>
    %64 = arith.index_cast %57 : i32 to index
    %c0_39 = arith.constant 0 : index
    %c20 = arith.constant 20 : index
    %65 = vector.load %arg12[%64, %c0_39, %c20] : memref<40x32x40xbf16, #tpu.memory_space<vmem>>, vector<1x32x16xbf16>
    %66 = vector.shape_cast %65 : vector<1x32x16xbf16> to vector<32x16xbf16>
    %c12_i32_40 = arith.constant 12 : i32
    %67 = arith.addi %c12_i32_40, %10 : i32
    %c0_i32_41 = arith.constant 0 : i32
    %68 = arith.addi %67, %c0_i32_41 : i32
    %69 = arith.index_cast %68 : i32 to index
    %c0_42 = arith.constant 0 : index
    %c4_43 = arith.constant 4 : index
    %70 = vector.load %arg12[%69, %c0_42, %c4_43] : memref<40x32x40xbf16, #tpu.memory_space<vmem>>, vector<1x32x16xbf16>
    %71 = vector.shape_cast %70 : vector<1x32x16xbf16> to vector<32x16xbf16>
    %72 = arith.index_cast %68 : i32 to index
    %c0_44 = arith.constant 0 : index
    %c12_45 = arith.constant 12 : index
    %73 = vector.load %arg12[%72, %c0_44, %c12_45] : memref<40x32x40xbf16, #tpu.memory_space<vmem>>, vector<1x32x16xbf16>
    %74 = vector.shape_cast %73 : vector<1x32x16xbf16> to vector<32x16xbf16>
    %75 = arith.index_cast %68 : i32 to index
    %c0_46 = arith.constant 0 : index
    %c20_47 = arith.constant 20 : index
    %76 = vector.load %arg12[%75, %c0_46, %c20_47] : memref<40x32x40xbf16, #tpu.memory_space<vmem>>, vector<1x32x16xbf16>
    %77 = vector.shape_cast %76 : vector<1x32x16xbf16> to vector<32x16xbf16>
    %c12_i32_48 = arith.constant 12 : i32
    %78 = arith.addi %c12_i32_48, %10 : i32
    %c8_i32_49 = arith.constant 8 : i32
    %79 = arith.addi %78, %c8_i32_49 : i32
    %80 = arith.index_cast %79 : i32 to index
    %c0_50 = arith.constant 0 : index
    %c4_51 = arith.constant 4 : index
    %81 = vector.load %arg12[%80, %c0_50, %c4_51] : memref<40x32x40xbf16, #tpu.memory_space<vmem>>, vector<1x32x16xbf16>
    %82 = vector.shape_cast %81 : vector<1x32x16xbf16> to vector<32x16xbf16>
    %83 = arith.index_cast %79 : i32 to index
    %c0_52 = arith.constant 0 : index
    %c12_53 = arith.constant 12 : index
    %84 = vector.load %arg12[%83, %c0_52, %c12_53] : memref<40x32x40xbf16, #tpu.memory_space<vmem>>, vector<1x32x16xbf16>
    %85 = vector.shape_cast %84 : vector<1x32x16xbf16> to vector<32x16xbf16>
    %86 = arith.index_cast %79 : i32 to index
    %c0_54 = arith.constant 0 : index
    %c20_55 = arith.constant 20 : index
    %87 = vector.load %arg12[%86, %c0_54, %c20_55] : memref<40x32x40xbf16, #tpu.memory_space<vmem>>, vector<1x32x16xbf16>
    %88 = vector.shape_cast %87 : vector<1x32x16xbf16> to vector<32x16xbf16>
    %89 = tpu.concatenate %60, %63, %66, %71, %74, %77, %82, %85, %88 in 0 : vector<32x16xbf16>, vector<32x16xbf16>, vector<32x16xbf16>, vector<32x16xbf16>, vector<32x16xbf16>, vector<32x16xbf16>, vector<32x16xbf16>, vector<32x16xbf16>, vector<32x16xbf16> -> vector<288x16xbf16>
    %cst_56 = arith.constant dense<0.000000e+00> : vector<32x16xf32>
    %90 = tpu.matmul %5, %89, %cst_56 {dimension_numbers = #tpu.dot_dimension_numbers<[1], [0], [0], [1], [0, 0, 1, 1], [], []>} : vector<32x288xbf16>, vector<288x16xbf16>, vector<32x16xf32> -> vector<32x16xf32>
    %91 = vector.broadcast %6 : vector<32x1xf32> to vector<32x16xf32>
    %92 = arith.addf %90, %91 : vector<32x16xf32>
    %cst_57 = arith.constant 0.000000e+00 : f32
    %93 = vector.broadcast %cst_57 : f32 to vector<32x16xf32>
    %94 = arith.maximumf %92, %93 : vector<32x16xf32>
    %95 = arith.addf %55, %94 : vector<32x16xf32>
    %c12_i32_58 = arith.constant 12 : i32
    %96 = arith.addi %c12_i32_58, %10 : i32
    %c-12_i32 = arith.constant -12 : i32
    %97 = arith.addi %96, %c-12_i32 : i32
    %98 = arith.index_cast %97 : i32 to index
    %c0_59 = arith.constant 0 : index
    %c0_60 = arith.constant 0 : index
    %99 = vector.load %arg12[%98, %c0_59, %c0_60] : memref<40x32x40xbf16, #tpu.memory_space<vmem>>, vector<1x32x16xbf16>
    %100 = vector.shape_cast %99 : vector<1x32x16xbf16> to vector<32x16xbf16>
    %101 = arith.index_cast %97 : i32 to index
    %c0_61 = arith.constant 0 : index
    %c12_62 = arith.constant 12 : index
    %102 = vector.load %arg12[%101, %c0_61, %c12_62] : memref<40x32x40xbf16, #tpu.memory_space<vmem>>, vector<1x32x16xbf16>
    %103 = vector.shape_cast %102 : vector<1x32x16xbf16> to vector<32x16xbf16>
    %104 = arith.index_cast %97 : i32 to index
    %c0_63 = arith.constant 0 : index
    %c24 = arith.constant 24 : index
    %105 = vector.load %arg12[%104, %c0_63, %c24] : memref<40x32x40xbf16, #tpu.memory_space<vmem>>, vector<1x32x16xbf16>
    %106 = vector.shape_cast %105 : vector<1x32x16xbf16> to vector<32x16xbf16>
    %c12_i32_64 = arith.constant 12 : i32
    %107 = arith.addi %c12_i32_64, %10 : i32
    %c0_i32_65 = arith.constant 0 : i32
    %108 = arith.addi %107, %c0_i32_65 : i32
    %109 = arith.index_cast %108 : i32 to index
    %c0_66 = arith.constant 0 : index
    %c0_67 = arith.constant 0 : index
    %110 = vector.load %arg12[%109, %c0_66, %c0_67] : memref<40x32x40xbf16, #tpu.memory_space<vmem>>, vector<1x32x16xbf16>
    %111 = vector.shape_cast %110 : vector<1x32x16xbf16> to vector<32x16xbf16>
    %112 = arith.index_cast %108 : i32 to index
    %c0_68 = arith.constant 0 : index
    %c12_69 = arith.constant 12 : index
    %113 = vector.load %arg12[%112, %c0_68, %c12_69] : memref<40x32x40xbf16, #tpu.memory_space<vmem>>, vector<1x32x16xbf16>
    %114 = vector.shape_cast %113 : vector<1x32x16xbf16> to vector<32x16xbf16>
    %115 = arith.index_cast %108 : i32 to index
    %c0_70 = arith.constant 0 : index
    %c24_71 = arith.constant 24 : index
    %116 = vector.load %arg12[%115, %c0_70, %c24_71] : memref<40x32x40xbf16, #tpu.memory_space<vmem>>, vector<1x32x16xbf16>
    %117 = vector.shape_cast %116 : vector<1x32x16xbf16> to vector<32x16xbf16>
    %c12_i32_72 = arith.constant 12 : i32
    %118 = arith.addi %c12_i32_72, %10 : i32
    %c12_i32_73 = arith.constant 12 : i32
    %119 = arith.addi %118, %c12_i32_73 : i32
    %120 = arith.index_cast %119 : i32 to index
    %c0_74 = arith.constant 0 : index
    %c0_75 = arith.constant 0 : index
    %121 = vector.load %arg12[%120, %c0_74, %c0_75] : memref<40x32x40xbf16, #tpu.memory_space<vmem>>, vector<1x32x16xbf16>
    %122 = vector.shape_cast %121 : vector<1x32x16xbf16> to vector<32x16xbf16>
    %123 = arith.index_cast %119 : i32 to index
    %c0_76 = arith.constant 0 : index
    %c12_77 = arith.constant 12 : index
    %124 = vector.load %arg12[%123, %c0_76, %c12_77] : memref<40x32x40xbf16, #tpu.memory_space<vmem>>, vector<1x32x16xbf16>
    %125 = vector.shape_cast %124 : vector<1x32x16xbf16> to vector<32x16xbf16>
    %126 = arith.index_cast %119 : i32 to index
    %c0_78 = arith.constant 0 : index
    %c24_79 = arith.constant 24 : index
    %127 = vector.load %arg12[%126, %c0_78, %c24_79] : memref<40x32x40xbf16, #tpu.memory_space<vmem>>, vector<1x32x16xbf16>
    %128 = vector.shape_cast %127 : vector<1x32x16xbf16> to vector<32x16xbf16>
    %129 = tpu.concatenate %100, %103, %106, %111, %114, %117, %122, %125, %128 in 0 : vector<32x16xbf16>, vector<32x16xbf16>, vector<32x16xbf16>, vector<32x16xbf16>, vector<32x16xbf16>, vector<32x16xbf16>, vector<32x16xbf16>, vector<32x16xbf16>, vector<32x16xbf16> -> vector<288x16xbf16>
    %cst_80 = arith.constant dense<0.000000e+00> : vector<32x16xf32>
    %130 = tpu.matmul %7, %129, %cst_80 {dimension_numbers = #tpu.dot_dimension_numbers<[1], [0], [0], [1], [0, 0, 1, 1], [], []>} : vector<32x288xbf16>, vector<288x16xbf16>, vector<32x16xf32> -> vector<32x16xf32>
    %131 = vector.broadcast %8 : vector<32x1xf32> to vector<32x16xf32>
    %132 = arith.addf %130, %131 : vector<32x16xf32>
    %cst_81 = arith.constant 0.000000e+00 : f32
    %133 = vector.broadcast %cst_81 : f32 to vector<32x16xf32>
    %134 = arith.maximumf %132, %133 : vector<32x16xf32>
    %135 = arith.addf %95, %134 : vector<32x16xf32>
    %c0_82 = arith.constant 0 : index
    %c0_83 = arith.constant 0 : index
    %c0_84 = arith.constant 0 : index
    %c0_85 = arith.constant 0 : index
    %136 = vector.load %arg11[%c0_82, %c0_83, %c0_84, %c0_85] : memref<1x32x8x16xf32, #tpu.memory_space<vmem>>, vector<1x32x1x16xf32>
    %137 = vector.shape_cast %136 : vector<1x32x1x16xf32> to vector<32x16xf32>
    %138 = vector.shape_cast %135 : vector<32x16xf32> to vector<1x32x1x16xf32>
    tpu.vector_store %arg11[%c0_82, %c0_83, %c0_84, %c0_85], %138 {strides = array<i32>} : memref<1x32x8x16xf32, #tpu.memory_space<vmem>>, vector<1x32x1x16xf32>,
    %c8_i32_86 = arith.constant 8 : i32
    %139 = arith.muli %arg1, %c8_i32_86 : i32
    %c1_i32 = arith.constant 1 : i32
    %140 = arith.addi %139, %c1_i32 : i32
    %c12_i32_87 = arith.constant 12 : i32
    %141 = arith.addi %c12_i32_87, %140 : i32
    %142 = arith.index_cast %141 : i32 to index
    %c0_88 = arith.constant 0 : index
    %c12_89 = arith.constant 12 : index
    %143 = vector.load %arg12[%142, %c0_88, %c12_89] : memref<40x32x40xbf16, #tpu.memory_space<vmem>>, vector<1x32x16xbf16>
    %144 = vector.shape_cast %143 : vector<1x32x16xbf16> to vector<32x16xbf16>
    %145 = arith.extf %144 : vector<32x16xbf16> to vector<32x16xf32>
    %c12_i32_90 = arith.constant 12 : i32
    %146 = arith.addi %c12_i32_90, %140 : i32
    %c-4_i32_91 = arith.constant -4 : i32
    %147 = arith.addi %146, %c-4_i32_91 : i32
    %148 = arith.index_cast %147 : i32 to index
    %c0_92 = arith.constant 0 : index
    %c8_93 = arith.constant 8 : index
    %149 = vector.load %arg12[%148, %c0_92, %c8_93] : memref<40x32x40xbf16, #tpu.memory_space<vmem>>, vector<1x32x16xbf16>
    %150 = vector.shape_cast %149 : vector<1x32x16xbf16> to vector<32x16xbf16>
    %151 = arith.index_cast %147 : i32 to index
    %c0_94 = arith.constant 0 : index
    %c12_95 = arith.constant 12 : index
    %152 = vector.load %arg12[%151, %c0_94, %c12_95] : memref<40x32x40xbf16, #tpu.memory_space<vmem>>, vector<1x32x16xbf16>
    %153 = vector.shape_cast %152 : vector<1x32x16xbf16> to vector<32x16xbf16>
    %154 = arith.index_cast %147 : i32 to index
    %c0_96 = arith.constant 0 : index
    %c16_97 = arith.constant 16 : index
    %155 = vector.load %arg12[%154, %c0_96, %c16_97] : memref<40x32x40xbf16, #tpu.memory_space<vmem>>, vector<1x32x16xbf16>
    %156 = vector.shape_cast %155 : vector<1x32x16xbf16> to vector<32x16xbf16>
    %c12_i32_98 = arith.constant 12 : i32
    %157 = arith.addi %c12_i32_98, %140 : i32
    %c0_i32_99 = arith.constant 0 : i32
    %158 = arith.addi %157, %c0_i32_99 : i32
    %159 = arith.index_cast %158 : i32 to index
    %c0_100 = arith.constant 0 : index
    %c8_101 = arith.constant 8 : index
    %160 = vector.load %arg12[%159, %c0_100, %c8_101] : memref<40x32x40xbf16, #tpu.memory_space<vmem>>, vector<1x32x16xbf16>
    %161 = vector.shape_cast %160 : vector<1x32x16xbf16> to vector<32x16xbf16>
    %162 = arith.index_cast %158 : i32 to index
    %c0_102 = arith.constant 0 : index
    %c12_103 = arith.constant 12 : index
    %163 = vector.load %arg12[%162, %c0_102, %c12_103] : memref<40x32x40xbf16, #tpu.memory_space<vmem>>, vector<1x32x16xbf16>
    %164 = vector.shape_cast %163 : vector<1x32x16xbf16> to vector<32x16xbf16>
    %165 = arith.index_cast %158 : i32 to index
    %c0_104 = arith.constant 0 : index
    %c16_105 = arith.constant 16 : index
    %166 = vector.load %arg12[%165, %c0_104, %c16_105] : memref<40x32x40xbf16, #tpu.memory_space<vmem>>, vector<1x32x16xbf16>
    %167 = vector.shape_cast %166 : vector<1x32x16xbf16> to vector<32x16xbf16>
    %c12_i32_106 = arith.constant 12 : i32
    %168 = arith.addi %c12_i32_106, %140 : i32
    %c4_i32_107 = arith.constant 4 : i32
    %169 = arith.addi %168, %c4_i32_107 : i32
    %170 = arith.index_cast %169 : i32 to index
    %c0_108 = arith.constant 0 : index
    %c8_109 = arith.constant 8 : index
    %171 = vector.load %arg12[%170, %c0_108, %c8_109] : memref<40x32x40xbf16, #tpu.memory_space<vmem>>, vector<1x32x16xbf16>
    %172 = vector.shape_cast %171 : vector<1x32x16xbf16> to vector<32x16xbf16>
    %173 = arith.index_cast %169 : i32 to index
    %c0_110 = arith.constant 0 : index
    %c12_111 = arith.constant 12 : index
    %174 = vector.load %arg12[%173, %c0_110, %c12_111] : memref<40x32x40xbf16, #tpu.memory_space<vmem>>, vector<1x32x16xbf16>
    %175 = vector.shape_cast %174 : vector<1x32x16xbf16> to vector<32x16xbf16>
    %176 = arith.index_cast %169 : i32 to index
    %c0_112 = arith.constant 0 : index
    %c16_113 = arith.constant 16 : index
    %177 = vector.load %arg12[%176, %c0_112, %c16_113] : memref<40x32x40xbf16, #tpu.memory_space<vmem>>, vector<1x32x16xbf16>
    %178 = vector.shape_cast %177 : vector<1x32x16xbf16> to vector<32x16xbf16>
    %179 = tpu.concatenate %150, %153, %156, %161, %164, %167, %172, %175, %178 in 0 : vector<32x16xbf16>, vector<32x16xbf16>, vector<32x16xbf16>, vector<32x16xbf16>, vector<32x16xbf16>, vector<32x16xbf16>, vector<32x16xbf16>, vector<32x16xbf16>, vector<32x16xbf16> -> vector<288x16xbf16>
    %cst_114 = arith.constant dense<0.000000e+00> : vector<32x16xf32>
    %180 = tpu.matmul %3, %179, %cst_114 {dimension_numbers = #tpu.dot_dimension_numbers<[1], [0], [0], [1], [0, 0, 1, 1], [], []>} : vector<32x288xbf16>, vector<288x16xbf16>, vector<32x16xf32> -> vector<32x16xf32>
    %181 = vector.broadcast %4 : vector<32x1xf32> to vector<32x16xf32>
    %182 = arith.addf %180, %181 : vector<32x16xf32>
    %cst_115 = arith.constant 0.000000e+00 : f32
    %183 = vector.broadcast %cst_115 : f32 to vector<32x16xf32>
    %184 = arith.maximumf %182, %183 : vector<32x16xf32>
    %185 = arith.addf %145, %184 : vector<32x16xf32>
    %c12_i32_116 = arith.constant 12 : i32
    %186 = arith.addi %c12_i32_116, %140 : i32
    %c-8_i32_117 = arith.constant -8 : i32
    %187 = arith.addi %186, %c-8_i32_117 : i32
    %188 = arith.index_cast %187 : i32 to index
    %c0_118 = arith.constant 0 : index
    %c4_119 = arith.constant 4 : index
    %189 = vector.load %arg12[%188, %c0_118, %c4_119] : memref<40x32x40xbf16, #tpu.memory_space<vmem>>, vector<1x32x16xbf16>
    %190 = vector.shape_cast %189 : vector<1x32x16xbf16> to vector<32x16xbf16>
    %191 = arith.index_cast %187 : i32 to index
    %c0_120 = arith.constant 0 : index
    %c12_121 = arith.constant 12 : index
    %192 = vector.load %arg12[%191, %c0_120, %c12_121] : memref<40x32x40xbf16, #tpu.memory_space<vmem>>, vector<1x32x16xbf16>
    %193 = vector.shape_cast %192 : vector<1x32x16xbf16> to vector<32x16xbf16>
    %194 = arith.index_cast %187 : i32 to index
    %c0_122 = arith.constant 0 : index
    %c20_123 = arith.constant 20 : index
    %195 = vector.load %arg12[%194, %c0_122, %c20_123] : memref<40x32x40xbf16, #tpu.memory_space<vmem>>, vector<1x32x16xbf16>
    %196 = vector.shape_cast %195 : vector<1x32x16xbf16> to vector<32x16xbf16>
    %c12_i32_124 = arith.constant 12 : i32
    %197 = arith.addi %c12_i32_124, %140 : i32
    %c0_i32_125 = arith.constant 0 : i32
    %198 = arith.addi %197, %c0_i32_125 : i32
    %199 = arith.index_cast %198 : i32 to index
    %c0_126 = arith.constant 0 : index
    %c4_127 = arith.constant 4 : index
    %200 = vector.load %arg12[%199, %c0_126, %c4_127] : memref<40x32x40xbf16, #tpu.memory_space<vmem>>, vector<1x32x16xbf16>
    %201 = vector.shape_cast %200 : vector<1x32x16xbf16> to vector<32x16xbf16>
    %202 = arith.index_cast %198 : i32 to index
    %c0_128 = arith.constant 0 : index
    %c12_129 = arith.constant 12 : index
    %203 = vector.load %arg12[%202, %c0_128, %c12_129] : memref<40x32x40xbf16, #tpu.memory_space<vmem>>, vector<1x32x16xbf16>
    %204 = vector.shape_cast %203 : vector<1x32x16xbf16> to vector<32x16xbf16>
    %205 = arith.index_cast %198 : i32 to index
    %c0_130 = arith.constant 0 : index
    %c20_131 = arith.constant 20 : index
    %206 = vector.load %arg12[%205, %c0_130, %c20_131] : memref<40x32x40xbf16, #tpu.memory_space<vmem>>, vector<1x32x16xbf16>
    %207 = vector.shape_cast %206 : vector<1x32x16xbf16> to vector<32x16xbf16>
    %c12_i32_132 = arith.constant 12 : i32
    %208 = arith.addi %c12_i32_132, %140 : i32
    %c8_i32_133 = arith.constant 8 : i32
    %209 = arith.addi %208, %c8_i32_133 : i32
    %210 = arith.index_cast %209 : i32 to index
    %c0_134 = arith.constant 0 : index
    %c4_135 = arith.constant 4 : index
    %211 = vector.load %arg12[%210, %c0_134, %c4_135] : memref<40x32x40xbf16, #tpu.memory_space<vmem>>, vector<1x32x16xbf16>
    %212 = vector.shape_cast %211 : vector<1x32x16xbf16> to vector<32x16xbf16>
    %213 = arith.index_cast %209 : i32 to index
    %c0_136 = arith.constant 0 : index
    %c12_137 = arith.constant 12 : index
    %214 = vector.load %arg12[%213, %c0_136, %c12_137] : memref<40x32x40xbf16, #tpu.memory_space<vmem>>, vector<1x32x16xbf16>
    %215 = vector.shape_cast %214 : vector<1x32x16xbf16> to vector<32x16xbf16>
    %216 = arith.index_cast %209 : i32 to index
    %c0_138 = arith.constant 0 : index
    %c20_139 = arith.constant 20 : index
    %217 = vector.load %arg12[%216, %c0_138, %c20_139] : memref<40x32x40xbf16, #tpu.memory_space<vmem>>, vector<1x32x16xbf16>
    %218 = vector.shape_cast %217 : vector<1x32x16xbf16> to vector<32x16xbf16>
    %219 = tpu.concatenate %190, %193, %196, %201, %204, %207, %212, %215, %218 in 0 : vector<32x16xbf16>, vector<32x16xbf16>, vector<32x16xbf16>, vector<32x16xbf16>, vector<32x16xbf16>, vector<32x16xbf16>, vector<32x16xbf16>, vector<32x16xbf16>, vector<32x16xbf16> -> vector<288x16xbf16>
    %cst_140 = arith.constant dense<0.000000e+00> : vector<32x16xf32>
    %220 = tpu.matmul %5, %219, %cst_140 {dimension_numbers = #tpu.dot_dimension_numbers<[1], [0], [0], [1], [0, 0, 1, 1], [], []>} : vector<32x288xbf16>, vector<288x16xbf16>, vector<32x16xf32> -> vector<32x16xf32>
    %221 = vector.broadcast %6 : vector<32x1xf32> to vector<32x16xf32>
    %222 = arith.addf %220, %221 : vector<32x16xf32>
    %cst_141 = arith.constant 0.000000e+00 : f32
    %223 = vector.broadcast %cst_141 : f32 to vector<32x16xf32>
    %224 = arith.maximumf %222, %223 : vector<32x16xf32>
    %225 = arith.addf %185, %224 : vector<32x16xf32>
    %c12_i32_142 = arith.constant 12 : i32
    %226 = arith.addi %c12_i32_142, %140 : i32
    %c-12_i32_143 = arith.constant -12 : i32
    %227 = arith.addi %226, %c-12_i32_143 : i32
    %228 = arith.index_cast %227 : i32 to index
    %c0_144 = arith.constant 0 : index
    %c0_145 = arith.constant 0 : index
    %229 = vector.load %arg12[%228, %c0_144, %c0_145] : memref<40x32x40xbf16, #tpu.memory_space<vmem>>, vector<1x32x16xbf16>
    %230 = vector.shape_cast %229 : vector<1x32x16xbf16> to vector<32x16xbf16>
    %231 = arith.index_cast %227 : i32 to index
    %c0_146 = arith.constant 0 : index
    %c12_147 = arith.constant 12 : index
    %232 = vector.load %arg12[%231, %c0_146, %c12_147] : memref<40x32x40xbf16, #tpu.memory_space<vmem>>, vector<1x32x16xbf16>
    %233 = vector.shape_cast %232 : vector<1x32x16xbf16> to vector<32x16xbf16>
    %234 = arith.index_cast %227 : i32 to index
    %c0_148 = arith.constant 0 : index
    %c24_149 = arith.constant 24 : index
    %235 = vector.load %arg12[%234, %c0_148, %c24_149] : memref<40x32x40xbf16, #tpu.memory_space<vmem>>, vector<1x32x16xbf16>
    %236 = vector.shape_cast %235 : vector<1x32x16xbf16> to vector<32x16xbf16>
    %c12_i32_150 = arith.constant 12 : i32
    %237 = arith.addi %c12_i32_150, %140 : i32
    %c0_i32_151 = arith.constant 0 : i32
    %238 = arith.addi %237, %c0_i32_151 : i32
    %239 = arith.index_cast %238 : i32 to index
    %c0_152 = arith.constant 0 : index
    %c0_153 = arith.constant 0 : index
    %240 = vector.load %arg12[%239, %c0_152, %c0_153] : memref<40x32x40xbf16, #tpu.memory_space<vmem>>, vector<1x32x16xbf16>
    %241 = vector.shape_cast %240 : vector<1x32x16xbf16> to vector<32x16xbf16>
    %242 = arith.index_cast %238 : i32 to index
    %c0_154 = arith.constant 0 : index
    %c12_155 = arith.constant 12 : index
    %243 = vector.load %arg12[%242, %c0_154, %c12_155] : memref<40x32x40xbf16, #tpu.memory_space<vmem>>, vector<1x32x16xbf16>
    %244 = vector.shape_cast %243 : vector<1x32x16xbf16> to vector<32x16xbf16>
    %245 = arith.index_cast %238 : i32 to index
    %c0_156 = arith.constant 0 : index
    %c24_157 = arith.constant 24 : index
    %246 = vector.load %arg12[%245, %c0_156, %c24_157] : memref<40x32x40xbf16, #tpu.memory_space<vmem>>, vector<1x32x16xbf16>
    %247 = vector.shape_cast %246 : vector<1x32x16xbf16> to vector<32x16xbf16>
    %c12_i32_158 = arith.constant 12 : i32
    %248 = arith.addi %c12_i32_158, %140 : i32
    %c12_i32_159 = arith.constant 12 : i32
    %249 = arith.addi %248, %c12_i32_159 : i32
    %250 = arith.index_cast %249 : i32 to index
    %c0_160 = arith.constant 0 : index
    %c0_161 = arith.constant 0 : index
    %251 = vector.load %arg12[%250, %c0_160, %c0_161] : memref<40x32x40xbf16, #tpu.memory_space<vmem>>, vector<1x32x16xbf16>
    %252 = vector.shape_cast %251 : vector<1x32x16xbf16> to vector<32x16xbf16>
    %253 = arith.index_cast %249 : i32 to index
    %c0_162 = arith.constant 0 : index
    %c12_163 = arith.constant 12 : index
    %254 = vector.load %arg12[%253, %c0_162, %c12_163] : memref<40x32x40xbf16, #tpu.memory_space<vmem>>, vector<1x32x16xbf16>
    %255 = vector.shape_cast %254 : vector<1x32x16xbf16> to vector<32x16xbf16>
    %256 = arith.index_cast %249 : i32 to index
    %c0_164 = arith.constant 0 : index
    %c24_165 = arith.constant 24 : index
    %257 = vector.load %arg12[%256, %c0_164, %c24_165] : memref<40x32x40xbf16, #tpu.memory_space<vmem>>, vector<1x32x16xbf16>
    %258 = vector.shape_cast %257 : vector<1x32x16xbf16> to vector<32x16xbf16>
    %259 = tpu.concatenate %230, %233, %236, %241, %244, %247, %252, %255, %258 in 0 : vector<32x16xbf16>, vector<32x16xbf16>, vector<32x16xbf16>, vector<32x16xbf16>, vector<32x16xbf16>, vector<32x16xbf16>, vector<32x16xbf16>, vector<32x16xbf16>, vector<32x16xbf16> -> vector<288x16xbf16>
    %cst_166 = arith.constant dense<0.000000e+00> : vector<32x16xf32>
    %260 = tpu.matmul %7, %259, %cst_166 {dimension_numbers = #tpu.dot_dimension_numbers<[1], [0], [0], [1], [0, 0, 1, 1], [], []>} : vector<32x288xbf16>, vector<288x16xbf16>, vector<32x16xf32> -> vector<32x16xf32>
    %261 = vector.broadcast %8 : vector<32x1xf32> to vector<32x16xf32>
    %262 = arith.addf %260, %261 : vector<32x16xf32>
    %cst_167 = arith.constant 0.000000e+00 : f32
    %263 = vector.broadcast %cst_167 : f32 to vector<32x16xf32>
    %264 = arith.maximumf %262, %263 : vector<32x16xf32>
    %265 = arith.addf %225, %264 : vector<32x16xf32>
    %c0_168 = arith.constant 0 : index
    %c0_169 = arith.constant 0 : index
    %c1 = arith.constant 1 : index
    %c0_170 = arith.constant 0 : index
    %266 = vector.load %arg11[%c0_168, %c0_169, %c1, %c0_170] : memref<1x32x8x16xf32, #tpu.memory_space<vmem>>, vector<1x32x1x16xf32>
    %267 = vector.shape_cast %266 : vector<1x32x1x16xf32> to vector<32x16xf32>
    %268 = vector.shape_cast %265 : vector<32x16xf32> to vector<1x32x1x16xf32>
    tpu.vector_store %arg11[%c0_168, %c0_169, %c1, %c0_170], %268 {strides = array<i32>} : memref<1x32x8x16xf32, #tpu.memory_space<vmem>>, vector<1x32x1x16xf32>,
    %c8_i32_171 = arith.constant 8 : i32
    %269 = arith.muli %arg1, %c8_i32_171 : i32
    %c2_i32 = arith.constant 2 : i32
    %270 = arith.addi %269, %c2_i32 : i32
    %c12_i32_172 = arith.constant 12 : i32
    %271 = arith.addi %c12_i32_172, %270 : i32
    %272 = arith.index_cast %271 : i32 to index
    %c0_173 = arith.constant 0 : index
    %c12_174 = arith.constant 12 : index
    %273 = vector.load %arg12[%272, %c0_173, %c12_174] : memref<40x32x40xbf16, #tpu.memory_space<vmem>>, vector<1x32x16xbf16>
    %274 = vector.shape_cast %273 : vector<1x32x16xbf16> to vector<32x16xbf16>
    %275 = arith.extf %274 : vector<32x16xbf16> to vector<32x16xf32>
    %c12_i32_175 = arith.constant 12 : i32
    %276 = arith.addi %c12_i32_175, %270 : i32
    %c-4_i32_176 = arith.constant -4 : i32
    %277 = arith.addi %276, %c-4_i32_176 : i32
    %278 = arith.index_cast %277 : i32 to index
    %c0_177 = arith.constant 0 : index
    %c8_178 = arith.constant 8 : index
    %279 = vector.load %arg12[%278, %c0_177, %c8_178] : memref<40x32x40xbf16, #tpu.memory_space<vmem>>, vector<1x32x16xbf16>
    %280 = vector.shape_cast %279 : vector<1x32x16xbf16> to vector<32x16xbf16>
    %281 = arith.index_cast %277 : i32 to index
    %c0_179 = arith.constant 0 : index
    %c12_180 = arith.constant 12 : index
    %282 = vector.load %arg12[%281, %c0_179, %c12_180] : memref<40x32x40xbf16, #tpu.memory_space<vmem>>, vector<1x32x16xbf16>
    %283 = vector.shape_cast %282 : vector<1x32x16xbf16> to vector<32x16xbf16>
    %284 = arith.index_cast %277 : i32 to index
    %c0_181 = arith.constant 0 : index
    %c16_182 = arith.constant 16 : index
    %285 = vector.load %arg12[%284, %c0_181, %c16_182] : memref<40x32x40xbf16, #tpu.memory_space<vmem>>, vector<1x32x16xbf16>
    %286 = vector.shape_cast %285 : vector<1x32x16xbf16> to vector<32x16xbf16>
    %c12_i32_183 = arith.constant 12 : i32
    %287 = arith.addi %c12_i32_183, %270 : i32
    %c0_i32_184 = arith.constant 0 : i32
    %288 = arith.addi %287, %c0_i32_184 : i32
    %289 = arith.index_cast %288 : i32 to index
    %c0_185 = arith.constant 0 : index
    %c8_186 = arith.constant 8 : index
    %290 = vector.load %arg12[%289, %c0_185, %c8_186] : memref<40x32x40xbf16, #tpu.memory_space<vmem>>, vector<1x32x16xbf16>
    %291 = vector.shape_cast %290 : vector<1x32x16xbf16> to vector<32x16xbf16>
    %292 = arith.index_cast %288 : i32 to index
    %c0_187 = arith.constant 0 : index
    %c12_188 = arith.constant 12 : index
    %293 = vector.load %arg12[%292, %c0_187, %c12_188] : memref<40x32x40xbf16, #tpu.memory_space<vmem>>, vector<1x32x16xbf16>
    %294 = vector.shape_cast %293 : vector<1x32x16xbf16> to vector<32x16xbf16>
    %295 = arith.index_cast %288 : i32 to index
    %c0_189 = arith.constant 0 : index
    %c16_190 = arith.constant 16 : index
    %296 = vector.load %arg12[%295, %c0_189, %c16_190] : memref<40x32x40xbf16, #tpu.memory_space<vmem>>, vector<1x32x16xbf16>
    %297 = vector.shape_cast %296 : vector<1x32x16xbf16> to vector<32x16xbf16>
    %c12_i32_191 = arith.constant 12 : i32
    %298 = arith.addi %c12_i32_191, %270 : i32
    %c4_i32_192 = arith.constant 4 : i32
    %299 = arith.addi %298, %c4_i32_192 : i32
    %300 = arith.index_cast %299 : i32 to index
    %c0_193 = arith.constant 0 : index
    %c8_194 = arith.constant 8 : index
    %301 = vector.load %arg12[%300, %c0_193, %c8_194] : memref<40x32x40xbf16, #tpu.memory_space<vmem>>, vector<1x32x16xbf16>
    %302 = vector.shape_cast %301 : vector<1x32x16xbf16> to vector<32x16xbf16>
    %303 = arith.index_cast %299 : i32 to index
    %c0_195 = arith.constant 0 : index
    %c12_196 = arith.constant 12 : index
    %304 = vector.load %arg12[%303, %c0_195, %c12_196] : memref<40x32x40xbf16, #tpu.memory_space<vmem>>, vector<1x32x16xbf16>
    %305 = vector.shape_cast %304 : vector<1x32x16xbf16> to vector<32x16xbf16>
    %306 = arith.index_cast %299 : i32 to index
    %c0_197 = arith.constant 0 : index
    %c16_198 = arith.constant 16 : index
    %307 = vector.load %arg12[%306, %c0_197, %c16_198] : memref<40x32x40xbf16, #tpu.memory_space<vmem>>, vector<1x32x16xbf16>
    %308 = vector.shape_cast %307 : vector<1x32x16xbf16> to vector<32x16xbf16>
    %309 = tpu.concatenate %280, %283, %286, %291, %294, %297, %302, %305, %308 in 0 : vector<32x16xbf16>, vector<32x16xbf16>, vector<32x16xbf16>, vector<32x16xbf16>, vector<32x16xbf16>, vector<32x16xbf16>, vector<32x16xbf16>, vector<32x16xbf16>, vector<32x16xbf16> -> vector<288x16xbf16>
    %cst_199 = arith.constant dense<0.000000e+00> : vector<32x16xf32>
    %310 = tpu.matmul %3, %309, %cst_199 {dimension_numbers = #tpu.dot_dimension_numbers<[1], [0], [0], [1], [0, 0, 1, 1], [], []>} : vector<32x288xbf16>, vector<288x16xbf16>, vector<32x16xf32> -> vector<32x16xf32>
    %311 = vector.broadcast %4 : vector<32x1xf32> to vector<32x16xf32>
    %312 = arith.addf %310, %311 : vector<32x16xf32>
    %cst_200 = arith.constant 0.000000e+00 : f32
    %313 = vector.broadcast %cst_200 : f32 to vector<32x16xf32>
    %314 = arith.maximumf %312, %313 : vector<32x16xf32>
    %315 = arith.addf %275, %314 : vector<32x16xf32>
    %c12_i32_201 = arith.constant 12 : i32
    %316 = arith.addi %c12_i32_201, %270 : i32
    %c-8_i32_202 = arith.constant -8 : i32
    %317 = arith.addi %316, %c-8_i32_202 : i32
    %318 = arith.index_cast %317 : i32 to index
    %c0_203 = arith.constant 0 : index
    %c4_204 = arith.constant 4 : index
    %319 = vector.load %arg12[%318, %c0_203, %c4_204] : memref<40x32x40xbf16, #tpu.memory_space<vmem>>, vector<1x32x16xbf16>
    %320 = vector.shape_cast %319 : vector<1x32x16xbf16> to vector<32x16xbf16>
    %321 = arith.index_cast %317 : i32 to index
    %c0_205 = arith.constant 0 : index
    %c12_206 = arith.constant 12 : index
    %322 = vector.load %arg12[%321, %c0_205, %c12_206] : memref<40x32x40xbf16, #tpu.memory_space<vmem>>, vector<1x32x16xbf16>
    %323 = vector.shape_cast %322 : vector<1x32x16xbf16> to vector<32x16xbf16>
    %324 = arith.index_cast %317 : i32 to index
    %c0_207 = arith.constant 0 : index
    %c20_208 = arith.constant 20 : index
    %325 = vector.load %arg12[%324, %c0_207, %c20_208] : memref<40x32x40xbf16, #tpu.memory_space<vmem>>, vector<1x32x16xbf16>
    %326 = vector.shape_cast %325 : vector<1x32x16xbf16> to vector<32x16xbf16>
    %c12_i32_209 = arith.constant 12 : i32
    %327 = arith.addi %c12_i32_209, %270 : i32
    %c0_i32_210 = arith.constant 0 : i32
    %328 = arith.addi %327, %c0_i32_210 : i32
    %329 = arith.index_cast %328 : i32 to index
    %c0_211 = arith.constant 0 : index
    %c4_212 = arith.constant 4 : index
    %330 = vector.load %arg12[%329, %c0_211, %c4_212] : memref<40x32x40xbf16, #tpu.memory_space<vmem>>, vector<1x32x16xbf16>
    %331 = vector.shape_cast %330 : vector<1x32x16xbf16> to vector<32x16xbf16>
    %332 = arith.index_cast %328 : i32 to index
    %c0_213 = arith.constant 0 : index
    %c12_214 = arith.constant 12 : index
    %333 = vector.load %arg12[%332, %c0_213, %c12_214] : memref<40x32x40xbf16, #tpu.memory_space<vmem>>, vector<1x32x16xbf16>
    %334 = vector.shape_cast %333 : vector<1x32x16xbf16> to vector<32x16xbf16>
    %335 = arith.index_cast %328 : i32 to index
    %c0_215 = arith.constant 0 : index
    %c20_216 = arith.constant 20 : index
    %336 = vector.load %arg12[%335, %c0_215, %c20_216] : memref<40x32x40xbf16, #tpu.memory_space<vmem>>, vector<1x32x16xbf16>
    %337 = vector.shape_cast %336 : vector<1x32x16xbf16> to vector<32x16xbf16>
    %c12_i32_217 = arith.constant 12 : i32
    %338 = arith.addi %c12_i32_217, %270 : i32
    %c8_i32_218 = arith.constant 8 : i32
    %339 = arith.addi %338, %c8_i32_218 : i32
    %340 = arith.index_cast %339 : i32 to index
    %c0_219 = arith.constant 0 : index
    %c4_220 = arith.constant 4 : index
    %341 = vector.load %arg12[%340, %c0_219, %c4_220] : memref<40x32x40xbf16, #tpu.memory_space<vmem>>, vector<1x32x16xbf16>
    %342 = vector.shape_cast %341 : vector<1x32x16xbf16> to vector<32x16xbf16>
    %343 = arith.index_cast %339 : i32 to index
    %c0_221 = arith.constant 0 : index
    %c12_222 = arith.constant 12 : index
    %344 = vector.load %arg12[%343, %c0_221, %c12_222] : memref<40x32x40xbf16, #tpu.memory_space<vmem>>, vector<1x32x16xbf16>
    %345 = vector.shape_cast %344 : vector<1x32x16xbf16> to vector<32x16xbf16>
    %346 = arith.index_cast %339 : i32 to index
    %c0_223 = arith.constant 0 : index
    %c20_224 = arith.constant 20 : index
    %347 = vector.load %arg12[%346, %c0_223, %c20_224] : memref<40x32x40xbf16, #tpu.memory_space<vmem>>, vector<1x32x16xbf16>
    %348 = vector.shape_cast %347 : vector<1x32x16xbf16> to vector<32x16xbf16>
    %349 = tpu.concatenate %320, %323, %326, %331, %334, %337, %342, %345, %348 in 0 : vector<32x16xbf16>, vector<32x16xbf16>, vector<32x16xbf16>, vector<32x16xbf16>, vector<32x16xbf16>, vector<32x16xbf16>, vector<32x16xbf16>, vector<32x16xbf16>, vector<32x16xbf16> -> vector<288x16xbf16>
    %cst_225 = arith.constant dense<0.000000e+00> : vector<32x16xf32>
    %350 = tpu.matmul %5, %349, %cst_225 {dimension_numbers = #tpu.dot_dimension_numbers<[1], [0], [0], [1], [0, 0, 1, 1], [], []>} : vector<32x288xbf16>, vector<288x16xbf16>, vector<32x16xf32> -> vector<32x16xf32>
    %351 = vector.broadcast %6 : vector<32x1xf32> to vector<32x16xf32>
    %352 = arith.addf %350, %351 : vector<32x16xf32>
    %cst_226 = arith.constant 0.000000e+00 : f32
    %353 = vector.broadcast %cst_226 : f32 to vector<32x16xf32>
    %354 = arith.maximumf %352, %353 : vector<32x16xf32>
    %355 = arith.addf %315, %354 : vector<32x16xf32>
    %c12_i32_227 = arith.constant 12 : i32
    %356 = arith.addi %c12_i32_227, %270 : i32
    %c-12_i32_228 = arith.constant -12 : i32
    %357 = arith.addi %356, %c-12_i32_228 : i32
    %358 = arith.index_cast %357 : i32 to index
    %c0_229 = arith.constant 0 : index
    %c0_230 = arith.constant 0 : index
    %359 = vector.load %arg12[%358, %c0_229, %c0_230] : memref<40x32x40xbf16, #tpu.memory_space<vmem>>, vector<1x32x16xbf16>
    %360 = vector.shape_cast %359 : vector<1x32x16xbf16> to vector<32x16xbf16>
    %361 = arith.index_cast %357 : i32 to index
    %c0_231 = arith.constant 0 : index
    %c12_232 = arith.constant 12 : index
    %362 = vector.load %arg12[%361, %c0_231, %c12_232] : memref<40x32x40xbf16, #tpu.memory_space<vmem>>, vector<1x32x16xbf16>
    %363 = vector.shape_cast %362 : vector<1x32x16xbf16> to vector<32x16xbf16>
    %364 = arith.index_cast %357 : i32 to index
    %c0_233 = arith.constant 0 : index
    %c24_234 = arith.constant 24 : index
    %365 = vector.load %arg12[%364, %c0_233, %c24_234] : memref<40x32x40xbf16, #tpu.memory_space<vmem>>, vector<1x32x16xbf16>
    %366 = vector.shape_cast %365 : vector<1x32x16xbf16> to vector<32x16xbf16>
    %c12_i32_235 = arith.constant 12 : i32
    %367 = arith.addi %c12_i32_235, %270 : i32
    %c0_i32_236 = arith.constant 0 : i32
    %368 = arith.addi %367, %c0_i32_236 : i32
    %369 = arith.index_cast %368 : i32 to index
    %c0_237 = arith.constant 0 : index
    %c0_238 = arith.constant 0 : index
    %370 = vector.load %arg12[%369, %c0_237, %c0_238] : memref<40x32x40xbf16, #tpu.memory_space<vmem>>, vector<1x32x16xbf16>
    %371 = vector.shape_cast %370 : vector<1x32x16xbf16> to vector<32x16xbf16>
    %372 = arith.index_cast %368 : i32 to index
    %c0_239 = arith.constant 0 : index
    %c12_240 = arith.constant 12 : index
    %373 = vector.load %arg12[%372, %c0_239, %c12_240] : memref<40x32x40xbf16, #tpu.memory_space<vmem>>, vector<1x32x16xbf16>
    %374 = vector.shape_cast %373 : vector<1x32x16xbf16> to vector<32x16xbf16>
    %375 = arith.index_cast %368 : i32 to index
    %c0_241 = arith.constant 0 : index
    %c24_242 = arith.constant 24 : index
    %376 = vector.load %arg12[%375, %c0_241, %c24_242] : memref<40x32x40xbf16, #tpu.memory_space<vmem>>, vector<1x32x16xbf16>
    %377 = vector.shape_cast %376 : vector<1x32x16xbf16> to vector<32x16xbf16>
    %c12_i32_243 = arith.constant 12 : i32
    %378 = arith.addi %c12_i32_243, %270 : i32
    %c12_i32_244 = arith.constant 12 : i32
    %379 = arith.addi %378, %c12_i32_244 : i32
    %380 = arith.index_cast %379 : i32 to index
    %c0_245 = arith.constant 0 : index
    %c0_246 = arith.constant 0 : index
    %381 = vector.load %arg12[%380, %c0_245, %c0_246] : memref<40x32x40xbf16, #tpu.memory_space<vmem>>, vector<1x32x16xbf16>
    %382 = vector.shape_cast %381 : vector<1x32x16xbf16> to vector<32x16xbf16>
    %383 = arith.index_cast %379 : i32 to index
    %c0_247 = arith.constant 0 : index
    %c12_248 = arith.constant 12 : index
    %384 = vector.load %arg12[%383, %c0_247, %c12_248] : memref<40x32x40xbf16, #tpu.memory_space<vmem>>, vector<1x32x16xbf16>
    %385 = vector.shape_cast %384 : vector<1x32x16xbf16> to vector<32x16xbf16>
    %386 = arith.index_cast %379 : i32 to index
    %c0_249 = arith.constant 0 : index
    %c24_250 = arith.constant 24 : index
    %387 = vector.load %arg12[%386, %c0_249, %c24_250] : memref<40x32x40xbf16, #tpu.memory_space<vmem>>, vector<1x32x16xbf16>
    %388 = vector.shape_cast %387 : vector<1x32x16xbf16> to vector<32x16xbf16>
    %389 = tpu.concatenate %360, %363, %366, %371, %374, %377, %382, %385, %388 in 0 : vector<32x16xbf16>, vector<32x16xbf16>, vector<32x16xbf16>, vector<32x16xbf16>, vector<32x16xbf16>, vector<32x16xbf16>, vector<32x16xbf16>, vector<32x16xbf16>, vector<32x16xbf16> -> vector<288x16xbf16>
    %cst_251 = arith.constant dense<0.000000e+00> : vector<32x16xf32>
    %390 = tpu.matmul %7, %389, %cst_251 {dimension_numbers = #tpu.dot_dimension_numbers<[1], [0], [0], [1], [0, 0, 1, 1], [], []>} : vector<32x288xbf16>, vector<288x16xbf16>, vector<32x16xf32> -> vector<32x16xf32>
    %391 = vector.broadcast %8 : vector<32x1xf32> to vector<32x16xf32>
    %392 = arith.addf %390, %391 : vector<32x16xf32>
    %cst_252 = arith.constant 0.000000e+00 : f32
    %393 = vector.broadcast %cst_252 : f32 to vector<32x16xf32>
    %394 = arith.maximumf %392, %393 : vector<32x16xf32>
    %395 = arith.addf %355, %394 : vector<32x16xf32>
    %c0_253 = arith.constant 0 : index
    %c0_254 = arith.constant 0 : index
    %c2 = arith.constant 2 : index
    %c0_255 = arith.constant 0 : index
    %396 = vector.load %arg11[%c0_253, %c0_254, %c2, %c0_255] : memref<1x32x8x16xf32, #tpu.memory_space<vmem>>, vector<1x32x1x16xf32>
    %397 = vector.shape_cast %396 : vector<1x32x1x16xf32> to vector<32x16xf32>
    %398 = vector.shape_cast %395 : vector<32x16xf32> to vector<1x32x1x16xf32>
    tpu.vector_store %arg11[%c0_253, %c0_254, %c2, %c0_255], %398 {strides = array<i32>} : memref<1x32x8x16xf32, #tpu.memory_space<vmem>>, vector<1x32x1x16xf32>,
    %c8_i32_256 = arith.constant 8 : i32
    %399 = arith.muli %arg1, %c8_i32_256 : i32
    %c3_i32 = arith.constant 3 : i32
    %400 = arith.addi %399, %c3_i32 : i32
    %c12_i32_257 = arith.constant 12 : i32
    %401 = arith.addi %c12_i32_257, %400 : i32
    %402 = arith.index_cast %401 : i32 to index
    %c0_258 = arith.constant 0 : index
    %c12_259 = arith.constant 12 : index
    %403 = vector.load %arg12[%402, %c0_258, %c12_259] : memref<40x32x40xbf16, #tpu.memory_space<vmem>>, vector<1x32x16xbf16>
    %404 = vector.shape_cast %403 : vector<1x32x16xbf16> to vector<32x16xbf16>
    %405 = arith.extf %404 : vector<32x16xbf16> to vector<32x16xf32>
    %c12_i32_260 = arith.constant 12 : i32
    %406 = arith.addi %c12_i32_260, %400 : i32
    %c-4_i32_261 = arith.constant -4 : i32
    %407 = arith.addi %406, %c-4_i32_261 : i32
    %408 = arith.index_cast %407 : i32 to index
    %c0_262 = arith.constant 0 : index
    %c8_263 = arith.constant 8 : index
    %409 = vector.load %arg12[%408, %c0_262, %c8_263] : memref<40x32x40xbf16, #tpu.memory_space<vmem>>, vector<1x32x16xbf16>
    %410 = vector.shape_cast %409 : vector<1x32x16xbf16> to vector<32x16xbf16>
    %411 = arith.index_cast %407 : i32 to index
    %c0_264 = arith.constant 0 : index
    %c12_265 = arith.constant 12 : index
    %412 = vector.load %arg12[%411, %c0_264, %c12_265] : memref<40x32x40xbf16, #tpu.memory_space<vmem>>, vector<1x32x16xbf16>
    %413 = vector.shape_cast %412 : vector<1x32x16xbf16> to vector<32x16xbf16>
    %414 = arith.index_cast %407 : i32 to index
    %c0_266 = arith.constant 0 : index
    %c16_267 = arith.constant 16 : index
    %415 = vector.load %arg12[%414, %c0_266, %c16_267] : memref<40x32x40xbf16, #tpu.memory_space<vmem>>, vector<1x32x16xbf16>
    %416 = vector.shape_cast %415 : vector<1x32x16xbf16> to vector<32x16xbf16>
    %c12_i32_268 = arith.constant 12 : i32
    %417 = arith.addi %c12_i32_268, %400 : i32
    %c0_i32_269 = arith.constant 0 : i32
    %418 = arith.addi %417, %c0_i32_269 : i32
    %419 = arith.index_cast %418 : i32 to index
    %c0_270 = arith.constant 0 : index
    %c8_271 = arith.constant 8 : index
    %420 = vector.load %arg12[%419, %c0_270, %c8_271] : memref<40x32x40xbf16, #tpu.memory_space<vmem>>, vector<1x32x16xbf16>
    %421 = vector.shape_cast %420 : vector<1x32x16xbf16> to vector<32x16xbf16>
    %422 = arith.index_cast %418 : i32 to index
    %c0_272 = arith.constant 0 : index
    %c12_273 = arith.constant 12 : index
    %423 = vector.load %arg12[%422, %c0_272, %c12_273] : memref<40x32x40xbf16, #tpu.memory_space<vmem>>, vector<1x32x16xbf16>
    %424 = vector.shape_cast %423 : vector<1x32x16xbf16> to vector<32x16xbf16>
    %425 = arith.index_cast %418 : i32 to index
    %c0_274 = arith.constant 0 : index
    %c16_275 = arith.constant 16 : index
    %426 = vector.load %arg12[%425, %c0_274, %c16_275] : memref<40x32x40xbf16, #tpu.memory_space<vmem>>, vector<1x32x16xbf16>
    %427 = vector.shape_cast %426 : vector<1x32x16xbf16> to vector<32x16xbf16>
    %c12_i32_276 = arith.constant 12 : i32
    %428 = arith.addi %c12_i32_276, %400 : i32
    %c4_i32_277 = arith.constant 4 : i32
    %429 = arith.addi %428, %c4_i32_277 : i32
    %430 = arith.index_cast %429 : i32 to index
    %c0_278 = arith.constant 0 : index
    %c8_279 = arith.constant 8 : index
    %431 = vector.load %arg12[%430, %c0_278, %c8_279] : memref<40x32x40xbf16, #tpu.memory_space<vmem>>, vector<1x32x16xbf16>
    %432 = vector.shape_cast %431 : vector<1x32x16xbf16> to vector<32x16xbf16>
    %433 = arith.index_cast %429 : i32 to index
    %c0_280 = arith.constant 0 : index
    %c12_281 = arith.constant 12 : index
    %434 = vector.load %arg12[%433, %c0_280, %c12_281] : memref<40x32x40xbf16, #tpu.memory_space<vmem>>, vector<1x32x16xbf16>
    %435 = vector.shape_cast %434 : vector<1x32x16xbf16> to vector<32x16xbf16>
    %436 = arith.index_cast %429 : i32 to index
    %c0_282 = arith.constant 0 : index
    %c16_283 = arith.constant 16 : index
    %437 = vector.load %arg12[%436, %c0_282, %c16_283] : memref<40x32x40xbf16, #tpu.memory_space<vmem>>, vector<1x32x16xbf16>
    %438 = vector.shape_cast %437 : vector<1x32x16xbf16> to vector<32x16xbf16>
    %439 = tpu.concatenate %410, %413, %416, %421, %424, %427, %432, %435, %438 in 0 : vector<32x16xbf16>, vector<32x16xbf16>, vector<32x16xbf16>, vector<32x16xbf16>, vector<32x16xbf16>, vector<32x16xbf16>, vector<32x16xbf16>, vector<32x16xbf16>, vector<32x16xbf16> -> vector<288x16xbf16>
    %cst_284 = arith.constant dense<0.000000e+00> : vector<32x16xf32>
    %440 = tpu.matmul %3, %439, %cst_284 {dimension_numbers = #tpu.dot_dimension_numbers<[1], [0], [0], [1], [0, 0, 1, 1], [], []>} : vector<32x288xbf16>, vector<288x16xbf16>, vector<32x16xf32> -> vector<32x16xf32>
    %441 = vector.broadcast %4 : vector<32x1xf32> to vector<32x16xf32>
    %442 = arith.addf %440, %441 : vector<32x16xf32>
    %cst_285 = arith.constant 0.000000e+00 : f32
    %443 = vector.broadcast %cst_285 : f32 to vector<32x16xf32>
    %444 = arith.maximumf %442, %443 : vector<32x16xf32>
    %445 = arith.addf %405, %444 : vector<32x16xf32>
    %c12_i32_286 = arith.constant 12 : i32
    %446 = arith.addi %c12_i32_286, %400 : i32
    %c-8_i32_287 = arith.constant -8 : i32
    %447 = arith.addi %446, %c-8_i32_287 : i32
    %448 = arith.index_cast %447 : i32 to index
    %c0_288 = arith.constant 0 : index
    %c4_289 = arith.constant 4 : index
    %449 = vector.load %arg12[%448, %c0_288, %c4_289] : memref<40x32x40xbf16, #tpu.memory_space<vmem>>, vector<1x32x16xbf16>
    %450 = vector.shape_cast %449 : vector<1x32x16xbf16> to vector<32x16xbf16>
    %451 = arith.index_cast %447 : i32 to index
    %c0_290 = arith.constant 0 : index
    %c12_291 = arith.constant 12 : index
    %452 = vector.load %arg12[%451, %c0_290, %c12_291] : memref<40x32x40xbf16, #tpu.memory_space<vmem>>, vector<1x32x16xbf16>
    %453 = vector.shape_cast %452 : vector<1x32x16xbf16> to vector<32x16xbf16>
    %454 = arith.index_cast %447 : i32 to index
    %c0_292 = arith.constant 0 : index
    %c20_293 = arith.constant 20 : index
    %455 = vector.load %arg12[%454, %c0_292, %c20_293] : memref<40x32x40xbf16, #tpu.memory_space<vmem>>, vector<1x32x16xbf16>
    %456 = vector.shape_cast %455 : vector<1x32x16xbf16> to vector<32x16xbf16>
    %c12_i32_294 = arith.constant 12 : i32
    %457 = arith.addi %c12_i32_294, %400 : i32
    %c0_i32_295 = arith.constant 0 : i32
    %458 = arith.addi %457, %c0_i32_295 : i32
    %459 = arith.index_cast %458 : i32 to index
    %c0_296 = arith.constant 0 : index
    %c4_297 = arith.constant 4 : index
    %460 = vector.load %arg12[%459, %c0_296, %c4_297] : memref<40x32x40xbf16, #tpu.memory_space<vmem>>, vector<1x32x16xbf16>
    %461 = vector.shape_cast %460 : vector<1x32x16xbf16> to vector<32x16xbf16>
    %462 = arith.index_cast %458 : i32 to index
    %c0_298 = arith.constant 0 : index
    %c12_299 = arith.constant 12 : index
    %463 = vector.load %arg12[%462, %c0_298, %c12_299] : memref<40x32x40xbf16, #tpu.memory_space<vmem>>, vector<1x32x16xbf16>
    %464 = vector.shape_cast %463 : vector<1x32x16xbf16> to vector<32x16xbf16>
    %465 = arith.index_cast %458 : i32 to index
    %c0_300 = arith.constant 0 : index
    %c20_301 = arith.constant 20 : index
    %466 = vector.load %arg12[%465, %c0_300, %c20_301] : memref<40x32x40xbf16, #tpu.memory_space<vmem>>, vector<1x32x16xbf16>
    %467 = vector.shape_cast %466 : vector<1x32x16xbf16> to vector<32x16xbf16>
    %c12_i32_302 = arith.constant 12 : i32
    %468 = arith.addi %c12_i32_302, %400 : i32
    %c8_i32_303 = arith.constant 8 : i32
    %469 = arith.addi %468, %c8_i32_303 : i32
    %470 = arith.index_cast %469 : i32 to index
    %c0_304 = arith.constant 0 : index
    %c4_305 = arith.constant 4 : index
    %471 = vector.load %arg12[%470, %c0_304, %c4_305] : memref<40x32x40xbf16, #tpu.memory_space<vmem>>, vector<1x32x16xbf16>
    %472 = vector.shape_cast %471 : vector<1x32x16xbf16> to vector<32x16xbf16>
    %473 = arith.index_cast %469 : i32 to index
    %c0_306 = arith.constant 0 : index
    %c12_307 = arith.constant 12 : index
    %474 = vector.load %arg12[%473, %c0_306, %c12_307] : memref<40x32x40xbf16, #tpu.memory_space<vmem>>, vector<1x32x16xbf16>
    %475 = vector.shape_cast %474 : vector<1x32x16xbf16> to vector<32x16xbf16>
    %476 = arith.index_cast %469 : i32 to index
    %c0_308 = arith.constant 0 : index
    %c20_309 = arith.constant 20 : index
    %477 = vector.load %arg12[%476, %c0_308, %c20_309] : memref<40x32x40xbf16, #tpu.memory_space<vmem>>, vector<1x32x16xbf16>
    %478 = vector.shape_cast %477 : vector<1x32x16xbf16> to vector<32x16xbf16>
    %479 = tpu.concatenate %450, %453, %456, %461, %464, %467, %472, %475, %478 in 0 : vector<32x16xbf16>, vector<32x16xbf16>, vector<32x16xbf16>, vector<32x16xbf16>, vector<32x16xbf16>, vector<32x16xbf16>, vector<32x16xbf16>, vector<32x16xbf16>, vector<32x16xbf16> -> vector<288x16xbf16>
    %cst_310 = arith.constant dense<0.000000e+00> : vector<32x16xf32>
    %480 = tpu.matmul %5, %479, %cst_310 {dimension_numbers = #tpu.dot_dimension_numbers<[1], [0], [0], [1], [0, 0, 1, 1], [], []>} : vector<32x288xbf16>, vector<288x16xbf16>, vector<32x16xf32> -> vector<32x16xf32>
    %481 = vector.broadcast %6 : vector<32x1xf32> to vector<32x16xf32>
    %482 = arith.addf %480, %481 : vector<32x16xf32>
    %cst_311 = arith.constant 0.000000e+00 : f32
    %483 = vector.broadcast %cst_311 : f32 to vector<32x16xf32>
    %484 = arith.maximumf %482, %483 : vector<32x16xf32>
    %485 = arith.addf %445, %484 : vector<32x16xf32>
    %c12_i32_312 = arith.constant 12 : i32
    %486 = arith.addi %c12_i32_312, %400 : i32
    %c-12_i32_313 = arith.constant -12 : i32
    %487 = arith.addi %486, %c-12_i32_313 : i32
    %488 = arith.index_cast %487 : i32 to index
    %c0_314 = arith.constant 0 : index
    %c0_315 = arith.constant 0 : index
    %489 = vector.load %arg12[%488, %c0_314, %c0_315] : memref<40x32x40xbf16, #tpu.memory_space<vmem>>, vector<1x32x16xbf16>
    %490 = vector.shape_cast %489 : vector<1x32x16xbf16> to vector<32x16xbf16>
    %491 = arith.index_cast %487 : i32 to index
    %c0_316 = arith.constant 0 : index
    %c12_317 = arith.constant 12 : index
    %492 = vector.load %arg12[%491, %c0_316, %c12_317] : memref<40x32x40xbf16, #tpu.memory_space<vmem>>, vector<1x32x16xbf16>
    %493 = vector.shape_cast %492 : vector<1x32x16xbf16> to vector<32x16xbf16>
    %494 = arith.index_cast %487 : i32 to index
    %c0_318 = arith.constant 0 : index
    %c24_319 = arith.constant 24 : index
    %495 = vector.load %arg12[%494, %c0_318, %c24_319] : memref<40x32x40xbf16, #tpu.memory_space<vmem>>, vector<1x32x16xbf16>
    %496 = vector.shape_cast %495 : vector<1x32x16xbf16> to vector<32x16xbf16>
    %c12_i32_320 = arith.constant 12 : i32
    %497 = arith.addi %c12_i32_320, %400 : i32
    %c0_i32_321 = arith.constant 0 : i32
    %498 = arith.addi %497, %c0_i32_321 : i32
    %499 = arith.index_cast %498 : i32 to index
    %c0_322 = arith.constant 0 : index
    %c0_323 = arith.constant 0 : index
    %500 = vector.load %arg12[%499, %c0_322, %c0_323] : memref<40x32x40xbf16, #tpu.memory_space<vmem>>, vector<1x32x16xbf16>
    %501 = vector.shape_cast %500 : vector<1x32x16xbf16> to vector<32x16xbf16>
    %502 = arith.index_cast %498 : i32 to index
    %c0_324 = arith.constant 0 : index
    %c12_325 = arith.constant 12 : index
    %503 = vector.load %arg12[%502, %c0_324, %c12_325] : memref<40x32x40xbf16, #tpu.memory_space<vmem>>, vector<1x32x16xbf16>
    %504 = vector.shape_cast %503 : vector<1x32x16xbf16> to vector<32x16xbf16>
    %505 = arith.index_cast %498 : i32 to index
    %c0_326 = arith.constant 0 : index
    %c24_327 = arith.constant 24 : index
    %506 = vector.load %arg12[%505, %c0_326, %c24_327] : memref<40x32x40xbf16, #tpu.memory_space<vmem>>, vector<1x32x16xbf16>
    %507 = vector.shape_cast %506 : vector<1x32x16xbf16> to vector<32x16xbf16>
    %c12_i32_328 = arith.constant 12 : i32
    %508 = arith.addi %c12_i32_328, %400 : i32
    %c12_i32_329 = arith.constant 12 : i32
    %509 = arith.addi %508, %c12_i32_329 : i32
    %510 = arith.index_cast %509 : i32 to index
    %c0_330 = arith.constant 0 : index
    %c0_331 = arith.constant 0 : index
    %511 = vector.load %arg12[%510, %c0_330, %c0_331] : memref<40x32x40xbf16, #tpu.memory_space<vmem>>, vector<1x32x16xbf16>
    %512 = vector.shape_cast %511 : vector<1x32x16xbf16> to vector<32x16xbf16>
    %513 = arith.index_cast %509 : i32 to index
    %c0_332 = arith.constant 0 : index
    %c12_333 = arith.constant 12 : index
    %514 = vector.load %arg12[%513, %c0_332, %c12_333] : memref<40x32x40xbf16, #tpu.memory_space<vmem>>, vector<1x32x16xbf16>
    %515 = vector.shape_cast %514 : vector<1x32x16xbf16> to vector<32x16xbf16>
    %516 = arith.index_cast %509 : i32 to index
    %c0_334 = arith.constant 0 : index
    %c24_335 = arith.constant 24 : index
    %517 = vector.load %arg12[%516, %c0_334, %c24_335] : memref<40x32x40xbf16, #tpu.memory_space<vmem>>, vector<1x32x16xbf16>
    %518 = vector.shape_cast %517 : vector<1x32x16xbf16> to vector<32x16xbf16>
    %519 = tpu.concatenate %490, %493, %496, %501, %504, %507, %512, %515, %518 in 0 : vector<32x16xbf16>, vector<32x16xbf16>, vector<32x16xbf16>, vector<32x16xbf16>, vector<32x16xbf16>, vector<32x16xbf16>, vector<32x16xbf16>, vector<32x16xbf16>, vector<32x16xbf16> -> vector<288x16xbf16>
    %cst_336 = arith.constant dense<0.000000e+00> : vector<32x16xf32>
    %520 = tpu.matmul %7, %519, %cst_336 {dimension_numbers = #tpu.dot_dimension_numbers<[1], [0], [0], [1], [0, 0, 1, 1], [], []>} : vector<32x288xbf16>, vector<288x16xbf16>, vector<32x16xf32> -> vector<32x16xf32>
    %521 = vector.broadcast %8 : vector<32x1xf32> to vector<32x16xf32>
    %522 = arith.addf %520, %521 : vector<32x16xf32>
    %cst_337 = arith.constant 0.000000e+00 : f32
    %523 = vector.broadcast %cst_337 : f32 to vector<32x16xf32>
    %524 = arith.maximumf %522, %523 : vector<32x16xf32>
    %525 = arith.addf %485, %524 : vector<32x16xf32>
    %c0_338 = arith.constant 0 : index
    %c0_339 = arith.constant 0 : index
    %c3 = arith.constant 3 : index
    %c0_340 = arith.constant 0 : index
    %526 = vector.load %arg11[%c0_338, %c0_339, %c3, %c0_340] : memref<1x32x8x16xf32, #tpu.memory_space<vmem>>, vector<1x32x1x16xf32>
    %527 = vector.shape_cast %526 : vector<1x32x1x16xf32> to vector<32x16xf32>
    %528 = vector.shape_cast %525 : vector<32x16xf32> to vector<1x32x1x16xf32>
    tpu.vector_store %arg11[%c0_338, %c0_339, %c3, %c0_340], %528 {strides = array<i32>} : memref<1x32x8x16xf32, #tpu.memory_space<vmem>>, vector<1x32x1x16xf32>,
    %c8_i32_341 = arith.constant 8 : i32
    %529 = arith.muli %arg1, %c8_i32_341 : i32
    %c4_i32_342 = arith.constant 4 : i32
    %530 = arith.addi %529, %c4_i32_342 : i32
    %c12_i32_343 = arith.constant 12 : i32
    %531 = arith.addi %c12_i32_343, %530 : i32
    %532 = arith.index_cast %531 : i32 to index
    %c0_344 = arith.constant 0 : index
    %c12_345 = arith.constant 12 : index
    %533 = vector.load %arg12[%532, %c0_344, %c12_345] : memref<40x32x40xbf16, #tpu.memory_space<vmem>>, vector<1x32x16xbf16>
    %534 = vector.shape_cast %533 : vector<1x32x16xbf16> to vector<32x16xbf16>
    %535 = arith.extf %534 : vector<32x16xbf16> to vector<32x16xf32>
    %c12_i32_346 = arith.constant 12 : i32
    %536 = arith.addi %c12_i32_346, %530 : i32
    %c-4_i32_347 = arith.constant -4 : i32
    %537 = arith.addi %536, %c-4_i32_347 : i32
    %538 = arith.index_cast %537 : i32 to index
    %c0_348 = arith.constant 0 : index
    %c8_349 = arith.constant 8 : index
    %539 = vector.load %arg12[%538, %c0_348, %c8_349] : memref<40x32x40xbf16, #tpu.memory_space<vmem>>, vector<1x32x16xbf16>
    %540 = vector.shape_cast %539 : vector<1x32x16xbf16> to vector<32x16xbf16>
    %541 = arith.index_cast %537 : i32 to index
    %c0_350 = arith.constant 0 : index
    %c12_351 = arith.constant 12 : index
    %542 = vector.load %arg12[%541, %c0_350, %c12_351] : memref<40x32x40xbf16, #tpu.memory_space<vmem>>, vector<1x32x16xbf16>
    %543 = vector.shape_cast %542 : vector<1x32x16xbf16> to vector<32x16xbf16>
    %544 = arith.index_cast %537 : i32 to index
    %c0_352 = arith.constant 0 : index
    %c16_353 = arith.constant 16 : index
    %545 = vector.load %arg12[%544, %c0_352, %c16_353] : memref<40x32x40xbf16, #tpu.memory_space<vmem>>, vector<1x32x16xbf16>
    %546 = vector.shape_cast %545 : vector<1x32x16xbf16> to vector<32x16xbf16>
    %c12_i32_354 = arith.constant 12 : i32
    %547 = arith.addi %c12_i32_354, %530 : i32
    %c0_i32_355 = arith.constant 0 : i32
    %548 = arith.addi %547, %c0_i32_355 : i32
    %549 = arith.index_cast %548 : i32 to index
    %c0_356 = arith.constant 0 : index
    %c8_357 = arith.constant 8 : index
    %550 = vector.load %arg12[%549, %c0_356, %c8_357] : memref<40x32x40xbf16, #tpu.memory_space<vmem>>, vector<1x32x16xbf16>
    %551 = vector.shape_cast %550 : vector<1x32x16xbf16> to vector<32x16xbf16>
    %552 = arith.index_cast %548 : i32 to index
    %c0_358 = arith.constant 0 : index
    %c12_359 = arith.constant 12 : index
    %553 = vector.load %arg12[%552, %c0_358, %c12_359] : memref<40x32x40xbf16, #tpu.memory_space<vmem>>, vector<1x32x16xbf16>
    %554 = vector.shape_cast %553 : vector<1x32x16xbf16> to vector<32x16xbf16>
    %555 = arith.index_cast %548 : i32 to index
    %c0_360 = arith.constant 0 : index
    %c16_361 = arith.constant 16 : index
    %556 = vector.load %arg12[%555, %c0_360, %c16_361] : memref<40x32x40xbf16, #tpu.memory_space<vmem>>, vector<1x32x16xbf16>
    %557 = vector.shape_cast %556 : vector<1x32x16xbf16> to vector<32x16xbf16>
    %c12_i32_362 = arith.constant 12 : i32
    %558 = arith.addi %c12_i32_362, %530 : i32
    %c4_i32_363 = arith.constant 4 : i32
    %559 = arith.addi %558, %c4_i32_363 : i32
    %560 = arith.index_cast %559 : i32 to index
    %c0_364 = arith.constant 0 : index
    %c8_365 = arith.constant 8 : index
    %561 = vector.load %arg12[%560, %c0_364, %c8_365] : memref<40x32x40xbf16, #tpu.memory_space<vmem>>, vector<1x32x16xbf16>
    %562 = vector.shape_cast %561 : vector<1x32x16xbf16> to vector<32x16xbf16>
    %563 = arith.index_cast %559 : i32 to index
    %c0_366 = arith.constant 0 : index
    %c12_367 = arith.constant 12 : index
    %564 = vector.load %arg12[%563, %c0_366, %c12_367] : memref<40x32x40xbf16, #tpu.memory_space<vmem>>, vector<1x32x16xbf16>
    %565 = vector.shape_cast %564 : vector<1x32x16xbf16> to vector<32x16xbf16>
    %566 = arith.index_cast %559 : i32 to index
    %c0_368 = arith.constant 0 : index
    %c16_369 = arith.constant 16 : index
    %567 = vector.load %arg12[%566, %c0_368, %c16_369] : memref<40x32x40xbf16, #tpu.memory_space<vmem>>, vector<1x32x16xbf16>
    %568 = vector.shape_cast %567 : vector<1x32x16xbf16> to vector<32x16xbf16>
    %569 = tpu.concatenate %540, %543, %546, %551, %554, %557, %562, %565, %568 in 0 : vector<32x16xbf16>, vector<32x16xbf16>, vector<32x16xbf16>, vector<32x16xbf16>, vector<32x16xbf16>, vector<32x16xbf16>, vector<32x16xbf16>, vector<32x16xbf16>, vector<32x16xbf16> -> vector<288x16xbf16>
    %cst_370 = arith.constant dense<0.000000e+00> : vector<32x16xf32>
    %570 = tpu.matmul %3, %569, %cst_370 {dimension_numbers = #tpu.dot_dimension_numbers<[1], [0], [0], [1], [0, 0, 1, 1], [], []>} : vector<32x288xbf16>, vector<288x16xbf16>, vector<32x16xf32> -> vector<32x16xf32>
    %571 = vector.broadcast %4 : vector<32x1xf32> to vector<32x16xf32>
    %572 = arith.addf %570, %571 : vector<32x16xf32>
    %cst_371 = arith.constant 0.000000e+00 : f32
    %573 = vector.broadcast %cst_371 : f32 to vector<32x16xf32>
    %574 = arith.maximumf %572, %573 : vector<32x16xf32>
    %575 = arith.addf %535, %574 : vector<32x16xf32>
    %c12_i32_372 = arith.constant 12 : i32
    %576 = arith.addi %c12_i32_372, %530 : i32
    %c-8_i32_373 = arith.constant -8 : i32
    %577 = arith.addi %576, %c-8_i32_373 : i32
    %578 = arith.index_cast %577 : i32 to index
    %c0_374 = arith.constant 0 : index
    %c4_375 = arith.constant 4 : index
    %579 = vector.load %arg12[%578, %c0_374, %c4_375] : memref<40x32x40xbf16, #tpu.memory_space<vmem>>, vector<1x32x16xbf16>
    %580 = vector.shape_cast %579 : vector<1x32x16xbf16> to vector<32x16xbf16>
    %581 = arith.index_cast %577 : i32 to index
    %c0_376 = arith.constant 0 : index
    %c12_377 = arith.constant 12 : index
    %582 = vector.load %arg12[%581, %c0_376, %c12_377] : memref<40x32x40xbf16, #tpu.memory_space<vmem>>, vector<1x32x16xbf16>
    %583 = vector.shape_cast %582 : vector<1x32x16xbf16> to vector<32x16xbf16>
    %584 = arith.index_cast %577 : i32 to index
    %c0_378 = arith.constant 0 : index
    %c20_379 = arith.constant 20 : index
    %585 = vector.load %arg12[%584, %c0_378, %c20_379] : memref<40x32x40xbf16, #tpu.memory_space<vmem>>, vector<1x32x16xbf16>
    %586 = vector.shape_cast %585 : vector<1x32x16xbf16> to vector<32x16xbf16>
    %c12_i32_380 = arith.constant 12 : i32
    %587 = arith.addi %c12_i32_380, %530 : i32
    %c0_i32_381 = arith.constant 0 : i32
    %588 = arith.addi %587, %c0_i32_381 : i32
    %589 = arith.index_cast %588 : i32 to index
    %c0_382 = arith.constant 0 : index
    %c4_383 = arith.constant 4 : index
    %590 = vector.load %arg12[%589, %c0_382, %c4_383] : memref<40x32x40xbf16, #tpu.memory_space<vmem>>, vector<1x32x16xbf16>
    %591 = vector.shape_cast %590 : vector<1x32x16xbf16> to vector<32x16xbf16>
    %592 = arith.index_cast %588 : i32 to index
    %c0_384 = arith.constant 0 : index
    %c12_385 = arith.constant 12 : index
    %593 = vector.load %arg12[%592, %c0_384, %c12_385] : memref<40x32x40xbf16, #tpu.memory_space<vmem>>, vector<1x32x16xbf16>
    %594 = vector.shape_cast %593 : vector<1x32x16xbf16> to vector<32x16xbf16>
    %595 = arith.index_cast %588 : i32 to index
    %c0_386 = arith.constant 0 : index
    %c20_387 = arith.constant 20 : index
    %596 = vector.load %arg12[%595, %c0_386, %c20_387] : memref<40x32x40xbf16, #tpu.memory_space<vmem>>, vector<1x32x16xbf16>
    %597 = vector.shape_cast %596 : vector<1x32x16xbf16> to vector<32x16xbf16>
    %c12_i32_388 = arith.constant 12 : i32
    %598 = arith.addi %c12_i32_388, %530 : i32
    %c8_i32_389 = arith.constant 8 : i32
    %599 = arith.addi %598, %c8_i32_389 : i32
    %600 = arith.index_cast %599 : i32 to index
    %c0_390 = arith.constant 0 : index
    %c4_391 = arith.constant 4 : index
    %601 = vector.load %arg12[%600, %c0_390, %c4_391] : memref<40x32x40xbf16, #tpu.memory_space<vmem>>, vector<1x32x16xbf16>
    %602 = vector.shape_cast %601 : vector<1x32x16xbf16> to vector<32x16xbf16>
    %603 = arith.index_cast %599 : i32 to index
    %c0_392 = arith.constant 0 : index
    %c12_393 = arith.constant 12 : index
    %604 = vector.load %arg12[%603, %c0_392, %c12_393] : memref<40x32x40xbf16, #tpu.memory_space<vmem>>, vector<1x32x16xbf16>
    %605 = vector.shape_cast %604 : vector<1x32x16xbf16> to vector<32x16xbf16>
    %606 = arith.index_cast %599 : i32 to index
    %c0_394 = arith.constant 0 : index
    %c20_395 = arith.constant 20 : index
    %607 = vector.load %arg12[%606, %c0_394, %c20_395] : memref<40x32x40xbf16, #tpu.memory_space<vmem>>, vector<1x32x16xbf16>
    %608 = vector.shape_cast %607 : vector<1x32x16xbf16> to vector<32x16xbf16>
    %609 = tpu.concatenate %580, %583, %586, %591, %594, %597, %602, %605, %608 in 0 : vector<32x16xbf16>, vector<32x16xbf16>, vector<32x16xbf16>, vector<32x16xbf16>, vector<32x16xbf16>, vector<32x16xbf16>, vector<32x16xbf16>, vector<32x16xbf16>, vector<32x16xbf16> -> vector<288x16xbf16>
    %cst_396 = arith.constant dense<0.000000e+00> : vector<32x16xf32>
    %610 = tpu.matmul %5, %609, %cst_396 {dimension_numbers = #tpu.dot_dimension_numbers<[1], [0], [0], [1], [0, 0, 1, 1], [], []>} : vector<32x288xbf16>, vector<288x16xbf16>, vector<32x16xf32> -> vector<32x16xf32>
    %611 = vector.broadcast %6 : vector<32x1xf32> to vector<32x16xf32>
    %612 = arith.addf %610, %611 : vector<32x16xf32>
    %cst_397 = arith.constant 0.000000e+00 : f32
    %613 = vector.broadcast %cst_397 : f32 to vector<32x16xf32>
    %614 = arith.maximumf %612, %613 : vector<32x16xf32>
    %615 = arith.addf %575, %614 : vector<32x16xf32>
    %c12_i32_398 = arith.constant 12 : i32
    %616 = arith.addi %c12_i32_398, %530 : i32
    %c-12_i32_399 = arith.constant -12 : i32
    %617 = arith.addi %616, %c-12_i32_399 : i32
    %618 = arith.index_cast %617 : i32 to index
    %c0_400 = arith.constant 0 : index
    %c0_401 = arith.constant 0 : index
    %619 = vector.load %arg12[%618, %c0_400, %c0_401] : memref<40x32x40xbf16, #tpu.memory_space<vmem>>, vector<1x32x16xbf16>
    %620 = vector.shape_cast %619 : vector<1x32x16xbf16> to vector<32x16xbf16>
    %621 = arith.index_cast %617 : i32 to index
    %c0_402 = arith.constant 0 : index
    %c12_403 = arith.constant 12 : index
    %622 = vector.load %arg12[%621, %c0_402, %c12_403] : memref<40x32x40xbf16, #tpu.memory_space<vmem>>, vector<1x32x16xbf16>
    %623 = vector.shape_cast %622 : vector<1x32x16xbf16> to vector<32x16xbf16>
    %624 = arith.index_cast %617 : i32 to index
    %c0_404 = arith.constant 0 : index
    %c24_405 = arith.constant 24 : index
    %625 = vector.load %arg12[%624, %c0_404, %c24_405] : memref<40x32x40xbf16, #tpu.memory_space<vmem>>, vector<1x32x16xbf16>
    %626 = vector.shape_cast %625 : vector<1x32x16xbf16> to vector<32x16xbf16>
    %c12_i32_406 = arith.constant 12 : i32
    %627 = arith.addi %c12_i32_406, %530 : i32
    %c0_i32_407 = arith.constant 0 : i32
    %628 = arith.addi %627, %c0_i32_407 : i32
    %629 = arith.index_cast %628 : i32 to index
    %c0_408 = arith.constant 0 : index
    %c0_409 = arith.constant 0 : index
    %630 = vector.load %arg12[%629, %c0_408, %c0_409] : memref<40x32x40xbf16, #tpu.memory_space<vmem>>, vector<1x32x16xbf16>
    %631 = vector.shape_cast %630 : vector<1x32x16xbf16> to vector<32x16xbf16>
    %632 = arith.index_cast %628 : i32 to index
    %c0_410 = arith.constant 0 : index
    %c12_411 = arith.constant 12 : index
    %633 = vector.load %arg12[%632, %c0_410, %c12_411] : memref<40x32x40xbf16, #tpu.memory_space<vmem>>, vector<1x32x16xbf16>
    %634 = vector.shape_cast %633 : vector<1x32x16xbf16> to vector<32x16xbf16>
    %635 = arith.index_cast %628 : i32 to index
    %c0_412 = arith.constant 0 : index
    %c24_413 = arith.constant 24 : index
    %636 = vector.load %arg12[%635, %c0_412, %c24_413] : memref<40x32x40xbf16, #tpu.memory_space<vmem>>, vector<1x32x16xbf16>
    %637 = vector.shape_cast %636 : vector<1x32x16xbf16> to vector<32x16xbf16>
    %c12_i32_414 = arith.constant 12 : i32
    %638 = arith.addi %c12_i32_414, %530 : i32
    %c12_i32_415 = arith.constant 12 : i32
    %639 = arith.addi %638, %c12_i32_415 : i32
    %640 = arith.index_cast %639 : i32 to index
    %c0_416 = arith.constant 0 : index
    %c0_417 = arith.constant 0 : index
    %641 = vector.load %arg12[%640, %c0_416, %c0_417] : memref<40x32x40xbf16, #tpu.memory_space<vmem>>, vector<1x32x16xbf16>
    %642 = vector.shape_cast %641 : vector<1x32x16xbf16> to vector<32x16xbf16>
    %643 = arith.index_cast %639 : i32 to index
    %c0_418 = arith.constant 0 : index
    %c12_419 = arith.constant 12 : index
    %644 = vector.load %arg12[%643, %c0_418, %c12_419] : memref<40x32x40xbf16, #tpu.memory_space<vmem>>, vector<1x32x16xbf16>
    %645 = vector.shape_cast %644 : vector<1x32x16xbf16> to vector<32x16xbf16>
    %646 = arith.index_cast %639 : i32 to index
    %c0_420 = arith.constant 0 : index
    %c24_421 = arith.constant 24 : index
    %647 = vector.load %arg12[%646, %c0_420, %c24_421] : memref<40x32x40xbf16, #tpu.memory_space<vmem>>, vector<1x32x16xbf16>
    %648 = vector.shape_cast %647 : vector<1x32x16xbf16> to vector<32x16xbf16>
    %649 = tpu.concatenate %620, %623, %626, %631, %634, %637, %642, %645, %648 in 0 : vector<32x16xbf16>, vector<32x16xbf16>, vector<32x16xbf16>, vector<32x16xbf16>, vector<32x16xbf16>, vector<32x16xbf16>, vector<32x16xbf16>, vector<32x16xbf16>, vector<32x16xbf16> -> vector<288x16xbf16>
    %cst_422 = arith.constant dense<0.000000e+00> : vector<32x16xf32>
    %650 = tpu.matmul %7, %649, %cst_422 {dimension_numbers = #tpu.dot_dimension_numbers<[1], [0], [0], [1], [0, 0, 1, 1], [], []>} : vector<32x288xbf16>, vector<288x16xbf16>, vector<32x16xf32> -> vector<32x16xf32>
    %651 = vector.broadcast %8 : vector<32x1xf32> to vector<32x16xf32>
    %652 = arith.addf %650, %651 : vector<32x16xf32>
    %cst_423 = arith.constant 0.000000e+00 : f32
    %653 = vector.broadcast %cst_423 : f32 to vector<32x16xf32>
    %654 = arith.maximumf %652, %653 : vector<32x16xf32>
    %655 = arith.addf %615, %654 : vector<32x16xf32>
    %c0_424 = arith.constant 0 : index
    %c0_425 = arith.constant 0 : index
    %c4_426 = arith.constant 4 : index
    %c0_427 = arith.constant 0 : index
    %656 = vector.load %arg11[%c0_424, %c0_425, %c4_426, %c0_427] : memref<1x32x8x16xf32, #tpu.memory_space<vmem>>, vector<1x32x1x16xf32>
    %657 = vector.shape_cast %656 : vector<1x32x1x16xf32> to vector<32x16xf32>
    %658 = vector.shape_cast %655 : vector<32x16xf32> to vector<1x32x1x16xf32>
    tpu.vector_store %arg11[%c0_424, %c0_425, %c4_426, %c0_427], %658 {strides = array<i32>} : memref<1x32x8x16xf32, #tpu.memory_space<vmem>>, vector<1x32x1x16xf32>,
    %c8_i32_428 = arith.constant 8 : i32
    %659 = arith.muli %arg1, %c8_i32_428 : i32
    %c5_i32 = arith.constant 5 : i32
    %660 = arith.addi %659, %c5_i32 : i32
    %c12_i32_429 = arith.constant 12 : i32
    %661 = arith.addi %c12_i32_429, %660 : i32
    %662 = arith.index_cast %661 : i32 to index
    %c0_430 = arith.constant 0 : index
    %c12_431 = arith.constant 12 : index
    %663 = vector.load %arg12[%662, %c0_430, %c12_431] : memref<40x32x40xbf16, #tpu.memory_space<vmem>>, vector<1x32x16xbf16>
    %664 = vector.shape_cast %663 : vector<1x32x16xbf16> to vector<32x16xbf16>
    %665 = arith.extf %664 : vector<32x16xbf16> to vector<32x16xf32>
    %c12_i32_432 = arith.constant 12 : i32
    %666 = arith.addi %c12_i32_432, %660 : i32
    %c-4_i32_433 = arith.constant -4 : i32
    %667 = arith.addi %666, %c-4_i32_433 : i32
    %668 = arith.index_cast %667 : i32 to index
    %c0_434 = arith.constant 0 : index
    %c8_435 = arith.constant 8 : index
    %669 = vector.load %arg12[%668, %c0_434, %c8_435] : memref<40x32x40xbf16, #tpu.memory_space<vmem>>, vector<1x32x16xbf16>
    %670 = vector.shape_cast %669 : vector<1x32x16xbf16> to vector<32x16xbf16>
    %671 = arith.index_cast %667 : i32 to index
    %c0_436 = arith.constant 0 : index
    %c12_437 = arith.constant 12 : index
    %672 = vector.load %arg12[%671, %c0_436, %c12_437] : memref<40x32x40xbf16, #tpu.memory_space<vmem>>, vector<1x32x16xbf16>
    %673 = vector.shape_cast %672 : vector<1x32x16xbf16> to vector<32x16xbf16>
    %674 = arith.index_cast %667 : i32 to index
    %c0_438 = arith.constant 0 : index
    %c16_439 = arith.constant 16 : index
    %675 = vector.load %arg12[%674, %c0_438, %c16_439] : memref<40x32x40xbf16, #tpu.memory_space<vmem>>, vector<1x32x16xbf16>
    %676 = vector.shape_cast %675 : vector<1x32x16xbf16> to vector<32x16xbf16>
    %c12_i32_440 = arith.constant 12 : i32
    %677 = arith.addi %c12_i32_440, %660 : i32
    %c0_i32_441 = arith.constant 0 : i32
    %678 = arith.addi %677, %c0_i32_441 : i32
    %679 = arith.index_cast %678 : i32 to index
    %c0_442 = arith.constant 0 : index
    %c8_443 = arith.constant 8 : index
    %680 = vector.load %arg12[%679, %c0_442, %c8_443] : memref<40x32x40xbf16, #tpu.memory_space<vmem>>, vector<1x32x16xbf16>
    %681 = vector.shape_cast %680 : vector<1x32x16xbf16> to vector<32x16xbf16>
    %682 = arith.index_cast %678 : i32 to index
    %c0_444 = arith.constant 0 : index
    %c12_445 = arith.constant 12 : index
    %683 = vector.load %arg12[%682, %c0_444, %c12_445] : memref<40x32x40xbf16, #tpu.memory_space<vmem>>, vector<1x32x16xbf16>
    %684 = vector.shape_cast %683 : vector<1x32x16xbf16> to vector<32x16xbf16>
    %685 = arith.index_cast %678 : i32 to index
    %c0_446 = arith.constant 0 : index
    %c16_447 = arith.constant 16 : index
    %686 = vector.load %arg12[%685, %c0_446, %c16_447] : memref<40x32x40xbf16, #tpu.memory_space<vmem>>, vector<1x32x16xbf16>
    %687 = vector.shape_cast %686 : vector<1x32x16xbf16> to vector<32x16xbf16>
    %c12_i32_448 = arith.constant 12 : i32
    %688 = arith.addi %c12_i32_448, %660 : i32
    %c4_i32_449 = arith.constant 4 : i32
    %689 = arith.addi %688, %c4_i32_449 : i32
    %690 = arith.index_cast %689 : i32 to index
    %c0_450 = arith.constant 0 : index
    %c8_451 = arith.constant 8 : index
    %691 = vector.load %arg12[%690, %c0_450, %c8_451] : memref<40x32x40xbf16, #tpu.memory_space<vmem>>, vector<1x32x16xbf16>
    %692 = vector.shape_cast %691 : vector<1x32x16xbf16> to vector<32x16xbf16>
    %693 = arith.index_cast %689 : i32 to index
    %c0_452 = arith.constant 0 : index
    %c12_453 = arith.constant 12 : index
    %694 = vector.load %arg12[%693, %c0_452, %c12_453] : memref<40x32x40xbf16, #tpu.memory_space<vmem>>, vector<1x32x16xbf16>
    %695 = vector.shape_cast %694 : vector<1x32x16xbf16> to vector<32x16xbf16>
    %696 = arith.index_cast %689 : i32 to index
    %c0_454 = arith.constant 0 : index
    %c16_455 = arith.constant 16 : index
    %697 = vector.load %arg12[%696, %c0_454, %c16_455] : memref<40x32x40xbf16, #tpu.memory_space<vmem>>, vector<1x32x16xbf16>
    %698 = vector.shape_cast %697 : vector<1x32x16xbf16> to vector<32x16xbf16>
    %699 = tpu.concatenate %670, %673, %676, %681, %684, %687, %692, %695, %698 in 0 : vector<32x16xbf16>, vector<32x16xbf16>, vector<32x16xbf16>, vector<32x16xbf16>, vector<32x16xbf16>, vector<32x16xbf16>, vector<32x16xbf16>, vector<32x16xbf16>, vector<32x16xbf16> -> vector<288x16xbf16>
    %cst_456 = arith.constant dense<0.000000e+00> : vector<32x16xf32>
    %700 = tpu.matmul %3, %699, %cst_456 {dimension_numbers = #tpu.dot_dimension_numbers<[1], [0], [0], [1], [0, 0, 1, 1], [], []>} : vector<32x288xbf16>, vector<288x16xbf16>, vector<32x16xf32> -> vector<32x16xf32>
    %701 = vector.broadcast %4 : vector<32x1xf32> to vector<32x16xf32>
    %702 = arith.addf %700, %701 : vector<32x16xf32>
    %cst_457 = arith.constant 0.000000e+00 : f32
    %703 = vector.broadcast %cst_457 : f32 to vector<32x16xf32>
    %704 = arith.maximumf %702, %703 : vector<32x16xf32>
    %705 = arith.addf %665, %704 : vector<32x16xf32>
    %c12_i32_458 = arith.constant 12 : i32
    %706 = arith.addi %c12_i32_458, %660 : i32
    %c-8_i32_459 = arith.constant -8 : i32
    %707 = arith.addi %706, %c-8_i32_459 : i32
    %708 = arith.index_cast %707 : i32 to index
    %c0_460 = arith.constant 0 : index
    %c4_461 = arith.constant 4 : index
    %709 = vector.load %arg12[%708, %c0_460, %c4_461] : memref<40x32x40xbf16, #tpu.memory_space<vmem>>, vector<1x32x16xbf16>
    %710 = vector.shape_cast %709 : vector<1x32x16xbf16> to vector<32x16xbf16>
    %711 = arith.index_cast %707 : i32 to index
    %c0_462 = arith.constant 0 : index
    %c12_463 = arith.constant 12 : index
    %712 = vector.load %arg12[%711, %c0_462, %c12_463] : memref<40x32x40xbf16, #tpu.memory_space<vmem>>, vector<1x32x16xbf16>
    %713 = vector.shape_cast %712 : vector<1x32x16xbf16> to vector<32x16xbf16>
    %714 = arith.index_cast %707 : i32 to index
    %c0_464 = arith.constant 0 : index
    %c20_465 = arith.constant 20 : index
    %715 = vector.load %arg12[%714, %c0_464, %c20_465] : memref<40x32x40xbf16, #tpu.memory_space<vmem>>, vector<1x32x16xbf16>
    %716 = vector.shape_cast %715 : vector<1x32x16xbf16> to vector<32x16xbf16>
    %c12_i32_466 = arith.constant 12 : i32
    %717 = arith.addi %c12_i32_466, %660 : i32
    %c0_i32_467 = arith.constant 0 : i32
    %718 = arith.addi %717, %c0_i32_467 : i32
    %719 = arith.index_cast %718 : i32 to index
    %c0_468 = arith.constant 0 : index
    %c4_469 = arith.constant 4 : index
    %720 = vector.load %arg12[%719, %c0_468, %c4_469] : memref<40x32x40xbf16, #tpu.memory_space<vmem>>, vector<1x32x16xbf16>
    %721 = vector.shape_cast %720 : vector<1x32x16xbf16> to vector<32x16xbf16>
    %722 = arith.index_cast %718 : i32 to index
    %c0_470 = arith.constant 0 : index
    %c12_471 = arith.constant 12 : index
    %723 = vector.load %arg12[%722, %c0_470, %c12_471] : memref<40x32x40xbf16, #tpu.memory_space<vmem>>, vector<1x32x16xbf16>
    %724 = vector.shape_cast %723 : vector<1x32x16xbf16> to vector<32x16xbf16>
    %725 = arith.index_cast %718 : i32 to index
    %c0_472 = arith.constant 0 : index
    %c20_473 = arith.constant 20 : index
    %726 = vector.load %arg12[%725, %c0_472, %c20_473] : memref<40x32x40xbf16, #tpu.memory_space<vmem>>, vector<1x32x16xbf16>
    %727 = vector.shape_cast %726 : vector<1x32x16xbf16> to vector<32x16xbf16>
    %c12_i32_474 = arith.constant 12 : i32
    %728 = arith.addi %c12_i32_474, %660 : i32
    %c8_i32_475 = arith.constant 8 : i32
    %729 = arith.addi %728, %c8_i32_475 : i32
    %730 = arith.index_cast %729 : i32 to index
    %c0_476 = arith.constant 0 : index
    %c4_477 = arith.constant 4 : index
    %731 = vector.load %arg12[%730, %c0_476, %c4_477] : memref<40x32x40xbf16, #tpu.memory_space<vmem>>, vector<1x32x16xbf16>
    %732 = vector.shape_cast %731 : vector<1x32x16xbf16> to vector<32x16xbf16>
    %733 = arith.index_cast %729 : i32 to index
    %c0_478 = arith.constant 0 : index
    %c12_479 = arith.constant 12 : index
    %734 = vector.load %arg12[%733, %c0_478, %c12_479] : memref<40x32x40xbf16, #tpu.memory_space<vmem>>, vector<1x32x16xbf16>
    %735 = vector.shape_cast %734 : vector<1x32x16xbf16> to vector<32x16xbf16>
    %736 = arith.index_cast %729 : i32 to index
    %c0_480 = arith.constant 0 : index
    %c20_481 = arith.constant 20 : index
    %737 = vector.load %arg12[%736, %c0_480, %c20_481] : memref<40x32x40xbf16, #tpu.memory_space<vmem>>, vector<1x32x16xbf16>
    %738 = vector.shape_cast %737 : vector<1x32x16xbf16> to vector<32x16xbf16>
    %739 = tpu.concatenate %710, %713, %716, %721, %724, %727, %732, %735, %738 in 0 : vector<32x16xbf16>, vector<32x16xbf16>, vector<32x16xbf16>, vector<32x16xbf16>, vector<32x16xbf16>, vector<32x16xbf16>, vector<32x16xbf16>, vector<32x16xbf16>, vector<32x16xbf16> -> vector<288x16xbf16>
    %cst_482 = arith.constant dense<0.000000e+00> : vector<32x16xf32>
    %740 = tpu.matmul %5, %739, %cst_482 {dimension_numbers = #tpu.dot_dimension_numbers<[1], [0], [0], [1], [0, 0, 1, 1], [], []>} : vector<32x288xbf16>, vector<288x16xbf16>, vector<32x16xf32> -> vector<32x16xf32>
    %741 = vector.broadcast %6 : vector<32x1xf32> to vector<32x16xf32>
    %742 = arith.addf %740, %741 : vector<32x16xf32>
    %cst_483 = arith.constant 0.000000e+00 : f32
    %743 = vector.broadcast %cst_483 : f32 to vector<32x16xf32>
    %744 = arith.maximumf %742, %743 : vector<32x16xf32>
    %745 = arith.addf %705, %744 : vector<32x16xf32>
    %c12_i32_484 = arith.constant 12 : i32
    %746 = arith.addi %c12_i32_484, %660 : i32
    %c-12_i32_485 = arith.constant -12 : i32
    %747 = arith.addi %746, %c-12_i32_485 : i32
    %748 = arith.index_cast %747 : i32 to index
    %c0_486 = arith.constant 0 : index
    %c0_487 = arith.constant 0 : index
    %749 = vector.load %arg12[%748, %c0_486, %c0_487] : memref<40x32x40xbf16, #tpu.memory_space<vmem>>, vector<1x32x16xbf16>
    %750 = vector.shape_cast %749 : vector<1x32x16xbf16> to vector<32x16xbf16>
    %751 = arith.index_cast %747 : i32 to index
    %c0_488 = arith.constant 0 : index
    %c12_489 = arith.constant 12 : index
    %752 = vector.load %arg12[%751, %c0_488, %c12_489] : memref<40x32x40xbf16, #tpu.memory_space<vmem>>, vector<1x32x16xbf16>
    %753 = vector.shape_cast %752 : vector<1x32x16xbf16> to vector<32x16xbf16>
    %754 = arith.index_cast %747 : i32 to index
    %c0_490 = arith.constant 0 : index
    %c24_491 = arith.constant 24 : index
    %755 = vector.load %arg12[%754, %c0_490, %c24_491] : memref<40x32x40xbf16, #tpu.memory_space<vmem>>, vector<1x32x16xbf16>
    %756 = vector.shape_cast %755 : vector<1x32x16xbf16> to vector<32x16xbf16>
    %c12_i32_492 = arith.constant 12 : i32
    %757 = arith.addi %c12_i32_492, %660 : i32
    %c0_i32_493 = arith.constant 0 : i32
    %758 = arith.addi %757, %c0_i32_493 : i32
    %759 = arith.index_cast %758 : i32 to index
    %c0_494 = arith.constant 0 : index
    %c0_495 = arith.constant 0 : index
    %760 = vector.load %arg12[%759, %c0_494, %c0_495] : memref<40x32x40xbf16, #tpu.memory_space<vmem>>, vector<1x32x16xbf16>
    %761 = vector.shape_cast %760 : vector<1x32x16xbf16> to vector<32x16xbf16>
    %762 = arith.index_cast %758 : i32 to index
    %c0_496 = arith.constant 0 : index
    %c12_497 = arith.constant 12 : index
    %763 = vector.load %arg12[%762, %c0_496, %c12_497] : memref<40x32x40xbf16, #tpu.memory_space<vmem>>, vector<1x32x16xbf16>
    %764 = vector.shape_cast %763 : vector<1x32x16xbf16> to vector<32x16xbf16>
    %765 = arith.index_cast %758 : i32 to index
    %c0_498 = arith.constant 0 : index
    %c24_499 = arith.constant 24 : index
    %766 = vector.load %arg12[%765, %c0_498, %c24_499] : memref<40x32x40xbf16, #tpu.memory_space<vmem>>, vector<1x32x16xbf16>
    %767 = vector.shape_cast %766 : vector<1x32x16xbf16> to vector<32x16xbf16>
    %c12_i32_500 = arith.constant 12 : i32
    %768 = arith.addi %c12_i32_500, %660 : i32
    %c12_i32_501 = arith.constant 12 : i32
    %769 = arith.addi %768, %c12_i32_501 : i32
    %770 = arith.index_cast %769 : i32 to index
    %c0_502 = arith.constant 0 : index
    %c0_503 = arith.constant 0 : index
    %771 = vector.load %arg12[%770, %c0_502, %c0_503] : memref<40x32x40xbf16, #tpu.memory_space<vmem>>, vector<1x32x16xbf16>
    %772 = vector.shape_cast %771 : vector<1x32x16xbf16> to vector<32x16xbf16>
    %773 = arith.index_cast %769 : i32 to index
    %c0_504 = arith.constant 0 : index
    %c12_505 = arith.constant 12 : index
    %774 = vector.load %arg12[%773, %c0_504, %c12_505] : memref<40x32x40xbf16, #tpu.memory_space<vmem>>, vector<1x32x16xbf16>
    %775 = vector.shape_cast %774 : vector<1x32x16xbf16> to vector<32x16xbf16>
    %776 = arith.index_cast %769 : i32 to index
    %c0_506 = arith.constant 0 : index
    %c24_507 = arith.constant 24 : index
    %777 = vector.load %arg12[%776, %c0_506, %c24_507] : memref<40x32x40xbf16, #tpu.memory_space<vmem>>, vector<1x32x16xbf16>
    %778 = vector.shape_cast %777 : vector<1x32x16xbf16> to vector<32x16xbf16>
    %779 = tpu.concatenate %750, %753, %756, %761, %764, %767, %772, %775, %778 in 0 : vector<32x16xbf16>, vector<32x16xbf16>, vector<32x16xbf16>, vector<32x16xbf16>, vector<32x16xbf16>, vector<32x16xbf16>, vector<32x16xbf16>, vector<32x16xbf16>, vector<32x16xbf16> -> vector<288x16xbf16>
    %cst_508 = arith.constant dense<0.000000e+00> : vector<32x16xf32>
    %780 = tpu.matmul %7, %779, %cst_508 {dimension_numbers = #tpu.dot_dimension_numbers<[1], [0], [0], [1], [0, 0, 1, 1], [], []>} : vector<32x288xbf16>, vector<288x16xbf16>, vector<32x16xf32> -> vector<32x16xf32>
    %781 = vector.broadcast %8 : vector<32x1xf32> to vector<32x16xf32>
    %782 = arith.addf %780, %781 : vector<32x16xf32>
    %cst_509 = arith.constant 0.000000e+00 : f32
    %783 = vector.broadcast %cst_509 : f32 to vector<32x16xf32>
    %784 = arith.maximumf %782, %783 : vector<32x16xf32>
    %785 = arith.addf %745, %784 : vector<32x16xf32>
    %c0_510 = arith.constant 0 : index
    %c0_511 = arith.constant 0 : index
    %c5 = arith.constant 5 : index
    %c0_512 = arith.constant 0 : index
    %786 = vector.load %arg11[%c0_510, %c0_511, %c5, %c0_512] : memref<1x32x8x16xf32, #tpu.memory_space<vmem>>, vector<1x32x1x16xf32>
    %787 = vector.shape_cast %786 : vector<1x32x1x16xf32> to vector<32x16xf32>
    %788 = vector.shape_cast %785 : vector<32x16xf32> to vector<1x32x1x16xf32>
    tpu.vector_store %arg11[%c0_510, %c0_511, %c5, %c0_512], %788 {strides = array<i32>} : memref<1x32x8x16xf32, #tpu.memory_space<vmem>>, vector<1x32x1x16xf32>,
    %c8_i32_513 = arith.constant 8 : i32
    %789 = arith.muli %arg1, %c8_i32_513 : i32
    %c6_i32 = arith.constant 6 : i32
    %790 = arith.addi %789, %c6_i32 : i32
    %c12_i32_514 = arith.constant 12 : i32
    %791 = arith.addi %c12_i32_514, %790 : i32
    %792 = arith.index_cast %791 : i32 to index
    %c0_515 = arith.constant 0 : index
    %c12_516 = arith.constant 12 : index
    %793 = vector.load %arg12[%792, %c0_515, %c12_516] : memref<40x32x40xbf16, #tpu.memory_space<vmem>>, vector<1x32x16xbf16>
    %794 = vector.shape_cast %793 : vector<1x32x16xbf16> to vector<32x16xbf16>
    %795 = arith.extf %794 : vector<32x16xbf16> to vector<32x16xf32>
    %c12_i32_517 = arith.constant 12 : i32
    %796 = arith.addi %c12_i32_517, %790 : i32
    %c-4_i32_518 = arith.constant -4 : i32
    %797 = arith.addi %796, %c-4_i32_518 : i32
    %798 = arith.index_cast %797 : i32 to index
    %c0_519 = arith.constant 0 : index
    %c8_520 = arith.constant 8 : index
    %799 = vector.load %arg12[%798, %c0_519, %c8_520] : memref<40x32x40xbf16, #tpu.memory_space<vmem>>, vector<1x32x16xbf16>
    %800 = vector.shape_cast %799 : vector<1x32x16xbf16> to vector<32x16xbf16>
    %801 = arith.index_cast %797 : i32 to index
    %c0_521 = arith.constant 0 : index
    %c12_522 = arith.constant 12 : index
    %802 = vector.load %arg12[%801, %c0_521, %c12_522] : memref<40x32x40xbf16, #tpu.memory_space<vmem>>, vector<1x32x16xbf16>
    %803 = vector.shape_cast %802 : vector<1x32x16xbf16> to vector<32x16xbf16>
    %804 = arith.index_cast %797 : i32 to index
    %c0_523 = arith.constant 0 : index
    %c16_524 = arith.constant 16 : index
    %805 = vector.load %arg12[%804, %c0_523, %c16_524] : memref<40x32x40xbf16, #tpu.memory_space<vmem>>, vector<1x32x16xbf16>
    %806 = vector.shape_cast %805 : vector<1x32x16xbf16> to vector<32x16xbf16>
    %c12_i32_525 = arith.constant 12 : i32
    %807 = arith.addi %c12_i32_525, %790 : i32
    %c0_i32_526 = arith.constant 0 : i32
    %808 = arith.addi %807, %c0_i32_526 : i32
    %809 = arith.index_cast %808 : i32 to index
    %c0_527 = arith.constant 0 : index
    %c8_528 = arith.constant 8 : index
    %810 = vector.load %arg12[%809, %c0_527, %c8_528] : memref<40x32x40xbf16, #tpu.memory_space<vmem>>, vector<1x32x16xbf16>
    %811 = vector.shape_cast %810 : vector<1x32x16xbf16> to vector<32x16xbf16>
    %812 = arith.index_cast %808 : i32 to index
    %c0_529 = arith.constant 0 : index
    %c12_530 = arith.constant 12 : index
    %813 = vector.load %arg12[%812, %c0_529, %c12_530] : memref<40x32x40xbf16, #tpu.memory_space<vmem>>, vector<1x32x16xbf16>
    %814 = vector.shape_cast %813 : vector<1x32x16xbf16> to vector<32x16xbf16>
    %815 = arith.index_cast %808 : i32 to index
    %c0_531 = arith.constant 0 : index
    %c16_532 = arith.constant 16 : index
    %816 = vector.load %arg12[%815, %c0_531, %c16_532] : memref<40x32x40xbf16, #tpu.memory_space<vmem>>, vector<1x32x16xbf16>
    %817 = vector.shape_cast %816 : vector<1x32x16xbf16> to vector<32x16xbf16>
    %c12_i32_533 = arith.constant 12 : i32
    %818 = arith.addi %c12_i32_533, %790 : i32
    %c4_i32_534 = arith.constant 4 : i32
    %819 = arith.addi %818, %c4_i32_534 : i32
    %820 = arith.index_cast %819 : i32 to index
    %c0_535 = arith.constant 0 : index
    %c8_536 = arith.constant 8 : index
    %821 = vector.load %arg12[%820, %c0_535, %c8_536] : memref<40x32x40xbf16, #tpu.memory_space<vmem>>, vector<1x32x16xbf16>
    %822 = vector.shape_cast %821 : vector<1x32x16xbf16> to vector<32x16xbf16>
    %823 = arith.index_cast %819 : i32 to index
    %c0_537 = arith.constant 0 : index
    %c12_538 = arith.constant 12 : index
    %824 = vector.load %arg12[%823, %c0_537, %c12_538] : memref<40x32x40xbf16, #tpu.memory_space<vmem>>, vector<1x32x16xbf16>
    %825 = vector.shape_cast %824 : vector<1x32x16xbf16> to vector<32x16xbf16>
    %826 = arith.index_cast %819 : i32 to index
    %c0_539 = arith.constant 0 : index
    %c16_540 = arith.constant 16 : index
    %827 = vector.load %arg12[%826, %c0_539, %c16_540] : memref<40x32x40xbf16, #tpu.memory_space<vmem>>, vector<1x32x16xbf16>
    %828 = vector.shape_cast %827 : vector<1x32x16xbf16> to vector<32x16xbf16>
    %829 = tpu.concatenate %800, %803, %806, %811, %814, %817, %822, %825, %828 in 0 : vector<32x16xbf16>, vector<32x16xbf16>, vector<32x16xbf16>, vector<32x16xbf16>, vector<32x16xbf16>, vector<32x16xbf16>, vector<32x16xbf16>, vector<32x16xbf16>, vector<32x16xbf16> -> vector<288x16xbf16>
    %cst_541 = arith.constant dense<0.000000e+00> : vector<32x16xf32>
    %830 = tpu.matmul %3, %829, %cst_541 {dimension_numbers = #tpu.dot_dimension_numbers<[1], [0], [0], [1], [0, 0, 1, 1], [], []>} : vector<32x288xbf16>, vector<288x16xbf16>, vector<32x16xf32> -> vector<32x16xf32>
    %831 = vector.broadcast %4 : vector<32x1xf32> to vector<32x16xf32>
    %832 = arith.addf %830, %831 : vector<32x16xf32>
    %cst_542 = arith.constant 0.000000e+00 : f32
    %833 = vector.broadcast %cst_542 : f32 to vector<32x16xf32>
    %834 = arith.maximumf %832, %833 : vector<32x16xf32>
    %835 = arith.addf %795, %834 : vector<32x16xf32>
    %c12_i32_543 = arith.constant 12 : i32
    %836 = arith.addi %c12_i32_543, %790 : i32
    %c-8_i32_544 = arith.constant -8 : i32
    %837 = arith.addi %836, %c-8_i32_544 : i32
    %838 = arith.index_cast %837 : i32 to index
    %c0_545 = arith.constant 0 : index
    %c4_546 = arith.constant 4 : index
    %839 = vector.load %arg12[%838, %c0_545, %c4_546] : memref<40x32x40xbf16, #tpu.memory_space<vmem>>, vector<1x32x16xbf16>
    %840 = vector.shape_cast %839 : vector<1x32x16xbf16> to vector<32x16xbf16>
    %841 = arith.index_cast %837 : i32 to index
    %c0_547 = arith.constant 0 : index
    %c12_548 = arith.constant 12 : index
    %842 = vector.load %arg12[%841, %c0_547, %c12_548] : memref<40x32x40xbf16, #tpu.memory_space<vmem>>, vector<1x32x16xbf16>
    %843 = vector.shape_cast %842 : vector<1x32x16xbf16> to vector<32x16xbf16>
    %844 = arith.index_cast %837 : i32 to index
    %c0_549 = arith.constant 0 : index
    %c20_550 = arith.constant 20 : index
    %845 = vector.load %arg12[%844, %c0_549, %c20_550] : memref<40x32x40xbf16, #tpu.memory_space<vmem>>, vector<1x32x16xbf16>
    %846 = vector.shape_cast %845 : vector<1x32x16xbf16> to vector<32x16xbf16>
    %c12_i32_551 = arith.constant 12 : i32
    %847 = arith.addi %c12_i32_551, %790 : i32
    %c0_i32_552 = arith.constant 0 : i32
    %848 = arith.addi %847, %c0_i32_552 : i32
    %849 = arith.index_cast %848 : i32 to index
    %c0_553 = arith.constant 0 : index
    %c4_554 = arith.constant 4 : index
    %850 = vector.load %arg12[%849, %c0_553, %c4_554] : memref<40x32x40xbf16, #tpu.memory_space<vmem>>, vector<1x32x16xbf16>
    %851 = vector.shape_cast %850 : vector<1x32x16xbf16> to vector<32x16xbf16>
    %852 = arith.index_cast %848 : i32 to index
    %c0_555 = arith.constant 0 : index
    %c12_556 = arith.constant 12 : index
    %853 = vector.load %arg12[%852, %c0_555, %c12_556] : memref<40x32x40xbf16, #tpu.memory_space<vmem>>, vector<1x32x16xbf16>
    %854 = vector.shape_cast %853 : vector<1x32x16xbf16> to vector<32x16xbf16>
    %855 = arith.index_cast %848 : i32 to index
    %c0_557 = arith.constant 0 : index
    %c20_558 = arith.constant 20 : index
    %856 = vector.load %arg12[%855, %c0_557, %c20_558] : memref<40x32x40xbf16, #tpu.memory_space<vmem>>, vector<1x32x16xbf16>
    %857 = vector.shape_cast %856 : vector<1x32x16xbf16> to vector<32x16xbf16>
    %c12_i32_559 = arith.constant 12 : i32
    %858 = arith.addi %c12_i32_559, %790 : i32
    %c8_i32_560 = arith.constant 8 : i32
    %859 = arith.addi %858, %c8_i32_560 : i32
    %860 = arith.index_cast %859 : i32 to index
    %c0_561 = arith.constant 0 : index
    %c4_562 = arith.constant 4 : index
    %861 = vector.load %arg12[%860, %c0_561, %c4_562] : memref<40x32x40xbf16, #tpu.memory_space<vmem>>, vector<1x32x16xbf16>
    %862 = vector.shape_cast %861 : vector<1x32x16xbf16> to vector<32x16xbf16>
    %863 = arith.index_cast %859 : i32 to index
    %c0_563 = arith.constant 0 : index
    %c12_564 = arith.constant 12 : index
    %864 = vector.load %arg12[%863, %c0_563, %c12_564] : memref<40x32x40xbf16, #tpu.memory_space<vmem>>, vector<1x32x16xbf16>
    %865 = vector.shape_cast %864 : vector<1x32x16xbf16> to vector<32x16xbf16>
    %866 = arith.index_cast %859 : i32 to index
    %c0_565 = arith.constant 0 : index
    %c20_566 = arith.constant 20 : index
    %867 = vector.load %arg12[%866, %c0_565, %c20_566] : memref<40x32x40xbf16, #tpu.memory_space<vmem>>, vector<1x32x16xbf16>
    %868 = vector.shape_cast %867 : vector<1x32x16xbf16> to vector<32x16xbf16>
    %869 = tpu.concatenate %840, %843, %846, %851, %854, %857, %862, %865, %868 in 0 : vector<32x16xbf16>, vector<32x16xbf16>, vector<32x16xbf16>, vector<32x16xbf16>, vector<32x16xbf16>, vector<32x16xbf16>, vector<32x16xbf16>, vector<32x16xbf16>, vector<32x16xbf16> -> vector<288x16xbf16>
    %cst_567 = arith.constant dense<0.000000e+00> : vector<32x16xf32>
    %870 = tpu.matmul %5, %869, %cst_567 {dimension_numbers = #tpu.dot_dimension_numbers<[1], [0], [0], [1], [0, 0, 1, 1], [], []>} : vector<32x288xbf16>, vector<288x16xbf16>, vector<32x16xf32> -> vector<32x16xf32>
    %871 = vector.broadcast %6 : vector<32x1xf32> to vector<32x16xf32>
    %872 = arith.addf %870, %871 : vector<32x16xf32>
    %cst_568 = arith.constant 0.000000e+00 : f32
    %873 = vector.broadcast %cst_568 : f32 to vector<32x16xf32>
    %874 = arith.maximumf %872, %873 : vector<32x16xf32>
    %875 = arith.addf %835, %874 : vector<32x16xf32>
    %c12_i32_569 = arith.constant 12 : i32
    %876 = arith.addi %c12_i32_569, %790 : i32
    %c-12_i32_570 = arith.constant -12 : i32
    %877 = arith.addi %876, %c-12_i32_570 : i32
    %878 = arith.index_cast %877 : i32 to index
    %c0_571 = arith.constant 0 : index
    %c0_572 = arith.constant 0 : index
    %879 = vector.load %arg12[%878, %c0_571, %c0_572] : memref<40x32x40xbf16, #tpu.memory_space<vmem>>, vector<1x32x16xbf16>
    %880 = vector.shape_cast %879 : vector<1x32x16xbf16> to vector<32x16xbf16>
    %881 = arith.index_cast %877 : i32 to index
    %c0_573 = arith.constant 0 : index
    %c12_574 = arith.constant 12 : index
    %882 = vector.load %arg12[%881, %c0_573, %c12_574] : memref<40x32x40xbf16, #tpu.memory_space<vmem>>, vector<1x32x16xbf16>
    %883 = vector.shape_cast %882 : vector<1x32x16xbf16> to vector<32x16xbf16>
    %884 = arith.index_cast %877 : i32 to index
    %c0_575 = arith.constant 0 : index
    %c24_576 = arith.constant 24 : index
    %885 = vector.load %arg12[%884, %c0_575, %c24_576] : memref<40x32x40xbf16, #tpu.memory_space<vmem>>, vector<1x32x16xbf16>
    %886 = vector.shape_cast %885 : vector<1x32x16xbf16> to vector<32x16xbf16>
    %c12_i32_577 = arith.constant 12 : i32
    %887 = arith.addi %c12_i32_577, %790 : i32
    %c0_i32_578 = arith.constant 0 : i32
    %888 = arith.addi %887, %c0_i32_578 : i32
    %889 = arith.index_cast %888 : i32 to index
    %c0_579 = arith.constant 0 : index
    %c0_580 = arith.constant 0 : index
    %890 = vector.load %arg12[%889, %c0_579, %c0_580] : memref<40x32x40xbf16, #tpu.memory_space<vmem>>, vector<1x32x16xbf16>
    %891 = vector.shape_cast %890 : vector<1x32x16xbf16> to vector<32x16xbf16>
    %892 = arith.index_cast %888 : i32 to index
    %c0_581 = arith.constant 0 : index
    %c12_582 = arith.constant 12 : index
    %893 = vector.load %arg12[%892, %c0_581, %c12_582] : memref<40x32x40xbf16, #tpu.memory_space<vmem>>, vector<1x32x16xbf16>
    %894 = vector.shape_cast %893 : vector<1x32x16xbf16> to vector<32x16xbf16>
    %895 = arith.index_cast %888 : i32 to index
    %c0_583 = arith.constant 0 : index
    %c24_584 = arith.constant 24 : index
    %896 = vector.load %arg12[%895, %c0_583, %c24_584] : memref<40x32x40xbf16, #tpu.memory_space<vmem>>, vector<1x32x16xbf16>
    %897 = vector.shape_cast %896 : vector<1x32x16xbf16> to vector<32x16xbf16>
    %c12_i32_585 = arith.constant 12 : i32
    %898 = arith.addi %c12_i32_585, %790 : i32
    %c12_i32_586 = arith.constant 12 : i32
    %899 = arith.addi %898, %c12_i32_586 : i32
    %900 = arith.index_cast %899 : i32 to index
    %c0_587 = arith.constant 0 : index
    %c0_588 = arith.constant 0 : index
    %901 = vector.load %arg12[%900, %c0_587, %c0_588] : memref<40x32x40xbf16, #tpu.memory_space<vmem>>, vector<1x32x16xbf16>
    %902 = vector.shape_cast %901 : vector<1x32x16xbf16> to vector<32x16xbf16>
    %903 = arith.index_cast %899 : i32 to index
    %c0_589 = arith.constant 0 : index
    %c12_590 = arith.constant 12 : index
    %904 = vector.load %arg12[%903, %c0_589, %c12_590] : memref<40x32x40xbf16, #tpu.memory_space<vmem>>, vector<1x32x16xbf16>
    %905 = vector.shape_cast %904 : vector<1x32x16xbf16> to vector<32x16xbf16>
    %906 = arith.index_cast %899 : i32 to index
    %c0_591 = arith.constant 0 : index
    %c24_592 = arith.constant 24 : index
    %907 = vector.load %arg12[%906, %c0_591, %c24_592] : memref<40x32x40xbf16, #tpu.memory_space<vmem>>, vector<1x32x16xbf16>
    %908 = vector.shape_cast %907 : vector<1x32x16xbf16> to vector<32x16xbf16>
    %909 = tpu.concatenate %880, %883, %886, %891, %894, %897, %902, %905, %908 in 0 : vector<32x16xbf16>, vector<32x16xbf16>, vector<32x16xbf16>, vector<32x16xbf16>, vector<32x16xbf16>, vector<32x16xbf16>, vector<32x16xbf16>, vector<32x16xbf16>, vector<32x16xbf16> -> vector<288x16xbf16>
    %cst_593 = arith.constant dense<0.000000e+00> : vector<32x16xf32>
    %910 = tpu.matmul %7, %909, %cst_593 {dimension_numbers = #tpu.dot_dimension_numbers<[1], [0], [0], [1], [0, 0, 1, 1], [], []>} : vector<32x288xbf16>, vector<288x16xbf16>, vector<32x16xf32> -> vector<32x16xf32>
    %911 = vector.broadcast %8 : vector<32x1xf32> to vector<32x16xf32>
    %912 = arith.addf %910, %911 : vector<32x16xf32>
    %cst_594 = arith.constant 0.000000e+00 : f32
    %913 = vector.broadcast %cst_594 : f32 to vector<32x16xf32>
    %914 = arith.maximumf %912, %913 : vector<32x16xf32>
    %915 = arith.addf %875, %914 : vector<32x16xf32>
    %c0_595 = arith.constant 0 : index
    %c0_596 = arith.constant 0 : index
    %c6 = arith.constant 6 : index
    %c0_597 = arith.constant 0 : index
    %916 = vector.load %arg11[%c0_595, %c0_596, %c6, %c0_597] : memref<1x32x8x16xf32, #tpu.memory_space<vmem>>, vector<1x32x1x16xf32>
    %917 = vector.shape_cast %916 : vector<1x32x1x16xf32> to vector<32x16xf32>
    %918 = vector.shape_cast %915 : vector<32x16xf32> to vector<1x32x1x16xf32>
    tpu.vector_store %arg11[%c0_595, %c0_596, %c6, %c0_597], %918 {strides = array<i32>} : memref<1x32x8x16xf32, #tpu.memory_space<vmem>>, vector<1x32x1x16xf32>,
    %c8_i32_598 = arith.constant 8 : i32
    %919 = arith.muli %arg1, %c8_i32_598 : i32
    %c7_i32 = arith.constant 7 : i32
    %920 = arith.addi %919, %c7_i32 : i32
    %c12_i32_599 = arith.constant 12 : i32
    %921 = arith.addi %c12_i32_599, %920 : i32
    %922 = arith.index_cast %921 : i32 to index
    %c0_600 = arith.constant 0 : index
    %c12_601 = arith.constant 12 : index
    %923 = vector.load %arg12[%922, %c0_600, %c12_601] : memref<40x32x40xbf16, #tpu.memory_space<vmem>>, vector<1x32x16xbf16>
    %924 = vector.shape_cast %923 : vector<1x32x16xbf16> to vector<32x16xbf16>
    %925 = arith.extf %924 : vector<32x16xbf16> to vector<32x16xf32>
    %c12_i32_602 = arith.constant 12 : i32
    %926 = arith.addi %c12_i32_602, %920 : i32
    %c-4_i32_603 = arith.constant -4 : i32
    %927 = arith.addi %926, %c-4_i32_603 : i32
    %928 = arith.index_cast %927 : i32 to index
    %c0_604 = arith.constant 0 : index
    %c8_605 = arith.constant 8 : index
    %929 = vector.load %arg12[%928, %c0_604, %c8_605] : memref<40x32x40xbf16, #tpu.memory_space<vmem>>, vector<1x32x16xbf16>
    %930 = vector.shape_cast %929 : vector<1x32x16xbf16> to vector<32x16xbf16>
    %931 = arith.index_cast %927 : i32 to index
    %c0_606 = arith.constant 0 : index
    %c12_607 = arith.constant 12 : index
    %932 = vector.load %arg12[%931, %c0_606, %c12_607] : memref<40x32x40xbf16, #tpu.memory_space<vmem>>, vector<1x32x16xbf16>
    %933 = vector.shape_cast %932 : vector<1x32x16xbf16> to vector<32x16xbf16>
    %934 = arith.index_cast %927 : i32 to index
    %c0_608 = arith.constant 0 : index
    %c16_609 = arith.constant 16 : index
    %935 = vector.load %arg12[%934, %c0_608, %c16_609] : memref<40x32x40xbf16, #tpu.memory_space<vmem>>, vector<1x32x16xbf16>
    %936 = vector.shape_cast %935 : vector<1x32x16xbf16> to vector<32x16xbf16>
    %c12_i32_610 = arith.constant 12 : i32
    %937 = arith.addi %c12_i32_610, %920 : i32
    %c0_i32_611 = arith.constant 0 : i32
    %938 = arith.addi %937, %c0_i32_611 : i32
    %939 = arith.index_cast %938 : i32 to index
    %c0_612 = arith.constant 0 : index
    %c8_613 = arith.constant 8 : index
    %940 = vector.load %arg12[%939, %c0_612, %c8_613] : memref<40x32x40xbf16, #tpu.memory_space<vmem>>, vector<1x32x16xbf16>
    %941 = vector.shape_cast %940 : vector<1x32x16xbf16> to vector<32x16xbf16>
    %942 = arith.index_cast %938 : i32 to index
    %c0_614 = arith.constant 0 : index
    %c12_615 = arith.constant 12 : index
    %943 = vector.load %arg12[%942, %c0_614, %c12_615] : memref<40x32x40xbf16, #tpu.memory_space<vmem>>, vector<1x32x16xbf16>
    %944 = vector.shape_cast %943 : vector<1x32x16xbf16> to vector<32x16xbf16>
    %945 = arith.index_cast %938 : i32 to index
    %c0_616 = arith.constant 0 : index
    %c16_617 = arith.constant 16 : index
    %946 = vector.load %arg12[%945, %c0_616, %c16_617] : memref<40x32x40xbf16, #tpu.memory_space<vmem>>, vector<1x32x16xbf16>
    %947 = vector.shape_cast %946 : vector<1x32x16xbf16> to vector<32x16xbf16>
    %c12_i32_618 = arith.constant 12 : i32
    %948 = arith.addi %c12_i32_618, %920 : i32
    %c4_i32_619 = arith.constant 4 : i32
    %949 = arith.addi %948, %c4_i32_619 : i32
    %950 = arith.index_cast %949 : i32 to index
    %c0_620 = arith.constant 0 : index
    %c8_621 = arith.constant 8 : index
    %951 = vector.load %arg12[%950, %c0_620, %c8_621] : memref<40x32x40xbf16, #tpu.memory_space<vmem>>, vector<1x32x16xbf16>
    %952 = vector.shape_cast %951 : vector<1x32x16xbf16> to vector<32x16xbf16>
    %953 = arith.index_cast %949 : i32 to index
    %c0_622 = arith.constant 0 : index
    %c12_623 = arith.constant 12 : index
    %954 = vector.load %arg12[%953, %c0_622, %c12_623] : memref<40x32x40xbf16, #tpu.memory_space<vmem>>, vector<1x32x16xbf16>
    %955 = vector.shape_cast %954 : vector<1x32x16xbf16> to vector<32x16xbf16>
    %956 = arith.index_cast %949 : i32 to index
    %c0_624 = arith.constant 0 : index
    %c16_625 = arith.constant 16 : index
    %957 = vector.load %arg12[%956, %c0_624, %c16_625] : memref<40x32x40xbf16, #tpu.memory_space<vmem>>, vector<1x32x16xbf16>
    %958 = vector.shape_cast %957 : vector<1x32x16xbf16> to vector<32x16xbf16>
    %959 = tpu.concatenate %930, %933, %936, %941, %944, %947, %952, %955, %958 in 0 : vector<32x16xbf16>, vector<32x16xbf16>, vector<32x16xbf16>, vector<32x16xbf16>, vector<32x16xbf16>, vector<32x16xbf16>, vector<32x16xbf16>, vector<32x16xbf16>, vector<32x16xbf16> -> vector<288x16xbf16>
    %cst_626 = arith.constant dense<0.000000e+00> : vector<32x16xf32>
    %960 = tpu.matmul %3, %959, %cst_626 {dimension_numbers = #tpu.dot_dimension_numbers<[1], [0], [0], [1], [0, 0, 1, 1], [], []>} : vector<32x288xbf16>, vector<288x16xbf16>, vector<32x16xf32> -> vector<32x16xf32>
    %961 = vector.broadcast %4 : vector<32x1xf32> to vector<32x16xf32>
    %962 = arith.addf %960, %961 : vector<32x16xf32>
    %cst_627 = arith.constant 0.000000e+00 : f32
    %963 = vector.broadcast %cst_627 : f32 to vector<32x16xf32>
    %964 = arith.maximumf %962, %963 : vector<32x16xf32>
    %965 = arith.addf %925, %964 : vector<32x16xf32>
    %c12_i32_628 = arith.constant 12 : i32
    %966 = arith.addi %c12_i32_628, %920 : i32
    %c-8_i32_629 = arith.constant -8 : i32
    %967 = arith.addi %966, %c-8_i32_629 : i32
    %968 = arith.index_cast %967 : i32 to index
    %c0_630 = arith.constant 0 : index
    %c4_631 = arith.constant 4 : index
    %969 = vector.load %arg12[%968, %c0_630, %c4_631] : memref<40x32x40xbf16, #tpu.memory_space<vmem>>, vector<1x32x16xbf16>
    %970 = vector.shape_cast %969 : vector<1x32x16xbf16> to vector<32x16xbf16>
    %971 = arith.index_cast %967 : i32 to index
    %c0_632 = arith.constant 0 : index
    %c12_633 = arith.constant 12 : index
    %972 = vector.load %arg12[%971, %c0_632, %c12_633] : memref<40x32x40xbf16, #tpu.memory_space<vmem>>, vector<1x32x16xbf16>
    %973 = vector.shape_cast %972 : vector<1x32x16xbf16> to vector<32x16xbf16>
    %974 = arith.index_cast %967 : i32 to index
    %c0_634 = arith.constant 0 : index
    %c20_635 = arith.constant 20 : index
    %975 = vector.load %arg12[%974, %c0_634, %c20_635] : memref<40x32x40xbf16, #tpu.memory_space<vmem>>, vector<1x32x16xbf16>
    %976 = vector.shape_cast %975 : vector<1x32x16xbf16> to vector<32x16xbf16>
    %c12_i32_636 = arith.constant 12 : i32
    %977 = arith.addi %c12_i32_636, %920 : i32
    %c0_i32_637 = arith.constant 0 : i32
    %978 = arith.addi %977, %c0_i32_637 : i32
    %979 = arith.index_cast %978 : i32 to index
    %c0_638 = arith.constant 0 : index
    %c4_639 = arith.constant 4 : index
    %980 = vector.load %arg12[%979, %c0_638, %c4_639] : memref<40x32x40xbf16, #tpu.memory_space<vmem>>, vector<1x32x16xbf16>
    %981 = vector.shape_cast %980 : vector<1x32x16xbf16> to vector<32x16xbf16>
    %982 = arith.index_cast %978 : i32 to index
    %c0_640 = arith.constant 0 : index
    %c12_641 = arith.constant 12 : index
    %983 = vector.load %arg12[%982, %c0_640, %c12_641] : memref<40x32x40xbf16, #tpu.memory_space<vmem>>, vector<1x32x16xbf16>
    %984 = vector.shape_cast %983 : vector<1x32x16xbf16> to vector<32x16xbf16>
    %985 = arith.index_cast %978 : i32 to index
    %c0_642 = arith.constant 0 : index
    %c20_643 = arith.constant 20 : index
    %986 = vector.load %arg12[%985, %c0_642, %c20_643] : memref<40x32x40xbf16, #tpu.memory_space<vmem>>, vector<1x32x16xbf16>
    %987 = vector.shape_cast %986 : vector<1x32x16xbf16> to vector<32x16xbf16>
    %c12_i32_644 = arith.constant 12 : i32
    %988 = arith.addi %c12_i32_644, %920 : i32
    %c8_i32_645 = arith.constant 8 : i32
    %989 = arith.addi %988, %c8_i32_645 : i32
    %990 = arith.index_cast %989 : i32 to index
    %c0_646 = arith.constant 0 : index
    %c4_647 = arith.constant 4 : index
    %991 = vector.load %arg12[%990, %c0_646, %c4_647] : memref<40x32x40xbf16, #tpu.memory_space<vmem>>, vector<1x32x16xbf16>
    %992 = vector.shape_cast %991 : vector<1x32x16xbf16> to vector<32x16xbf16>
    %993 = arith.index_cast %989 : i32 to index
    %c0_648 = arith.constant 0 : index
    %c12_649 = arith.constant 12 : index
    %994 = vector.load %arg12[%993, %c0_648, %c12_649] : memref<40x32x40xbf16, #tpu.memory_space<vmem>>, vector<1x32x16xbf16>
    %995 = vector.shape_cast %994 : vector<1x32x16xbf16> to vector<32x16xbf16>
    %996 = arith.index_cast %989 : i32 to index
    %c0_650 = arith.constant 0 : index
    %c20_651 = arith.constant 20 : index
    %997 = vector.load %arg12[%996, %c0_650, %c20_651] : memref<40x32x40xbf16, #tpu.memory_space<vmem>>, vector<1x32x16xbf16>
    %998 = vector.shape_cast %997 : vector<1x32x16xbf16> to vector<32x16xbf16>
    %999 = tpu.concatenate %970, %973, %976, %981, %984, %987, %992, %995, %998 in 0 : vector<32x16xbf16>, vector<32x16xbf16>, vector<32x16xbf16>, vector<32x16xbf16>, vector<32x16xbf16>, vector<32x16xbf16>, vector<32x16xbf16>, vector<32x16xbf16>, vector<32x16xbf16> -> vector<288x16xbf16>
    %cst_652 = arith.constant dense<0.000000e+00> : vector<32x16xf32>
    %1000 = tpu.matmul %5, %999, %cst_652 {dimension_numbers = #tpu.dot_dimension_numbers<[1], [0], [0], [1], [0, 0, 1, 1], [], []>} : vector<32x288xbf16>, vector<288x16xbf16>, vector<32x16xf32> -> vector<32x16xf32>
    %1001 = vector.broadcast %6 : vector<32x1xf32> to vector<32x16xf32>
    %1002 = arith.addf %1000, %1001 : vector<32x16xf32>
    %cst_653 = arith.constant 0.000000e+00 : f32
    %1003 = vector.broadcast %cst_653 : f32 to vector<32x16xf32>
    %1004 = arith.maximumf %1002, %1003 : vector<32x16xf32>
    %1005 = arith.addf %965, %1004 : vector<32x16xf32>
    %c12_i32_654 = arith.constant 12 : i32
    %1006 = arith.addi %c12_i32_654, %920 : i32
    %c-12_i32_655 = arith.constant -12 : i32
    %1007 = arith.addi %1006, %c-12_i32_655 : i32
    %1008 = arith.index_cast %1007 : i32 to index
    %c0_656 = arith.constant 0 : index
    %c0_657 = arith.constant 0 : index
    %1009 = vector.load %arg12[%1008, %c0_656, %c0_657] : memref<40x32x40xbf16, #tpu.memory_space<vmem>>, vector<1x32x16xbf16>
    %1010 = vector.shape_cast %1009 : vector<1x32x16xbf16> to vector<32x16xbf16>
    %1011 = arith.index_cast %1007 : i32 to index
    %c0_658 = arith.constant 0 : index
    %c12_659 = arith.constant 12 : index
    %1012 = vector.load %arg12[%1011, %c0_658, %c12_659] : memref<40x32x40xbf16, #tpu.memory_space<vmem>>, vector<1x32x16xbf16>
    %1013 = vector.shape_cast %1012 : vector<1x32x16xbf16> to vector<32x16xbf16>
    %1014 = arith.index_cast %1007 : i32 to index
    %c0_660 = arith.constant 0 : index
    %c24_661 = arith.constant 24 : index
    %1015 = vector.load %arg12[%1014, %c0_660, %c24_661] : memref<40x32x40xbf16, #tpu.memory_space<vmem>>, vector<1x32x16xbf16>
    %1016 = vector.shape_cast %1015 : vector<1x32x16xbf16> to vector<32x16xbf16>
    %c12_i32_662 = arith.constant 12 : i32
    %1017 = arith.addi %c12_i32_662, %920 : i32
    %c0_i32_663 = arith.constant 0 : i32
    %1018 = arith.addi %1017, %c0_i32_663 : i32
    %1019 = arith.index_cast %1018 : i32 to index
    %c0_664 = arith.constant 0 : index
    %c0_665 = arith.constant 0 : index
    %1020 = vector.load %arg12[%1019, %c0_664, %c0_665] : memref<40x32x40xbf16, #tpu.memory_space<vmem>>, vector<1x32x16xbf16>
    %1021 = vector.shape_cast %1020 : vector<1x32x16xbf16> to vector<32x16xbf16>
    %1022 = arith.index_cast %1018 : i32 to index
    %c0_666 = arith.constant 0 : index
    %c12_667 = arith.constant 12 : index
    %1023 = vector.load %arg12[%1022, %c0_666, %c12_667] : memref<40x32x40xbf16, #tpu.memory_space<vmem>>, vector<1x32x16xbf16>
    %1024 = vector.shape_cast %1023 : vector<1x32x16xbf16> to vector<32x16xbf16>
    %1025 = arith.index_cast %1018 : i32 to index
    %c0_668 = arith.constant 0 : index
    %c24_669 = arith.constant 24 : index
    %1026 = vector.load %arg12[%1025, %c0_668, %c24_669] : memref<40x32x40xbf16, #tpu.memory_space<vmem>>, vector<1x32x16xbf16>
    %1027 = vector.shape_cast %1026 : vector<1x32x16xbf16> to vector<32x16xbf16>
    %c12_i32_670 = arith.constant 12 : i32
    %1028 = arith.addi %c12_i32_670, %920 : i32
    %c12_i32_671 = arith.constant 12 : i32
    %1029 = arith.addi %1028, %c12_i32_671 : i32
    %1030 = arith.index_cast %1029 : i32 to index
    %c0_672 = arith.constant 0 : index
    %c0_673 = arith.constant 0 : index
    %1031 = vector.load %arg12[%1030, %c0_672, %c0_673] : memref<40x32x40xbf16, #tpu.memory_space<vmem>>, vector<1x32x16xbf16>
    %1032 = vector.shape_cast %1031 : vector<1x32x16xbf16> to vector<32x16xbf16>
    %1033 = arith.index_cast %1029 : i32 to index
    %c0_674 = arith.constant 0 : index
    %c12_675 = arith.constant 12 : index
    %1034 = vector.load %arg12[%1033, %c0_674, %c12_675] : memref<40x32x40xbf16, #tpu.memory_space<vmem>>, vector<1x32x16xbf16>
    %1035 = vector.shape_cast %1034 : vector<1x32x16xbf16> to vector<32x16xbf16>
    %1036 = arith.index_cast %1029 : i32 to index
    %c0_676 = arith.constant 0 : index
    %c24_677 = arith.constant 24 : index
    %1037 = vector.load %arg12[%1036, %c0_676, %c24_677] : memref<40x32x40xbf16, #tpu.memory_space<vmem>>, vector<1x32x16xbf16>
    %1038 = vector.shape_cast %1037 : vector<1x32x16xbf16> to vector<32x16xbf16>
    %1039 = tpu.concatenate %1010, %1013, %1016, %1021, %1024, %1027, %1032, %1035, %1038 in 0 : vector<32x16xbf16>, vector<32x16xbf16>, vector<32x16xbf16>, vector<32x16xbf16>, vector<32x16xbf16>, vector<32x16xbf16>, vector<32x16xbf16>, vector<32x16xbf16>, vector<32x16xbf16> -> vector<288x16xbf16>
    %cst_678 = arith.constant dense<0.000000e+00> : vector<32x16xf32>
    %1040 = tpu.matmul %7, %1039, %cst_678 {dimension_numbers = #tpu.dot_dimension_numbers<[1], [0], [0], [1], [0, 0, 1, 1], [], []>} : vector<32x288xbf16>, vector<288x16xbf16>, vector<32x16xf32> -> vector<32x16xf32>
    %1041 = vector.broadcast %8 : vector<32x1xf32> to vector<32x16xf32>
    %1042 = arith.addf %1040, %1041 : vector<32x16xf32>
    %cst_679 = arith.constant 0.000000e+00 : f32
    %1043 = vector.broadcast %cst_679 : f32 to vector<32x16xf32>
    %1044 = arith.maximumf %1042, %1043 : vector<32x16xf32>
    %1045 = arith.addf %1005, %1044 : vector<32x16xf32>
    %c0_680 = arith.constant 0 : index
    %c0_681 = arith.constant 0 : index
    %c7 = arith.constant 7 : index
    %c0_682 = arith.constant 0 : index
    %1046 = vector.load %arg11[%c0_680, %c0_681, %c7, %c0_682] : memref<1x32x8x16xf32, #tpu.memory_space<vmem>>, vector<1x32x1x16xf32>
    %1047 = vector.shape_cast %1046 : vector<1x32x1x16xf32> to vector<32x16xf32>
    %1048 = vector.shape_cast %1045 : vector<32x16xf32> to vector<1x32x1x16xf32>
    tpu.vector_store %arg11[%c0_680, %c0_681, %c7, %c0_682], %1048 {strides = array<i32>} : memref<1x32x8x16xf32, #tpu.memory_space<vmem>>, vector<1x32x1x16xf32>,
    return
  }
  func.func @transform_0(%arg0: i32, %arg1: i32) -> (i32, i32, i32, i32) {
    %c0_i32 = arith.constant 0 : i32
    %c0_i32_0 = arith.constant 0 : i32
    %c0_i32_1 = arith.constant 0 : i32
    %c0_i32_2 = arith.constant 0 : i32
    return %arg0, %c0_i32, %c0_i32_0, %c0_i32_1 : i32, i32, i32, i32
  }
  func.func @transform_1(%arg0: i32, %arg1: i32) -> (i32, i32) {
    %c0_i32 = arith.constant 0 : i32
    %c0_i32_0 = arith.constant 0 : i32
    %c0_i32_1 = arith.constant 0 : i32
    return %c0_i32, %c0_i32_0 : i32, i32
  }
  func.func @transform_2(%arg0: i32, %arg1: i32) -> (i32, i32) {
    %c0_i32 = arith.constant 0 : i32
    %c0_i32_0 = arith.constant 0 : i32
    %c0_i32_1 = arith.constant 0 : i32
    return %c0_i32, %c0_i32_0 : i32, i32
  }
  func.func @transform_3(%arg0: i32, %arg1: i32) -> (i32, i32) {
    %c0_i32 = arith.constant 0 : i32
    %c0_i32_0 = arith.constant 0 : i32
    %c0_i32_1 = arith.constant 0 : i32
    return %c0_i32, %c0_i32_0 : i32, i32
  }
  func.func @transform_4(%arg0: i32, %arg1: i32) -> (i32, i32) {
    %c0_i32 = arith.constant 0 : i32
    %c0_i32_0 = arith.constant 0 : i32
    %c0_i32_1 = arith.constant 0 : i32
    return %c0_i32, %c0_i32_0 : i32, i32
  }
  func.func @transform_5(%arg0: i32, %arg1: i32) -> (i32, i32) {
    %c0_i32 = arith.constant 0 : i32
    %c0_i32_0 = arith.constant 0 : i32
    %c0_i32_1 = arith.constant 0 : i32
    return %c0_i32, %c0_i32_0 : i32, i32
  }
  func.func @transform_6(%arg0: i32, %arg1: i32) -> (i32, i32) {
    %c0_i32 = arith.constant 0 : i32
    %c0_i32_0 = arith.constant 0 : i32
    %c0_i32_1 = arith.constant 0 : i32
    return %c0_i32, %c0_i32_0 : i32, i32
  }
  func.func @transform_7(%arg0: i32, %arg1: i32) -> (i32, i32) {
    %c0_i32 = arith.constant 0 : i32
    %c0_i32_0 = arith.constant 0 : i32
    %c0_i32_1 = arith.constant 0 : i32
    return %c0_i32, %c0_i32_0 : i32, i32
  }
  func.func @transform_8(%arg0: i32, %arg1: i32) -> (i32, i32) {
    %c0_i32 = arith.constant 0 : i32
    %c0_i32_0 = arith.constant 0 : i32
    %c0_i32_1 = arith.constant 0 : i32
    return %c0_i32, %c0_i32_0 : i32, i32
  }
  func.func @transform_9(%arg0: i32, %arg1: i32) -> (i32, i32, i32, i32) {
    %c0_i32 = arith.constant 0 : i32
    %c0_i32_0 = arith.constant 0 : i32
    %c0_i32_1 = arith.constant 0 : i32
    return %arg0, %c0_i32, %arg1, %c0_i32_0 : i32, i32, i32, i32
  }
}

</mosaic_0001>

<bundles_post_ra>
// kernel: msblock_forward.1
= control target key start
LH: loop header
LB: loop body
LE: loop exit
PB: predicated region body
PF: predicated region fallthrough
CT: control target
= control target key end

     0   :  { %s15473_s0 = inlined_call_operand.vmem [shape: bf16[2,16,36,16], index: 0, kind: input, shape index: {}]   ;;  %s15474_s1 = inlined_call_operand.vmem [shape: bf16[32,36], index: 1, kind: input, shape index: {}]   ;;  %s15475_s2 = inlined_call_operand.vmem [shape: f32[32,1], index: 2, kind: input, shape index: {}]   ;;  %s15476_s3 = inlined_call_operand.vmem [shape: bf16[32,288], index: 3, kind: input, shape index: {}]   ;;  %s15477_s4 = inlined_call_operand.vmem [shape: f32[32,1], index: 4, kind: input, shape index: {}]   ;;  %s15478_s5 = inlined_call_operand.vmem [shape: bf16[32,288], index: 5, kind: input, shape index: {}]   ;;  %s15479_s6 = inlined_call_operand.vmem [shape: f32[32,1], index: 6, kind: input, shape index: {}]   ;;  %s15480_s7 = inlined_call_operand.vmem [shape: bf16[32,288], index: 7, kind: input, shape index: {}]   ;;  %s15481_s8 = inlined_call_operand.vmem [shape: f32[32,1], index: 8, kind: input, shape index: {}]   ;;  %s15482_s9 = inlined_call_operand.vmem [shape: f32[2,32,16,16], index: 9, kind: output, shape index: {}]  }
   0x1   :  { %15502 = sst [smem:[#allocation15_spill]] %s15473_s0 }
   0x2   :  { %s11201_s30 = smov 0   ;;  %s11203_s10 = smov 0  }
   0x3   :  { %s11205_s11 = smov 0   ;;  %s11207_s12 = smov 0  }
   0x4   :  { %s11209_s13 = smov 0   ;;  %s11211_s14 = smov 0  }
   0x5   :  { %s11213_s15 = smov 0  }
   0x6 LB: > { %s28_s16 = sadd.s32 1, %s11126_s13  ;;  %s31_s17 = sadd.s32 1, %s11130_s14  ;;  %s11134_s15 = sphi %s11213_s15, %s19_s15   ;;  %s11130_s14 = sphi %s11211_s14, %s15538_s14   ;;  %s11126_s13 = sphi %s11209_s13, %s15537_s13   ;;  %s11122_s12 = sphi %s11207_s12, %s15536_s12   ;;  %s11118_s11 = sphi %s11205_s11, %s15535_s11   ;;  %s11114_s10 = sphi %s11203_s10, %s15534_s10   ;;  %s11110_s30 = sphi %s11201_s30, %s15533_s30  }
   0x7   : > { %p29_p0 = scmp.ge.s32.totalorder %s28_s16, 2  ;;  %s9615_s18 = sadd.s32 4294967295, %s11134_s15  }
   0x8   : > { %p244_p1 = scmp.ne.s32.totalorder %s11114_s10, %s11110_s30  ;;  %p245_p2 = scmp.eq.s32.totalorder %s9615_s18, 3 }
   0x9   : > { %s15540_s16 = smov (%p29_p0, %s28_s16), 0  ;;  %s15542_s17 = smov (!%p29_p0, %s31_s17), %s11130_s14 }
   0xa   : > { %15503 = sst [smem:[#allocation4_spill]] %s15540_s16  ;;  %s230_s19 = ssub.s32 %s11126_s13, %s15540_s16 }
   0xb   : > { %p33_p3 = scmp.ge.s32.totalorder %s15542_s17, 2  ;;  %p9619_p4 = scmp.ge.s32.totalorder %s11134_s15, 1 }
   0xc   : > { %p11247_p5 = por %p245_p2, %p244_p1  ;;  %p301_p6 = scmp.lt.s32.totalorder %s11134_s15, 5 }
   0xd   : > { %s15544_s17 = smov (%p33_p3, %s15542_s17), 0  ;;  %s234_s23 = sadd.s32 1, %s11114_s10 }
   0xe   : > { %15505 = sst [smem:[#allocation5_spill]] %s15544_s17  ;;  %p302_p7 = pnand %p9619_p4, %p301_p6 }
   0xf   : > { %s229_s21 = ssub.s32 %s11130_s14, %s15544_s17 }
  0x10   : > { %s231_s22 = sor.u32 %s230_s19, %s229_s21  ;;  %305 = sbr.rel (%p302_p7) target bundleno = 5414 (0x1526), region = 56 }
  0x11   : > { %p232_p8 = scmp.eq.s32.totalorder %s231_s22, 0 }
  0x13   : > { %s11258_s24 = scalar_select %p232_p8, %s11114_s10, %s234_s23  }
  0x17   : > { %s333_s25 = sand.u32 1, %s11110_s30   ;;  %p336_p9 = scmp.lt.s32.totalorder %s11122_s12, 1 }
  0x18   : > { %s9620_s26 = sshll.u32 %s333_s25, 8  ;;  %s15506_s0 = sld [smem:[#allocation15_spill]] }
  0x19   : > { %s337_s27 = scalar_select %p336_p9, %s11122_s12, 1 }
  0x1a   : > { %s11268_s17 = scalar_lea.vmem [#allocation3], %s9620_s26  ;;  %p9622_p10 = scmp.ne.s32.totalorder %s11118_s11, 0 }
  0x1b   : > { %s10890_s28 = smul.u32 320, %s337_s27  ;;  %vm346_vm0 = vcmask (!%p9622_p10), 326656   ;;  %v11274_v0 = vld [vmem:[%s15474_s1] sm:$0xf] (!%p9622_p10)  ;;  %v11279_v1 = vld [vmem:[%s15474_s1 + $0x4] sm:$0xf] (!%p9622_p10) }
  0x1c   : > { %345 = sbr.rel (%p9622_p10) target bundleno = 486 (0x1e6), region = 60  ;;  %v11140_v2 = vmov (!%p9622_p10), 0   ;;  %v11380_v3 = vld [vmem:[%s15474_s1 + $0x8] sm:$0xf] (!%p9622_p10)  ;;  %v11385_v4 = vld [vmem:[%s15474_s1 + $0xc] sm:$0xf] (!%p9622_p10) }
  0x1d   : > { %347 = vst.msk [vmem:[#allocation2] sm:$0xff] (!%p9622_p10), %vm346_vm0, %v11140_v2  ;;  %348 = vst.msk [vmem:[#allocation2 + $0x8] sm:$0xff] (!%p9622_p10), %vm346_vm0, %v11140_v2  ;;  %v11390_v5 = vld [vmem:[%s15475_s2] sm:$0xff] (!%p9622_p10)  ;;  %vm396_vm1 = vcmask (!%p9622_p10), 97280   ;;  %v11395_v6 = vld [vmem:[%s15475_s2 + $0x8] sm:$0xff] (!%p9622_p10)  ;;  %vm477_vm2 = vcmask (!%p9622_p10), 326880  }
  0x1e   : > { %s11266_s16 = scalar_lea.vmem %s15506_s0, %s10890_s28  ;;  %349 = vst.msk [vmem:[#allocation2 + $0x10] sm:$0xff] (!%p9622_p10), %vm346_vm0, %v11140_v2  ;;  %350 = vst.msk [vmem:[#allocation2 + $0x18] sm:$0xff] (!%p9622_p10), %vm346_vm0, %v11140_v2  ;;  %v11400_v7 = vld [vmem:[%s15475_s2 + $0x10] sm:$0xff] (!%p9622_p10)  ;;  %v11405_v8 = vld [vmem:[%s15475_s2 + $0x18] sm:$0xff] (!%p9622_p10)  ;;  %s11727_s25 = smov (!%p9622_p10), 0  }
  0x1f   : > { %351 = vst.msk [vmem:[#allocation2 + $0x20] sm:$0xff] (!%p9622_p10), %vm346_vm0, %v11140_v2  ;;  %352 = vst.msk [vmem:[#allocation2 + $0x28] sm:$0xff] (!%p9622_p10), %vm346_vm0, %v11140_v2 }
  0x20   : > { %353 = vst.msk [vmem:[#allocation2 + $0x30] sm:$0xff] (!%p9622_p10), %vm346_vm0, %v11140_v2  ;;  %354 = vst.msk [vmem:[#allocation2 + $0x38] sm:$0xff] (!%p9622_p10), %vm346_vm0, %v11140_v2 }
  0x21   : > { %355 = vst.msk [vmem:[#allocation2 + $0x40] sm:$0xff] (!%p9622_p10), %vm346_vm0, %v11140_v2  ;;  %356 = vst.msk [vmem:[#allocation2 + $0x48] sm:$0xff] (!%p9622_p10), %vm346_vm0, %v11140_v2 }
  0x22   : > { %357 = vst.msk [vmem:[#allocation2 + $0x50] sm:$0xff] (!%p9622_p10), %vm346_vm0, %v11140_v2  ;;  %358 = vst.msk [vmem:[#allocation2 + $0x58] sm:$0xff] (!%p9622_p10), %vm346_vm0, %v11140_v2 }
  0x23   : > { %359 = vst.msk [vmem:[#allocation2 + $0x60] sm:$0xff] %vm346_vm0, %v11140_v2  ;;  %360 = vst.msk [vmem:[#allocation2 + $0x68] sm:$0xff] %vm346_vm0, %v11140_v2 }
  0x24   : > { %361 = vst.msk [vmem:[#allocation2 + $0x70] sm:$0xff] %vm346_vm0, %v11140_v2  ;;  %362 = vst.msk [vmem:[#allocation2 + $0x78] sm:$0xff] %vm346_vm0, %v11140_v2 }
  0x25   : > { %363 = vst.msk [vmem:[#allocation2 + $0x80] sm:$0xff] %vm346_vm0, %v11140_v2  ;;  %364 = vst.msk [vmem:[#allocation2 + $0x88] sm:$0xff] %vm346_vm0, %v11140_v2 }
  0x26   : > { %365 = vst.msk [vmem:[#allocation2 + $0x90] sm:$0xff] %vm346_vm0, %v11140_v2  ;;  %366 = vst.msk [vmem:[#allocation2 + $0x98] sm:$0xff] %vm346_vm0, %v11140_v2 }
  0x27   : > { %367 = vst.msk [vmem:[#allocation2 + $0xa0] sm:$0xff] %vm346_vm0, %v11140_v2  ;;  %368 = vst.msk [vmem:[#allocation2 + $0xa8] sm:$0xff] %vm346_vm0, %v11140_v2 }
  0x28   : > { %369 = vst.msk [vmem:[#allocation2 + $0xb0] sm:$0xff] %vm346_vm0, %v11140_v2  ;;  %370 = vst.msk [vmem:[#allocation2 + $0xb8] sm:$0xff] %vm346_vm0, %v11140_v2 }
  0x29   : > { %372 = vst.msk [vmem:[#allocation2 + $0x1c0] sm:$0xff] %vm346_vm0, %v11140_v2  ;;  %373 = vst.msk [vmem:[#allocation2 + $0x1c8] sm:$0xff] %vm346_vm0, %v11140_v2 }
  0x2a   : > { %374 = vst.msk [vmem:[#allocation2 + $0x1d0] sm:$0xff] %vm346_vm0, %v11140_v2  ;;  %375 = vst.msk [vmem:[#allocation2 + $0x1d8] sm:$0xff] %vm346_vm0, %v11140_v2 }
  0x2b   : > { %376 = vst.msk [vmem:[#allocation2 + $0x1e0] sm:$0xff] %vm346_vm0, %v11140_v2  ;;  %377 = vst.msk [vmem:[#allocation2 + $0x1e8] sm:$0xff] %vm346_vm0, %v11140_v2 }
  0x2c   : > { %378 = vst.msk [vmem:[#allocation2 + $0x1f0] sm:$0xff] %vm346_vm0, %v11140_v2  ;;  %379 = vst.msk [vmem:[#allocation2 + $0x1f8] sm:$0xff] %vm346_vm0, %v11140_v2 }
  0x2d   : > { %380 = vst.msk [vmem:[#allocation2 + $0x200] sm:$0xff] %vm346_vm0, %v11140_v2  ;;  %381 = vst.msk [vmem:[#allocation2 + $0x208] sm:$0xff] %vm346_vm0, %v11140_v2 }
  0x2e   : > { %382 = vst.msk [vmem:[#allocation2 + $0x210] sm:$0xff] %vm346_vm0, %v11140_v2  ;;  %383 = vst.msk [vmem:[#allocation2 + $0x218] sm:$0xff] %vm346_vm0, %v11140_v2 }
  0x2f   : > { %384 = vst.msk [vmem:[#allocation2 + $0x220] sm:$0xff] %vm346_vm0, %v11140_v2  ;;  %385 = vst.msk [vmem:[#allocation2 + $0x228] sm:$0xff] %vm346_vm0, %v11140_v2 }
  0x30   : > { %386 = vst.msk [vmem:[#allocation2 + $0x230] sm:$0xff] %vm346_vm0, %v11140_v2  ;;  %387 = vst.msk [vmem:[#allocation2 + $0x238] sm:$0xff] %vm346_vm0, %v11140_v2 }
  0x31   : > { %388 = vst.msk [vmem:[#allocation2 + $0x240] sm:$0xff] %vm346_vm0, %v11140_v2  ;;  %389 = vst.msk [vmem:[#allocation2 + $0x248] sm:$0xff] %vm346_vm0, %v11140_v2 }
  0x32   : > { %390 = vst.msk [vmem:[#allocation2 + $0x250] sm:$0xff] %vm346_vm0, %v11140_v2  ;;  %391 = vst.msk [vmem:[#allocation2 + $0x258] sm:$0xff] %vm346_vm0, %v11140_v2 }
  0x33   : > { %392 = vst.msk [vmem:[#allocation2 + $0x260] sm:$0xff] %vm346_vm0, %v11140_v2  ;;  %393 = vst.msk [vmem:[#allocation2 + $0x268] sm:$0xff] %vm346_vm0, %v11140_v2 }
  0x34   : > { %394 = vst.msk [vmem:[#allocation2 + $0x270] sm:$0xff] %vm346_vm0, %v11140_v2  ;;  %395 = vst.msk [vmem:[#allocation2 + $0x278] sm:$0xff] %vm346_vm0, %v11140_v2 }
  0x35   : > { %397 = vst.msk [vmem:[#allocation2] sm:$0xff] %vm396_vm1, %v11140_v2  ;;  %398 = vst.msk [vmem:[#allocation2 + $0x8] sm:$0xff] %vm396_vm1, %v11140_v2 }
  0x36   : > { %399 = vst.msk [vmem:[#allocation2 + $0x10] sm:$0xff] %vm396_vm1, %v11140_v2  ;;  %400 = vst.msk [vmem:[#allocation2 + $0x18] sm:$0xff] %vm396_vm1, %v11140_v2 }
  0x37   : > { %401 = vst.msk [vmem:[#allocation2 + $0x20] sm:$0xff] %vm396_vm1, %v11140_v2  ;;  %402 = vst.msk [vmem:[#allocation2 + $0x28] sm:$0xff] %vm396_vm1, %v11140_v2 }
  0x38   : > { %403 = vst.msk [vmem:[#allocation2 + $0x30] sm:$0xff] %vm396_vm1, %v11140_v2  ;;  %404 = vst.msk [vmem:[#allocation2 + $0x38] sm:$0xff] %vm396_vm1, %v11140_v2 }
  0x39   : > { %405 = vst.msk [vmem:[#allocation2 + $0x40] sm:$0xff] %vm396_vm1, %v11140_v2  ;;  %406 = vst.msk [vmem:[#allocation2 + $0x48] sm:$0xff] %vm396_vm1, %v11140_v2 }
  0x3a   : > { %407 = vst.msk [vmem:[#allocation2 + $0x50] sm:$0xff] %vm396_vm1, %v11140_v2  ;;  %408 = vst.msk [vmem:[#allocation2 + $0x58] sm:$0xff] %vm396_vm1, %v11140_v2 }
  0x3b   : > { %409 = vst.msk [vmem:[#allocation2 + $0x60] sm:$0xff] %vm396_vm1, %v11140_v2  ;;  %410 = vst.msk [vmem:[#allocation2 + $0x68] sm:$0xff] %vm396_vm1, %v11140_v2 }
  0x3c   : > { %411 = vst.msk [vmem:[#allocation2 + $0x70] sm:$0xff] %vm396_vm1, %v11140_v2  ;;  %412 = vst.msk [vmem:[#allocation2 + $0x78] sm:$0xff] %vm396_vm1, %v11140_v2 }
  0x3d   : > { %413 = vst.msk [vmem:[#allocation2 + $0x80] sm:$0xff] %vm396_vm1, %v11140_v2  ;;  %414 = vst.msk [vmem:[#allocation2 + $0x88] sm:$0xff] %vm396_vm1, %v11140_v2 }
  0x3e   : > { %415 = vst.msk [vmem:[#allocation2 + $0x90] sm:$0xff] %vm396_vm1, %v11140_v2  ;;  %416 = vst.msk [vmem:[#allocation2 + $0x98] sm:$0xff] %vm396_vm1, %v11140_v2 }
  0x3f   : > { %417 = vst.msk [vmem:[#allocation2 + $0xa0] sm:$0xff] %vm396_vm1, %v11140_v2  ;;  %418 = vst.msk [vmem:[#allocation2 + $0xa8] sm:$0xff] %vm396_vm1, %v11140_v2 }
  0x40   : > { %419 = vst.msk [vmem:[#allocation2 + $0xb0] sm:$0xff] %vm396_vm1, %v11140_v2  ;;  %420 = vst.msk [vmem:[#allocation2 + $0xb8] sm:$0xff] %vm396_vm1, %v11140_v2 }
  0x41   : > { %421 = vst.msk [vmem:[#allocation2 + $0xc0] sm:$0xff] %vm396_vm1, %v11140_v2  ;;  %422 = vst.msk [vmem:[#allocation2 + $0xc8] sm:$0xff] %vm396_vm1, %v11140_v2 }
  0x42   : > { %423 = vst.msk [vmem:[#allocation2 + $0xd0] sm:$0xff] %vm396_vm1, %v11140_v2  ;;  %424 = vst.msk [vmem:[#allocation2 + $0xd8] sm:$0xff] %vm396_vm1, %v11140_v2 }
  0x43   : > { %425 = vst.msk [vmem:[#allocation2 + $0xe0] sm:$0xff] %vm396_vm1, %v11140_v2  ;;  %426 = vst.msk [vmem:[#allocation2 + $0xe8] sm:$0xff] %vm396_vm1, %v11140_v2 }
  0x44   : > { %427 = vst.msk [vmem:[#allocation2 + $0xf0] sm:$0xff] %vm396_vm1, %v11140_v2  ;;  %428 = vst.msk [vmem:[#allocation2 + $0xf8] sm:$0xff] %vm396_vm1, %v11140_v2 }
  0x45   : > { %429 = vst.msk [vmem:[#allocation2 + $0x100] sm:$0xff] %vm396_vm1, %v11140_v2  ;;  %430 = vst.msk [vmem:[#allocation2 + $0x108] sm:$0xff] %vm396_vm1, %v11140_v2 }
  0x46   : > { %431 = vst.msk [vmem:[#allocation2 + $0x110] sm:$0xff] %vm396_vm1, %v11140_v2  ;;  %432 = vst.msk [vmem:[#allocation2 + $0x118] sm:$0xff] %vm396_vm1, %v11140_v2 }
  0x47   : > { %433 = vst.msk [vmem:[#allocation2 + $0x120] sm:$0xff] %vm396_vm1, %v11140_v2  ;;  %434 = vst.msk [vmem:[#allocation2 + $0x128] sm:$0xff] %vm396_vm1, %v11140_v2 }
  0x48   : > { %435 = vst.msk [vmem:[#allocation2 + $0x130] sm:$0xff] %vm396_vm1, %v11140_v2  ;;  %436 = vst.msk [vmem:[#allocation2 + $0x138] sm:$0xff] %vm396_vm1, %v11140_v2 }
  0x49   : > { %437 = vst.msk [vmem:[#allocation2 + $0x140] sm:$0xff] %vm396_vm1, %v11140_v2  ;;  %438 = vst.msk [vmem:[#allocation2 + $0x148] sm:$0xff] %vm396_vm1, %v11140_v2 }
  0x4a   : > { %439 = vst.msk [vmem:[#allocation2 + $0x150] sm:$0xff] %vm396_vm1, %v11140_v2  ;;  %440 = vst.msk [vmem:[#allocation2 + $0x158] sm:$0xff] %vm396_vm1, %v11140_v2 }
  0x4b   : > { %441 = vst.msk [vmem:[#allocation2 + $0x160] sm:$0xff] %vm396_vm1, %v11140_v2  ;;  %442 = vst.msk [vmem:[#allocation2 + $0x168] sm:$0xff] %vm396_vm1, %v11140_v2 }
  0x4c   : > { %443 = vst.msk [vmem:[#allocation2 + $0x170] sm:$0xff] %vm396_vm1, %v11140_v2  ;;  %444 = vst.msk [vmem:[#allocation2 + $0x178] sm:$0xff] %vm396_vm1, %v11140_v2 }
  0x4d   : > { %445 = vst.msk [vmem:[#allocation2 + $0x180] sm:$0xff] %vm396_vm1, %v11140_v2  ;;  %446 = vst.msk [vmem:[#allocation2 + $0x188] sm:$0xff] %vm396_vm1, %v11140_v2 }
  0x4e   : > { %447 = vst.msk [vmem:[#allocation2 + $0x190] sm:$0xff] %vm396_vm1, %v11140_v2  ;;  %448 = vst.msk [vmem:[#allocation2 + $0x198] sm:$0xff] %vm396_vm1, %v11140_v2 }
  0x4f   : > { %449 = vst.msk [vmem:[#allocation2 + $0x1a0] sm:$0xff] %vm396_vm1, %v11140_v2  ;;  %450 = vst.msk [vmem:[#allocation2 + $0x1a8] sm:$0xff] %vm396_vm1, %v11140_v2 }
  0x50   : > { %451 = vst.msk [vmem:[#allocation2 + $0x1b0] sm:$0xff] %vm396_vm1, %v11140_v2  ;;  %452 = vst.msk [vmem:[#allocation2 + $0x1b8] sm:$0xff] %vm396_vm1, %v11140_v2 }
  0x51   : > { %453 = vst.msk [vmem:[#allocation2 + $0x1c0] sm:$0xff] %vm396_vm1, %v11140_v2  ;;  %454 = vst.msk [vmem:[#allocation2 + $0x1c8] sm:$0xff] %vm396_vm1, %v11140_v2 }
  0x52   : > { %455 = vst.msk [vmem:[#allocation2 + $0x1d0] sm:$0xff] %vm396_vm1, %v11140_v2  ;;  %456 = vst.msk [vmem:[#allocation2 + $0x1d8] sm:$0xff] %vm396_vm1, %v11140_v2 }
  0x53   : > { %457 = vst.msk [vmem:[#allocation2 + $0x1e0] sm:$0xff] %vm396_vm1, %v11140_v2  ;;  %458 = vst.msk [vmem:[#allocation2 + $0x1e8] sm:$0xff] %vm396_vm1, %v11140_v2 }
  0x54   : > { %459 = vst.msk [vmem:[#allocation2 + $0x1f0] sm:$0xff] %vm396_vm1, %v11140_v2  ;;  %460 = vst.msk [vmem:[#allocation2 + $0x1f8] sm:$0xff] %vm396_vm1, %v11140_v2 }
  0x55   : > { %461 = vst.msk [vmem:[#allocation2 + $0x200] sm:$0xff] %vm396_vm1, %v11140_v2  ;;  %462 = vst.msk [vmem:[#allocation2 + $0x208] sm:$0xff] %vm396_vm1, %v11140_v2 }
  0x56   : > { %463 = vst.msk [vmem:[#allocation2 + $0x210] sm:$0xff] %vm396_vm1, %v11140_v2  ;;  %464 = vst.msk [vmem:[#allocation2 + $0x218] sm:$0xff] %vm396_vm1, %v11140_v2 }
  0x57   : > { %465 = vst.msk [vmem:[#allocation2 + $0x220] sm:$0xff] %vm396_vm1, %v11140_v2  ;;  %466 = vst.msk [vmem:[#allocation2 + $0x228] sm:$0xff] %vm396_vm1, %v11140_v2 }
  0x58   : > { %467 = vst.msk [vmem:[#allocation2 + $0x230] sm:$0xff] %vm396_vm1, %v11140_v2  ;;  %468 = vst.msk [vmem:[#allocation2 + $0x238] sm:$0xff] %vm396_vm1, %v11140_v2 }
  0x59   : > { %469 = vst.msk [vmem:[#allocation2 + $0x240] sm:$0xff] %vm396_vm1, %v11140_v2  ;;  %470 = vst.msk [vmem:[#allocation2 + $0x248] sm:$0xff] %vm396_vm1, %v11140_v2 }
  0x5a   : > { %471 = vst.msk [vmem:[#allocation2 + $0x250] sm:$0xff] %vm396_vm1, %v11140_v2  ;;  %472 = vst.msk [vmem:[#allocation2 + $0x258] sm:$0xff] %vm396_vm1, %v11140_v2 }
  0x5b   : > { %473 = vst.msk [vmem:[#allocation2 + $0x260] sm:$0xff] %vm396_vm1, %v11140_v2  ;;  %474 = vst.msk [vmem:[#allocation2 + $0x268] sm:$0xff] %vm396_vm1, %v11140_v2 }
  0x5c   : > { %475 = vst.msk [vmem:[#allocation2 + $0x270] sm:$0xff] %vm396_vm1, %v11140_v2  ;;  %476 = vst.msk [vmem:[#allocation2 + $0x278] sm:$0xff] %vm396_vm1, %v11140_v2 }
  0x5d   : > { %478 = vst.msk [vmem:[#allocation2] sm:$0xff] %vm477_vm2, %v11140_v2  ;;  %479 = vst.msk [vmem:[#allocation2 + $0x8] sm:$0xff] %vm477_vm2, %v11140_v2 }
  0x5e   : > { %480 = vst.msk [vmem:[#allocation2 + $0x10] sm:$0xff] %vm477_vm2, %v11140_v2  ;;  %481 = vst.msk [vmem:[#allocation2 + $0x18] sm:$0xff] %vm477_vm2, %v11140_v2 }
  0x5f   : > { %482 = vst.msk [vmem:[#allocation2 + $0x20] sm:$0xff] %vm477_vm2, %v11140_v2  ;;  %483 = vst.msk [vmem:[#allocation2 + $0x28] sm:$0xff] %vm477_vm2, %v11140_v2 }
  0x60   : > { %484 = vst.msk [vmem:[#allocation2 + $0x30] sm:$0xff] %vm477_vm2, %v11140_v2  ;;  %485 = vst.msk [vmem:[#allocation2 + $0x38] sm:$0xff] %vm477_vm2, %v11140_v2 }
  0x61   : > { %486 = vst.msk [vmem:[#allocation2 + $0x40] sm:$0xff] %vm477_vm2, %v11140_v2  ;;  %487 = vst.msk [vmem:[#allocation2 + $0x48] sm:$0xff] %vm477_vm2, %v11140_v2 }
  0x62   : > { %488 = vst.msk [vmem:[#allocation2 + $0x50] sm:$0xff] %vm477_vm2, %v11140_v2  ;;  %489 = vst.msk [vmem:[#allocation2 + $0x58] sm:$0xff] %vm477_vm2, %v11140_v2 }
  0x63   : > { %490 = vst.msk [vmem:[#allocation2 + $0x60] sm:$0xff] %vm477_vm2, %v11140_v2  ;;  %491 = vst.msk [vmem:[#allocation2 + $0x68] sm:$0xff] %vm477_vm2, %v11140_v2 }
  0x64   : > { %492 = vst.msk [vmem:[#allocation2 + $0x70] sm:$0xff] %vm477_vm2, %v11140_v2  ;;  %493 = vst.msk [vmem:[#allocation2 + $0x78] sm:$0xff] %vm477_vm2, %v11140_v2 }
  0x65   : > { %494 = vst.msk [vmem:[#allocation2 + $0x80] sm:$0xff] %vm477_vm2, %v11140_v2  ;;  %495 = vst.msk [vmem:[#allocation2 + $0x88] sm:$0xff] %vm477_vm2, %v11140_v2 }
  0x66   : > { %496 = vst.msk [vmem:[#allocation2 + $0x90] sm:$0xff] %vm477_vm2, %v11140_v2  ;;  %497 = vst.msk [vmem:[#allocation2 + $0x98] sm:$0xff] %vm477_vm2, %v11140_v2 }
  0x67   : > { %498 = vst.msk [vmem:[#allocation2 + $0xa0] sm:$0xff] %vm477_vm2, %v11140_v2  ;;  %499 = vst.msk [vmem:[#allocation2 + $0xa8] sm:$0xff] %vm477_vm2, %v11140_v2 }
  0x68   : > { %500 = vst.msk [vmem:[#allocation2 + $0xb0] sm:$0xff] %vm477_vm2, %v11140_v2  ;;  %501 = vst.msk [vmem:[#allocation2 + $0xb8] sm:$0xff] %vm477_vm2, %v11140_v2 }
  0x69   : > { %502 = vst.msk [vmem:[#allocation2 + $0xc0] sm:$0xff] %vm477_vm2, %v11140_v2  ;;  %503 = vst.msk [vmem:[#allocation2 + $0xc8] sm:$0xff] %vm477_vm2, %v11140_v2 }
  0x6a   : > { %504 = vst.msk [vmem:[#allocation2 + $0xd0] sm:$0xff] %vm477_vm2, %v11140_v2  ;;  %505 = vst.msk [vmem:[#allocation2 + $0xd8] sm:$0xff] %vm477_vm2, %v11140_v2 }
  0x6b   : > { %506 = vst.msk [vmem:[#allocation2 + $0xe0] sm:$0xff] %vm477_vm2, %v11140_v2  ;;  %507 = vst.msk [vmem:[#allocation2 + $0xe8] sm:$0xff] %vm477_vm2, %v11140_v2 }
  0x6c   : > { %508 = vst.msk [vmem:[#allocation2 + $0xf0] sm:$0xff] %vm477_vm2, %v11140_v2  ;;  %509 = vst.msk [vmem:[#allocation2 + $0xf8] sm:$0xff] %vm477_vm2, %v11140_v2 }
  0x6d   : > { %510 = vst.msk [vmem:[#allocation2 + $0x100] sm:$0xff] %vm477_vm2, %v11140_v2  ;;  %511 = vst.msk [vmem:[#allocation2 + $0x108] sm:$0xff] %vm477_vm2, %v11140_v2 }
  0x6e   : > { %512 = vst.msk [vmem:[#allocation2 + $0x110] sm:$0xff] %vm477_vm2, %v11140_v2  ;;  %513 = vst.msk [vmem:[#allocation2 + $0x118] sm:$0xff] %vm477_vm2, %v11140_v2 }
  0x6f   : > { %514 = vst.msk [vmem:[#allocation2 + $0x120] sm:$0xff] %vm477_vm2, %v11140_v2  ;;  %515 = vst.msk [vmem:[#allocation2 + $0x128] sm:$0xff] %vm477_vm2, %v11140_v2 }
  0x70   : > { %516 = vst.msk [vmem:[#allocation2 + $0x130] sm:$0xff] %vm477_vm2, %v11140_v2  ;;  %517 = vst.msk [vmem:[#allocation2 + $0x138] sm:$0xff] %vm477_vm2, %v11140_v2 }
  0x71   : > { %518 = vst.msk [vmem:[#allocation2 + $0x140] sm:$0xff] %vm477_vm2, %v11140_v2  ;;  %519 = vst.msk [vmem:[#allocation2 + $0x148] sm:$0xff] %vm477_vm2, %v11140_v2 }
  0x72   : > { %520 = vst.msk [vmem:[#allocation2 + $0x150] sm:$0xff] %vm477_vm2, %v11140_v2  ;;  %521 = vst.msk [vmem:[#allocation2 + $0x158] sm:$0xff] %vm477_vm2, %v11140_v2 }
  0x73   : > { %522 = vst.msk [vmem:[#allocation2 + $0x160] sm:$0xff] %vm477_vm2, %v11140_v2  ;;  %523 = vst.msk [vmem:[#allocation2 + $0x168] sm:$0xff] %vm477_vm2, %v11140_v2 }
  0x74   : > { %524 = vst.msk [vmem:[#allocation2 + $0x170] sm:$0xff] %vm477_vm2, %v11140_v2  ;;  %525 = vst.msk [vmem:[#allocation2 + $0x178] sm:$0xff] %vm477_vm2, %v11140_v2 }
  0x75   : > { %526 = vst.msk [vmem:[#allocation2 + $0x180] sm:$0xff] %vm477_vm2, %v11140_v2  ;;  %527 = vst.msk [vmem:[#allocation2 + $0x188] sm:$0xff] %vm477_vm2, %v11140_v2 }
  0x76   : > { %528 = vst.msk [vmem:[#allocation2 + $0x190] sm:$0xff] %vm477_vm2, %v11140_v2  ;;  %529 = vst.msk [vmem:[#allocation2 + $0x198] sm:$0xff] %vm477_vm2, %v11140_v2 }
  0x77   : > { %530 = vst.msk [vmem:[#allocation2 + $0x1a0] sm:$0xff] %vm477_vm2, %v11140_v2  ;;  %531 = vst.msk [vmem:[#allocation2 + $0x1a8] sm:$0xff] %vm477_vm2, %v11140_v2 }
  0x78   : > { %532 = vst.msk [vmem:[#allocation2 + $0x1b0] sm:$0xff] %vm477_vm2, %v11140_v2  ;;  %533 = vst.msk [vmem:[#allocation2 + $0x1b8] sm:$0xff] %vm477_vm2, %v11140_v2 }
  0x79   : > { %534 = vst.msk [vmem:[#allocation2 + $0x1c0] sm:$0xff] %vm477_vm2, %v11140_v2  ;;  %535 = vst.msk [vmem:[#allocation2 + $0x1c8] sm:$0xff] %vm477_vm2, %v11140_v2 }
  0x7a   : > { %536 = vst.msk [vmem:[#allocation2 + $0x1d0] sm:$0xff] %vm477_vm2, %v11140_v2  ;;  %537 = vst.msk [vmem:[#allocation2 + $0x1d8] sm:$0xff] %vm477_vm2, %v11140_v2 }
  0x7b   : > { %538 = vst.msk [vmem:[#allocation2 + $0x1e0] sm:$0xff] %vm477_vm2, %v11140_v2  ;;  %539 = vst.msk [vmem:[#allocation2 + $0x1e8] sm:$0xff] %vm477_vm2, %v11140_v2 }
  0x7c   : > { %540 = vst.msk [vmem:[#allocation2 + $0x1f0] sm:$0xff] %vm477_vm2, %v11140_v2  ;;  %541 = vst.msk [vmem:[#allocation2 + $0x1f8] sm:$0xff] %vm477_vm2, %v11140_v2 }
  0x7d   : > { %542 = vst.msk [vmem:[#allocation2 + $0x200] sm:$0xff] %vm477_vm2, %v11140_v2  ;;  %543 = vst.msk [vmem:[#allocation2 + $0x208] sm:$0xff] %vm477_vm2, %v11140_v2 }
  0x7e   : > { %544 = vst.msk [vmem:[#allocation2 + $0x210] sm:$0xff] %vm477_vm2, %v11140_v2  ;;  %545 = vst.msk [vmem:[#allocation2 + $0x218] sm:$0xff] %vm477_vm2, %v11140_v2 }
  0x7f   : > { %546 = vst.msk [vmem:[#allocation2 + $0x220] sm:$0xff] %vm477_vm2, %v11140_v2  ;;  %547 = vst.msk [vmem:[#allocation2 + $0x228] sm:$0xff] %vm477_vm2, %v11140_v2 }
  0x80   : > { %548 = vst.msk [vmem:[#allocation2 + $0x230] sm:$0xff] %vm477_vm2, %v11140_v2  ;;  %549 = vst.msk [vmem:[#allocation2 + $0x238] sm:$0xff] %vm477_vm2, %v11140_v2 }
  0x81   : > { %550 = vst.msk [vmem:[#allocation2 + $0x240] sm:$0xff] %vm477_vm2, %v11140_v2  ;;  %551 = vst.msk [vmem:[#allocation2 + $0x248] sm:$0xff] %vm477_vm2, %v11140_v2 }
  0x82   : > { %552 = vst.msk [vmem:[#allocation2 + $0x250] sm:$0xff] %vm477_vm2, %v11140_v2  ;;  %553 = vst.msk [vmem:[#allocation2 + $0x258] sm:$0xff] %vm477_vm2, %v11140_v2 }
  0x83   : > { %554 = vst.msk [vmem:[#allocation2 + $0x260] sm:$0xff] %vm477_vm2, %v11140_v2  ;;  %555 = vst.msk [vmem:[#allocation2 + $0x268] sm:$0xff] %vm477_vm2, %v11140_v2 }
  0x84   : > { %556 = vst.msk [vmem:[#allocation2 + $0x270] sm:$0xff] %vm477_vm2, %v11140_v2  ;;  %557 = vst.msk [vmem:[#allocation2 + $0x278] sm:$0xff] %vm477_vm2, %v11140_v2 }
  0x85 LB: >> { %v9624_v9 = vcombine.low %v11274_v0, %v11279_v1  ;;  %vm625_vm3 = vcmask 293888   ;;  %s9880_s26 = smul.u32 20, %s11138_s25  ;;  %v11141_v10 = vmov 0   ;;  %vm632_vm4 = vcmask 1041408   ;;  %s11142_s28 = smov 12   ;;  %s11138_s25 = sphi %s11727_s25, %s571_s25  }
  0x86   : >> { %10967 = vset.pattern.permute.xlu1 %v11141_v10  ;;  %10966 = vset.pattern.permute.xlu0 %v11141_v10  ;;  %v9625_v15 = vcombine.low %v11380_v3, %v11385_v4  ;;  %s9631_s29 = sshll.u32 %s11138_s25, 4  ;;  %vm703_vm5 = vcmask 228448   ;;  %s571_s25 = sadd.s32 1, %s11138_s25  }
  0x87   : >> { %10693 = vmatprep.mubr.msk.bf16.mxu0 %vm625_vm3, %v9624_v9  ;;  %592 = vperm.xlu1 %10967, %v11400_v7   ;;  %s574_s27 = scalar_lea.vmem %s11266_s16, %s9880_s26  ;;  %s9438_s18 = scalar_lea.vmem [#allocation2], %s9631_s29 }
  0x88   : >> { %582 = vperm.xlu0 %10966, %v11390_v5   ;;  %v10968_v11 = vld [vmem:[%s574_s27] sm:$0xff]   ;;  %v10969_v12 = vld [vmem:[%s574_s27 + $0x8] sm:$0xff]   ;;  %v10970_v13 = vld [vmem:[%s574_s27 + $0x10] ss:$0 sps:$4 sm:$0x33]   ;;  %p568_p11 = scmp.ge.s32.totalorder %s571_s25, 16  }
  0x89   : >> { %10687 = vmatprep.subr.bf16.mxu0 %v10968_v11  ;;  %v634_v14 = vsel %vm632_vm4, %v10970_v13, 0 }
  0x8a   : >> { %10688 = vmatpush3.bf16.msra.mxu0 %v10968_v11 }
  0x8b   : >> { %597 = vperm.xlu1 %10967, %v11405_v8   ;;  %10689 = vmatprep.subr.bf16.mxu0 %v10969_v12 }
  0x8c   : >> { %587 = vperm.xlu0 %10966, %v11395_v6  }
  0x8e   : >> { %10690 = vmatpush3.bf16.msra.mxu0 %v10969_v12 }
  0x8f   : >> { %10889 = vmatprep.subr.msk.bf16.mxu0 %vm632_vm4, %v10970_v13 }
  0x92   : >> { %10692 = vmatpush3.bf16.msra.mxu0 %v634_v14 }
  0x95   : >> { %10694 = vmatmul.mubr.msk.bf16.vlgmr.msra.gmra.mrb[0].mxu0 %vm625_vm3, %v9625_v15 }
 0x106   : >> { %v593_v16 = vpop.permute.xlu1 %592 }
 0x107   : >> { %v583_v17 = vpop.permute.xlu0 %582 }
 0x10a   : >> { %v598_v21 = vpop.permute.xlu1 %597 }
 0x10b   : >> { %v588_v24 = vpop.permute.xlu0 %587 }
 0x168   : >> { %v10695_v18 = vpop.f32.mrb[0].mxu0 }
 0x169   : >> { %v679_v19 = vadd.f32 %v10695_v18, %v593_v16  ;;  %v670_v20 = vpop.f32.mrb[1].mxu0 }
 0x16a   : >> { %v671_v22 = vadd.f32 %v670_v20, %v583_v17  ;;  %v10696_v23 = vpop.f32.mrb[2].mxu0 }
 0x16b   : >> { %v682_v25 = vadd.f32 %v10696_v23, %v598_v21  ;;  %v673_v26 = vpop.f32.mrb[3].mxu0  ;;  %v687_v28 = vmax.f32 %v679_v19, 0.0 }
 0x16c   : >> { %v674_v27 = vadd.f32 %v673_v26, %v588_v24  ;;  %v685_v30 = vmax.f32 %v671_v22, 0.0 }
 0x16d   : >> { %v688_v29 = vmax.f32 %v682_v25, 0.0 }
 0x16e   : >> { %v686_v31 = vmax.f32 %v674_v27, 0.0 }
 0x16f   : >> { %v690_v32 = vpack.c.bf16 %v688_v29, %v687_v28 }
 0x170   : >> { %v689_v33 = vpack.c.bf16 %v686_v31, %v685_v30 }
 0x171   : >> { %696 = vrot.lane.b32.xlu1 %v690_v32, %s11142_s28 }
 0x172   : >> { %694 = vrot.lane.b32.xlu0 %v689_v33, %s11142_s28 }
 0x1df   : > { %570 = sbr.rel (!%p568_p11) target bundleno = 133 (0x85), region = 170 }
 0x1e3   : >> { %v697_v34 = vpop.permute.xlu1 %696 }
 0x1e4   : >> { %9633 = vst.msk [vmem:[%s9438_s18 + $0xc8] sm:$0xff] %vm703_vm5, %v697_v34  ;;  %v695_v35 = vpop.permute.xlu0 %694 }
 0x1e5   : >> { %9632 = vst.msk [vmem:[%s9438_s18 + $0xc0] sm:$0xff] %vm703_vm5, %v695_v35 }
 0x1e6 PF: > { %s9881_s19 = sshll.u32 %s11118_s11, 7  ;;  %v11143_v36 = vmov 0   ;;  %s15498_s30 = smov 120   ;;  %v715_v43 = vld [vmem:[%s15477_s4 + $0x8] sm:$0xff]  ;;  %v714_v44 = vld [vmem:[%s15477_s4] sm:$0xff]  ;;  %v716_v45 = vld [vmem:[%s15477_s4 + $0x10] sm:$0xff] }
 0x1e7   : > { %10972 = vset.pattern.permute.xlu1 %v11143_v36  ;;  %10971 = vset.pattern.permute.xlu0 %v11143_v36  ;;  %s11749_s21 = scalar_lea.vmem [#allocation2], %s9881_s19  ;;  %s15494_s22 = smov 124   ;;  %v717_v46 = vld [vmem:[%s15477_s4 + $0x18] sm:$0xff]  ;;  %v726_v51 = vld [vmem:[%s15479_s6] sm:$0xff]  ;;  %v727_v52 = vld [vmem:[%s15479_s6 + $0x8] sm:$0xff]  ;;  %vm887_vm6 = vcmask 261120  }
 0x1e8   : > { %s15496_s19 = smov 112   ;;  %v728_v53 = vld [vmem:[%s15479_s6 + $0x10] sm:$0xff]  ;;  %v729_v54 = vld [vmem:[%s15479_s6 + $0x18] sm:$0xff]  ;;  %s15485_s16 = smov 116   ;;  %v738_v24 = vld [vmem:[%s15481_s8] sm:$0xff]  ;;  %vm1933_vm7 = vcmask 122880  }
 0x1e9   : > { %v11865_v4 = vld [vmem:[%s15476_s3 + $0x4] ss:$12 sps:$4 sm:$0xff]   ;;  %v11871_v5 = vld [vmem:[%s15476_s3 + $0x8] ss:$12 sps:$4 sm:$0xff]   ;;  %s15492_s28 = smov 104   ;;  %v741_v28 = vld [vmem:[%s15481_s8 + $0x18] sm:$0xff] }
 0x1ea   : > { %926 = vmatprep.mubr.bf16.mxu0 %v11865_v4  ;;  %10701 = vmatprep.mubr.msk.bf16.mxu1 %vm887_vm6, %v11871_v5  ;;  %v740_v25 = vld [vmem:[%s15481_s8 + $0x10] sm:$0xff]  ;;  %v739_v26 = vld [vmem:[%s15481_s8 + $0x8] sm:$0xff]  ;;  %s15508_s26 = smov 116   ;;  %s15500_s23 = smov 12  }
 0x1eb   : > { %s15530_s0 = smov 120  }
 0x1ec   : > { %v9641_v37 = vld [vmem:[%s11749_s21 + $0x80] sm:$0xff]  ;;  %v9642_v38 = vld [vmem:[%s11749_s21 + $0x88] sm:$0xff]  ;;  %v9691_v29 = vld [vmem:[%s11749_s21 + $0x90] sm:$0xff] }
 0x1ed   : > { %771 = vrot.lane.b32.xlu1 %v9641_v37, %s15498_s30  ;;  %767 = vrot.lane.b32.xlu0 %v9641_v37, %s15494_s22  ;;  %v11756_v39 = vld [vmem:[%s11749_s21 + $0xc8] sm:$0xff]  ;;  %v11759_v40 = vld [vmem:[%s11749_s21 + $0xc0] sm:$0xff] }
 0x1ee   : > { %v9646_v41 = vld [vmem:[%s11749_s21 + $0x108] sm:$0xff]  ;;  %v9645_v42 = vld [vmem:[%s11749_s21 + $0x100] sm:$0xff]  ;;  %v9692_v32 = vld [vmem:[%s11749_s21 + $0x98] sm:$0xff] }
 0x1ef   : > { %v9657_v47 = vld [vmem:[%s11749_s21 + $0x40] sm:$0xff]  ;;  %v9658_v48 = vld [vmem:[%s11749_s21 + $0x48] sm:$0xff]  ;;  %v11958_v35 = vld [vmem:[%s11749_s21 + $0xd0] sm:$0xff] }
 0x1f0   : > { %v9661_v49 = vld [vmem:[%s11749_s21 + $0x140] sm:$0xff]  ;;  %v9662_v50 = vld [vmem:[%s11749_s21 + $0x148] sm:$0xff]  ;;  %v11966_v37 = vld [vmem:[%s11749_s21 + $0xd8] sm:$0xff] }
 0x1f1   : > { %773 = vrot.lane.b32.xlu1 %v9642_v38, %s15498_s30  ;;  %769 = vrot.lane.b32.xlu0 %v9642_v38, %s15494_s22  ;;  %v11822_v55 = vld [vmem:[%s11749_s21] sm:$0xff]  ;;  %v11898_v20 = vld [vmem:[%s11749_s21 + $0x8] sm:$0xff] }
 0x1f2   : > { %v11913_v21 = vld [vmem:[%s11749_s21 + $0x180] sm:$0xff]  ;;  %v11920_v22 = vld [vmem:[%s11749_s21 + $0x188] sm:$0xff] }
 0x1f5   : > { %779 = vrot.lane.b32.xlu1 %v11756_v39, %s15494_s22  ;;  %777 = vrot.lane.b32.xlu0 %v11759_v40, %s15494_s22 }
 0x1f9   : > { %783 = vrot.lane.b32.xlu1 %v11756_v39, %s15498_s30  ;;  %781 = vrot.lane.b32.xlu0 %v11759_v40, %s15498_s30 }
 0x1fd   : > { %789 = vrot.lane.b32.xlu1 %v9646_v41, %s15494_s22  ;;  %787 = vrot.lane.b32.xlu0 %v9645_v42, %s15494_s22 }
 0x201   : > { %793 = vrot.lane.b32.xlu1 %v9646_v41, %s15498_s30  ;;  %791 = vrot.lane.b32.xlu0 %v9645_v42, %s15498_s30  ;;  %v9695_v41 = vld [vmem:[%s11749_s21 + $0x110] sm:$0xff] }
 0x205   : > { %802 = vperm.xlu1 %10972, %v715_v43   ;;  %797 = vperm.xlu0 %10971, %v714_v44   ;;  %v9696_v44 = vld [vmem:[%s11749_s21 + $0x118] sm:$0xff] }
 0x209   : > { %807 = vperm.xlu1 %10972, %v716_v45   ;;  %812 = vperm.xlu0 %10971, %v717_v46  }
 0x20d   : > { %1030 = vrot.lane.b32.xlu1 %v9657_v47, %s15498_s30  ;;  %1032 = vrot.lane.b32.xlu0 %v9658_v48, %s15498_s30 }
 0x211   : > { %1034 = vrot.lane.b32.xlu1 %v9657_v47, %s15496_s19  ;;  %1036 = vrot.lane.b32.xlu0 %v9658_v48, %s15496_s19 }
 0x215   : > { %1038 = vrot.lane.b32.xlu1 %v11759_v40, %s15496_s19  ;;  %1040 = vrot.lane.b32.xlu0 %v11756_v39, %s15496_s19 }
 0x219   : > { %1044 = vrot.lane.b32.xlu1 %v9661_v49, %s15498_s30  ;;  %1046 = vrot.lane.b32.xlu0 %v9662_v50, %s15498_s30 }
 0x21d   : > { %1048 = vrot.lane.b32.xlu1 %v9661_v49, %s15496_s19  ;;  %1050 = vrot.lane.b32.xlu0 %v9662_v50, %s15496_s19 }
 0x221   : > { %1054 = vperm.xlu1 %10972, %v726_v51   ;;  %1059 = vperm.xlu0 %10971, %v727_v52  }
 0x225   : > { %1064 = vperm.xlu1 %10972, %v728_v53   ;;  %1069 = vperm.xlu0 %10971, %v729_v54  }
 0x229   : > { %1102 = vrot.lane.b32.xlu1 %v9657_v47, %s15494_s22  ;;  %1104 = vrot.lane.b32.xlu0 %v9658_v48, %s15494_s22 }
 0x22d   : > { %1122 = vrot.lane.b32.xlu1 %v9661_v49, %s15494_s22  ;;  %1124 = vrot.lane.b32.xlu0 %v9662_v50, %s15494_s22 }
 0x231   : > { %1293 = vrot.lane.b32.xlu1 %v11822_v55, %s15485_s16 }
 0x25f   : > { %v11826_v56 = vpop.permute.xlu1 %771  ;;  %v768_v57 = vpop.permute.xlu0 %767 }
 0x260   : > { %845 = vrot.lane.b32.xlu1 %v768_v57, %s15498_s30 }
 0x263   : > { %v11829_v58 = vpop.permute.xlu1 %773  ;;  %v770_v59 = vpop.permute.xlu0 %769 }
 0x264   : > { %849 = vrot.lane.b32.xlu1 %v11826_v56, %s15498_s30  ;;  %847 = vrot.lane.b32.xlu0 %v770_v59, %s15498_s30  ;;  %v12005_v59 = vld [vmem:[%s15476_s3] ss:$12 sps:$4 sm:$0xff]  }
 0x267   : > { %v11834_v60 = vpop.permute.xlu1 %779  ;;  %v11836_v61 = vpop.permute.xlu0 %777 }
 0x268   : > { %853 = vrot.lane.b32.xlu1 %v11836_v61, %s15498_s30  ;;  %851 = vrot.lane.b32.xlu0 %v11829_v58, %s15498_s30 }
 0x26b   : > { %v11842_v62 = vpop.permute.xlu1 %783  ;;  %v11844_v63 = vpop.permute.xlu0 %781 }
 0x26c   : > { %857 = vrot.lane.b32.xlu1 %v11844_v63, %s15498_s30  ;;  %855 = vrot.lane.b32.xlu0 %v11834_v60, %s15498_s30 }
 0x26f   : > { %v788_v0 = vpop.permute.xlu0 %787  ;;  %v790_v1 = vpop.permute.xlu1 %789 }
 0x270   : > { %861 = vrot.lane.b32.xlu1 %v788_v0, %s15498_s30  ;;  %859 = vrot.lane.b32.xlu0 %v11842_v62, %s15498_s30  ;;  %v12011_v0 = vld [vmem:[%s15476_s3 + $0x1c] ss:$12 sps:$4 sm:$0xff]  }
 0x273   : > { %v11853_v2 = vpop.permute.xlu0 %791  ;;  %v11858_v3 = vpop.permute.xlu1 %793 }
 0x274   : > { %865 = vrot.lane.b32.xlu1 %v11853_v2, %s15498_s30  ;;  %863 = vrot.lane.b32.xlu0 %v790_v1, %s15498_s30 }
 0x278   : > { %867 = vrot.lane.b32.xlu0 %v11858_v3, %s15498_s30 }
 0x284   : > { %v11875_v6 = vpop.permute.xlu1 %802  ;;  %v11877_v7 = vpop.permute.xlu0 %797 }
 0x288   : > { %v11879_v8 = vpop.permute.xlu1 %807  ;;  %v11881_v9 = vpop.permute.xlu0 %812 }
 0x28c   : > { %v1031_v10 = vpop.permute.xlu1 %1030  ;;  %v1033_v11 = vpop.permute.xlu0 %1032 }
 0x28d   : > { %1106 = vrot.lane.b32.xlu1 %v1031_v10, %s15494_s22  ;;  %1108 = vrot.lane.b32.xlu0 %v1033_v11, %s15494_s22 }
 0x290   : > { %v1035_v12 = vpop.permute.xlu1 %1034  ;;  %v1037_v13 = vpop.permute.xlu0 %1036 }
 0x291   : > { %1110 = vrot.lane.b32.xlu1 %v1035_v12, %s15494_s22  ;;  %1112 = vrot.lane.b32.xlu0 %v1037_v13, %s15494_s22 }
 0x294   : > { %v1039_v14 = vpop.permute.xlu1 %1038  ;;  %v1041_v15 = vpop.permute.xlu0 %1040 }
 0x295   : > { %1114 = vrot.lane.b32.xlu1 %v11844_v63, %s15494_s22  ;;  %1116 = vrot.lane.b32.xlu0 %v11842_v62, %s15494_s22 }
 0x298   : > { %v1045_v16 = vpop.permute.xlu1 %1044  ;;  %v1047_v17 = vpop.permute.xlu0 %1046 }
 0x299   : > { %1118 = vrot.lane.b32.xlu1 %v1039_v14, %s15494_s22  ;;  %1120 = vrot.lane.b32.xlu0 %v1041_v15, %s15494_s22 }
 0x29c   : > { %v1049_v18 = vpop.permute.xlu1 %1048  ;;  %v1051_v19 = vpop.permute.xlu0 %1050 }
 0x29d   : > { %1126 = vrot.lane.b32.xlu1 %v1045_v16, %s15494_s22  ;;  %1128 = vrot.lane.b32.xlu0 %v1047_v17, %s15494_s22 }
 0x2a0   : > { %v11926_v23 = vpop.permute.xlu1 %1054  ;;  %v11945_v30 = vpop.permute.xlu0 %1059 }
 0x2a1   : > { %1130 = vrot.lane.b32.xlu1 %v1049_v18, %s15494_s22  ;;  %1132 = vrot.lane.b32.xlu0 %v1051_v19, %s15494_s22 }
 0x2a4   : > { %v11939_v27 = vpop.permute.xlu1 %1064  ;;  %v11953_v33 = vpop.permute.xlu0 %1069 }
 0x2a5   : > { %1299 = vrot.lane.b32.xlu1 %v11822_v55, %s15492_s28  ;;  %1295 = vrot.lane.b32.xlu0 %v11898_v20, %s15485_s16 }
 0x2a8   : > { %v11947_v31 = vpop.permute.xlu1 %1102  ;;  %v11963_v36 = vpop.permute.xlu0 %1104 }
 0x2a9   : > { %1305 = vrot.lane.b32.xlu1 %v11759_v40, %s15485_s16  ;;  %1301 = vrot.lane.b32.xlu0 %v11898_v20, %s15492_s28 }
 0x2ac   : > { %v11955_v34 = vpop.permute.xlu1 %1122  ;;  %v11975_v42 = vpop.permute.xlu0 %1124 }
 0x2ad   : > { %1311 = vrot.lane.b32.xlu1 %v11759_v40, %s15492_s28  ;;  %1307 = vrot.lane.b32.xlu0 %v11756_v39, %s15485_s16 }
 0x2b0   : > { %v11968_v38 = vpop.permute.xlu1 %1293 }
 0x2b1   : > { %1319 = vrot.lane.b32.xlu1 %v11913_v21, %s15485_s16  ;;  %1313 = vrot.lane.b32.xlu0 %v11756_v39, %s15492_s28 }
 0x2b5   : > { %1325 = vrot.lane.b32.xlu1 %v11913_v21, %s15492_s28  ;;  %1321 = vrot.lane.b32.xlu0 %v11920_v22, %s15485_s16 }
 0x2b9   : > { %1333 = vperm.xlu1 %10972, %v738_v24   ;;  %1327 = vrot.lane.b32.xlu0 %v11920_v22, %s15492_s28 }
 0x2bd   : > { %1343 = vperm.xlu1 %10972, %v740_v25   ;;  %1338 = vperm.xlu0 %10971, %v739_v26   ;;  %v12034_v25 = vld [vmem:[%s15478_s5 + $0x20] ss:$12 sps:$4 sm:$0xff]   ;;  %v12039_v26 = vld [vmem:[%s15480_s7 + $0x8] ss:$12 sps:$4 sm:$0xff]  }
 0x2c1   : > { %1348 = vperm.xlu0 %10971, %v741_v28   ;;  %1990 = vrot.lane.b32.xlu1 %v9691_v29, %s15494_s22 }
 0x2c5   : > { %1994 = vrot.lane.b32.xlu1 %v9691_v29, %s15498_s30  ;;  %1992 = vrot.lane.b32.xlu0 %v9692_v32, %s15494_s22 }
 0x2c9   : > { %2000 = vrot.lane.b32.xlu1 %v11958_v35, %s15494_s22  ;;  %1996 = vrot.lane.b32.xlu0 %v9692_v32, %s15498_s30 }
 0x2cd   : > { %2004 = vrot.lane.b32.xlu1 %v11958_v35, %s15498_s30  ;;  %2002 = vrot.lane.b32.xlu0 %v11966_v37, %s15494_s22 }
 0x2d1   : > { %2010 = vrot.lane.b32.xlu1 %v9695_v41, %s15494_s22  ;;  %2006 = vrot.lane.b32.xlu0 %v11966_v37, %s15498_s30 }
 0x2d2   : > { %v846_v43 = vpop.permute.xlu1 %845 }
 0x2d5   : > { %2014 = vrot.lane.b32.xlu1 %v9695_v41, %s15498_s30  ;;  %2012 = vrot.lane.b32.xlu0 %v9696_v44, %s15494_s22  ;;  %v12050_v41 = vld [vmem:[%s15478_s5] ss:$12 sps:$4 sm:$0xff]  }
 0x2d6   : > { %v850_v45 = vpop.permute.xlu1 %849  ;;  %v848_v46 = vpop.permute.xlu0 %847 }
 0x2d9   : > { %2016 = vrot.lane.b32.xlu0 %v9696_v44, %s15498_s30 }
 0x2da   : > { %v854_v47 = vpop.permute.xlu1 %853  ;;  %v852_v48 = vpop.permute.xlu0 %851 }
 0x2db   : > { %9919 = vmatprep.subr.bf16.mxu0 %v854_v47 }
 0x2dc   : > { %9920 = vmatpush3.bf16.msra.mxu0 %v11826_v56  ;;  %v11990_v56 = vld [vmem:[%s15476_s3 + $0x20] ss:$12 sps:$4 sm:$0xff]  }
 0x2de   : > { %v858_v49 = vpop.permute.xlu1 %857  ;;  %v856_v50 = vpop.permute.xlu0 %855 }
 0x2df   : > { %9921 = vmatprep.subr.bf16.mxu0 %v856_v50 }
 0x2e0   : > { %9922 = vmatpush3.bf16.msra.mxu0 %v11829_v58  ;;  %v11995_v58 = vld [vmem:[%s15478_s5 + $0x4] ss:$12 sps:$4 sm:$0xff]  }
 0x2e1   : > { %9923 = vmatprep.subr.bf16.mxu0 %v858_v49  ;;  %v12106_v49 = vld [vmem:[%s15480_s7 + $0x1c] ss:$12 sps:$4 sm:$0xff]  }
 0x2e2   : > { %v862_v51 = vpop.permute.xlu1 %861  ;;  %v860_v52 = vpop.permute.xlu0 %859 }
 0x2e4   : > { %9924 = vmatpush3.bf16.msra.mxu0 %v846_v43 }
 0x2e5   : > { %9925 = vmatprep.subr.bf16.mxu0 %v860_v52  ;;  %v12124_v52 = vld [vmem:[%s15480_s7 + $0x18] ss:$12 sps:$4 sm:$0xff]  }
 0x2e6   : > { %v866_v53 = vpop.permute.xlu1 %865  ;;  %v864_v54 = vpop.permute.xlu0 %863 }
 0x2e7   : > { %10697 = vmatprep.subr.bf16.mxu1 %v866_v53 }
 0x2e8   : > { %9926 = vmatpush3.bf16.msra.mxu0 %v848_v46  ;;  %10698 = vmatpush3.bf16.msra.mxu1 %v866_v53 }
 0x2e9   : > { %9927 = vmatprep.subr.bf16.mxu0 %v11853_v2 }
 0x2ea   : > { %v868_v57 = vpop.permute.xlu0 %867 }
 0x2eb   : > { %10699 = vmatprep.subr.bf16.mxu1 %v868_v57 }
 0x2ec   : > { %9928 = vmatpush3.bf16.msra.mxu0 %v850_v45  ;;  %10700 = vmatpush3.bf16.msra.mxu1 %v868_v57  ;;  %v12069_v45 = vld [vmem:[%s15480_s7 + $0x20] ss:$12 sps:$4 sm:$0xff]  }
 0x2ed   : > { %9929 = vmatprep.subr.bf16.mxu0 %v11858_v3 }
 0x2ef   : > { %10702 = vmatmul.mubr.msk.bf16.vlgmr.msra.gmra.mrb[0].mxu1 %vm887_vm6, %v11990_v56 }
 0x2f0   : > { %9930 = vmatpush3.bf16.msra.mxu0 %v852_v48  ;;  %1190 = vmatprep.mubr.bf16.mxu1 %v11995_v58 }
 0x2f1   : > { %9931 = vmatprep.subr.bf16.mxu0 %v862_v51 }
 0x2f4   : > { %9932 = vmatpush3.bf16.msra.mxu0 %v11844_v63  ;;  %v12018_v63 = vld [vmem:[%s15476_s3 + $0x18] ss:$12 sps:$4 sm:$0xff]  }
 0x2f5   : > { %9933 = vmatprep.subr.bf16.mxu0 %v864_v54 }
 0x2f8   : > { %9934 = vmatpush3.bf16.msra.mxu0 %v11842_v62  ;;  %v12023_v62 = vld [vmem:[%s15478_s5 + $0x8] ss:$12 sps:$4 sm:$0xff]  }
 0x2fb   : > { %927 = vmatmul.mubr.bf16.vlgmr.msra.gmra.mrb[0].mxu0 %v12005_v59 }
 0x2fc   : > { %934 = vmatprep.mubr.bf16.mxu0 %v12011_v0 }
 0x2ff   : > { %v1107_v1 = vpop.permute.xlu1 %1106  ;;  %v1109_v2 = vpop.permute.xlu0 %1108 }
 0x303   : > { %v1111_v3 = vpop.permute.xlu1 %1110  ;;  %v1113_v10 = vpop.permute.xlu0 %1112  ;;  %935 = vmatmul.mubr.bf16.gmra.mrb[4].mxu0 %v12018_v63 }
 0x304   : > { %10709 = vmatprep.mubr.msk.bf16.mxu0 %vm887_vm6, %v12023_v62 }
 0x307   : > { %v1115_v11 = vpop.permute.xlu1 %1114  ;;  %v1117_v12 = vpop.permute.xlu0 %1116 }
 0x308   : > { %9951 = vmatprep.subr.bf16.mxu1 %v1115_v11  ;;  %v12148_v11 = vld [vmem:[%s11749_s21 + $0x150] sm:$0xff] }
 0x309   : > { %9952 = vmatpush3.bf16.msra.mxu1 %v11947_v31 }
 0x30a   : > { %9953 = vmatprep.subr.bf16.mxu1 %v1117_v12  ;;  %v12155_v12 = vld [vmem:[%s11749_s21 + $0x158] sm:$0xff] }
 0x30b   : > { %v1119_v13 = vpop.permute.xlu1 %1118  ;;  %v1121_v14 = vpop.permute.xlu0 %1120 }
 0x30d   : > { %9954 = vmatpush3.bf16.msra.mxu1 %v11963_v36 }
 0x30e   : > { %9955 = vmatprep.subr.bf16.mxu1 %v1119_v13 }
 0x30f   : > { %v1127_v15 = vpop.permute.xlu1 %1126  ;;  %v1129_v16 = vpop.permute.xlu0 %1128 }
 0x311   : > { %9956 = vmatpush3.bf16.msra.mxu1 %v1107_v1 }
 0x312   : > { %9957 = vmatprep.subr.bf16.mxu1 %v1121_v14 }
 0x313   : > { %v1131_v17 = vpop.permute.xlu1 %1130  ;;  %v1133_v18 = vpop.permute.xlu0 %1132 }
 0x314   : > { %10705 = vmatprep.subr.bf16.mxu0 %v1131_v17 }
 0x315   : > { %9958 = vmatpush3.bf16.msra.mxu1 %v1109_v2  ;;  %10706 = vmatpush3.bf16.msra.mxu0 %v1131_v17  ;;  %v9701_v2 = vld [vmem:[%s11749_s21 + $0x50] sm:$0xff] }
 0x316   : > { %9959 = vmatprep.subr.bf16.mxu1 %v11955_v34  ;;  %10707 = vmatprep.subr.bf16.mxu0 %v1133_v18 }
 0x317   : > { %v1300_v19 = vpop.permute.xlu1 %1299  ;;  %v1296_v24 = vpop.permute.xlu0 %1295 }
 0x319   : > { %9960 = vmatpush3.bf16.msra.mxu1 %v1111_v3  ;;  %10708 = vmatpush3.bf16.msra.mxu0 %v1133_v18 }
 0x31a   : > { %9961 = vmatprep.subr.bf16.mxu1 %v11975_v42  ;;  %v12056_v42 = vld [vmem:[%s15478_s5 + $0x1c] ss:$12 sps:$4 sm:$0xff]  }
 0x31b   : > { %v1306_v28 = vpop.permute.xlu1 %1305  ;;  %v1302_v29 = vpop.permute.xlu0 %1301 }
 0x31c   : > { %10710 = vmatmul.mubr.msk.bf16.vlgmr.msra.gmra.mrb[8].mxu0 %vm887_vm6, %v12034_v25 }
 0x31d   : > { %9962 = vmatpush3.bf16.msra.mxu1 %v1113_v10  ;;  %10717 = vmatprep.mubr.msk.bf16.mxu0 %vm887_vm6, %v12039_v26  ;;  %v9702_v10 = vld [vmem:[%s11749_s21 + $0x58] sm:$0xff] }
 0x31e   : > { %9963 = vmatprep.subr.bf16.mxu1 %v1127_v15 }
 0x31f   : > { %v1312_v31 = vpop.permute.xlu1 %1311  ;;  %v1308_v32 = vpop.permute.xlu0 %1307 }
 0x321   : > { %9964 = vmatpush3.bf16.msra.mxu1 %v11836_v61 }
 0x322   : > { %9965 = vmatprep.subr.bf16.mxu1 %v1129_v16 }
 0x323   : > { %v1320_v34 = vpop.permute.xlu1 %1319  ;;  %v1314_v36 = vpop.permute.xlu0 %1313 }
 0x325   : > { %9966 = vmatpush3.bf16.msra.mxu1 %v11834_v60  ;;  %v12064_v60 = vld [vmem:[%s15478_s5 + $0x18] ss:$12 sps:$4 sm:$0xff]  }
 0x326   : > { %9983 = vmatprep.subr.bf16.mxu1 %v1306_v28 }
 0x327   : > { %v1326_v43 = vpop.permute.xlu1 %1325  ;;  %v1322_v44 = vpop.permute.xlu0 %1321 }
 0x328   : > { %1191 = vmatmul.mubr.bf16.vlgmr.msra.gmra.mrb[4].mxu1 %v12050_v41  ;;  %10713 = vmatprep.subr.bf16.mxu0 %v1326_v43 }
 0x329   : > { %9984 = vmatpush3.bf16.msra.mxu1 %v11822_v55  ;;  %10714 = vmatpush3.bf16.msra.mxu0 %v1326_v43  ;;  %v12075_v55 = vld [vmem:[%s15480_s7 + $0x4] ss:$12 sps:$4 sm:$0xff]  }
 0x32a   : > { %9985 = vmatprep.subr.bf16.mxu1 %v1308_v32  ;;  %1198 = vmatprep.mubr.bf16.mxu1 %v12056_v42 }
 0x32b   : > { %v1328_v61 = vpop.permute.xlu0 %1327 }
 0x32c   : > { %10715 = vmatprep.subr.bf16.mxu0 %v1328_v61 }
 0x32d   : > { %9986 = vmatpush3.bf16.msra.mxu1 %v11898_v20  ;;  %10716 = vmatpush3.bf16.msra.mxu0 %v1328_v61 }
 0x32e   : > { %9987 = vmatprep.subr.bf16.mxu1 %v1312_v31 }
 0x330   : > { %1199 = vmatmul.mubr.bf16.gmra.mrb[8].mxu1 %v12064_v60  ;;  %10718 = vmatmul.mubr.msk.bf16.vlgmr.msra.gmra.mrb[12].mxu0 %vm887_vm6, %v12069_v45 }
 0x331   : > { %9988 = vmatpush3.bf16.msra.mxu1 %v11968_v38  ;;  %1419 = vmatprep.mubr.bf16.mxu1 %v12075_v55 }
 0x332   : > { %9989 = vmatprep.subr.bf16.mxu1 %v1314_v36  ;;  %2092 = vmatprep.mubr.bf16.mxu0 %v11865_v4 }
 0x335   : > { %9990 = vmatpush3.bf16.msra.mxu1 %v1296_v24 }
 0x336   : > { %9991 = vmatprep.subr.bf16.mxu1 %v11913_v21 }
 0x338   : > { %v12084_v20 = vpop.permute.xlu1 %1333 }
 0x339   : > { %9992 = vmatpush3.bf16.msra.mxu1 %v1300_v19 }
 0x33a   : > { %9993 = vmatprep.subr.bf16.mxu1 %v11920_v22  ;;  %v12100_v22 = vld [vmem:[%s15480_s7] ss:$12 sps:$4 sm:$0xff]  }
 0x33c   : > { %v12087_v46 = vpop.permute.xlu1 %1343  ;;  %v12089_v47 = vpop.permute.xlu0 %1338 }
 0x33d   : > { %9994 = vmatpush3.bf16.msra.mxu1 %v1302_v29 }
 0x33e   : > { %9995 = vmatprep.subr.bf16.mxu1 %v1320_v34 }
 0x340   : > { %v1991_v38 = vpop.permute.xlu1 %1990  ;;  %v12091_v48 = vpop.permute.xlu0 %1348 }
 0x341   : > { %2018 = vrot.lane.b32.xlu1 %v1991_v38, %s15498_s30  ;;  %9996 = vmatpush3.bf16.msra.mxu1 %v11759_v40 }
 0x342   : > { %9997 = vmatprep.subr.bf16.mxu1 %v1322_v44 }
 0x344   : > { %v1995_v4 = vpop.permute.xlu1 %1994  ;;  %v1993_v21 = vpop.permute.xlu0 %1992 }
 0x345   : > { %2022 = vrot.lane.b32.xlu1 %v1995_v4, %s15498_s30  ;;  %2020 = vrot.lane.b32.xlu0 %v1993_v21, %s15498_s30 }
 0x346   : > { %9998 = vmatpush3.bf16.msra.mxu1 %v11756_v39 }
 0x348   : > { %v12108_v40 = vpop.permute.xlu1 %2000  ;;  %v1997_v50 = vpop.permute.xlu0 %1996 }
 0x349   : > { %1420 = vmatmul.mubr.bf16.vlgmr.msra.gmra.mrb[12].mxu1 %v12100_v22  ;;  %2026 = vrot.lane.b32.xlu1 %v12108_v40, %s15498_s30 }
 0x34a   : > { %2024 = vrot.lane.b32.xlu0 %v1997_v50, %s15498_s30  ;;  %1427 = vmatprep.mubr.bf16.mxu1 %v12106_v49 }
 0x34c   : > { %v12115_v51 = vpop.permute.xlu1 %2004  ;;  %v12117_v39 = vpop.permute.xlu0 %2002 }
 0x34d   : > { %2030 = vrot.lane.b32.xlu1 %v12115_v51, %s15498_s30 }
 0x34e   : > { %2028 = vrot.lane.b32.xlu0 %v12117_v39, %s15498_s30 }
 0x350   : > { %v2011_v53 = vpop.permute.xlu1 %2010  ;;  %v12128_v54 = vpop.permute.xlu0 %2006 }
 0x351   : > { %1428 = vmatmul.mubr.bf16.gmra.mrb[16].mxu1 %v12124_v52  ;;  %2034 = vrot.lane.b32.xlu1 %v2011_v53, %s15498_s30 }
 0x352   : > { %2032 = vrot.lane.b32.xlu0 %v12128_v54, %s15498_s30  ;;  %10725 = vmatprep.mubr.msk.bf16.mxu1 %vm887_vm6, %v11871_v5 }
 0x354   : > { %v2015_v57 = vpop.permute.xlu1 %2014  ;;  %v2013_v1 = vpop.permute.xlu0 %2012 }
 0x355   : > { %2038 = vrot.lane.b32.xlu1 %v2015_v57, %s15498_s30 }
 0x356   : > { %2036 = vrot.lane.b32.xlu0 %v2013_v1, %s15498_s30 }
 0x358   : > { %v2017_v3 = vpop.permute.xlu0 %2016 }
 0x359   : > { %2196 = vrot.lane.b32.xlu1 %v9701_v2, %s15498_s30 }
 0x35a   : > { %2040 = vrot.lane.b32.xlu0 %v2017_v3, %s15498_s30 }
 0x35d   : > { %2200 = vrot.lane.b32.xlu1 %v9701_v2, %s15496_s19 }
 0x35e   : > { %2198 = vrot.lane.b32.xlu0 %v9702_v10, %s15498_s30 }
 0x361   : > { %2204 = vrot.lane.b32.xlu1 %v11958_v35, %s15496_s19 }
 0x362   : > { %2202 = vrot.lane.b32.xlu0 %v9702_v10, %s15496_s19 }
 0x365   : > { %2210 = vrot.lane.b32.xlu1 %v12148_v11, %s15498_s30 }
 0x366   : > { %2206 = vrot.lane.b32.xlu0 %v11966_v37, %s15496_s19 }
 0x369   : > { %2214 = vrot.lane.b32.xlu1 %v12148_v11, %s15496_s19 }
 0x36a   : > { %2212 = vrot.lane.b32.xlu0 %v12155_v12, %s15498_s30 }
 0x36d   : > { %2218 = vrot.lane.b32.xlu1 %v9701_v2, %s15494_s22 }
 0x36e   : > { %2216 = vrot.lane.b32.xlu0 %v12155_v12, %s15496_s19 }
 0x372   : > { %2220 = vrot.lane.b32.xlu0 %v9702_v10, %s15494_s22 }
 0x3b3   : > { %v2019_v13 = vpop.permute.xlu1 %2018 }
 0x3b7   : > { %v2023_v14 = vpop.permute.xlu1 %2022  ;;  %v2021_v15 = vpop.permute.xlu0 %2020 }
 0x3bb   : > { %v2027_v16 = vpop.permute.xlu1 %2026 }
 0x3bc   : > { %v2025_v17 = vpop.permute.xlu0 %2024  ;;  %10015 = vmatprep.subr.bf16.mxu0 %v2027_v16 }
 0x3bd   : > { %10016 = vmatpush3.bf16.msra.mxu0 %v1995_v4 }
 0x3bf   : > { %v2031_v18 = vpop.permute.xlu1 %2030 }
 0x3c0   : > { %v2029_v19 = vpop.permute.xlu0 %2028 }
 0x3c1   : > { %10017 = vmatprep.subr.bf16.mxu0 %v2029_v19 }
 0x3c2   : > { %10018 = vmatpush3.bf16.msra.mxu0 %v1997_v50  ;;  %v10703_v24 = vpop.f32.mrb[0].mxu1 }
 0x3c3   : > { %10019 = vmatprep.subr.bf16.mxu0 %v2031_v18  ;;  %v2035_v28 = vpop.permute.xlu1 %2034  ;;  %v977_v29 = vpop.f32.mrb[1].mxu1 }
 0x3c4   : > { %v2033_v31 = vpop.permute.xlu0 %2032  ;;  %v10704_v32 = vpop.f32.mrb[2].mxu1 }
 0x3c5   : > { %v980_v34 = vpop.f32.mrb[3].mxu1 }
 0x3c6   : > { %10020 = vmatpush3.bf16.msra.mxu0 %v2019_v13 }
 0x3c7   : > { %10021 = vmatprep.subr.bf16.mxu0 %v2033_v31  ;;  %v2039_v36 = vpop.permute.xlu1 %2038 }
 0x3c8   : > { %v2037_v43 = vpop.permute.xlu0 %2036  ;;  %10721 = vmatprep.subr.bf16.mxu1 %v2039_v36 }
 0x3c9   : > { %10722 = vmatpush3.bf16.msra.mxu1 %v2039_v36 }
 0x3ca   : > { %10022 = vmatpush3.bf16.msra.mxu0 %v2021_v15 }
 0x3cb   : > { %10023 = vmatprep.subr.bf16.mxu0 %v2015_v57  ;;  %v2197_v44 = vpop.permute.xlu1 %2196 }
 0x3cc   : > { %v2041_v61 = vpop.permute.xlu0 %2040  ;;  %2222 = vrot.lane.b32.xlu1 %v2197_v44, %s15494_s22 }
 0x3cd   : > { %10723 = vmatprep.subr.bf16.mxu1 %v2041_v61 }
 0x3ce   : > { %10024 = vmatpush3.bf16.msra.mxu0 %v2023_v14  ;;  %10724 = vmatpush3.bf16.msra.mxu1 %v2041_v61  ;;  %v9935_v38 = vpop.f32.mrb[0].mxu0 }
 0x3cf   : > { %10025 = vmatprep.subr.bf16.mxu0 %v2017_v3  ;;  %v2201_v4 = vpop.permute.xlu1 %2200  ;;  %v9936_v21 = vpop.f32.mrb[1].mxu0 }
 0x3d0   : > { %v2199_v50 = vpop.permute.xlu0 %2198  ;;  %v9937_v53 = vadd.f32 %v9936_v21, %v9935_v38  ;;  %2226 = vrot.lane.b32.xlu1 %v2201_v4, %s15494_s22  ;;  %v9938_v1 = vpop.f32.mrb[2].mxu0 }
 0x3d1   : > { %2224 = vrot.lane.b32.xlu0 %v2199_v50, %s15494_s22  ;;  %v9939_v2 = vpop.f32.mrb[3].mxu0  ;;  %10726 = vmatmul.mubr.msk.bf16.vlgmr.msra.gmra.mrb[20].mxu1 %vm887_vm6, %v11990_v56 }
 0x3d2   : > { %v9940_v57 = vadd.f32 %v9939_v2, %v9938_v1  ;;  %10026 = vmatpush3.bf16.msra.mxu0 %v2025_v17  ;;  %v929_v10 = vadd.f32 %v9937_v53, %v11877_v7  ;;  %10733 = vmatprep.mubr.msk.bf16.mxu1 %vm887_vm6, %v12023_v62  ;;  %v12226_v53 = vld [vmem:[%s11749_s21 + $0x190] sm:$0xff]  ;;  %v12233_v1 = vld [vmem:[%s11749_s21 + $0x198] sm:$0xff] }
 0x3d3   : > { %10027 = vmatprep.subr.bf16.mxu0 %v2035_v28  ;;  %v2205_v15 = vpop.permute.xlu1 %2204 }
 0x3d4   : > { %v2203_v3 = vpop.permute.xlu0 %2202  ;;  %v12173_v13 = vadd.f32 %v977_v29, %v929_v10  ;;  %2230 = vrot.lane.b32.xlu1 %v12115_v51, %s15494_s22  ;;  %v932_v14 = vadd.f32 %v9940_v57, %v11875_v6 }
 0x3d5   : > { %2228 = vrot.lane.b32.xlu0 %v2203_v3, %s15494_s22 }
 0x3d6   : > { %v12179_v16 = vadd.f32 %v980_v34, %v932_v14  ;;  %10028 = vmatpush3.bf16.msra.mxu0 %v12115_v51  ;;  %v9941_v17 = vpop.f32.mrb[4].mxu0  ;;  %v9725_v14 = vld [vmem:[%s11749_s21 + $0xa0] sm:$0xff] }
 0x3d7   : > { %10029 = vmatprep.subr.bf16.mxu0 %v2037_v43  ;;  %v9942_v18 = vpop.f32.mrb[5].mxu0  ;;  %v2211_v44 = vpop.permute.xlu1 %2210 }
 0x3d8   : > { %v9943_v19 = vadd.f32 %v9942_v18, %v9941_v17  ;;  %2234 = vrot.lane.b32.xlu1 %v2205_v15, %s15494_s22  ;;  %v9944_v28 = vpop.f32.mrb[6].mxu0  ;;  %v2207_v34 = vpop.permute.xlu0 %2206 }
 0x3d9   : > { %2232 = vrot.lane.b32.xlu0 %v12128_v54, %s15494_s22  ;;  %v9945_v29 = vpop.f32.mrb[7].mxu0 }
 0x3da   : > { %v937_v31 = vadd.f32 %v9943_v19, %v11879_v8  ;;  %v9946_v36 = vadd.f32 %v9945_v29, %v9944_v28  ;;  %10030 = vmatpush3.bf16.msra.mxu0 %v12128_v54  ;;  %v9726_v29 = vld [vmem:[%s11749_s21 + $0xa8] sm:$0xff] }
 0x3dc   : > { %v12187_v51 = vadd.f32 %v10703_v24, %v937_v31  ;;  %v940_v43 = vadd.f32 %v9946_v36, %v11881_v9  ;;  %2238 = vrot.lane.b32.xlu1 %v12148_v11, %s15494_s22  ;;  %v2213_v54 = vpop.permute.xlu0 %2212  ;;  %v2215_v24 = vpop.permute.xlu1 %2214  ;;  %v12204_v11 = vld [vmem:[%s11749_s21 + $0x10] sm:$0xff] }
 0x3dd   : > { %2236 = vrot.lane.b32.xlu0 %v2207_v34, %s15494_s22  ;;  %2093 = vmatmul.mubr.bf16.vlgmr.msra.gmra.mrb[16].mxu0 %v12005_v59 }
 0x3de   : > { %v12194_v61 = vadd.f32 %v10704_v32, %v940_v43  ;;  %2100 = vmatprep.mubr.bf16.mxu0 %v12011_v0 }
 0x3e0   : > { %15507 = vst [vmem:[#allocation6_spill] sm:$0xff] %v12194_v61  ;;  %2242 = vrot.lane.b32.xlu1 %v2211_v44, %s15494_s22  ;;  %v2217_v32 = vpop.permute.xlu0 %2216 }
 0x3e1   : > { %2240 = vrot.lane.b32.xlu0 %v12155_v12, %s15494_s22  ;;  %v12211_v12 = vld [vmem:[%s11749_s21 + $0x18] sm:$0xff] }
 0x3e4   : > { %2246 = vrot.lane.b32.xlu1 %v2215_v24, %s15494_s22 }
 0x3e5   : > { %2244 = vrot.lane.b32.xlu0 %v2213_v54, %s15494_s22  ;;  %2101 = vmatmul.mubr.bf16.gmra.mrb[20].mxu0 %v12018_v63 }
 0x3e6   : > { %2300 = vmatprep.mubr.bf16.mxu0 %v11995_v58 }
 0x3e8   : > { %2404 = vrot.lane.b32.xlu1 %v12204_v11, %s15508_s26 }
 0x3e9   : > { %2248 = vrot.lane.b32.xlu0 %v2217_v32, %s15494_s22  ;;  %v12253_v32 = vld [vmem:[%s11749_s21 + $0xe0] sm:$0xff] }
 0x3ec   : > { %2410 = vrot.lane.b32.xlu1 %v12204_v11, %s15492_s28 }
 0x3ed   : > { %2406 = vrot.lane.b32.xlu0 %v12211_v12, %s15508_s26 }
 0x3ef   : > { %v10711_v38 = vpop.f32.mrb[8].mxu0 }
 0x3f0   : > { %2416 = vrot.lane.b32.xlu1 %v11958_v35, %s15508_s26  ;;  %v1241_v4 = vpop.f32.mrb[9].mxu0 }
 0x3f1   : > { %2412 = vrot.lane.b32.xlu0 %v12211_v12, %s15492_s28  ;;  %v10712_v21 = vpop.f32.mrb[10].mxu0 }
 0x3f2   : > { %v1244_v50 = vpop.f32.mrb[11].mxu0 }
 0x3f4   : > { %2422 = vrot.lane.b32.xlu1 %v11958_v35, %s15492_s28 }
 0x3f5   : > { %2418 = vrot.lane.b32.xlu0 %v11966_v37, %s15508_s26 }
 0x3f8   : > { %2430 = vrot.lane.b32.xlu1 %v12226_v53, %s15508_s26 }
 0x3f9   : > { %2424 = vrot.lane.b32.xlu0 %v11966_v37, %s15492_s28 }
 0x3fb   : > { %v9967_v2 = vpop.f32.mrb[4].mxu1 }
 0x3fc   : > { %2436 = vrot.lane.b32.xlu1 %v12226_v53, %s15492_s28  ;;  %v9968_v57 = vpop.f32.mrb[5].mxu1 }
 0x3fd   : > { %2432 = vrot.lane.b32.xlu0 %v12233_v1, %s15508_s26  ;;  %v9969_v10 = vadd.f32 %v9968_v57, %v9967_v2  ;;  %v9970_v3 = vpop.f32.mrb[6].mxu1 }
 0x3fe   : > { %v9971_v15 = vpop.f32.mrb[7].mxu1 }
 0x3ff   : > { %v9972_v17 = vadd.f32 %v9971_v15, %v9970_v3  ;;  %v1193_v18 = vadd.f32 %v9969_v10, %v11926_v23  ;;  %v12263_v15 = vld [vmem:[%s11749_s21 + $0xe8] sm:$0xff] }
 0x400   : > { %3044 = vrot.lane.b32.xlu1 %v9725_v14, %s15494_s22 }
 0x401   : > { %2438 = vrot.lane.b32.xlu0 %v12233_v1, %s15492_s28  ;;  %v12244_v19 = vadd.f32 %v1241_v4, %v1193_v18  ;;  %v1196_v28 = vadd.f32 %v9972_v17, %v11945_v30  ;;  %v9729_v18 = vld [vmem:[%s11749_s21 + $0x120] sm:$0xff] }
 0x403   : > { %v12248_v31 = vadd.f32 %v1244_v50, %v1196_v28  ;;  %v9973_v36 = vpop.f32.mrb[8].mxu1  ;;  %v10719_v34 = vpop.f32.mrb[12].mxu0 }
 0x404   : > { %3048 = vrot.lane.b32.xlu1 %v9725_v14, %s15498_s30  ;;  %v9974_v44 = vpop.f32.mrb[9].mxu1  ;;  %v1470_v43 = vpop.f32.mrb[13].mxu0 }
 0x405   : > { %15509 = vst [vmem:[#allocation7_spill] sm:$0xff] %v12248_v31  ;;  %3046 = vrot.lane.b32.xlu0 %v9726_v29, %s15494_s22  ;;  %v9975_v54 = vadd.f32 %v9974_v44, %v9973_v36  ;;  %v9976_v24 = vpop.f32.mrb[10].mxu1  ;;  %v10720_v4 = vpop.f32.mrb[14].mxu0 }
 0x406   : > { %v9977_v2 = vpop.f32.mrb[11].mxu1  ;;  %v1473_v57 = vpop.f32.mrb[15].mxu0 }
 0x407   : > { %v1201_v50 = vadd.f32 %v9975_v54, %v11939_v27  ;;  %v9978_v10 = vadd.f32 %v9977_v2, %v9976_v24 }
 0x408   : > { %3054 = vrot.lane.b32.xlu1 %v12253_v32, %s15494_s22 }
 0x409   : > { %v12258_v3 = vadd.f32 %v10711_v38, %v1201_v50  ;;  %v1204_v14 = vadd.f32 %v9978_v10, %v11953_v33  ;;  %3050 = vrot.lane.b32.xlu0 %v9726_v29, %s15498_s30  ;;  %v9730_v38 = vld [vmem:[%s11749_s21 + $0x128] sm:$0xff] }
 0x40b   : > { %15510 = vst [vmem:[#allocation8_spill] sm:$0xff] %v12258_v3  ;;  %v12265_v17 = vadd.f32 %v10712_v21, %v1204_v14 }
 0x40c   : > { %3058 = vrot.lane.b32.xlu1 %v12253_v32, %s15498_s30 }
 0x40d   : > { %15511 = vst [vmem:[#allocation9_spill] sm:$0xff] %v12265_v17  ;;  %3056 = vrot.lane.b32.xlu0 %v12263_v15, %s15494_s22 }
 0x410   : > { %3064 = vrot.lane.b32.xlu1 %v9729_v18, %s15494_s22 }
 0x411   : > { %3060 = vrot.lane.b32.xlu0 %v12263_v15, %s15498_s30 }
 0x414   : > { %3068 = vrot.lane.b32.xlu1 %v9729_v18, %s15498_s30 }
 0x415   : > { %3066 = vrot.lane.b32.xlu0 %v9730_v38, %s15494_s22 }
 0x419   : > { %3070 = vrot.lane.b32.xlu0 %v9730_v38, %s15498_s30 }
 0x41c   : > { %v9999_v21 = vpop.f32.mrb[12].mxu1 }
 0x41d   : > { %v10000_v28 = vpop.f32.mrb[13].mxu1 }
 0x41e   : > { %v10001_v29 = vadd.f32 %v10000_v28, %v9999_v21  ;;  %v10002_v36 = vpop.f32.mrb[14].mxu1 }
 0x41f   : > { %v10003_v44 = vpop.f32.mrb[15].mxu1 }
 0x420   : > { %v10004_v54 = vadd.f32 %v10003_v44, %v10002_v36  ;;  %v1422_v24 = vadd.f32 %v10001_v29, %v12084_v20  ;;  %v2221_v29 = vpop.permute.xlu0 %2220 }
 0x422   : > { %v12280_v2 = vadd.f32 %v1470_v43, %v1422_v24  ;;  %v1425_v50 = vadd.f32 %v10004_v54, %v12089_v47  ;;  %v2219_v43 = vpop.permute.xlu1 %2218 }
 0x424   : > { %v12283_v10 = vadd.f32 %v1473_v57, %v1425_v50  ;;  %v10005_v14 = vpop.f32.mrb[16].mxu1 }
 0x425   : > { %v10006_v18 = vpop.f32.mrb[17].mxu1 }
 0x426   : > { %v10007_v17 = vadd.f32 %v10006_v18, %v10005_v14  ;;  %v10008_v31 = vpop.f32.mrb[18].mxu1 }
 0x427   : > { %v10009_v3 = vpop.f32.mrb[19].mxu1 }
 0x428   : > { %v1430_v38 = vadd.f32 %v10007_v17, %v12087_v46  ;;  %v10010_v61 = vadd.f32 %v10009_v3, %v10008_v31 }
 0x42a   : > { %v12286_v21 = vadd.f32 %v10719_v34, %v1430_v38  ;;  %v1433_v28 = vadd.f32 %v10010_v61, %v12091_v48 }
 0x42c   : > { %v12289_v36 = vadd.f32 %v10720_v4, %v1433_v28 }
 0x43e   : > { %v2223_v44 = vpop.permute.xlu1 %2222 }
 0x442   : > { %v2227_v54 = vpop.permute.xlu1 %2226 }
 0x443   : > { %v2225_v57 = vpop.permute.xlu0 %2224 }
 0x446   : > { %v2231_v24 = vpop.permute.xlu1 %2230 }
 0x447   : > { %v2229_v50 = vpop.permute.xlu0 %2228  ;;  %10047 = vmatprep.subr.bf16.mxu0 %v2231_v24 }
 0x448   : > { %10048 = vmatpush3.bf16.msra.mxu0 %v2219_v43 }
 0x44a   : > { %v2235_v14 = vpop.permute.xlu1 %2234 }
 0x44b   : > { %v2233_v18 = vpop.permute.xlu0 %2232 }
 0x44c   : > { %10049 = vmatprep.subr.bf16.mxu0 %v2233_v18  ;;  %v12365_v18 = vld [vmem:[%s11749_s21 + $0x160] sm:$0xff] }
 0x44d   : > { %10050 = vmatpush3.bf16.msra.mxu0 %v2221_v29 }
 0x44e   : > { %10051 = vmatprep.subr.bf16.mxu0 %v2235_v14  ;;  %v2239_v31 = vpop.permute.xlu1 %2238 }
 0x44f   : > { %v2237_v34 = vpop.permute.xlu0 %2236 }
 0x451   : > { %10052 = vmatpush3.bf16.msra.mxu0 %v2223_v44 }
 0x452   : > { %10053 = vmatprep.subr.bf16.mxu0 %v2237_v34  ;;  %v2243_v61 = vpop.permute.xlu1 %2242 }
 0x453   : > { %v2241_v4 = vpop.permute.xlu0 %2240 }
 0x455   : > { %10054 = vmatpush3.bf16.msra.mxu0 %v2225_v57 }
 0x456   : > { %10055 = vmatprep.subr.bf16.mxu0 %v2239_v31  ;;  %v2247_v3 = vpop.permute.xlu1 %2246 }
 0x457   : > { %v2245_v17 = vpop.permute.xlu0 %2244  ;;  %10729 = vmatprep.subr.bf16.mxu1 %v2247_v3 }
 0x458   : > { %10730 = vmatpush3.bf16.msra.mxu1 %v2247_v3 }
 0x459   : > { %10056 = vmatpush3.bf16.msra.mxu0 %v2227_v54 }
 0x45a   : > { %10057 = vmatprep.subr.bf16.mxu0 %v2241_v4  ;;  %v2405_v38 = vpop.permute.xlu1 %2404 }
 0x45b   : > { %v2249_v28 = vpop.permute.xlu0 %2248 }
 0x45c   : > { %10731 = vmatprep.subr.bf16.mxu1 %v2249_v28 }
 0x45d   : > { %10058 = vmatpush3.bf16.msra.mxu0 %v2229_v50  ;;  %10732 = vmatpush3.bf16.msra.mxu1 %v2249_v28 }
 0x45e   : > { %10059 = vmatprep.subr.bf16.mxu0 %v2243_v61  ;;  %v2411_v43 = vpop.permute.xlu1 %2410 }
 0x45f   : > { %v2407_v29 = vpop.permute.xlu0 %2406 }
 0x460   : > { %10734 = vmatmul.mubr.msk.bf16.vlgmr.msra.gmra.mrb[24].mxu1 %vm887_vm6, %v12034_v25 }
 0x461   : > { %10060 = vmatpush3.bf16.msra.mxu0 %v12108_v40  ;;  %2474 = vmatprep.mubr.bf16.mxu1 %v12075_v55 }
 0x462   : > { %10061 = vmatprep.subr.bf16.mxu0 %v2245_v17  ;;  %v2417_v44 = vpop.permute.xlu1 %2416 }
 0x463   : > { %v2413_v57 = vpop.permute.xlu0 %2412  ;;  %10079 = vmatprep.subr.bf16.mxu1 %v2417_v44 }
 0x464   : > { %10080 = vmatpush3.bf16.msra.mxu1 %v12204_v11 }
 0x465   : > { %10062 = vmatpush3.bf16.msra.mxu0 %v12117_v39 }
 0x466   : > { %v2423_v54 = vpop.permute.xlu1 %2422 }
 0x467   : > { %v2419_v24 = vpop.permute.xlu0 %2418 }
 0x468   : > { %2301 = vmatmul.mubr.bf16.vlgmr.msra.gmra.mrb[24].mxu0 %v12050_v41  ;;  %10081 = vmatprep.subr.bf16.mxu1 %v2419_v24 }
 0x469   : > { %10082 = vmatpush3.bf16.msra.mxu1 %v12211_v12  ;;  %2308 = vmatprep.mubr.bf16.mxu0 %v12056_v42 }
 0x46a   : > { %10083 = vmatprep.subr.bf16.mxu1 %v2423_v54  ;;  %v2431_v25 = vpop.permute.xlu1 %2430 }
 0x46b   : > { %v2425_v55 = vpop.permute.xlu0 %2424 }
 0x46d   : > { %10084 = vmatpush3.bf16.msra.mxu1 %v2405_v38 }
 0x46e   : > { %10085 = vmatprep.subr.bf16.mxu1 %v2425_v55  ;;  %v2437_v40 = vpop.permute.xlu1 %2436 }
 0x46f   : > { %v2433_v50 = vpop.permute.xlu0 %2432  ;;  %10737 = vmatprep.subr.bf16.mxu0 %v2437_v40 }
 0x470   : > { %2309 = vmatmul.mubr.bf16.gmra.mrb[28].mxu0 %v12064_v60 }
 0x471   : > { %10086 = vmatpush3.bf16.msra.mxu1 %v2407_v29  ;;  %10738 = vmatpush3.bf16.msra.mxu0 %v2437_v40 }
 0x472   : > { %v3045_v39 = vpop.permute.xlu1 %3044  ;;  %10087 = vmatprep.subr.bf16.mxu1 %v12226_v53  ;;  %10741 = vmatprep.mubr.msk.bf16.mxu0 %vm887_vm6, %v12039_v26 }
 0x473   : > { %v2439_v41 = vpop.permute.xlu0 %2438  ;;  %3072 = vrot.lane.b32.xlu1 %v3045_v39, %s15498_s30 }
 0x474   : > { %10739 = vmatprep.subr.bf16.mxu0 %v2439_v41 }
 0x475   : > { %10088 = vmatpush3.bf16.msra.mxu1 %v2411_v43  ;;  %10740 = vmatpush3.bf16.msra.mxu0 %v2439_v41 }
 0x476   : > { %v12305_v42 = vpop.permute.xlu1 %3048  ;;  %10089 = vmatprep.subr.bf16.mxu1 %v12233_v1 }
 0x477   : > { %v3047_v11 = vpop.permute.xlu0 %3046  ;;  %3076 = vrot.lane.b32.xlu1 %v12305_v42, %s15498_s30 }
 0x478   : > { %3074 = vrot.lane.b32.xlu0 %v3047_v11, %s15498_s30  ;;  %10742 = vmatmul.mubr.msk.bf16.vlgmr.msra.gmra.mrb[32].mxu0 %vm887_vm6, %v12069_v45 }
 0x479   : > { %10090 = vmatpush3.bf16.msra.mxu1 %v2413_v57  ;;  %10749 = vmatprep.mubr.msk.bf16.mxu0 %vm887_vm6, %v11871_v5 }
 0x47a   : > { %10091 = vmatprep.subr.bf16.mxu1 %v2431_v25  ;;  %v12315_v26 = vpop.permute.xlu1 %3054 }
 0x47b   : > { %v12317_v60 = vpop.permute.xlu0 %3050  ;;  %3080 = vrot.lane.b32.xlu1 %v12315_v26, %s15498_s30 }
 0x47c   : > { %3078 = vrot.lane.b32.xlu0 %v12317_v60, %s15498_s30 }
 0x47d   : > { %10092 = vmatpush3.bf16.msra.mxu1 %v11958_v35 }
 0x47e   : > { %10093 = vmatprep.subr.bf16.mxu1 %v2433_v50  ;;  %v12324_v45 = vpop.permute.xlu1 %3058 }
 0x47f   : > { %v12326_v12 = vpop.permute.xlu0 %3056  ;;  %3084 = vrot.lane.b32.xlu1 %v12324_v45, %s15498_s30 }
 0x480   : > { %3082 = vrot.lane.b32.xlu0 %v12326_v12, %s15498_s30 }
 0x481   : > { %10094 = vmatpush3.bf16.msra.mxu1 %v11966_v37  ;;  %v9735_v37 = vld [vmem:[%s11749_s21 + $0x60] sm:$0xff] }
 0x482   : > { %v3065_v5 = vpop.permute.xlu1 %3064 }
 0x483   : > { %v12333_v53 = vpop.permute.xlu0 %3060  ;;  %3088 = vrot.lane.b32.xlu1 %v3065_v5, %s15498_s30 }
 0x484   : > { %3086 = vrot.lane.b32.xlu0 %v12333_v53, %s15498_s30  ;;  %2475 = vmatmul.mubr.bf16.vlgmr.msra.gmra.mrb[28].mxu1 %v12100_v22  ;;  %v9736_v22 = vld [vmem:[%s11749_s21 + $0x68] sm:$0xff] }
 0x485   : > { %2482 = vmatprep.mubr.bf16.mxu1 %v12106_v49  ;;  %v12356_v49 = vld [vmem:[%s15476_s3 + $0x4] ss:$12 sps:$4 sm:$0xff]  }
 0x486   : > { %v12340_v35 = vpop.permute.xlu1 %3068 }
 0x487   : > { %v3067_v1 = vpop.permute.xlu0 %3066  ;;  %3092 = vrot.lane.b32.xlu1 %v12340_v35, %s15498_s30 }
 0x488   : > { %3090 = vrot.lane.b32.xlu0 %v3067_v1, %s15498_s30 }
 0x48b   : > { %v12346_v14 = vpop.permute.xlu0 %3070  ;;  %3250 = vrot.lane.b32.xlu1 %v9735_v37, %s15498_s30 }
 0x48c   : > { %3094 = vrot.lane.b32.xlu0 %v12346_v14, %s15498_s30  ;;  %2483 = vmatmul.mubr.bf16.gmra.mrb[32].mxu1 %v12124_v52  ;;  %v12372_v52 = vld [vmem:[%s11749_s21 + $0x168] sm:$0xff] }
 0x48d   : > { %3146 = vmatprep.mubr.bf16.mxu1 %v12356_v49 }
 0x48f   : > { %3254 = vrot.lane.b32.xlu1 %v9735_v37, %s15496_s19 }
 0x490   : > { %3252 = vrot.lane.b32.xlu0 %v9736_v22, %s15498_s30 }
 0x493   : > { %3258 = vrot.lane.b32.xlu1 %v12253_v32, %s15496_s19 }
 0x494   : > { %3256 = vrot.lane.b32.xlu0 %v9736_v22, %s15496_s19 }
 0x497   : > { %3264 = vrot.lane.b32.xlu1 %v12365_v18, %s15498_s30 }
 0x498   : > { %3260 = vrot.lane.b32.xlu0 %v12263_v15, %s15496_s19 }
 0x49b   : > { %3268 = vrot.lane.b32.xlu1 %v12365_v18, %s15496_s19 }
 0x49c   : > { %3266 = vrot.lane.b32.xlu0 %v12372_v52, %s15498_s30 }
 0x49f   : > { %3272 = vrot.lane.b32.xlu1 %v9735_v37, %s15494_s22 }
 0x4a0   : > { %3270 = vrot.lane.b32.xlu0 %v12372_v52, %s15496_s19 }
 0x4a4   : > { %v10727_v31 = vpop.f32.mrb[20].mxu1  ;;  %3274 = vrot.lane.b32.xlu0 %v9736_v22, %s15494_s22 }
 0x4a5   : > { %v2143_v34 = vpop.f32.mrb[21].mxu1 }
 0x4a6   : > { %v10728_v61 = vpop.f32.mrb[22].mxu1 }
 0x4a7   : > { %v2146_v4 = vpop.f32.mrb[23].mxu1 }
 0x4b0   : > { %v10031_v3 = vpop.f32.mrb[16].mxu0 }
 0x4b1   : > { %v10032_v17 = vpop.f32.mrb[17].mxu0 }
 0x4b2   : > { %v10033_v38 = vadd.f32 %v10032_v17, %v10031_v3  ;;  %v10034_v28 = vpop.f32.mrb[18].mxu0 }
 0x4b3   : > { %v10035_v43 = vpop.f32.mrb[19].mxu0 }
 0x4b4   : > { %v10036_v29 = vadd.f32 %v10035_v43, %v10034_v28  ;;  %v2095_v44 = vadd.f32 %v10033_v38, %v11877_v7 }
 0x4b6   : > { %v12383_v57 = vadd.f32 %v2143_v34, %v2095_v44  ;;  %v2098_v54 = vadd.f32 %v10036_v29, %v11875_v6 }
 0x4b8   : > { %v12386_v24 = vadd.f32 %v2146_v4, %v2098_v54  ;;  %v10037_v25 = vpop.f32.mrb[20].mxu0 }
 0x4b9   : > { %v10038_v55 = vpop.f32.mrb[21].mxu0 }
 0x4ba   : > { %v10039_v40 = vadd.f32 %v10038_v55, %v10037_v25  ;;  %v10040_v50 = vpop.f32.mrb[22].mxu0  ;;  %v9760_v55 = vld [vmem:[%s11749_s21 + $0xb8] sm:$0xff] }
 0x4bb   : > { %v10041_v39 = vpop.f32.mrb[23].mxu0 }
 0x4bc   : > { %v2103_v41 = vadd.f32 %v10039_v40, %v11879_v8  ;;  %v10042_v11 = vadd.f32 %v10041_v39, %v10040_v50 }
 0x4be   : > { %v12389_v5 = vadd.f32 %v10727_v31, %v2103_v41  ;;  %v2106_v1 = vadd.f32 %v10042_v11, %v11881_v9  ;;  %v12468_v41 = vld [vmem:[%s11749_s21 + $0xf0] sm:$0xff] }
 0x4c0   : > { %v12392_v37 = vadd.f32 %v10728_v61, %v2106_v1 }
 0x4e5   : > { %v3073_v22 = vpop.permute.xlu1 %3072 }
 0x4e9   : > { %v3077_v34 = vpop.permute.xlu1 %3076 }
 0x4ea   : > { %v3075_v3 = vpop.permute.xlu0 %3074 }
 0x4ed   : > { %v3081_v17 = vpop.permute.xlu1 %3080 }
 0x4ee   : > { %v3079_v4 = vpop.permute.xlu0 %3078  ;;  %10111 = vmatprep.subr.bf16.mxu1 %v3081_v17 }
 0x4ef   : > { %10112 = vmatpush3.bf16.msra.mxu1 %v12305_v42 }
 0x4f1   : > { %v3085_v38 = vpop.permute.xlu1 %3084 }
 0x4f2   : > { %v3083_v28 = vpop.permute.xlu0 %3082 }
 0x4f3   : > { %10113 = vmatprep.subr.bf16.mxu1 %v3083_v28  ;;  %v9763_v28 = vld [vmem:[%s11749_s21 + $0x130] sm:$0xff] }
 0x4f4   : > { %10114 = vmatpush3.bf16.msra.mxu1 %v12317_v60 }
 0x4f5   : > { %10115 = vmatprep.subr.bf16.mxu1 %v3085_v38  ;;  %v3089_v31 = vpop.permute.xlu1 %3088 }
 0x4f6   : > { %v3087_v43 = vpop.permute.xlu0 %3086 }
 0x4f8   : > { %10116 = vmatpush3.bf16.msra.mxu1 %v3073_v22  ;;  %v12474_v22 = vld [vmem:[%s11749_s21 + $0xf8] sm:$0xff] }
 0x4f9   : > { %10117 = vmatprep.subr.bf16.mxu1 %v3087_v43  ;;  %v3093_v61 = vpop.permute.xlu1 %3092 }
 0x4fa   : > { %v3091_v29 = vpop.permute.xlu0 %3090  ;;  %10745 = vmatprep.subr.bf16.mxu0 %v3093_v61 }
 0x4fb   : > { %10746 = vmatpush3.bf16.msra.mxu0 %v3093_v61 }
 0x4fc   : > { %10118 = vmatpush3.bf16.msra.mxu1 %v3075_v3 }
 0x4fd   : > { %10119 = vmatprep.subr.bf16.mxu1 %v12340_v35  ;;  %v3251_v44 = vpop.permute.xlu1 %3250 }
 0x4fe   : > { %v3095_v54 = vpop.permute.xlu0 %3094  ;;  %3276 = vrot.lane.b32.xlu1 %v3251_v44, %s15494_s22 }
 0x4ff   : > { %10747 = vmatprep.subr.bf16.mxu0 %v3095_v54 }
 0x500   : > { %10120 = vmatpush3.bf16.msra.mxu1 %v3077_v34  ;;  %10748 = vmatpush3.bf16.msra.mxu0 %v3095_v54  ;;  %v9764_v54 = vld [vmem:[%s11749_s21 + $0x138] sm:$0xff] }
 0x501   : > { %10121 = vmatprep.subr.bf16.mxu1 %v12346_v14  ;;  %v3255_v42 = vpop.permute.xlu1 %3254 }
 0x502   : > { %v3253_v60 = vpop.permute.xlu0 %3252  ;;  %3280 = vrot.lane.b32.xlu1 %v3255_v42, %s15494_s22 }
 0x503   : > { %3278 = vrot.lane.b32.xlu0 %v3253_v60, %s15494_s22  ;;  %10750 = vmatmul.mubr.msk.bf16.vlgmr.msra.gmra.mrb[36].mxu0 %vm887_vm6, %v11990_v56 }
 0x504   : > { %10122 = vmatpush3.bf16.msra.mxu1 %v3079_v4  ;;  %3354 = vmatprep.mubr.bf16.mxu0 %v11995_v58 }
 0x505   : > { %10123 = vmatprep.subr.bf16.mxu1 %v3089_v31  ;;  %v3259_v14 = vpop.permute.xlu1 %3258 }
 0x506   : > { %v3257_v35 = vpop.permute.xlu0 %3256  ;;  %3284 = vrot.lane.b32.xlu1 %v12324_v45, %s15494_s22 }
 0x507   : > { %3282 = vrot.lane.b32.xlu0 %v3257_v35, %s15494_s22 }
 0x508   : > { %10124 = vmatpush3.bf16.msra.mxu1 %v12324_v45 }
 0x509   : > { %10125 = vmatprep.subr.bf16.mxu1 %v3091_v29  ;;  %v3265_v58 = vpop.permute.xlu1 %3264 }
 0x50a   : > { %3288 = vrot.lane.b32.xlu1 %v3259_v14, %s15494_s22  ;;  %v3261_v56 = vpop.permute.xlu0 %3260 }
 0x50b   : > { %3286 = vrot.lane.b32.xlu0 %v12333_v53, %s15494_s22 }
 0x50c   : > { %10126 = vmatpush3.bf16.msra.mxu1 %v12333_v53  ;;  %v12424_v53 = vld [vmem:[%s11749_s21 + $0x20] sm:$0xff] }
 0x50d   : > { %v3269_v25 = vpop.permute.xlu1 %3268 }
 0x50e   : > { %3292 = vrot.lane.b32.xlu1 %v12365_v18, %s15494_s22  ;;  %v3267_v45 = vpop.permute.xlu0 %3266  ;;  %v9759_v18 = vld [vmem:[%s11749_s21 + $0xb0] sm:$0xff] }
 0x50f   : > { %3290 = vrot.lane.b32.xlu0 %v3261_v56, %s15494_s22  ;;  %3147 = vmatmul.mubr.bf16.vlgmr.msra.gmra.mrb[36].mxu1 %v12005_v59 }
 0x510   : > { %3154 = vmatprep.mubr.bf16.mxu1 %v12011_v0  ;;  %v12432_v0 = vld [vmem:[%s11749_s21 + $0x28] sm:$0xff] }
 0x512   : > { %3296 = vrot.lane.b32.xlu1 %v3265_v58, %s15494_s22  ;;  %v3271_v59 = vpop.permute.xlu0 %3270 }
 0x513   : > { %3294 = vrot.lane.b32.xlu0 %v12372_v52, %s15494_s22 }
 0x516   : > { %3300 = vrot.lane.b32.xlu1 %v3269_v25, %s15494_s22 }
 0x517   : > { %3298 = vrot.lane.b32.xlu0 %v3267_v45, %s15494_s22  ;;  %3155 = vmatmul.mubr.bf16.gmra.mrb[40].mxu1 %v12018_v63  ;;  %v12447_v63 = vld [vmem:[%s11749_s21 + $0x1a0] sm:$0xff] }
 0x518   : > { %10757 = vmatprep.mubr.msk.bf16.mxu1 %vm887_vm6, %v12023_v62  ;;  %v12454_v62 = vld [vmem:[%s11749_s21 + $0x1a8] sm:$0xff] }
 0x51a   : > { %3458 = vrot.lane.b32.xlu1 %v12424_v53, %s15508_s26 }
 0x51b   : > { %3302 = vrot.lane.b32.xlu0 %v3271_v59, %s15494_s22 }
 0x51e   : > { %3464 = vrot.lane.b32.xlu1 %v12424_v53, %s15492_s28 }
 0x51f   : > { %3460 = vrot.lane.b32.xlu0 %v12432_v0, %s15508_s26 }
 0x522   : > { %3470 = vrot.lane.b32.xlu1 %v12253_v32, %s15508_s26 }
 0x523   : > { %3466 = vrot.lane.b32.xlu0 %v12432_v0, %s15492_s28 }
 0x526   : > { %3476 = vrot.lane.b32.xlu1 %v12253_v32, %s15492_s28 }
 0x527   : > { %3472 = vrot.lane.b32.xlu0 %v12263_v15, %s15508_s26 }
 0x52a   : > { %3484 = vrot.lane.b32.xlu1 %v12447_v63, %s15508_s26 }
 0x52b   : > { %3478 = vrot.lane.b32.xlu0 %v12263_v15, %s15492_s28 }
 0x52e   : > { %3490 = vrot.lane.b32.xlu1 %v12447_v63, %s15492_s28 }
 0x52f   : > { %3486 = vrot.lane.b32.xlu0 %v12454_v62, %s15508_s26 }
 0x532   : > { %4098 = vrot.lane.b32.xlu1 %v9759_v18, %s15494_s22 }
 0x533   : > { %3492 = vrot.lane.b32.xlu0 %v12454_v62, %s15492_s28  ;;  %v10735_v52 = vpop.f32.mrb[24].mxu1 }
 0x534   : > { %v2351_v40 = vpop.f32.mrb[25].mxu1 }
 0x535   : > { %v10736_v50 = vpop.f32.mrb[26].mxu1 }
 0x536   : > { %4102 = vrot.lane.b32.xlu1 %v9759_v18, %s15498_s30  ;;  %v2354_v39 = vpop.f32.mrb[27].mxu1 }
 0x537   : > { %4100 = vrot.lane.b32.xlu0 %v9760_v55, %s15494_s22 }
 0x53a   : > { %4108 = vrot.lane.b32.xlu1 %v12468_v41, %s15494_s22 }
 0x53b   : > { %4104 = vrot.lane.b32.xlu0 %v9760_v55, %s15498_s30  ;;  %v10063_v11 = vpop.f32.mrb[24].mxu0 }
 0x53c   : > { %v10064_v1 = vpop.f32.mrb[25].mxu0 }
 0x53d   : > { %v10065_v34 = vadd.f32 %v10064_v1, %v10063_v11  ;;  %v10066_v3 = vpop.f32.mrb[26].mxu0 }
 0x53e   : > { %v10067_v17 = vpop.f32.mrb[27].mxu0  ;;  %4112 = vrot.lane.b32.xlu1 %v12468_v41, %s15498_s30 }
 0x53f   : > { %v10068_v4 = vadd.f32 %v10067_v17, %v10066_v3  ;;  %4110 = vrot.lane.b32.xlu0 %v12474_v22, %s15494_s22  ;;  %v2303_v38 = vadd.f32 %v10065_v34, %v11926_v23 }
 0x541   : > { %v12482_v31 = vadd.f32 %v2351_v40, %v2303_v38  ;;  %v2306_v43 = vadd.f32 %v10068_v4, %v11945_v30 }
 0x542   : > { %4118 = vrot.lane.b32.xlu1 %v9763_v28, %s15494_s22 }
 0x543   : > { %v12486_v61 = vadd.f32 %v2354_v39, %v2306_v43  ;;  %4114 = vrot.lane.b32.xlu0 %v12474_v22, %s15498_s30  ;;  %v10069_v29 = vpop.f32.mrb[28].mxu0 }
 0x544   : > { %v10070_v44 = vpop.f32.mrb[29].mxu0 }
 0x545   : > { %v10071_v42 = vadd.f32 %v10070_v44, %v10069_v29  ;;  %v10072_v60 = vpop.f32.mrb[30].mxu0 }
 0x546   : > { %v10073_v35 = vpop.f32.mrb[31].mxu0  ;;  %4122 = vrot.lane.b32.xlu1 %v9763_v28, %s15498_s30 }
 0x547   : > { %v2311_v14 = vadd.f32 %v10071_v42, %v11939_v27  ;;  %v10074_v56 = vadd.f32 %v10073_v35, %v10072_v60  ;;  %4120 = vrot.lane.b32.xlu0 %v9764_v54, %s15494_s22 }
 0x549   : > { %v12494_v58 = vadd.f32 %v10735_v52, %v2311_v14  ;;  %v2314_v45 = vadd.f32 %v10074_v56, %v11953_v33 }
 0x54b   : > { %v12497_v25 = vadd.f32 %v10736_v50, %v2314_v45  ;;  %4124 = vrot.lane.b32.xlu0 %v9764_v54, %s15498_s30  ;;  %v10743_v59 = vpop.f32.mrb[32].mxu0  ;;  %v3273_v45 = vpop.permute.xlu1 %3272 }
 0x54c   : > { %v2525_v18 = vpop.f32.mrb[33].mxu0 }
 0x54d   : > { %v10744_v55 = vpop.f32.mrb[34].mxu0 }
 0x54e   : > { %v2528_v40 = vpop.f32.mrb[35].mxu0 }
 0x557   : > { %v10095_v39 = vpop.f32.mrb[28].mxu1 }
 0x558   : > { %v10096_v11 = vpop.f32.mrb[29].mxu1 }
 0x559   : > { %v10097_v1 = vadd.f32 %v10096_v11, %v10095_v39  ;;  %v10098_v34 = vpop.f32.mrb[30].mxu1 }
 0x55a   : > { %v10099_v3 = vpop.f32.mrb[31].mxu1 }
 0x55b   : > { %v10100_v17 = vadd.f32 %v10099_v3, %v10098_v34  ;;  %v2477_v4 = vadd.f32 %v10097_v1, %v12084_v20 }
 0x55d   : > { %v12501_v52 = vadd.f32 %v2525_v18, %v2477_v4  ;;  %v2480_v38 = vadd.f32 %v10100_v17, %v12089_v47  ;;  %v3275_v18 = vpop.permute.xlu0 %3274 }
 0x55f   : > { %v12504_v50 = vadd.f32 %v2528_v40, %v2480_v38  ;;  %v10101_v28 = vpop.f32.mrb[32].mxu1 }
 0x560   : > { %v10102_v43 = vpop.f32.mrb[33].mxu1 }
 0x561   : > { %v10103_v29 = vadd.f32 %v10102_v43, %v10101_v28  ;;  %v10104_v44 = vpop.f32.mrb[34].mxu1 }
 0x562   : > { %v10105_v54 = vpop.f32.mrb[35].mxu1 }
 0x563   : > { %v2485_v42 = vadd.f32 %v10103_v29, %v12087_v46  ;;  %v10106_v60 = vadd.f32 %v10105_v54, %v10104_v44 }
 0x565   : > { %v12507_v35 = vadd.f32 %v10743_v59, %v2485_v42  ;;  %v2488_v14 = vadd.f32 %v10106_v60, %v12091_v48  ;;  %v12515_v60 = vld [vmem:[%s15478_s5 + $0x20] ss:$12 sps:$4 sm:$0xff]  }
 0x566   : > { %15512 = vst [vmem:[#allocation10_spill] sm:$0xff] %v12515_v60 }
 0x567   : > { %v12510_v56 = vadd.f32 %v10744_v55, %v2488_v14  ;;  %v12523_v14 = vld [vmem:[%s15480_s7 + $0x8] ss:$12 sps:$4 sm:$0xff]  }
 0x568   : > { %15513 = vst [vmem:[#allocation11_spill] sm:$0xff] %v12523_v14 }
 0x570   : > { %v3277_v39 = vpop.permute.xlu1 %3276 }
 0x574   : > { %v3281_v11 = vpop.permute.xlu1 %3280 }
 0x575   : > { %v3279_v40 = vpop.permute.xlu0 %3278 }
 0x578   : > { %v3285_v1 = vpop.permute.xlu1 %3284 }
 0x579   : > { %v3283_v34 = vpop.permute.xlu0 %3282  ;;  %10143 = vmatprep.subr.bf16.mxu0 %v3285_v1 }
 0x57a   : > { %10144 = vmatpush3.bf16.msra.mxu0 %v3273_v45 }
 0x57c   : > { %v3289_v3 = vpop.permute.xlu1 %3288 }
 0x57d   : > { %v3287_v17 = vpop.permute.xlu0 %3286 }
 0x57e   : > { %10145 = vmatprep.subr.bf16.mxu0 %v3287_v17  ;;  %v12551_v17 = vld [vmem:[%s15480_s7 + $0x4] ss:$12 sps:$4 sm:$0xff]  }
 0x57f   : > { %10146 = vmatpush3.bf16.msra.mxu0 %v3275_v18  ;;  %15516 = vst [vmem:[#allocation14_spill] sm:$0xff] %v12551_v17 }
 0x580   : > { %10147 = vmatprep.subr.bf16.mxu0 %v3289_v3  ;;  %v3293_v59 = vpop.permute.xlu1 %3292 }
 0x581   : > { %v3291_v4 = vpop.permute.xlu0 %3290 }
 0x583   : > { %10148 = vmatpush3.bf16.msra.mxu0 %v3277_v39 }
 0x584   : > { %10149 = vmatprep.subr.bf16.mxu0 %v3291_v4  ;;  %v3297_v55 = vpop.permute.xlu1 %3296 }
 0x585   : > { %v3295_v38 = vpop.permute.xlu0 %3294 }
 0x587   : > { %10150 = vmatpush3.bf16.msra.mxu0 %v3279_v40  ;;  %v12538_v40 = vld [vmem:[%s15478_s5 + $0x1c] ss:$12 sps:$4 sm:$0xff]  }
 0x588   : > { %10151 = vmatprep.subr.bf16.mxu0 %v3293_v59  ;;  %v3301_v28 = vpop.permute.xlu1 %3300  ;;  %15514 = vst [vmem:[#allocation12_spill] sm:$0xff] %v12538_v40 }
 0x589   : > { %v3299_v43 = vpop.permute.xlu0 %3298  ;;  %10753 = vmatprep.subr.bf16.mxu1 %v3301_v28 }
 0x58a   : > { %10754 = vmatpush3.bf16.msra.mxu1 %v3301_v28 }
 0x58b   : > { %10152 = vmatpush3.bf16.msra.mxu0 %v3281_v11 }
 0x58c   : > { %10153 = vmatprep.subr.bf16.mxu0 %v3295_v38  ;;  %v3459_v29 = vpop.permute.xlu1 %3458  ;;  %v11004_v38 = vld [vmem:[%s15480_s7 + $0x20] ss:$12 sps:$4 sm:$0xff]  }
 0x58d   : > { %v3303_v44 = vpop.permute.xlu0 %3302 }
 0x58e   : > { %10755 = vmatprep.subr.bf16.mxu1 %v3303_v44 }
 0x58f   : > { %10154 = vmatpush3.bf16.msra.mxu0 %v3283_v34  ;;  %10756 = vmatpush3.bf16.msra.mxu1 %v3303_v44 }
 0x590   : > { %10155 = vmatprep.subr.bf16.mxu0 %v3297_v55  ;;  %v3465_v54 = vpop.permute.xlu1 %3464 }
 0x591   : > { %v3461_v42 = vpop.permute.xlu0 %3460 }
 0x592   : > { %10758 = vmatmul.mubr.msk.bf16.vlgmr.msra.gmra.mrb[44].mxu1 %vm887_vm6, %v12515_v60 }
 0x593   : > { %10156 = vmatpush3.bf16.msra.mxu0 %v12315_v26  ;;  %10765 = vmatprep.mubr.msk.bf16.mxu1 %vm887_vm6, %v12523_v14  ;;  %v12531_v26 = vld [vmem:[%s15478_s5] ss:$12 sps:$4 sm:$0xff]  }
 0x594   : > { %10157 = vmatprep.subr.bf16.mxu0 %v3299_v43  ;;  %v3471_v45 = vpop.permute.xlu1 %3470 }
 0x595   : > { %v3467_v18 = vpop.permute.xlu0 %3466 }
 0x597   : > { %10158 = vmatpush3.bf16.msra.mxu0 %v12326_v12 }
 0x598   : > { %10175 = vmatprep.subr.bf16.mxu0 %v3471_v45  ;;  %v3477_v39 = vpop.permute.xlu1 %3476  ;;  %v11006_v45 = vld [vmem:[%s15480_s7 + $0x1c] ss:$12 sps:$4 sm:$0xff]  }
 0x599   : > { %v3473_v11 = vpop.permute.xlu0 %3472 }
 0x59a   : > { %3355 = vmatmul.mubr.bf16.vlgmr.msra.gmra.mrb[40].mxu0 %v12531_v26 }
 0x59b   : > { %10176 = vmatpush3.bf16.msra.mxu0 %v12424_v53  ;;  %3362 = vmatprep.mubr.bf16.mxu0 %v12538_v40  ;;  %v12545_v53 = vld [vmem:[%s15478_s5 + $0x18] ss:$12 sps:$4 sm:$0xff]  }
 0x59c   : > { %10177 = vmatprep.subr.bf16.mxu0 %v3473_v11  ;;  %v3485_v12 = vpop.permute.xlu1 %3484  ;;  %15515 = vst [vmem:[#allocation13_spill] sm:$0xff] %v12545_v53  ;;  %v11008_v11 = vld [vmem:[%s15476_s3 + $0x8] ss:$12 sps:$4 sm:$0xff]  }
 0x59d   : > { %v3479_v1 = vpop.permute.xlu0 %3478 }
 0x59f   : > { %10178 = vmatpush3.bf16.msra.mxu0 %v12432_v0 }
 0x5a0   : > { %10179 = vmatprep.subr.bf16.mxu0 %v3477_v39  ;;  %v3491_v34 = vpop.permute.xlu1 %3490  ;;  %v11007_v39 = vld [vmem:[%s15480_s7 + $0x18] ss:$12 sps:$4 sm:$0xff]  }
 0x5a1   : > { %v3487_v3 = vpop.permute.xlu0 %3486  ;;  %10761 = vmatprep.subr.bf16.mxu1 %v3491_v34 }
 0x5a2   : > { %3363 = vmatmul.mubr.bf16.gmra.mrb[44].mxu0 %v12545_v53  ;;  %10762 = vmatpush3.bf16.msra.mxu1 %v3491_v34 }
 0x5a3   : > { %10180 = vmatpush3.bf16.msra.mxu0 %v3459_v29  ;;  %3528 = vmatprep.mubr.bf16.mxu0 %v12551_v17 }
 0x5a4   : > { %10181 = vmatprep.subr.bf16.mxu0 %v3479_v1  ;;  %v4099_v0 = vpop.permute.xlu1 %4098  ;;  %v12628_v1 = vld [vmem:[%s11749_s21 + $0x178] sm:$0xff] }
 0x5a5   : > { %v3493_v59 = vpop.permute.xlu0 %3492  ;;  %4126 = vrot.lane.b32.xlu1 %v4099_v0, %s15498_s30 }
 0x5a6   : > { %10763 = vmatprep.subr.bf16.mxu1 %v3493_v59 }
 0x5a7   : > { %10182 = vmatpush3.bf16.msra.mxu0 %v3461_v42  ;;  %10764 = vmatpush3.bf16.msra.mxu1 %v3493_v59  ;;  %v9769_v42 = vld [vmem:[%s11749_s21 + $0x70] sm:$0xff] }
 0x5a8   : > { %v12555_v4 = vpop.permute.xlu1 %4102  ;;  %10183 = vmatprep.subr.bf16.mxu0 %v12447_v63 }
 0x5a9   : > { %v4101_v55 = vpop.permute.xlu0 %4100  ;;  %4130 = vrot.lane.b32.xlu1 %v12555_v4, %s15498_s30 }
 0x5aa   : > { %4128 = vrot.lane.b32.xlu0 %v4101_v55, %s15498_s30  ;;  %10766 = vmatmul.mubr.msk.bf16.vlgmr.msra.gmra.mrb[48].mxu1 %vm887_vm6, %v11004_v38 }
 0x5ab   : > { %10184 = vmatpush3.bf16.msra.mxu0 %v3465_v54  ;;  %4200 = vmatprep.mubr.bf16.mxu1 %v12356_v49 }
 0x5ac   : > { %v12566_v28 = vpop.permute.xlu1 %4108  ;;  %10185 = vmatprep.subr.bf16.mxu0 %v12454_v62 }
 0x5ad   : > { %v12569_v63 = vpop.permute.xlu0 %4104  ;;  %4134 = vrot.lane.b32.xlu1 %v12566_v28, %s15498_s30 }
 0x5ae   : > { %4132 = vrot.lane.b32.xlu0 %v12569_v63, %s15498_s30 }
 0x5af   : > { %10186 = vmatpush3.bf16.msra.mxu0 %v3467_v18  ;;  %v9770_v18 = vld [vmem:[%s11749_s21 + $0x78] sm:$0xff] }
 0x5b0   : > { %10187 = vmatprep.subr.bf16.mxu0 %v3485_v12  ;;  %v12575_v43 = vpop.permute.xlu1 %4112  ;;  %v12621_v12 = vld [vmem:[%s11749_s21 + $0x170] sm:$0xff] }
 0x5b1   : > { %v12577_v29 = vpop.permute.xlu0 %4110  ;;  %4138 = vrot.lane.b32.xlu1 %v12575_v43, %s15498_s30 }
 0x5b2   : > { %4136 = vrot.lane.b32.xlu0 %v12577_v29, %s15498_s30 }
 0x5b3   : > { %10188 = vmatpush3.bf16.msra.mxu0 %v12253_v32  ;;  %v11005_v32 = vld [vmem:[%s15480_s7] ss:$12 sps:$4 sm:$0xff]  }
 0x5b4   : > { %10189 = vmatprep.subr.bf16.mxu0 %v3487_v3  ;;  %v4119_v49 = vpop.permute.xlu1 %4118 }
 0x5b5   : > { %v12584_v62 = vpop.permute.xlu0 %4114  ;;  %4142 = vrot.lane.b32.xlu1 %v4119_v49, %s15498_s30 }
 0x5b6   : > { %4140 = vrot.lane.b32.xlu0 %v12584_v62, %s15498_s30 }
 0x5b7   : > { %10190 = vmatpush3.bf16.msra.mxu0 %v12263_v15 }
 0x5b8   : > { %v12590_v44 = vpop.permute.xlu1 %4122 }
 0x5b9   : > { %v4121_v54 = vpop.permute.xlu0 %4120  ;;  %4146 = vrot.lane.b32.xlu1 %v12590_v44, %s15498_s30 }
 0x5ba   : > { %4144 = vrot.lane.b32.xlu0 %v4121_v54, %s15498_s30  ;;  %3529 = vmatmul.mubr.bf16.vlgmr.msra.gmra.mrb[48].mxu0 %v11005_v32 }
 0x5bb   : > { %3536 = vmatprep.mubr.bf16.mxu0 %v11006_v45 }
 0x5bd   : > { %v12602_v15 = vpop.permute.xlu0 %4124  ;;  %4304 = vrot.lane.b32.xlu1 %v9769_v42, %s15498_s30 }
 0x5be   : > { %4148 = vrot.lane.b32.xlu0 %v12602_v15, %s15498_s30 }
 0x5c1   : > { %4308 = vrot.lane.b32.xlu1 %v9769_v42, %s15496_s19 }
 0x5c2   : > { %4306 = vrot.lane.b32.xlu0 %v9770_v18, %s15498_s30  ;;  %3537 = vmatmul.mubr.bf16.gmra.mrb[52].mxu0 %v11007_v39 }
 0x5c3   : > { %10773 = vmatprep.mubr.msk.bf16.mxu0 %vm887_vm6, %v11008_v11 }
 0x5c5   : > { %4312 = vrot.lane.b32.xlu1 %v12468_v41, %s15496_s19 }
 0x5c6   : > { %4310 = vrot.lane.b32.xlu0 %v9770_v18, %s15496_s19 }
 0x5c9   : > { %4318 = vrot.lane.b32.xlu1 %v12621_v12, %s15498_s30 }
 0x5ca   : > { %4314 = vrot.lane.b32.xlu0 %v12474_v22, %s15496_s19 }
 0x5cd   : > { %4322 = vrot.lane.b32.xlu1 %v12621_v12, %s15496_s19 }
 0x5ce   : > { %4320 = vrot.lane.b32.xlu0 %v12628_v1, %s15498_s30 }
 0x5d1   : > { %4326 = vrot.lane.b32.xlu1 %v9769_v42, %s15494_s22 }
 0x5d2   : > { %4324 = vrot.lane.b32.xlu0 %v12628_v1, %s15496_s19  ;;  %s15527_s19 = smov 124  }
 0x5d6   : > { %v10751_v41 = vpop.f32.mrb[36].mxu0  ;;  %4328 = vrot.lane.b32.xlu0 %v9770_v18, %s15494_s22 }
 0x5d7   : > { %v3197_v34 = vpop.f32.mrb[37].mxu0 }
 0x5d8   : > { %v10752_v3 = vpop.f32.mrb[38].mxu0 }
 0x5d9   : > { %v3200_v0 = vpop.f32.mrb[39].mxu0 }
 0x5e2   : > { %v10127_v22 = vpop.f32.mrb[36].mxu1 }
 0x5e3   : > { %v10128_v59 = vpop.f32.mrb[37].mxu1 }
 0x5e4   : > { %v10129_v55 = vadd.f32 %v10128_v59, %v10127_v22  ;;  %v10130_v38 = vpop.f32.mrb[38].mxu1 }
 0x5e5   : > { %v10131_v49 = vpop.f32.mrb[39].mxu1 }
 0x5e6   : > { %v10132_v54 = vadd.f32 %v10131_v49, %v10130_v38  ;;  %v3149_v32 = vadd.f32 %v10129_v55, %v11877_v7 }
 0x5e8   : > { %v12639_v45 = vadd.f32 %v3197_v34, %v3149_v32  ;;  %v3152_v42 = vadd.f32 %v10132_v54, %v11875_v6 }
 0x5ea   : > { %v12642_v39 = vadd.f32 %v3200_v0, %v3152_v42  ;;  %v10133_v11 = vpop.f32.mrb[40].mxu1  ;;  %v11009_v42 = vld [vmem:[%s15476_s3 + $0x20] ss:$12 sps:$4 sm:$0xff]  }
 0x5eb   : > { %v10134_v14 = vpop.f32.mrb[41].mxu1 }
 0x5ec   : > { %v10135_v18 = vadd.f32 %v10134_v14, %v10133_v11  ;;  %v10136_v53 = vpop.f32.mrb[42].mxu1 }
 0x5ed   : > { %v10137_v17 = vpop.f32.mrb[43].mxu1 }
 0x5ee   : > { %v3157_v60 = vadd.f32 %v10135_v18, %v11879_v8  ;;  %v10138_v40 = vadd.f32 %v10137_v17, %v10136_v53  ;;  %v992_v18 = vmax.f32 %v12173_v13, 0.0  ;;  %v993_v13 = vmax.f32 %v12179_v16, 0.0  ;;  %v11014_v16 = vld [vmem:[%s15478_s5 + $0x4] ss:$12 sps:$4 sm:$0xff]  }
 0x5f0   : > { %v12645_v22 = vadd.f32 %v10751_v41, %v3157_v60  ;;  %v3160_v59 = vadd.f32 %v10138_v40, %v11881_v9 }
 0x5f2   : > { %v12648_v38 = vadd.f32 %v10752_v3, %v3160_v59 }
 0x617   : > { %v4127_v34 = vpop.permute.xlu1 %4126 }
 0x61b   : > { %v4131_v55 = vpop.permute.xlu1 %4130 }
 0x61c   : > { %v4129_v49 = vpop.permute.xlu0 %4128 }
 0x61f   : > { %v4135_v54 = vpop.permute.xlu1 %4134 }
 0x620   : > { %v4133_v0 = vpop.permute.xlu0 %4132  ;;  %10207 = vmatprep.subr.bf16.mxu1 %v4135_v54  ;;  %v15518_v54 = vld [vmem:[#allocation8_spill] sm:$0xff] }
 0x621   : > { %10208 = vmatpush3.bf16.msra.mxu1 %v12555_v4 }
 0x623   : > { %v4139_v14 = vpop.permute.xlu1 %4138 }
 0x624   : > { %v4137_v32 = vpop.permute.xlu0 %4136 }
 0x625   : > { %10209 = vmatprep.subr.bf16.mxu1 %v4137_v32 }
 0x626   : > { %10210 = vmatpush3.bf16.msra.mxu1 %v12569_v63 }
 0x627   : > { %10211 = vmatprep.subr.bf16.mxu1 %v4139_v14  ;;  %v4143_v60 = vpop.permute.xlu1 %4142  ;;  %v15519_v14 = vld [vmem:[#allocation7_spill] sm:$0xff] }
 0x628   : > { %v4141_v53 = vpop.permute.xlu0 %4140  ;;  %v1257_v32 = vmax.f32 %v15519_v14, 0.0  ;;  %v2367_v14 = vmax.f32 %v12486_v61, 0.0 }
 0x62a   : > { %10212 = vmatpush3.bf16.msra.mxu1 %v4127_v34  ;;  %v11012_v34 = vld [vmem:[%s15476_s3 + $0x1c] ss:$12 sps:$4 sm:$0xff]  }
 0x62b   : > { %10213 = vmatprep.subr.bf16.mxu1 %v4141_v53  ;;  %v4147_v40 = vpop.permute.xlu1 %4146 }
 0x62c   : > { %v4145_v17 = vpop.permute.xlu0 %4144  ;;  %10769 = vmatprep.subr.bf16.mxu0 %v4147_v40 }
 0x62d   : > { %10770 = vmatpush3.bf16.msra.mxu0 %v4147_v40 }
 0x62e   : > { %10214 = vmatpush3.bf16.msra.mxu1 %v4129_v49  ;;  %v1256_v49 = vmax.f32 %v12244_v19, 0.0  ;;  %v15520_v19 = vld [vmem:[#allocation9_spill] sm:$0xff] }
 0x62f   : > { %10215 = vmatprep.subr.bf16.mxu1 %v12590_v44  ;;  %v4305_v41 = vpop.permute.xlu1 %4304  ;;  %v11010_v44 = vld [vmem:[%s15478_s5 + $0x8] ss:$12 sps:$4 sm:$0xff]  }
 0x630   : > { %v4149_v3 = vpop.permute.xlu0 %4148  ;;  %4330 = vrot.lane.b32.xlu1 %v4305_v41, %s15494_s22 }
 0x631   : > { %10771 = vmatprep.subr.bf16.mxu0 %v4149_v3 }
 0x632   : > { %10216 = vmatpush3.bf16.msra.mxu1 %v4131_v55  ;;  %10772 = vmatpush3.bf16.msra.mxu0 %v4149_v3  ;;  %v11013_v55 = vld [vmem:[%s15476_s3 + $0x18] ss:$12 sps:$4 sm:$0xff]  }
 0x633   : > { %10217 = vmatprep.subr.bf16.mxu1 %v12602_v15  ;;  %v4309_v4 = vpop.permute.xlu1 %4308  ;;  %v9780_v3 = vld [vmem:[%s11749_s21 + $0x38] sm:$0xff] }
 0x634   : > { %v4307_v63 = vpop.permute.xlu0 %4306  ;;  %4334 = vrot.lane.b32.xlu1 %v4309_v4, %s15494_s22  ;;  %v1485_v4 = vmax.f32 %v12280_v2, 0.0  ;;  %v1488_v2 = vmax.f32 %v12289_v36, 0.0 }
 0x635   : > { %4332 = vrot.lane.b32.xlu0 %v4307_v63, %s15494_s22  ;;  %10774 = vmatmul.mubr.msk.bf16.vlgmr.msra.gmra.mrb[56].mxu0 %vm887_vm6, %v11009_v42  ;;  %v1487_v42 = vmax.f32 %v12286_v21, 0.0  ;;  %v2160_v21 = vmax.f32 %v12389_v5, 0.0 }
 0x636   : > { %10218 = vmatpush3.bf16.msra.mxu1 %v4133_v0  ;;  %10781 = vmatprep.mubr.msk.bf16.mxu0 %vm887_vm6, %v11010_v44  ;;  %v1258_v0 = vmax.f32 %v15518_v54, 0.0  ;;  %v2368_v54 = vmax.f32 %v12494_v58, 0.0 }
 0x637   : > { %10219 = vmatprep.subr.bf16.mxu1 %v4143_v60  ;;  %v4313_v11 = vpop.permute.xlu1 %4312  ;;  %v1259_v60 = vmax.f32 %v15520_v19, 0.0 }
 0x638   : > { %v4311_v15 = vpop.permute.xlu0 %4310  ;;  %4338 = vrot.lane.b32.xlu1 %v12575_v43, %s15494_s22 }
 0x639   : > { %4336 = vrot.lane.b32.xlu0 %v4311_v15, %s15494_s22  ;;  %v1486_v15 = vmax.f32 %v12283_v10, 0.0  ;;  %v2159_v10 = vmax.f32 %v12386_v24, 0.0 }
 0x63a   : > { %10220 = vmatpush3.bf16.msra.mxu1 %v12575_v43  ;;  %v11011_v43 = vld [vmem:[%s15476_s3] ss:$12 sps:$4 sm:$0xff]  }
 0x63b   : > { %10221 = vmatprep.subr.bf16.mxu1 %v4145_v17  ;;  %v9779_v17 = vld [vmem:[%s11749_s21 + $0x30] sm:$0xff] }
 0x63c   : > { %4342 = vrot.lane.b32.xlu1 %v4313_v11, %s15494_s22  ;;  %v4315_v59 = vpop.permute.xlu0 %4314 }
 0x63d   : > { %4340 = vrot.lane.b32.xlu0 %v12584_v62, %s15494_s22 }
 0x63e   : > { %10222 = vmatpush3.bf16.msra.mxu1 %v12584_v62  ;;  %v994_v62 = vmax.f32 %v12187_v51, 0.0 }
 0x640   : > { %1000 = vrot.lane.b32.xlu1 %v992_v18, %s15500_s23  ;;  %v4321_v53 = vpop.permute.xlu0 %4320 }
 0x641   : > { %4344 = vrot.lane.b32.xlu0 %v4315_v59, %s15494_s22  ;;  %4201 = vmatmul.mubr.bf16.vlgmr.msra.gmra.mrb[52].mxu1 %v11011_v43  ;;  %v2158_v59 = vmax.f32 %v12383_v57, 0.0  ;;  %v2366_v57 = vmax.f32 %v12482_v31, 0.0 }
 0x642   : > { %4208 = vmatprep.mubr.bf16.mxu1 %v11012_v34 }
 0x644   : > { %4346 = vrot.lane.b32.xlu1 %v12621_v12, %s15494_s22  ;;  %v15517_v12 = vld [vmem:[#allocation6_spill] sm:$0xff]  ;;  %v4325_v41 = vpop.permute.xlu0 %4324 }
 0x645   : > { %1002 = vrot.lane.b32.xlu0 %v993_v13, %s15500_s23  ;;  %v995_v51 = vmax.f32 %v15517_v12, 0.0 }
 0x648   : > { %1004 = vrot.lane.b32.xlu1 %v994_v62, %s15500_s23 }
 0x649   : > { %4209 = vmatmul.mubr.bf16.gmra.mrb[56].mxu1 %v11013_v55  ;;  %4348 = vrot.lane.b32.xlu0 %v12628_v1, %s15494_s22  ;;  %v4319_v1 = vpop.permute.xlu1 %4318 }
 0x64a   : > { %4408 = vmatprep.mubr.bf16.mxu1 %v11014_v16  ;;  %v2161_v16 = vmax.f32 %v12392_v37, 0.0 }
 0x64c   : > { %1264 = vrot.lane.b32.xlu1 %v1256_v49, %s15500_s23 }
 0x64d   : > { %1006 = vrot.lane.b32.xlu0 %v995_v51, %s15500_s23  ;;  %v4323_v40 = vpop.permute.xlu1 %4322 }
 0x650   : > { %1268 = vrot.lane.b32.xlu1 %v1258_v0, %s15500_s23 }
 0x651   : > { %1266 = vrot.lane.b32.xlu0 %v1257_v32, %s15500_s23 }
 0x654   : > { %4350 = vrot.lane.b32.xlu1 %v4319_v1, %s15494_s22 }
 0x655   : > { %1270 = vrot.lane.b32.xlu0 %v1259_v60, %s15500_s23  ;;  %v2540_v60 = vmax.f32 %v12501_v52, 0.0 }
 0x658   : > { %4354 = vrot.lane.b32.xlu1 %v4323_v40, %s15494_s22 }
 0x659   : > { %4352 = vrot.lane.b32.xlu0 %v4321_v53, %s15494_s22  ;;  %v2369_v53 = vmax.f32 %v12497_v25, 0.0  ;;  %v3212_v25 = vmax.f32 %v12639_v45, 0.0 }
 0x65c   : > { %4512 = vrot.lane.b32.xlu1 %v9779_v17, %s15508_s26 }
 0x65d   : > { %4356 = vrot.lane.b32.xlu0 %v4325_v41, %s15494_s22  ;;  %v2542_v41 = vmax.f32 %v12507_v35, 0.0  ;;  %v3213_v35 = vmax.f32 %v12642_v39, 0.0 }
 0x660   : > { %4518 = vrot.lane.b32.xlu1 %v9779_v17, %s15492_s28 }
 0x661   : > { %4514 = vrot.lane.b32.xlu0 %v9780_v3, %s15508_s26 }
 0x664   : > { %1493 = vrot.lane.b32.xlu1 %v1485_v4, %s15500_s23  ;;  %v2541_v4 = vmax.f32 %v12504_v50, 0.0 }
 0x665   : > { %4520 = vrot.lane.b32.xlu0 %v9780_v3, %s15492_s28  ;;  %v10759_v63 = vpop.f32.mrb[44].mxu1 }
 0x666   : > { %v3405_v44 = vpop.f32.mrb[45].mxu1 }
 0x667   : > { %v10760_v11 = vpop.f32.mrb[46].mxu1 }
 0x668   : > { %1497 = vrot.lane.b32.xlu1 %v1487_v42, %s15500_s23  ;;  %v3408_v18 = vpop.f32.mrb[47].mxu1 }
 0x669   : > { %1495 = vrot.lane.b32.xlu0 %v1486_v15, %s15500_s23  ;;  %v3215_v15 = vmax.f32 %v12648_v38, 0.0 }
 0x66c   : > { %2166 = vrot.lane.b32.xlu1 %v2158_v59, %s15500_s23 }
 0x66d   : > { %v10159_v43 = vpop.f32.mrb[40].mxu0  ;;  %1499 = vrot.lane.b32.xlu0 %v1488_v2, %s15500_s23 }
 0x66e   : > { %v10160_v34 = vpop.f32.mrb[41].mxu0 }
 0x66f   : > { %v10161_v13 = vadd.f32 %v10160_v34, %v10159_v43  ;;  %v10162_v62 = vpop.f32.mrb[42].mxu0 }
 0x670   : > { %v10163_v55 = vpop.f32.mrb[43].mxu0  ;;  %2170 = vrot.lane.b32.xlu1 %v2160_v21, %s15500_s23 }
 0x671   : > { %v10164_v49 = vadd.f32 %v10163_v55, %v10162_v62  ;;  %2168 = vrot.lane.b32.xlu0 %v2159_v10, %s15500_s23  ;;  %v3357_v36 = vadd.f32 %v10161_v13, %v11926_v23 }
 0x673   : > { %v3406_v12 = vadd.f32 %v3405_v44, %v3357_v36  ;;  %v3360_v5 = vadd.f32 %v10164_v49, %v11945_v30  ;;  %v3214_v44 = vmax.f32 %v12645_v22, 0.0 }
 0x674   : > { %2374 = vrot.lane.b32.xlu1 %v2366_v57, %s15500_s23 }
 0x675   : > { %v3409_v24 = vadd.f32 %v3408_v18, %v3360_v5  ;;  %v10165_v51 = vpop.f32.mrb[44].mxu0  ;;  %2172 = vrot.lane.b32.xlu0 %v2161_v16, %s15500_s23  ;;  %v3420_v50 = vmax.f32 %v3406_v12, 0.0 }
 0x676   : > { %v10166_v0 = vpop.f32.mrb[45].mxu0 }
 0x677   : > { %v10167_v32 = vadd.f32 %v10166_v0, %v10165_v51  ;;  %v10168_v1 = vpop.f32.mrb[46].mxu0  ;;  %v3421_v18 = vmax.f32 %v3409_v24, 0.0  ;;  %v4327_v24 = vpop.permute.xlu1 %4326 }
 0x678   : > { %v10169_v19 = vpop.f32.mrb[47].mxu0  ;;  %2378 = vrot.lane.b32.xlu1 %v2368_v54, %s15500_s23  ;;  %v4329_v54 = vpop.permute.xlu0 %4328 }
 0x679   : > { %v3365_v37 = vadd.f32 %v10167_v32, %v11939_v27  ;;  %v10170_v31 = vadd.f32 %v10169_v19, %v10168_v1  ;;  %2376 = vrot.lane.b32.xlu0 %v2367_v14, %s15500_s23 }
 0x67b   : > { %v3414_v40 = vadd.f32 %v10759_v63, %v3365_v37  ;;  %v3368_v58 = vadd.f32 %v10170_v31, %v11953_v33  ;;  %v2543_v63 = vmax.f32 %v12510_v56, 0.0 }
 0x67c   : > { %2548 = vrot.lane.b32.xlu1 %v2540_v60, %s15500_s23 }
 0x67d   : > { %v3417_v61 = vadd.f32 %v10760_v11, %v3368_v58  ;;  %2380 = vrot.lane.b32.xlu0 %v2369_v53, %s15500_s23  ;;  %v10767_v17 = vpop.f32.mrb[48].mxu1  ;;  %v3422_v56 = vmax.f32 %v3414_v40, 0.0 }
 0x67e   : > { %v3579_v3 = vpop.f32.mrb[49].mxu1 }
 0x67f   : > { %v10768_v42 = vpop.f32.mrb[50].mxu1  ;;  %v3423_v21 = vmax.f32 %v3417_v61, 0.0 }
 0x680   : > { %2552 = vrot.lane.b32.xlu1 %v2542_v41, %s15500_s23  ;;  %v3582_v52 = vpop.f32.mrb[51].mxu1 }
 0x681   : > { %2550 = vrot.lane.b32.xlu0 %v2541_v4, %s15500_s23 }
 0x684   : > { %3220 = vrot.lane.b32.xlu1 %v3212_v25, %s15500_s23 }
 0x685   : > { %2554 = vrot.lane.b32.xlu0 %v2543_v63, %s15500_s23 }
 0x688   : > { %3224 = vrot.lane.b32.xlu1 %v3214_v44, %s15500_s23 }
 0x689   : > { %3222 = vrot.lane.b32.xlu0 %v3213_v35, %s15500_s23  ;;  %v11150_v35 = vmov 1966171168  }
 0x68c   : > { %3428 = vrot.lane.b32.xlu1 %v3420_v50, %s15500_s23  ;;  %v1515_v50 = vunpack.c.l.s4 %v11150_v35 }
 0x68d   : > { %v10191_v45 = vpop.f32.mrb[48].mxu0  ;;  %3226 = vrot.lane.b32.xlu0 %v3215_v15, %s15500_s23  ;;  %v1517_v15 = vlaneseq }
 0x68e   : > { %v10192_v11 = vpop.f32.mrb[49].mxu0 }
 0x68f   : > { %v10193_v59 = vadd.f32 %v10192_v11, %v10191_v45  ;;  %v10194_v2 = vpop.f32.mrb[50].mxu0 }
 0x690   : > { %v10195_v22 = vpop.f32.mrb[51].mxu0  ;;  %3432 = vrot.lane.b32.xlu1 %v3422_v56, %s15500_s23  ;;  %v11015_v56 = vld [vmem:[%s11749_s21 + $0xc0] sm:$0xff] }
 0x691   : > { %v10196_v39 = vadd.f32 %v10195_v22, %v10194_v2  ;;  %3430 = vrot.lane.b32.xlu0 %v3421_v18, %s15500_s23  ;;  %v3531_v43 = vadd.f32 %v10193_v59, %v12084_v20  ;;  %v749_v11 = vunpack.c.l.bf16 %v11015_v56  ;;  %v1516_v59 = vunpack.c.0.s8 %v1515_v50 }
 0x692   : > { %v1518_v2 = vshrl.u32 %v1517_v15, 7 }
 0x693   : > { %v12764_v38 = vadd.f32 %v3579_v3, %v3531_v43  ;;  %v3534_v34 = vadd.f32 %v10196_v39, %v12089_v47  ;;  %v15522_v43 = vld [vmem:[#allocation10_spill] sm:$0xff] }
 0x695   : > { %v12767_v10 = vadd.f32 %v3582_v52, %v3534_v34  ;;  %v10197_v13 = vpop.f32.mrb[52].mxu0  ;;  %3434 = vrot.lane.b32.xlu0 %v3423_v21, %s15500_s23  ;;  %v12797_v34 = vsub.s32 %v1516_v59, %v1518_v2 }
 0x696   : > { %v10198_v62 = vpop.f32.mrb[53].mxu0 }
 0x697   : > { %v10199_v55 = vadd.f32 %v10198_v62, %v10197_v13  ;;  %v10200_v49 = vpop.f32.mrb[54].mxu0  ;;  %v15523_v13 = vld [vmem:[#allocation14_spill] sm:$0xff] }
 0x698   : > { %v10201_v36 = vpop.f32.mrb[55].mxu0 }
 0x699   : > { %v3539_v57 = vadd.f32 %v10199_v55, %v12087_v46  ;;  %v10202_v16 = vadd.f32 %v10201_v36, %v10200_v49  ;;  %v15524_v36 = vld [vmem:[#allocation13_spill] sm:$0xff] }
 0x69b   : > { %v12771_v12 = vadd.f32 %v10767_v17, %v3539_v57  ;;  %v3542_v5 = vadd.f32 %v10202_v16, %v12091_v48  ;;  %v15525_v16 = vld [vmem:[#allocation11_spill] sm:$0xff] }
 0x69d   : > { %v12774_v51 = vadd.f32 %v10768_v42, %v3542_v5 }
 0x6a2   : > { %v4331_v0 = vpop.permute.xlu1 %4330 }
 0x6a6   : > { %v4335_v14 = vpop.permute.xlu1 %4334 }
 0x6a7   : > { %v4333_v32 = vpop.permute.xlu0 %4332 }
 0x6aa   : > { %v4339_v1 = vpop.permute.xlu1 %4338 }
 0x6ab   : > { %v4337_v19 = vpop.permute.xlu0 %4336  ;;  %10239 = vmatprep.subr.bf16.mxu1 %v4339_v1 }
 0x6ac   : > { %10240 = vmatpush3.bf16.msra.mxu1 %v4327_v24 }
 0x6ae   : > { %v4343_v37 = vpop.permute.xlu1 %4342 }
 0x6af   : > { %v4341_v31 = vpop.permute.xlu0 %4340 }
 0x6b0   : > { %10241 = vmatprep.subr.bf16.mxu1 %v4341_v31 }
 0x6b1   : > { %10242 = vmatpush3.bf16.msra.mxu1 %v4329_v54 }
 0x6b2   : > { %10243 = vmatprep.subr.bf16.mxu1 %v4343_v37  ;;  %v1001_v60 = vpop.permute.xlu1 %1000 }
 0x6b3   : > { %v4345_v53 = vpop.permute.xlu0 %4344  ;;  %v1012_v39 = vadd.f32 %v1001_v60, %v749_v11 }
 0x6b5   : > { %10244 = vmatpush3.bf16.msra.mxu1 %v4331_v0 }
 0x6b6   : > { %10245 = vmatprep.subr.bf16.mxu1 %v4345_v53  ;;  %v4347_v40 = vpop.permute.xlu1 %4346 }
 0x6b7   : > { %v1003_v58 = vpop.permute.xlu0 %1002 }
 0x6b9   : > { %10246 = vmatpush3.bf16.msra.mxu1 %v4333_v32  ;;  %v12807_v32 = vsub.s32 0, %v1518_v2 }
 0x6ba   : > { %10247 = vmatprep.subr.bf16.mxu1 %v4347_v40  ;;  %v12776_v61 = vpop.permute.xlu1 %1004 }
 0x6bb   : > { %v4349_v17 = vpop.permute.xlu0 %4348 }
 0x6bd   : > { %10248 = vmatpush3.bf16.msra.mxu1 %v4335_v14 }
 0x6be   : > { %10249 = vmatprep.subr.bf16.mxu1 %v4349_v17  ;;  %v1265_v41 = vpop.permute.xlu1 %1264 }
 0x6bf   : > { %v12778_v3 = vpop.permute.xlu0 %1006  ;;  %v1276_v21 = vadd.f32 %v1265_v41, %v1012_v39 }
 0x6c1   : > { %10250 = vmatpush3.bf16.msra.mxu1 %v4337_v19 }
 0x6c2   : > { %v12780_v4 = vpop.permute.xlu1 %1268 }
 0x6c3   : > { %v1267_v42 = vpop.permute.xlu0 %1266 }
 0x6c6   : > { %v4351_v52 = vpop.permute.xlu1 %4350 }
 0x6c7   : > { %v12782_v25 = vpop.permute.xlu0 %1270  ;;  %10251 = vmatprep.subr.bf16.mxu1 %v4351_v52 }
 0x6c8   : > { %10252 = vmatpush3.bf16.msra.mxu1 %v12566_v28  ;;  %v15521_v28 = vld [vmem:[#allocation12_spill] sm:$0xff] }
 0x6ca   : > { %v4355_v63 = vpop.permute.xlu1 %4354 }
 0x6cb   : > { %v4353_v44 = vpop.permute.xlu0 %4352  ;;  %10777 = vmatprep.subr.bf16.mxu0 %v4355_v63 }
 0x6cc   : > { %10253 = vmatprep.subr.bf16.mxu1 %v4353_v44  ;;  %10778 = vmatpush3.bf16.msra.mxu0 %v4355_v63 }
 0x6cd   : > { %10254 = vmatpush3.bf16.msra.mxu1 %v12577_v29 }
 0x6ce   : > { %v12786_v45 = vpop.permute.xlu1 %4512 }
 0x6cf   : > { %v4357_v18 = vpop.permute.xlu0 %4356 }
 0x6d0   : > { %4409 = vmatmul.mubr.bf16.vlgmr.msra.gmra.mrb[60].mxu1 %v12531_v26  ;;  %10779 = vmatprep.subr.bf16.mxu0 %v4357_v18  ;;  %v750_v26 = vunpack.c.h.bf16 %v11015_v56  ;;  %v11016_v56 = vld [vmem:[%s11749_s21 + $0xc8] sm:$0xff] }
 0x6d1   : > { %10780 = vmatpush3.bf16.msra.mxu0 %v4357_v18  ;;  %4416 = vmatprep.mubr.bf16.mxu1 %v15521_v28  ;;  %v751_v11 = vunpack.c.l.bf16 %v11016_v56 }
 0x6d2   : > { %v12791_v22 = vpop.permute.xlu1 %4518  ;;  %v1013_v5 = vadd.f32 %v1003_v58, %v750_v26 }
 0x6d3   : > { %v12793_v29 = vpop.permute.xlu0 %4514 }
 0x6d4   : > { %10782 = vmatmul.mubr.msk.bf16.vlgmr.msra.gmra.mrb[60].mxu0 %vm887_vm6, %v15522_v43  ;;  %v1277_v1 = vadd.f32 %v1267_v42, %v1013_v5  ;;  %v1014_v43 = vadd.f32 %v12776_v61, %v751_v11 }
 0x6d5   : > { %4582 = vmatprep.mubr.bf16.mxu0 %v15523_v13 }
 0x6d6   : > { %v1494_v62 = vpop.permute.xlu1 %1493 }
 0x6d7   : > { %v12800_v55 = vpop.permute.xlu0 %4520  ;;  %v1505_v49 = vadd.f32 %v1494_v62, %v1276_v21 }
 0x6d8   : > { %4417 = vmatmul.mubr.bf16.gmra.mrb[64].mxu1 %v15524_v36 }
 0x6d9   : > { %v1520_v57 = vrot.slane %v1505_v49, %v12797_v34  ;;  %10789 = vmatprep.mubr.msk.bf16.mxu1 %vm887_vm6, %v15525_v16  ;;  %v1513_v24 = vcombine.high %v1505_v49, %v1505_v49 }
 0x6da   : > { %v1498_v36 = vpop.permute.xlu1 %1497 }
 0x6db   : > { %v1528_v54 = vcombine.high %v1520_v57, %v1520_v57  ;;  %v1536_v0 = vrot.slane %v1520_v57, %v12797_v34  ;;  %v1496_v14 = vpop.permute.xlu0 %1495  ;;  %v1527_v31 = vrot.slane %v1513_v24, %v12797_v34  ;;  %v1278_v57 = vadd.f32 %v12780_v4, %v1014_v43 }
 0x6dc   : > { %v1506_v37 = vadd.f32 %v1496_v14, %v1277_v1  ;;  %v752_v14 = vunpack.c.h.bf16 %v11016_v56 }
 0x6dd   : > { %v1550_v19 = vrot.slane %v1528_v54, %v12797_v34  ;;  %v1558_v60 = vcombine.high %v1536_v0, %v1536_v0  ;;  %v1712_v53 = vrot.slane %v1536_v0, %v12807_v32  ;;  %v1529_v17 = vcombine.high %v1527_v31, %v1527_v31 }
 0x6de   : > { %v1569_v58 = vrot.slane %v1506_v37, %v12797_v34  ;;  %v1543_v41 = vrot.slane %v1527_v31, %v12797_v34  ;;  %v1562_v18 = vcombine.high %v1506_v37, %v1506_v37  ;;  %v1507_v5 = vadd.f32 %v1498_v36, %v1278_v57 }
 0x6df   : > { %v1716_v40 = vrot.slane %v1550_v19, %v12807_v32  ;;  %1837 = vrot.lane.b32.xlu1 %v1712_v53, %s15508_s26  ;;  %v1720_v42 = vrot.slane %v1558_v60, %v12807_v32  ;;  %v1560_v52 = vcombine.high %v1550_v19, %v1550_v19  ;;  %v1557_v15 = vrot.slane %v1529_v17, %v12797_v34 }
 0x6e0   : > { %v1577_v63 = vcombine.high %v1569_v58, %v1569_v58  ;;  %v1585_v44 = vrot.slane %v1569_v58, %v12797_v34  ;;  %v1728_v50 = vrot.slane %v1543_v41, %v12807_v32  ;;  %v1559_v39 = vcombine.high %v1543_v41, %v1543_v41 }
 0x6e1   : > { %1839 = vrot.lane.b32.xlu0 %v1716_v40, %s15508_s26  ;;  %v1724_v35 = vrot.slane %v1560_v52, %v12807_v32  ;;  %v1732_v59 = vrot.slane %v1557_v15, %v12807_v32  ;;  %v1576_v21 = vrot.slane %v1562_v18, %v12797_v34  ;;  %v1561_v62 = vcombine.high %v1557_v15, %v1557_v15 }
 0x6e2   : > { %v1599_v28 = vrot.slane %v1577_v63, %v12797_v34  ;;  %v1744_v2 = vrot.slane %v1585_v44, %v12807_v32  ;;  %v1736_v26 = vrot.slane %v1559_v39, %v12807_v32  ;;  %v1607_v49 = vcombine.high %v1585_v44, %v1585_v44 }
 0x6e3   : > { %1841 = vrot.lane.b32.xlu1 %v1720_v42, %s15508_s26  ;;  %v1578_v16 = vcombine.high %v1576_v21, %v1576_v21  ;;  %v1740_v24 = vrot.slane %v1561_v62, %v12807_v32  ;;  %v1592_v54 = vrot.slane %v1576_v21, %v12797_v34  ;;  %v1618_v4 = vrot.slane %v1507_v5, %v12797_v34  ;;  %v1500_v42 = vpop.permute.xlu0 %1499 }
 0x6e4   : > { %v1748_v13 = vrot.slane %v1599_v28, %v12807_v32  ;;  %v1609_v61 = vcombine.high %v1599_v28, %v1599_v28  ;;  %v1752_v0 = vrot.slane %v1607_v49, %v12807_v32  ;;  %v1015_v60 = vadd.f32 %v12778_v3, %v752_v14 }
 0x6e5   : > { %1843 = vrot.lane.b32.xlu0 %v1724_v35, %s15508_s26  ;;  %v1606_v19 = vrot.slane %v1578_v16, %v12797_v34  ;;  %v1760_v37 = vrot.slane %v1592_v54, %v12807_v32  ;;  %v1608_v31 = vcombine.high %v1592_v54, %v1592_v54  ;;  %v1611_v53 = vcombine.high %v1507_v5, %v1507_v5 }
 0x6e6   : > { %v1756_v1 = vrot.slane %v1609_v61, %v12807_v32  ;;  %v1626_v40 = vcombine.high %v1618_v4, %v1618_v4  ;;  %v1634_v41 = vrot.slane %v1618_v4, %v12797_v34  ;;  %v1279_v63 = vadd.f32 %v12782_v25, %v1015_v60 }
 0x6e7   : > { %1845 = vrot.lane.b32.xlu1 %v1728_v50, %s15508_s26  ;;  %v1764_v58 = vrot.slane %v1606_v19, %v12807_v32  ;;  %v1610_v17 = vcombine.high %v1606_v19, %v1606_v19  ;;  %v1768_v52 = vrot.slane %v1608_v31, %v12807_v32  ;;  %v1625_v3 = vrot.slane %v1611_v53, %v12797_v34 }
 0x6e8   : > { %v1648_v44 = vrot.slane %v1626_v40, %v12797_v34  ;;  %v1508_v35 = vadd.f32 %v1500_v42, %v1279_v63  ;;  %v1656_v15 = vcombine.high %v1634_v41, %v1634_v41  ;;  %v1776_v56 = vrot.slane %v1634_v41, %v12807_v32 }
 0x6e9   : > { %1847 = vrot.lane.b32.xlu0 %v1732_v59, %s15508_s26  ;;  %v1772_v50 = vrot.slane %v1610_v17, %v12807_v32  ;;  %v1627_v11 = vcombine.high %v1625_v3, %v1625_v3  ;;  %v1641_v59 = vrot.slane %v1625_v3, %v12797_v34  ;;  %v3595_v4 = vmax.f32 %v12767_v10, 0.0 }
 0x6ea   : > { %v1667_v25 = vrot.slane %v1508_v35, %v12797_v34  ;;  %v1780_v18 = vrot.slane %v1648_v44, %v12807_v32  ;;  %v1658_v28 = vcombine.high %v1648_v44, %v1648_v44  ;;  %v1660_v61 = vcombine.high %v1508_v35, %v1508_v35  ;;  %v12896_v35 = vpop.permute.xlu0 %2168 }
 0x6eb   : > { %1853 = vrot.lane.b32.xlu1 %v1744_v2, %s15508_s26  ;;  %v1784_v2 = vrot.slane %v1656_v15, %v12807_v32  ;;  %v1655_v21 = vrot.slane %v1627_v11, %v12797_v34  ;;  %v1657_v14 = vcombine.high %v1641_v59, %v1641_v59 }
 0x6ec   : > { %v1675_v39 = vcombine.high %v1667_v25, %v1667_v25  ;;  %v1788_v43 = vrot.slane %v1658_v28, %v12807_v32 }
 0x6ed   : > { %1855 = vrot.lane.b32.xlu0 %v1748_v13, %s15508_s26  ;;  %v1683_v13 = vrot.slane %v1667_v25, %v12797_v34  ;;  %v1796_v16 = vrot.slane %v1655_v21, %v12807_v32  ;;  %v1659_v19 = vcombine.high %v1655_v21, %v1655_v21  ;;  %v1800_v60 = vrot.slane %v1657_v14, %v12807_v32 }
 0x6ee   : > { %v1697_v57 = vrot.slane %v1675_v39, %v12797_v34  ;;  %v3596_v14 = vmax.f32 %v12771_v12, 0.0 }
 0x6ef   : > { %1849 = vrot.lane.b32.xlu1 %v1736_v26, %s15508_s26  ;;  %v1792_v26 = vrot.slane %v1641_v59, %v12807_v32  ;;  %v1804_v17 = vrot.slane %v1659_v19, %v12807_v32 }
 0x6f0   : > { %v1812_v54 = vrot.slane %v1697_v57, %v12807_v32  ;;  %v1707_v42 = vcombine.high %v1697_v57, %v1697_v57 }
 0x6f1   : > { %1851 = vrot.lane.b32.xlu0 %v1740_v24, %s15508_s26  ;;  %v1808_v24 = vrot.slane %v1683_v13, %v12807_v32 }
 0x6f3   : > { %1857 = vrot.lane.b32.xlu1 %v1752_v0, %s15508_s26  ;;  %v3594_v0 = vmax.f32 %v12764_v38, 0.0 }
 0x6f5   : > { %1859 = vrot.lane.b32.xlu0 %v1756_v1, %s15508_s26  ;;  %v1674_v1 = vrot.slane %v1660_v61, %v12797_v34 }
 0x6f7   : > { %1861 = vrot.lane.b32.xlu1 %v1760_v37, %s15508_s26  ;;  %v1705_v37 = vcombine.high %v1683_v13, %v1683_v13  ;;  %v1690_v10 = vrot.slane %v1674_v1, %v12797_v34  ;;  %v12908_v13 = vpop.permute.xlu0 %2172 }
 0x6f9   : > { %1863 = vrot.lane.b32.xlu0 %v1764_v58, %s15508_s26  ;;  %v1676_v58 = vcombine.high %v1674_v1, %v1674_v1  ;;  %v1816_v3 = vrot.slane %v1705_v37, %v12807_v32  ;;  %v1824_v28 = vrot.slane %v1690_v10, %v12807_v32  ;;  %v1706_v59 = vcombine.high %v1690_v10, %v1690_v10 }
 0x6fb   : > { %1865 = vrot.lane.b32.xlu1 %v1768_v52, %s15508_s26  ;;  %v12892_v52 = vpop.permute.xlu1 %2166  ;;  %v1704_v11 = vrot.slane %v1676_v58, %v12797_v34  ;;  %v12921_v19 = vpop.permute.xlu0 %2376 }
 0x6fd   : > { %1867 = vrot.lane.b32.xlu0 %v1772_v50, %s15508_s26  ;;  %v1708_v57 = vcombine.high %v1704_v11, %v1704_v11 }
 0x6ff   : > { %1869 = vrot.lane.b32.xlu1 %v1776_v56, %s15508_s26  ;;  %v1820_v56 = vrot.slane %v1707_v42, %v12807_v32  ;;  %v12905_v39 = vpop.permute.xlu1 %2170  ;;  %v12930_v12 = vpop.permute.xlu0 %2380 }
 0x701   : > { %1871 = vrot.lane.b32.xlu0 %v1780_v18, %s15508_s26 }
 0x703   : > { %1873 = vrot.lane.b32.xlu1 %v1784_v2, %s15508_s26  ;;  %v12919_v1 = vpop.permute.xlu1 %2374 }
 0x705   : > { %1875 = vrot.lane.b32.xlu0 %v1788_v43, %s15508_s26 }
 0x707   : > { %1877 = vrot.lane.b32.xlu1 %v1792_v26, %s15508_s26  ;;  %v1828_v26 = vrot.slane %v1704_v11, %v12807_v32 }
 0x708   : > { %v10775_v62 = vpop.f32.mrb[56].mxu0 }
 0x709   : > { %v4251_v49 = vpop.f32.mrb[57].mxu0  ;;  %1879 = vrot.lane.b32.xlu0 %v1796_v16, %s15508_s26 }
 0x70a   : > { %v12874_v36 = vpop.f32.mrb[58].mxu0 }
 0x70b   : > { %v4254_v5 = vpop.f32.mrb[59].mxu0  ;;  %1885 = vrot.lane.b32.xlu1 %v1808_v24, %s15508_s26  ;;  %v1832_v24 = vrot.slane %v1706_v59, %v12807_v32 }
 0x70d   : > { %1887 = vrot.lane.b32.xlu0 %v1812_v54, %s15508_s26 }
 0x70f   : > { %3602 = vrot.lane.b32.xlu1 %v3594_v0, %s15500_s23  ;;  %v1836_v0 = vrot.slane %v1708_v57, %v12807_v32 }
 0x711   : > { %3604 = vrot.lane.b32.xlu0 %v3595_v4, %s15500_s23 }
 0x713   : > { %1881 = vrot.lane.b32.xlu1 %v1800_v60, %s15508_s26 }
 0x714   : > { %v10223_v31 = vpop.f32.mrb[52].mxu1 }
 0x715   : > { %v10224_v53 = vpop.f32.mrb[53].mxu1  ;;  %1883 = vrot.lane.b32.xlu0 %v1804_v17, %s15508_s26 }
 0x716   : > { %v10225_v38 = vadd.f32 %v10224_v53, %v10223_v31  ;;  %v10226_v40 = vpop.f32.mrb[54].mxu1  ;;  %v12928_v31 = vpop.permute.xlu1 %2378 }
 0x717   : > { %v10227_v41 = vpop.f32.mrb[55].mxu1  ;;  %1889 = vrot.lane.b32.xlu1 %v1816_v3, %s15508_s26 }
 0x718   : > { %v10228_v63 = vadd.f32 %v10227_v41, %v10226_v40  ;;  %v4203_v44 = vadd.f32 %v10225_v38, %v11877_v7 }
 0x719   : > { %1891 = vrot.lane.b32.xlu0 %v1820_v56, %s15508_s26 }
 0x71a   : > { %v4252_v50 = vadd.f32 %v4251_v49, %v4203_v44  ;;  %v4206_v15 = vadd.f32 %v10228_v63, %v11875_v6  ;;  %v12934_v38 = vpop.permute.xlu1 %2548 }
 0x71b   : > { %1893 = vrot.lane.b32.xlu1 %v1824_v28, %s15508_s26 }
 0x71c   : > { %v4255_v25 = vadd.f32 %v4254_v5, %v4206_v15  ;;  %v10229_v18 = vpop.f32.mrb[56].mxu1  ;;  %v4266_v37 = vmax.f32 %v4252_v50, 0.0 }
 0x71d   : > { %v10230_v2 = vpop.f32.mrb[57].mxu1  ;;  %1895 = vrot.lane.b32.xlu0 %v1828_v26, %s15508_s26 }
 0x71e   : > { %v10231_v43 = vadd.f32 %v10230_v2, %v10229_v18  ;;  %v10232_v21 = vpop.f32.mrb[58].mxu1  ;;  %v12939_v40 = vpop.permute.xlu1 %2552 }
 0x71f   : > { %v10233_v49 = vpop.f32.mrb[59].mxu1  ;;  %1897 = vrot.lane.b32.xlu1 %v1832_v24, %s15508_s26 }
 0x720   : > { %v4211_v16 = vadd.f32 %v10231_v43, %v11879_v8  ;;  %v10234_v5 = vadd.f32 %v10233_v49, %v10232_v21 }
 0x721   : > { %1899 = vrot.lane.b32.xlu0 %v1836_v0, %s15508_s26 }
 0x722   : > { %v4260_v61 = vadd.f32 %v10775_v62, %v4211_v16  ;;  %v4214_v54 = vadd.f32 %v10234_v5, %v11881_v9  ;;  %v3597_v62 = vmax.f32 %v12774_v51, 0.0  ;;  %v12936_v51 = vpop.permute.xlu0 %2550  ;;  %v12943_v17 = vpop.permute.xlu1 %3220 }
 0x723   : > { %3606 = vrot.lane.b32.xlu1 %v3596_v14, %s15500_s23 }
 0x724   : > { %v4263_v4 = vadd.f32 %v12874_v36, %v4214_v54  ;;  %v4267_v36 = vmax.f32 %v4255_v25, 0.0  ;;  %v4268_v60 = vmax.f32 %v4260_v61, 0.0 }
 0x725   : > { %3608 = vrot.lane.b32.xlu0 %v3597_v62, %s15500_s23 }
 0x726   : > { %v4269_v53 = vmax.f32 %v4263_v4, 0.0  ;;  %v12941_v58 = vpop.permute.xlu0 %2554  ;;  %v12947_v42 = vpop.permute.xlu1 %3224 }
 0x727   : > { %4274 = vrot.lane.b32.xlu1 %v4266_v37, %s15500_s23 }
 0x729   : > { %4276 = vrot.lane.b32.xlu0 %v4267_v36, %s15500_s23 }
 0x72a   : > { %v12945_v41 = vpop.permute.xlu0 %3222  ;;  %v12951_v63 = vpop.permute.xlu1 %3428 }
 0x72b   : > { %4278 = vrot.lane.b32.xlu1 %v4268_v60, %s15500_s23 }
 0x72d   : > { %4280 = vrot.lane.b32.xlu0 %v4269_v53, %s15500_s23 }
 0x72e   : > { %v12949_v10 = vpop.permute.xlu0 %3226  ;;  %v12955_v44 = vpop.permute.xlu1 %3432 }
 0x732   : > { %v12953_v3 = vpop.permute.xlu0 %3430 }
 0x736   : > { %v12957_v50 = vpop.permute.xlu0 %3434 }
 0x751   : > { %v1838_v15 = vpop.permute.xlu1 %1837 }
 0x752   : > { %1934 = vst.msk [vmem:[%s11268_s17] sm:$0x1] %vm1933_vm7, %v1838_v15 }
 0x753   : > { %v1840_v56 = vpop.permute.xlu0 %1839 }
 0x754   : > { %1935 = vst.msk [vmem:[%s11268_s17 + $0x8] sm:$0x1] %vm1933_vm7, %v1840_v56 }
 0x755   : > { %v1842_v11 = vpop.permute.xlu1 %1841 }
 0x756   : > { %1936 = vst.msk [vmem:[%s11268_s17 + $0x10] sm:$0x1] %vm1933_vm7, %v1842_v11 }
 0x757   : > { %v1844_v25 = vpop.permute.xlu0 %1843 }
 0x758   : > { %1937 = vst.msk [vmem:[%s11268_s17 + $0x18] sm:$0x1] %vm1933_vm7, %v1844_v25 }
 0x759   : > { %v1846_v18 = vpop.permute.xlu1 %1845 }
 0x75a   : > { %1938 = vst.msk [vmem:[%s11268_s17 + $0x20] sm:$0x1] %vm1933_vm7, %v1846_v18 }
 0x75b   : > { %v1848_v28 = vpop.permute.xlu0 %1847 }
 0x75c   : > { %1939 = vst.msk [vmem:[%s11268_s17 + $0x28] sm:$0x1] %vm1933_vm7, %v1848_v28 }
 0x75d   : > { %v1854_v59 = vpop.permute.xlu1 %1853 }
 0x75e   : > { %1942 = vst.msk [vmem:[%s11268_s17 + $0x40] sm:$0x1] %vm1933_vm7, %v1854_v59 }
 0x75f   : > { %v1856_v2 = vpop.permute.xlu0 %1855 }
 0x760   : > { %1943 = vst.msk [vmem:[%s11268_s17 + $0x48] sm:$0x1] %vm1933_vm7, %v1856_v2 }
 0x761   : > { %v1850_v43 = vpop.permute.xlu1 %1849 }
 0x762   : > { %1940 = vst.msk [vmem:[%s11268_s17 + $0x30] sm:$0x1] %vm1933_vm7, %v1850_v43  ;;  %v11017_v43 = vld [vmem:[%s11749_s21 + $0xd0] sm:$0xff] }
 0x763   : > { %v1852_v21 = vpop.permute.xlu0 %1851 }
 0x764   : > { %1941 = vst.msk [vmem:[%s11268_s17 + $0x38] sm:$0x1] %vm1933_vm7, %v1852_v21  ;;  %v1972_v21 = vunpack.c.l.bf16 %v11017_v43 }
 0x765   : > { %v1858_v26 = vpop.permute.xlu1 %1857 }
 0x766   : > { %1944 = vst.msk [vmem:[%s11268_s17 + $0x50] sm:$0x1] %vm1933_vm7, %v1858_v26  ;;  %v2178_v26 = vadd.f32 %v12892_v52, %v1972_v21 }
 0x767   : > { %v1860_v49 = vpop.permute.xlu0 %1859 }
 0x768   : > { %1945 = vst.msk [vmem:[%s11268_s17 + $0x58] sm:$0x1] %vm1933_vm7, %v1860_v49  ;;  %v2386_v49 = vadd.f32 %v12919_v1, %v2178_v26 }
 0x769   : > { %v1862_v57 = vpop.permute.xlu1 %1861 }
 0x76a   : > { %1946 = vst.msk [vmem:[%s11268_s17 + $0x60] sm:$0x1] %vm1933_vm7, %v1862_v57  ;;  %v2560_v57 = vadd.f32 %v12934_v38, %v2386_v49 }
 0x76b   : > { %v1864_v16 = vpop.permute.xlu0 %1863 }
 0x76c   : > { %1947 = vst.msk [vmem:[%s11268_s17 + $0x68] sm:$0x1] %vm1933_vm7, %v1864_v16 }
 0x76d   : > { %v1866_v5 = vpop.permute.xlu1 %1865 }
 0x76e   : > { %1948 = vst.msk [vmem:[%s11268_s17 + $0x70] sm:$0x1] %vm1933_vm7, %v1866_v5 }
 0x76f   : > { %v1868_v24 = vpop.permute.xlu0 %1867 }
 0x770   : > { %1949 = vst.msk [vmem:[%s11268_s17 + $0x78] sm:$0x1] %vm1933_vm7, %v1868_v24  ;;  %v2575_v24 = vrot.slane %v2560_v57, %v12797_v34 }
 0x771   : > { %v1870_v61 = vpop.permute.xlu1 %1869 }
 0x772   : > { %1950 = vst.msk [vmem:[%s11268_s17 + $0x80] sm:$0x1] %vm1933_vm7, %v1870_v61  ;;  %v2591_v38 = vrot.slane %v2575_v24, %v12797_v34 }
 0x773   : > { %v1872_v54 = vpop.permute.xlu0 %1871 }
 0x774   : > { %1951 = vst.msk [vmem:[%s11268_s17 + $0x88] sm:$0x1] %vm1933_vm7, %v1872_v54 }
 0x775   : > { %v1874_v0 = vpop.permute.xlu1 %1873 }
 0x776   : > { %1952 = vst.msk [vmem:[%s11268_s17 + $0x90] sm:$0x1] %vm1933_vm7, %v1874_v0 }
 0x777   : > { %v1876_v14 = vpop.permute.xlu0 %1875 }
 0x778   : > { %1953 = vst.msk [vmem:[%s11268_s17 + $0x98] sm:$0x1] %vm1933_vm7, %v1876_v14 }
 0x779   : > { %v1878_v4 = vpop.permute.xlu1 %1877 }
 0x77a   : > { %1954 = vst.msk [vmem:[%s11268_s17 + $0xa0] sm:$0x1] %vm1933_vm7, %v1878_v4 }
 0x77b   : > { %v1880_v62 = vpop.permute.xlu0 %1879 }
 0x77c   : > { %1955 = vst.msk [vmem:[%s11268_s17 + $0xa8] sm:$0x1] %vm1933_vm7, %v1880_v62 }
 0x77d   : > { %v1886_v37 = vpop.permute.xlu1 %1885 }
 0x77e   : > { %1958 = vst.msk [vmem:[%s11268_s17 + $0xc0] sm:$0x1] %vm1933_vm7, %v1886_v37 }
 0x77f   : > { %v1888_v36 = vpop.permute.xlu0 %1887 }
 0x780   : > { %1959 = vst.msk [vmem:[%s11268_s17 + $0xc8] sm:$0x1] %vm1933_vm7, %v1888_v36  ;;  %v1973_v36 = vunpack.c.h.bf16 %v11017_v43 }
 0x781   : > { %v13007_v60 = vpop.permute.xlu1 %3602 }
 0x782   : > { %v2179_v21 = vadd.f32 %v12896_v35, %v1973_v36 }
 0x783   : > { %v13009_v53 = vpop.permute.xlu0 %3604 }
 0x785   : > { %v1882_v15 = vpop.permute.xlu1 %1881 }
 0x786   : > { %1956 = vst.msk [vmem:[%s11268_s17 + $0xb0] sm:$0x1] %vm1933_vm7, %v1882_v15  ;;  %v2583_v15 = vcombine.high %v2575_v24, %v2575_v24 }
 0x787   : > { %v1884_v56 = vpop.permute.xlu0 %1883 }
 0x788   : > { %1957 = vst.msk [vmem:[%s11268_s17 + $0xb8] sm:$0x1] %vm1933_vm7, %v1884_v56  ;;  %v2605_v26 = vrot.slane %v2583_v15, %v12797_v34 }
 0x789   : > { %v1890_v11 = vpop.permute.xlu1 %1889 }
 0x78a   : > { %1960 = vst.msk [vmem:[%s11268_s17 + $0xd0] sm:$0x1] %vm1933_vm7, %v1890_v11 }
 0x78b   : > { %v1892_v25 = vpop.permute.xlu0 %1891 }
 0x78c   : > { %1961 = vst.msk [vmem:[%s11268_s17 + $0xd8] sm:$0x1] %vm1933_vm7, %v1892_v25 }
 0x78d   : > { %v1894_v18 = vpop.permute.xlu1 %1893 }
 0x78e   : > { %1962 = vst.msk [vmem:[%s11268_s17 + $0xe0] sm:$0x1] %vm1933_vm7, %v1894_v18 }
 0x78f   : > { %v1896_v28 = vpop.permute.xlu0 %1895 }
 0x790   : > { %1963 = vst.msk [vmem:[%s11268_s17 + $0xe8] sm:$0x1] %vm1933_vm7, %v1896_v28 }
 0x791   : > { %v1898_v59 = vpop.permute.xlu1 %1897 }
 0x792   : > { %1964 = vst.msk [vmem:[%s11268_s17 + $0xf0] sm:$0x1] %vm1933_vm7, %v1898_v59  ;;  %v2568_v59 = vcombine.high %v2560_v57, %v2560_v57  ;;  %v2767_v57 = vrot.slane %v2591_v38, %v12807_v32 }
 0x793   : > { %v1900_v2 = vpop.permute.xlu0 %1899 }
 0x794   : > { %1965 = vst.msk [vmem:[%s11268_s17 + $0xf8] sm:$0x1] %vm1933_vm7, %v1900_v2 }
 0x7a3   : > { %v10255_v16 = vpop.f32.mrb[60].mxu1 }
 0x7a4   : > { %v10256_v5 = vpop.f32.mrb[61].mxu1 }
 0x7a5   : > { %v10257_v61 = vadd.f32 %v10256_v5, %v10255_v16  ;;  %v10258_v54 = vpop.f32.mrb[62].mxu1 }
 0x7a6   : > { %v10259_v0 = vpop.f32.mrb[63].mxu1 }
 0x7a7   : > { %v10260_v14 = vadd.f32 %v10259_v0, %v10258_v54  ;;  %v10783_v4 = vpop.f32.mrb[60].mxu0  ;;  %v4411_v62 = vadd.f32 %v10257_v61, %v11926_v23  ;;  %v2387_v61 = vadd.f32 %v12921_v19, %v2179_v21  ;;  %v2582_v0 = vrot.slane %v2568_v59, %v12797_v34 }
 0x7a8   : > { %v4459_v37 = vpop.f32.mrb[61].mxu0  ;;  %v2613_v19 = vcombine.high %v2591_v38, %v2591_v38 }
 0x7a9   : > { %v4460_v56 = vadd.f32 %v4459_v37, %v4411_v62  ;;  %v10784_v52 = vpop.f32.mrb[62].mxu0  ;;  %v4414_v1 = vadd.f32 %v10260_v14, %v11945_v30  ;;  %v2561_v35 = vadd.f32 %v12936_v51, %v2387_v61  ;;  %v2771_v37 = vrot.slane %v2605_v26, %v12807_v32 }
 0x7aa   : > { %v4462_v11 = vpop.f32.mrb[63].mxu0  ;;  %v2615_v51 = vcombine.high %v2605_v26, %v2605_v26 }
 0x7ab   : > { %v4474_v25 = vmax.f32 %v4460_v56, 0.0  ;;  %v4463_v18 = vadd.f32 %v4462_v11, %v4414_v1  ;;  %v10261_v28 = vpop.f32.mrb[64].mxu1  ;;  %v2584_v56 = vcombine.high %v2582_v0, %v2582_v0  ;;  %v2624_v1 = vrot.slane %v2561_v35, %v12797_v34 }
 0x7ac   : > { %v10262_v2 = vpop.f32.mrb[65].mxu1 }
 0x7ad   : > { %v4475_v49 = vmax.f32 %v4463_v18, 0.0  ;;  %v10263_v16 = vadd.f32 %v10262_v2, %v10261_v28  ;;  %v10264_v43 = vpop.f32.mrb[66].mxu1  ;;  %4482 = vrot.lane.b32.xlu1 %v4474_v25, %s15500_s23  ;;  %v2775_v25 = vrot.slane %v2613_v19, %v12807_v32  ;;  %v11018_v18 = vld [vmem:[%s11749_s21 + $0xd8] sm:$0xff]  ;;  %v2632_v38 = vcombine.high %v2624_v1, %v2624_v1 }
 0x7ae   : > { %v10265_v5 = vpop.f32.mrb[67].mxu1  ;;  %v1974_v28 = vunpack.c.l.bf16 %v11018_v18  ;;  %v2612_v59 = vrot.slane %v2584_v56, %v12797_v34  ;;  %v2640_v2 = vrot.slane %v2624_v1, %v12797_v34 }
 0x7af   : > { %v4419_v54 = vadd.f32 %v10263_v16, %v11939_v27  ;;  %v10266_v24 = vadd.f32 %v10265_v5, %v10264_v43  ;;  %4484 = vrot.lane.b32.xlu0 %v4475_v49, %s15500_s23  ;;  %v2617_v49 = vcombine.high %v2561_v35, %v2561_v35  ;;  %v2654_v16 = vrot.slane %v2632_v38, %v12797_v34 }
 0x7b0   : > { %v2180_v26 = vadd.f32 %v12905_v39, %v1974_v28  ;;  %v2787_v43 = vrot.slane %v2612_v59, %v12807_v32  ;;  %v2799_v61 = vrot.slane %v2640_v2, %v12807_v32  ;;  %v2662_v35 = vcombine.high %v2640_v2, %v2640_v2 }
 0x7b1   : > { %v4468_v14 = vadd.f32 %v10783_v4, %v4419_v54  ;;  %v4422_v62 = vadd.f32 %v10266_v24, %v11953_v33  ;;  %2892 = vrot.lane.b32.xlu1 %v2767_v57, %s15508_s26  ;;  %v2598_v4 = vrot.slane %v2582_v0, %v12797_v34  ;;  %v2631_v24 = vrot.slane %v2617_v49, %v12797_v34 }
 0x7b2   : > { %v2388_v5 = vadd.f32 %v12928_v31, %v2180_v26  ;;  %v2803_v39 = vrot.slane %v2654_v16, %v12807_v32  ;;  %v2616_v0 = vcombine.high %v2612_v59, %v2612_v59  ;;  %v2664_v19 = vcombine.high %v2654_v16, %v2654_v16 }
 0x7b3   : > { %v4476_v36 = vmax.f32 %v4468_v14, 0.0  ;;  %v4471_v15 = vadd.f32 %v10784_v52, %v4422_v62  ;;  %2894 = vrot.lane.b32.xlu0 %v2771_v37, %s15508_s26  ;;  %v2779_v52 = vrot.slane %v2615_v51, %v12807_v32  ;;  %v2783_v21 = vrot.slane %v2598_v4, %v12807_v32 }
 0x7b4   : > { %v2614_v54 = vcombine.high %v2598_v4, %v2598_v4  ;;  %v2562_v57 = vadd.f32 %v12939_v40, %v2388_v5  ;;  %v2633_v31 = vcombine.high %v2631_v24, %v2631_v24  ;;  %v2795_v37 = vrot.slane %v2616_v0, %v12807_v32 }
 0x7b5   : > { %v4477_v11 = vmax.f32 %v4471_v15, 0.0  ;;  %4486 = vrot.lane.b32.xlu1 %v4476_v36, %s15500_s23  ;;  %v2647_v40 = vrot.slane %v2631_v24, %v12797_v34  ;;  %v2807_v36 = vrot.slane %v2662_v35, %v12807_v32  ;;  %v1975_v15 = vunpack.c.h.bf16 %v11018_v18 }
 0x7b6   : > { %v2791_v14 = vrot.slane %v2614_v54, %v12807_v32  ;;  %v2673_v62 = vrot.slane %v2562_v57, %v12797_v34  ;;  %v2811_v1 = vrot.slane %v2664_v19, %v12807_v32  ;;  %v2666_v28 = vcombine.high %v2562_v57, %v2562_v57 }
 0x7b7   : > { %4488 = vrot.lane.b32.xlu0 %v4477_v11, %s15500_s23  ;;  %v2661_v11 = vrot.slane %v2633_v31, %v12797_v34  ;;  %v2815_v4 = vrot.slane %v2647_v40, %v12807_v32  ;;  %v2663_v2 = vcombine.high %v2647_v40, %v2647_v40 }
 0x7b8   : > { %v2681_v56 = vcombine.high %v2673_v62, %v2673_v62  ;;  %v2689_v51 = vrot.slane %v2673_v62, %v12797_v34 }
 0x7b9   : > { %2896 = vrot.lane.b32.xlu1 %v2775_v25, %s15508_s26  ;;  %v2181_v25 = vadd.f32 %v12908_v13, %v1975_v15  ;;  %v2819_v18 = vrot.slane %v2661_v11, %v12807_v32  ;;  %v2665_v49 = vcombine.high %v2661_v11, %v2661_v11 }
 0x7ba   : > { %v2703_v38 = vrot.slane %v2681_v56, %v12797_v34  ;;  %v2831_v59 = vrot.slane %v2689_v51, %v12807_v32  ;;  %v2711_v16 = vcombine.high %v2689_v51, %v2689_v51 }
 0x7bb   : > { %2898 = vrot.lane.b32.xlu0 %v2779_v52, %s15508_s26  ;;  %v2389_v52 = vadd.f32 %v12930_v12, %v2181_v25 }
 0x7bc   : > { %v2835_v13 = vrot.slane %v2703_v38, %v12807_v32  ;;  %v2713_v54 = vcombine.high %v2703_v38, %v2703_v38  ;;  %v2839_v24 = vrot.slane %v2711_v16, %v12807_v32 }
 0x7bd   : > { %2900 = vrot.lane.b32.xlu1 %v2783_v21, %s15508_s26  ;;  %v2680_v21 = vrot.slane %v2666_v28, %v12797_v34  ;;  %v2563_v26 = vadd.f32 %v12941_v58, %v2389_v52 }
 0x7bf   : > { %2902 = vrot.lane.b32.xlu0 %v2787_v43, %s15508_s26  ;;  %v2823_v43 = vrot.slane %v2663_v2, %v12807_v32  ;;  %v2682_v12 = vcombine.high %v2680_v21, %v2680_v21  ;;  %v2722_v5 = vrot.slane %v2563_v26, %v12797_v34  ;;  %v2696_v58 = vrot.slane %v2680_v21, %v12797_v34 }
 0x7c0   : > { %v2715_v31 = vcombine.high %v2563_v26, %v2563_v26 }
 0x7c1   : > { %2908 = vrot.lane.b32.xlu1 %v2799_v61, %s15508_s26  ;;  %v2827_v61 = vrot.slane %v2665_v49, %v12807_v32  ;;  %v2730_v57 = vcombine.high %v2722_v5, %v2722_v5  ;;  %v2710_v0 = vrot.slane %v2682_v12, %v12797_v34  ;;  %v2738_v35 = vrot.slane %v2722_v5, %v12797_v34 }
 0x7c2   : > { %v2712_v40 = vcombine.high %v2696_v58, %v2696_v58 }
 0x7c3   : > { %2910 = vrot.lane.b32.xlu0 %v2803_v39, %s15508_s26  ;;  %v2843_v39 = vrot.slane %v2713_v54, %v12807_v32  ;;  %v2752_v62 = vrot.slane %v2730_v57, %v12797_v34  ;;  %v2863_v19 = vrot.slane %v2738_v35, %v12807_v32  ;;  %v2714_v56 = vcombine.high %v2710_v0, %v2710_v0 }
 0x7c4   : > { %v2855_v11 = vrot.slane %v2712_v40, %v12807_v32 }
 0x7c5   : > { %2904 = vrot.lane.b32.xlu1 %v2791_v14, %s15508_s26  ;;  %v2847_v14 = vrot.slane %v2696_v58, %v12807_v32  ;;  %v2867_v15 = vrot.slane %v2752_v62, %v12807_v32  ;;  %v2762_v25 = vcombine.high %v2752_v62, %v2752_v62  ;;  %v13143_v58 = vld [vmem:[%s11749_s21 + $0xf0] sm:$0xff] }
 0x7c7   : > { %2906 = vrot.lane.b32.xlu0 %v2795_v37, %s15508_s26  ;;  %v2851_v37 = vrot.slane %v2710_v0, %v12807_v32 }
 0x7c9   : > { %2912 = vrot.lane.b32.xlu1 %v2807_v36, %s15508_s26  ;;  %v2729_v36 = vrot.slane %v2715_v31, %v12797_v34 }
 0x7cb   : > { %2914 = vrot.lane.b32.xlu0 %v2811_v1, %s15508_s26  ;;  %v2760_v1 = vcombine.high %v2738_v35, %v2738_v35  ;;  %v2731_v51 = vcombine.high %v2729_v36, %v2729_v36  ;;  %v2745_v28 = vrot.slane %v2729_v36, %v12797_v34  ;;  %v13162_v35 = vld [vmem:[%s11749_s21 + $0x1b8] sm:$0xff] }
 0x7cd   : > { %2916 = vrot.lane.b32.xlu1 %v2815_v4, %s15508_s26  ;;  %v2859_v4 = vrot.slane %v2714_v56, %v12807_v32  ;;  %v2871_v38 = vrot.slane %v2760_v1, %v12807_v32  ;;  %v2759_v2 = vrot.slane %v2731_v51, %v12797_v34  ;;  %v2879_v21 = vrot.slane %v2745_v28, %v12807_v32 }
 0x7ce   : > { %v2761_v26 = vcombine.high %v2745_v28, %v2745_v28 }
 0x7cf   : > { %2918 = vrot.lane.b32.xlu0 %v2819_v18, %s15508_s26  ;;  %v11019_v18 = vld [vmem:[%s11749_s21 + $0xe0] sm:$0xff]  ;;  %v2883_v49 = vrot.slane %v2759_v2, %v12807_v32  ;;  %v2763_v16 = vcombine.high %v2759_v2, %v2759_v2 }
 0x7d0   : > { %v3026_v52 = vunpack.c.l.bf16 %v11019_v18  ;;  %v2887_v12 = vrot.slane %v2761_v26, %v12807_v32 }
 0x7d1   : > { %2924 = vrot.lane.b32.xlu1 %v2831_v59, %s15508_s26  ;;  %v2875_v59 = vrot.slane %v2762_v25, %v12807_v32 }
 0x7d3   : > { %2926 = vrot.lane.b32.xlu0 %v2835_v13, %s15508_s26  ;;  %v3232_v13 = vadd.f32 %v12943_v17, %v3026_v52  ;;  %v3027_v17 = vunpack.c.h.bf16 %v11019_v18 }
 0x7d5   : > { %2920 = vrot.lane.b32.xlu1 %v2823_v43, %s15508_s26  ;;  %v3440_v43 = vadd.f32 %v12951_v63, %v3232_v13  ;;  %v13148_v63 = vld [vmem:[%s11749_s21 + $0xf8] sm:$0xff] }
 0x7d7   : > { %2922 = vrot.lane.b32.xlu0 %v2827_v61, %s15508_s26  ;;  %v3614_v5 = vadd.f32 %v13007_v60, %v3440_v43  ;;  %v2891_v61 = vrot.slane %v2763_v16, %v12807_v32  ;;  %v3233_v60 = vadd.f32 %v12945_v41, %v3027_v17  ;;  %v3609_v17 = vpop.permute.xlu0 %3608 }
 0x7d9   : > { %2928 = vrot.lane.b32.xlu1 %v2839_v24, %s15508_s26  ;;  %v3629_v54 = vrot.slane %v3614_v5, %v12797_v34  ;;  %v3622_v24 = vcombine.high %v3614_v5, %v3614_v5  ;;  %v3441_v0 = vadd.f32 %v12953_v3, %v3233_v60 }
 0x7db   : > { %2930 = vrot.lane.b32.xlu0 %v2843_v39, %s15508_s26  ;;  %v3637_v57 = vcombine.high %v3629_v54, %v3629_v54  ;;  %v13156_v39 = vld [vmem:[%s11749_s21 + $0x1b0] sm:$0xff]  ;;  %v3615_v41 = vadd.f32 %v13009_v53, %v3441_v0  ;;  %v3645_v62 = vrot.slane %v3629_v54, %v12797_v34 }
 0x7dd   : > { %2932 = vrot.lane.b32.xlu1 %v2847_v14, %s15508_s26  ;;  %v3636_v14 = vrot.slane %v3622_v24, %v12797_v34  ;;  %v3659_v31 = vrot.slane %v3637_v57, %v12797_v34  ;;  %v3667_v36 = vcombine.high %v3645_v62, %v3645_v62  ;;  %v3821_v53 = vrot.slane %v3645_v62, %v12807_v32  ;;  %v13209_v62 = vpop.permute.xlu0 %4276 }
 0x7de   : > { %v3671_v28 = vcombine.high %v3615_v41, %v3615_v41 }
 0x7df   : > { %2934 = vrot.lane.b32.xlu0 %v2851_v37, %s15508_s26  ;;  %v3638_v3 = vcombine.high %v3636_v14, %v3636_v14  ;;  %v3678_v37 = vrot.slane %v3615_v41, %v12797_v34  ;;  %v3669_v40 = vcombine.high %v3659_v31, %v3659_v31  ;;  %v3829_v51 = vrot.slane %v3667_v36, %v12807_v32 }
 0x7e1   : > { %2940 = vrot.lane.b32.xlu1 %v2863_v19, %s15508_s26  ;;  %v3825_v19 = vrot.slane %v3659_v31, %v12807_v32  ;;  %v3833_v56 = vrot.slane %v3669_v40, %v12807_v32  ;;  %v3666_v1 = vrot.slane %v3638_v3, %v12797_v34  ;;  %v3694_v52 = vrot.slane %v3678_v37, %v12797_v34 }
 0x7e3   : > { %2942 = vrot.lane.b32.xlu0 %v2867_v15, %s15508_s26  ;;  %v3686_v15 = vcombine.high %v3678_v37, %v3678_v37  ;;  %v3841_v18 = vrot.slane %v3666_v1, %v12807_v32  ;;  %v3670_v13 = vcombine.high %v3666_v1, %v3666_v1  ;;  %v3853_v43 = vrot.slane %v3694_v52, %v12807_v32 }
 0x7e4   : > { %v3716_v60 = vcombine.high %v3694_v52, %v3694_v52 }
 0x7e5   : > { %2936 = vrot.lane.b32.xlu1 %v2855_v11, %s15508_s26  ;;  %v3652_v11 = vrot.slane %v3636_v14, %v12797_v34 }
 0x7e6   : > { %v3861_v3 = vrot.slane %v3716_v60, %v12807_v32 }
 0x7e7   : > { %2938 = vrot.lane.b32.xlu0 %v2859_v4, %s15508_s26  ;;  %v11022_v4 = vld [vmem:[%s11749_s21 + $0xe8] sm:$0xff] }
 0x7e8   : > { %v3028_v25 = vunpack.c.l.bf16 %v11022_v4  ;;  %v3029_v57 = vunpack.c.h.bf16 %v11022_v4 }
 0x7e9   : > { %2944 = vrot.lane.b32.xlu1 %v2871_v38, %s15508_s26  ;;  %v3708_v38 = vrot.slane %v3686_v15, %v12797_v34 }
 0x7ea   : > { %v3234_v2 = vadd.f32 %v12947_v42, %v3028_v25  ;;  %v3849_v42 = vrot.slane %v3670_v13, %v12807_v32  ;;  %v3235_v37 = vadd.f32 %v12949_v10, %v3029_v57  ;;  %v13223_v25 = vpop.permute.xlu0 %4280 }
 0x7eb   : > { %2946 = vrot.lane.b32.xlu0 %v2875_v59, %s15508_s26  ;;  %v3837_v59 = vrot.slane %v3652_v11, %v12807_v32  ;;  %v3857_v26 = vrot.slane %v3708_v38, %v12807_v32  ;;  %v3718_v54 = vcombine.high %v3708_v38, %v3708_v38 }
 0x7ec   : > { %v3442_v16 = vadd.f32 %v12955_v44, %v3234_v2  ;;  %v3443_v15 = vadd.f32 %v12957_v50, %v3235_v37 }
 0x7ed   : > { %2948 = vrot.lane.b32.xlu1 %v2879_v21, %s15508_s26  ;;  %v3685_v21 = vrot.slane %v3671_v28, %v12797_v34  ;;  %v3865_v14 = vrot.slane %v3718_v54, %v12807_v32 }
 0x7ee   : > { %v3617_v4 = vadd.f32 %v3609_v17, %v3443_v15 }
 0x7ef   : > { %2950 = vrot.lane.b32.xlu0 %v2883_v49, %s15508_s26  ;;  %v3607_v49 = vpop.permute.xlu1 %3606  ;;  %v3687_v5 = vcombine.high %v3685_v21, %v3685_v21  ;;  %v3701_v41 = vrot.slane %v3685_v21, %v12797_v34 }
 0x7f0   : > { %v3769_v60 = vcombine.high %v3617_v4, %v3617_v4 }
 0x7f1   : > { %2952 = vrot.lane.b32.xlu1 %v2887_v12, %s15508_s26  ;;  %v3668_v12 = vcombine.high %v3652_v11, %v3652_v11  ;;  %v3715_v31 = vrot.slane %v3687_v5, %v12797_v34  ;;  %v3869_v1 = vrot.slane %v3701_v41, %v12807_v32  ;;  %v3717_v11 = vcombine.high %v3701_v41, %v3701_v41 }
 0x7f3   : > { %2954 = vrot.lane.b32.xlu0 %v2891_v61, %s15508_s26  ;;  %v3616_v61 = vadd.f32 %v3607_v49, %v3442_v16  ;;  %v3845_v24 = vrot.slane %v3668_v12, %v12807_v32  ;;  %v13203_v0 = vpop.permute.xlu1 %4274  ;;  %v3873_v36 = vrot.slane %v3715_v31, %v12807_v32 }
 0x7f5   : > { %4524 = vrot.lane.b32.xlu1 %v13143_v58, %s15508_s26  ;;  %v3727_v44 = vrot.slane %v3616_v61, %v12797_v34 }
 0x7f7   : > { %4526 = vrot.lane.b32.xlu0 %v13148_v63, %s15508_s26  ;;  %v3735_v40 = vcombine.high %v3727_v44, %v3727_v44  ;;  %v3743_v50 = vrot.slane %v3727_v44, %v12797_v34 }
 0x7f9   : > { %4530 = vrot.lane.b32.xlu1 %v13143_v58, %s15492_s28  ;;  %v3757_v10 = vrot.slane %v3735_v40, %v12797_v34  ;;  %v3765_v13 = vcombine.high %v3743_v50, %v3743_v50  ;;  %v3885_v16 = vrot.slane %v3743_v50, %v12807_v32 }
 0x7fb   : > { %4532 = vrot.lane.b32.xlu0 %v13148_v63, %s15492_s28  ;;  %v3889_v21 = vrot.slane %v3757_v10, %v12807_v32  ;;  %v3893_v54 = vrot.slane %v3765_v13, %v12807_v32 }
 0x7fd   : > { %4538 = vrot.lane.b32.xlu1 %v13156_v39, %s15508_s26 }
 0x7ff   : > { %4540 = vrot.lane.b32.xlu0 %v13162_v35, %s15508_s26 }
 0x801   : > { %4544 = vrot.lane.b32.xlu1 %v13156_v39, %s15492_s28 }
 0x803   : > { %3948 = vrot.lane.b32.xlu0 %v3825_v19, %s15508_s26  ;;  %v3720_v19 = vcombine.high %v3616_v61, %v3616_v61 }
 0x805   : > { %3946 = vrot.lane.b32.xlu1 %v3821_v53, %s15508_s26  ;;  %v3719_v53 = vcombine.high %v3715_v31, %v3715_v31 }
 0x807   : > { %3952 = vrot.lane.b32.xlu0 %v3833_v56, %s15508_s26  ;;  %v13217_v56 = vpop.permute.xlu1 %4278  ;;  %v3881_v28 = vrot.slane %v3719_v53, %v12807_v32 }
 0x809   : > { %3950 = vrot.lane.b32.xlu1 %v3829_v51, %s15508_s26  ;;  %v3734_v51 = vrot.slane %v3720_v19, %v12797_v34 }
 0x80b   : > { %3956 = vrot.lane.b32.xlu0 %v3841_v18, %s15508_s26  ;;  %v3877_v18 = vrot.slane %v3717_v11, %v12807_v32  ;;  %v3736_v52 = vcombine.high %v3734_v51, %v3734_v51  ;;  %v3750_v17 = vrot.slane %v3734_v51, %v12797_v34 }
 0x80d   : > { %3954 = vrot.lane.b32.xlu1 %v3837_v59, %s15508_s26  ;;  %v3776_v59 = vrot.slane %v3617_v4, %v12797_v34  ;;  %v3764_v61 = vrot.slane %v3736_v52, %v12797_v34  ;;  %v3901_v41 = vrot.slane %v3750_v17, %v12807_v32  ;;  %v3766_v15 = vcombine.high %v3750_v17, %v3750_v17 }
 0x80f   : > { %3964 = vrot.lane.b32.xlu0 %v3857_v26, %s15508_s26  ;;  %v3767_v26 = vcombine.high %v3757_v10, %v3757_v10  ;;  %v3905_v44 = vrot.slane %v3764_v61, %v12807_v32  ;;  %v3768_v40 = vcombine.high %v3764_v61, %v3764_v61  ;;  %v3909_v50 = vrot.slane %v3766_v15, %v12807_v32 }
 0x811   : > { %3962 = vrot.lane.b32.xlu1 %v3853_v43, %s15508_s26  ;;  %v3784_v43 = vcombine.high %v3776_v59, %v3776_v59  ;;  %v3897_v5 = vrot.slane %v3767_v26, %v12807_v32  ;;  %v3913_v51 = vrot.slane %v3768_v40, %v12807_v32 }
 0x813   : > { %3960 = vrot.lane.b32.xlu0 %v3849_v42, %s15508_s26 }
 0x815   : > { %3958 = vrot.lane.b32.xlu1 %v3845_v24, %s15508_s26  ;;  %v3806_v24 = vrot.slane %v3784_v43, %v12797_v34 }
 0x817   : > { %3968 = vrot.lane.b32.xlu0 %v3865_v14, %s15508_s26  ;;  %v3792_v14 = vrot.slane %v3776_v59, %v12797_v34  ;;  %v3921_v19 = vrot.slane %v3806_v24, %v12807_v32  ;;  %v3816_v10 = vcombine.high %v3806_v24, %v3806_v24 }
 0x819   : > { %3966 = vrot.lane.b32.xlu1 %v3861_v3, %s15508_s26  ;;  %v3783_v3 = vrot.slane %v3769_v60, %v12797_v34  ;;  %v3917_v53 = vrot.slane %v3792_v14, %v12807_v32  ;;  %v3814_v4 = vcombine.high %v3792_v14, %v3792_v14  ;;  %v3929_v52 = vrot.slane %v3816_v10, %v12807_v32 }
 0x81b   : > { %3972 = vrot.lane.b32.xlu0 %v3873_v36, %s15508_s26  ;;  %v3925_v13 = vrot.slane %v3814_v4, %v12807_v32 }
 0x81d   : > { %3970 = vrot.lane.b32.xlu1 %v3869_v1, %s15508_s26  ;;  %v3785_v1 = vcombine.high %v3783_v3, %v3783_v3 }
 0x81f   : > { %3976 = vrot.lane.b32.xlu0 %v3881_v28, %s15508_s26  ;;  %v13229_v38 = vpop.permute.xlu1 %4482  ;;  %v3813_v59 = vrot.slane %v3785_v1, %v12797_v34 }
 0x821   : > { %v13233_v2 = vpop.permute.xlu0 %4484  ;;  %3974 = vrot.lane.b32.xlu1 %v3877_v18, %s15508_s26  ;;  %v3817_v43 = vcombine.high %v3813_v59, %v3813_v59 }
 0x823   : > { %3980 = vrot.lane.b32.xlu0 %v3889_v21, %s15508_s26  ;;  %v2893_v49 = vpop.permute.xlu1 %2892  ;;  %v3799_v21 = vrot.slane %v3783_v3, %v12797_v34 }
 0x824   : > { %2988 = vst.msk [vmem:[%s11268_s17 + $0x1] sm:$0x1] %vm1933_vm7, %v2893_v49 }
 0x825   : > { %v2895_v12 = vpop.permute.xlu0 %2894  ;;  %3978 = vrot.lane.b32.xlu1 %v3885_v16, %s15508_s26  ;;  %v3937_v16 = vrot.slane %v3813_v59, %v12807_v32  ;;  %v3815_v61 = vcombine.high %v3799_v21, %v3799_v21 }
 0x826   : > { %2989 = vst.msk [vmem:[%s11268_s17 + $0x9] sm:$0x1] %vm1933_vm7, %v2895_v12 }
 0x827   : > { %3984 = vrot.lane.b32.xlu0 %v3897_v5, %s15508_s26  ;;  %v13248_v42 = vpop.permute.xlu1 %4486  ;;  %v3933_v5 = vrot.slane %v3799_v21, %v12807_v32  ;;  %v3941_v24 = vrot.slane %v3815_v61, %v12807_v32  ;;  %v11023_v21 = vld [vmem:[%s11749_s21 + $0x30] sm:$0xff] }
 0x829   : > { %v13252_v57 = vpop.permute.xlu0 %4488  ;;  %3982 = vrot.lane.b32.xlu1 %v3893_v54, %s15508_s26  ;;  %v3945_v54 = vrot.slane %v3817_v43, %v12807_v32 }
 0x82b   : > { %3988 = vrot.lane.b32.xlu0 %v3905_v44, %s15508_s26  ;;  %v2897_v31 = vpop.permute.xlu1 %2896 }
 0x82c   : > { %2990 = vst.msk [vmem:[%s11268_s17 + $0x11] sm:$0x1] %vm1933_vm7, %v2897_v31 }
 0x82d   : > { %v2899_v37 = vpop.permute.xlu0 %2898  ;;  %3986 = vrot.lane.b32.xlu1 %v3901_v41, %s15508_s26 }
 0x82e   : > { %2991 = vst.msk [vmem:[%s11268_s17 + $0x19] sm:$0x1] %vm1933_vm7, %v2899_v37 }
 0x82f   : > { %3996 = vrot.lane.b32.xlu0 %v3921_v19, %s15508_s26  ;;  %v2901_v36 = vpop.permute.xlu1 %2900 }
 0x830   : > { %2992 = vst.msk [vmem:[%s11268_s17 + $0x21] sm:$0x1] %vm1933_vm7, %v2901_v36 }
 0x831   : > { %v2903_v11 = vpop.permute.xlu0 %2902  ;;  %3994 = vrot.lane.b32.xlu1 %v3917_v53, %s15508_s26 }
 0x832   : > { %2993 = vst.msk [vmem:[%s11268_s17 + $0x29] sm:$0x1] %vm1933_vm7, %v2903_v11 }
 0x833   : > { %3992 = vrot.lane.b32.xlu0 %v3913_v51, %s15508_s26  ;;  %v2909_v28 = vpop.permute.xlu1 %2908 }
 0x834   : > { %2996 = vst.msk [vmem:[%s11268_s17 + $0x41] sm:$0x1] %vm1933_vm7, %v2909_v28 }
 0x835   : > { %v2911_v18 = vpop.permute.xlu0 %2910  ;;  %3990 = vrot.lane.b32.xlu1 %v3909_v50, %s15508_s26 }
 0x836   : > { %2997 = vst.msk [vmem:[%s11268_s17 + $0x49] sm:$0x1] %vm1933_vm7, %v2911_v18 }
 0x837   : > { %4000 = vrot.lane.b32.xlu0 %v3929_v52, %s15508_s26  ;;  %v2905_v26 = vpop.permute.xlu1 %2904 }
 0x838   : > { %2994 = vst.msk [vmem:[%s11268_s17 + $0x31] sm:$0x1] %vm1933_vm7, %v2905_v26 }
 0x839   : > { %v2907_v49 = vpop.permute.xlu0 %2906  ;;  %3998 = vrot.lane.b32.xlu1 %v3925_v13, %s15508_s26 }
 0x83a   : > { %2995 = vst.msk [vmem:[%s11268_s17 + $0x39] sm:$0x1] %vm1933_vm7, %v2907_v49  ;;  %v11024_v49 = vld [vmem:[%s11749_s21 + $0x38] sm:$0xff] }
 0x83b   : > { %4004 = vrot.lane.b32.xlu0 %v3937_v16, %s15508_s26  ;;  %v2913_v12 = vpop.permute.xlu1 %2912 }
 0x83c   : > { %2998 = vst.msk [vmem:[%s11268_s17 + $0x51] sm:$0x1] %vm1933_vm7, %v2913_v12 }
 0x83d   : > { %v2915_v17 = vpop.permute.xlu0 %2914  ;;  %4002 = vrot.lane.b32.xlu1 %v3933_v5, %s15508_s26 }
 0x83e   : > { %2999 = vst.msk [vmem:[%s11268_s17 + $0x59] sm:$0x1] %vm1933_vm7, %v2915_v17 }
 0x83f   : > { %4008 = vrot.lane.b32.xlu0 %v3945_v54, %s15508_s26  ;;  %v2917_v60 = vpop.permute.xlu1 %2916 }
 0x840   : > { %3000 = vst.msk [vmem:[%s11268_s17 + $0x61] sm:$0x1] %vm1933_vm7, %v2917_v60  ;;  %v11025_v60 = vld [vmem:[%s15480_s7] ss:$12 sps:$4 sm:$0xff]  }
 0x841   : > { %v2919_v44 = vpop.permute.xlu0 %2918  ;;  %4006 = vrot.lane.b32.xlu1 %v3941_v24, %s15508_s26 }
 0x842   : > { %3001 = vst.msk [vmem:[%s11268_s17 + $0x69] sm:$0x1] %vm1933_vm7, %v2919_v44  ;;  %v11026_v44 = vld [vmem:[%s15480_s7 + $0x1c] ss:$12 sps:$4 sm:$0xff]  }
 0x843   : > { %4546 = vrot.lane.b32.xlu0 %v13162_v35, %s15492_s28  ;;  %v2925_v14 = vpop.permute.xlu1 %2924 }
 0x844   : > { %3004 = vst.msk [vmem:[%s11268_s17 + $0x81] sm:$0x1] %vm1933_vm7, %v2925_v14 }
 0x845   : > { %v2927_v31 = vpop.permute.xlu0 %2926 }
 0x846   : > { %3005 = vst.msk [vmem:[%s11268_s17 + $0x89] sm:$0x1] %vm1933_vm7, %v2927_v31 }
 0x847   : > { %v2921_v41 = vpop.permute.xlu1 %2920 }
 0x848   : > { %3002 = vst.msk [vmem:[%s11268_s17 + $0x71] sm:$0x1] %vm1933_vm7, %v2921_v41 }
 0x849   : > { %v2923_v3 = vpop.permute.xlu0 %2922 }
 0x84a   : > { %3003 = vst.msk [vmem:[%s11268_s17 + $0x79] sm:$0x1] %vm1933_vm7, %v2923_v3  ;;  %v11027_v3 = vld [vmem:[%s15480_s7 + $0x18] ss:$12 sps:$4 sm:$0xff]  }
 0x84b   : > { %v2929_v37 = vpop.permute.xlu1 %2928 }
 0x84c   : > { %3006 = vst.msk [vmem:[%s11268_s17 + $0x91] sm:$0x1] %vm1933_vm7, %v2929_v37 }
 0x84d   : > { %v2931_v19 = vpop.permute.xlu0 %2930 }
 0x84e   : > { %3007 = vst.msk [vmem:[%s11268_s17 + $0x99] sm:$0x1] %vm1933_vm7, %v2931_v19  ;;  %v11028_v19 = vld [vmem:[%s15476_s3 + $0x4] ss:$12 sps:$4 sm:$0xff]  }
 0x84f   : > { %v2933_v40 = vpop.permute.xlu1 %2932 }
 0x850   : > { %3008 = vst.msk [vmem:[%s11268_s17 + $0xa1] sm:$0x1] %vm1933_vm7, %v2933_v40 }
 0x851   : > { %v2935_v36 = vpop.permute.xlu0 %2934 }
 0x852   : > { %3009 = vst.msk [vmem:[%s11268_s17 + $0xa9] sm:$0x1] %vm1933_vm7, %v2935_v36 }
 0x853   : > { %v2941_v53 = vpop.permute.xlu1 %2940 }
 0x854   : > { %3012 = vst.msk [vmem:[%s11268_s17 + $0xc1] sm:$0x1] %vm1933_vm7, %v2941_v53 }
 0x855   : > { %v2943_v15 = vpop.permute.xlu0 %2942 }
 0x856   : > { %3013 = vst.msk [vmem:[%s11268_s17 + $0xc9] sm:$0x1] %vm1933_vm7, %v2943_v15 }
 0x857   : > { %v2937_v1 = vpop.permute.xlu1 %2936 }
 0x858   : > { %3010 = vst.msk [vmem:[%s11268_s17 + $0xb1] sm:$0x1] %vm1933_vm7, %v2937_v1 }
 0x859   : > { %v2939_v11 = vpop.permute.xlu0 %2938 }
 0x85a   : > { %3011 = vst.msk [vmem:[%s11268_s17 + $0xb9] sm:$0x1] %vm1933_vm7, %v2939_v11 }
 0x85b   : > { %v2945_v51 = vpop.permute.xlu1 %2944 }
 0x85c   : > { %3014 = vst.msk [vmem:[%s11268_s17 + $0xd1] sm:$0x1] %vm1933_vm7, %v2945_v51 }
 0x85d   : > { %v2947_v10 = vpop.permute.xlu0 %2946 }
 0x85e   : > { %3015 = vst.msk [vmem:[%s11268_s17 + $0xd9] sm:$0x1] %vm1933_vm7, %v2947_v10 }
 0x85f   : > { %v2949_v4 = vpop.permute.xlu1 %2948 }
 0x860   : > { %3016 = vst.msk [vmem:[%s11268_s17 + $0xe1] sm:$0x1] %vm1933_vm7, %v2949_v4 }
 0x861   : > { %v2951_v28 = vpop.permute.xlu0 %2950 }
 0x862   : > { %3017 = vst.msk [vmem:[%s11268_s17 + $0xe9] sm:$0x1] %vm1933_vm7, %v2951_v28 }
 0x863   : > { %v2953_v50 = vpop.permute.xlu1 %2952 }
 0x864   : > { %3018 = vst.msk [vmem:[%s11268_s17 + $0xf1] sm:$0x1] %vm1933_vm7, %v2953_v50 }
 0x865   : > { %v2955_v18 = vpop.permute.xlu0 %2954 }
 0x866   : > { %3019 = vst.msk [vmem:[%s11268_s17 + $0xf9] sm:$0x1] %vm1933_vm7, %v2955_v18 }
 0x867   : > { %v4525_v52 = vpop.permute.xlu1 %4524 }
 0x868   : > { %10271 = vmatprep.subr.bf16.mxu0 %v4525_v52 }
 0x869   : > { %v4527_v59 = vpop.permute.xlu0 %4526  ;;  %10272 = vmatpush3.bf16.msra.mxu0 %v11023_v21 }
 0x86a   : > { %10273 = vmatprep.subr.bf16.mxu0 %v4527_v59 }
 0x86b   : > { %v4531_v26 = vpop.permute.xlu1 %4530 }
 0x86d   : > { %v4533_v13 = vpop.permute.xlu0 %4532  ;;  %10274 = vmatpush3.bf16.msra.mxu0 %v11024_v49 }
 0x86e   : > { %10275 = vmatprep.subr.bf16.mxu0 %v4531_v26 }
 0x86f   : > { %v4539_v16 = vpop.permute.xlu1 %4538 }
 0x871   : > { %v4541_v43 = vpop.permute.xlu0 %4540  ;;  %10276 = vmatpush3.bf16.msra.mxu0 %v12786_v45 }
 0x872   : > { %10277 = vmatprep.subr.bf16.mxu0 %v4533_v13 }
 0x873   : > { %v4545_v12 = vpop.permute.xlu1 %4544 }
 0x874   : > { %10785 = vmatprep.subr.bf16.mxu1 %v4545_v12 }
 0x875   : > { %v3949_v5 = vpop.permute.xlu0 %3948  ;;  %10278 = vmatpush3.bf16.msra.mxu0 %v12793_v29  ;;  %10786 = vmatpush3.bf16.msra.mxu1 %v4545_v12 }
 0x876   : > { %4043 = vst.msk [vmem:[%s11268_s17 + $0xa] sm:$0x1] %vm1933_vm7, %v3949_v5  ;;  %10279 = vmatprep.subr.bf16.mxu0 %v13156_v39 }
 0x877   : > { %v3947_v61 = vpop.permute.xlu1 %3946 }
 0x878   : > { %4042 = vst.msk [vmem:[%s11268_s17 + $0x2] sm:$0x1] %vm1933_vm7, %v3947_v61 }
 0x879   : > { %v3953_v17 = vpop.permute.xlu0 %3952  ;;  %10280 = vmatpush3.bf16.msra.mxu0 %v12791_v22 }
 0x87a   : > { %4045 = vst.msk [vmem:[%s11268_s17 + $0x1a] sm:$0x1] %vm1933_vm7, %v3953_v17  ;;  %10281 = vmatprep.subr.bf16.mxu0 %v13162_v35 }
 0x87b   : > { %v3951_v45 = vpop.permute.xlu1 %3950 }
 0x87c   : > { %4044 = vst.msk [vmem:[%s11268_s17 + $0x12] sm:$0x1] %vm1933_vm7, %v3951_v45 }
 0x87d   : > { %v3957_v29 = vpop.permute.xlu0 %3956  ;;  %10282 = vmatpush3.bf16.msra.mxu0 %v12800_v55 }
 0x87e   : > { %4047 = vst.msk [vmem:[%s11268_s17 + $0x2a] sm:$0x1] %vm1933_vm7, %v3957_v29  ;;  %10283 = vmatprep.subr.bf16.mxu0 %v4539_v16  ;;  %v13434_v16 = vld [vmem:[%s15480_s7 + $0x20] ss:$12 sps:$4 sm:$0xff]  }
 0x87f   : > { %v3955_v39 = vpop.permute.xlu1 %3954 }
 0x880   : > { %4046 = vst.msk [vmem:[%s11268_s17 + $0x22] sm:$0x1] %vm1933_vm7, %v3955_v39 }
 0x881   : > { %v3965_v22 = vpop.permute.xlu0 %3964  ;;  %10284 = vmatpush3.bf16.msra.mxu0 %v13143_v58 }
 0x882   : > { %4051 = vst.msk [vmem:[%s11268_s17 + $0x4a] sm:$0x1] %vm1933_vm7, %v3965_v22  ;;  %10285 = vmatprep.subr.bf16.mxu0 %v4541_v43  ;;  %v11030_v43 = vld [vmem:[%s15476_s3 + $0x8] ss:$12 sps:$4 sm:$0xff]  }
 0x883   : > { %v3963_v35 = vpop.permute.xlu1 %3962 }
 0x884   : > { %4050 = vst.msk [vmem:[%s11268_s17 + $0x42] sm:$0x1] %vm1933_vm7, %v3963_v35 }
 0x885   : > { %v3961_v54 = vpop.permute.xlu0 %3960  ;;  %10286 = vmatpush3.bf16.msra.mxu0 %v13148_v63 }
 0x886   : > { %4049 = vst.msk [vmem:[%s11268_s17 + $0x3a] sm:$0x1] %vm1933_vm7, %v3961_v54 }
 0x887   : > { %v3959_v55 = vpop.permute.xlu1 %3958 }
 0x888   : > { %4048 = vst.msk [vmem:[%s11268_s17 + $0x32] sm:$0x1] %vm1933_vm7, %v3959_v55  ;;  %4583 = vmatmul.mubr.bf16.vlgmr.msra.gmra.mrb[64].mxu0 %v11025_v60 }
 0x889   : > { %v3969_v24 = vpop.permute.xlu0 %3968  ;;  %4590 = vmatprep.mubr.bf16.mxu0 %v11026_v44 }
 0x88a   : > { %4053 = vst.msk [vmem:[%s11268_s17 + $0x5a] sm:$0x1] %vm1933_vm7, %v3969_v24 }
 0x88b   : > { %v3967_v14 = vpop.permute.xlu1 %3966 }
 0x88c   : > { %4052 = vst.msk [vmem:[%s11268_s17 + $0x52] sm:$0x1] %vm1933_vm7, %v3967_v14 }
 0x88d   : > { %v3973_v31 = vpop.permute.xlu0 %3972 }
 0x88e   : > { %4055 = vst.msk [vmem:[%s11268_s17 + $0x6a] sm:$0x1] %vm1933_vm7, %v3973_v31 }
 0x88f   : > { %v3971_v41 = vpop.permute.xlu1 %3970 }
 0x890   : > { %4054 = vst.msk [vmem:[%s11268_s17 + $0x62] sm:$0x1] %vm1933_vm7, %v3971_v41  ;;  %4591 = vmatmul.mubr.bf16.gmra.mrb[68].mxu0 %v11027_v3 }
 0x891   : > { %v3977_v37 = vpop.permute.xlu0 %3976  ;;  %5242 = vmatprep.mubr.bf16.mxu0 %v11028_v19 }
 0x892   : > { %4057 = vst.msk [vmem:[%s11268_s17 + $0x7a] sm:$0x1] %vm1933_vm7, %v3977_v37 }
 0x893   : > { %v3975_v40 = vpop.permute.xlu1 %3974 }
 0x894   : > { %4056 = vst.msk [vmem:[%s11268_s17 + $0x72] sm:$0x1] %vm1933_vm7, %v3975_v40 }
 0x895   : > { %v3981_v36 = vpop.permute.xlu0 %3980 }
 0x896   : > { %4059 = vst.msk [vmem:[%s11268_s17 + $0x8a] sm:$0x1] %vm1933_vm7, %v3981_v36 }
 0x897   : > { %v3979_v53 = vpop.permute.xlu1 %3978 }
 0x898   : > { %4058 = vst.msk [vmem:[%s11268_s17 + $0x82] sm:$0x1] %vm1933_vm7, %v3979_v53 }
 0x899   : > { %v3985_v15 = vpop.permute.xlu0 %3984 }
 0x89a   : > { %4061 = vst.msk [vmem:[%s11268_s17 + $0x9a] sm:$0x1] %vm1933_vm7, %v3985_v15 }
 0x89b   : > { %v3983_v1 = vpop.permute.xlu1 %3982 }
 0x89c   : > { %4060 = vst.msk [vmem:[%s11268_s17 + $0x92] sm:$0x1] %vm1933_vm7, %v3983_v1 }
 0x89d   : > { %v3989_v11 = vpop.permute.xlu0 %3988 }
 0x89e   : > { %4063 = vst.msk [vmem:[%s11268_s17 + $0xaa] sm:$0x1] %vm1933_vm7, %v3989_v11 }
 0x89f   : > { %v3987_v51 = vpop.permute.xlu1 %3986 }
 0x8a0   : > { %4062 = vst.msk [vmem:[%s11268_s17 + $0xa2] sm:$0x1] %vm1933_vm7, %v3987_v51 }
 0x8a1   : > { %v3997_v10 = vpop.permute.xlu0 %3996 }
 0x8a2   : > { %4067 = vst.msk [vmem:[%s11268_s17 + $0xca] sm:$0x1] %vm1933_vm7, %v3997_v10 }
 0x8a3   : > { %v3995_v4 = vpop.permute.xlu1 %3994 }
 0x8a4   : > { %4066 = vst.msk [vmem:[%s11268_s17 + $0xc2] sm:$0x1] %vm1933_vm7, %v3995_v4  ;;  %v4080_v4 = vunpack.c.l.bf16 %v13143_v58 }
 0x8a5   : > { %v3993_v28 = vpop.permute.xlu0 %3992 }
 0x8a6   : > { %4065 = vst.msk [vmem:[%s11268_s17 + $0xba] sm:$0x1] %vm1933_vm7, %v3993_v28  ;;  %v4286_v28 = vadd.f32 %v13203_v0, %v4080_v4 }
 0x8a7   : > { %v3991_v50 = vpop.permute.xlu1 %3990 }
 0x8a8   : > { %4064 = vst.msk [vmem:[%s11268_s17 + $0xb2] sm:$0x1] %vm1933_vm7, %v3991_v50  ;;  %v4081_v50 = vunpack.c.h.bf16 %v13143_v58 }
 0x8a9   : > { %v4001_v18 = vpop.permute.xlu0 %4000 }
 0x8aa   : > { %4069 = vst.msk [vmem:[%s11268_s17 + $0xda] sm:$0x1] %vm1933_vm7, %v4001_v18  ;;  %v4494_v18 = vadd.f32 %v13229_v38, %v4286_v28 }
 0x8ab   : > { %v3999_v52 = vpop.permute.xlu1 %3998 }
 0x8ac   : > { %4068 = vst.msk [vmem:[%s11268_s17 + $0xd2] sm:$0x1] %vm1933_vm7, %v3999_v52 }
 0x8ad   : > { %v4005_v59 = vpop.permute.xlu0 %4004 }
 0x8ae   : > { %4071 = vst.msk [vmem:[%s11268_s17 + $0xea] sm:$0x1] %vm1933_vm7, %v4005_v59 }
 0x8af   : > { %v4003_v21 = vpop.permute.xlu1 %4002 }
 0x8b0   : > { %4070 = vst.msk [vmem:[%s11268_s17 + $0xe2] sm:$0x1] %vm1933_vm7, %v4003_v21  ;;  %v4287_v21 = vadd.f32 %v13209_v62, %v4081_v50 }
 0x8b1   : > { %v4009_v26 = vpop.permute.xlu0 %4008 }
 0x8b2   : > { %4073 = vst.msk [vmem:[%s11268_s17 + $0xfa] sm:$0x1] %vm1933_vm7, %v4009_v26 }
 0x8b3   : > { %v4007_v13 = vpop.permute.xlu1 %4006 }
 0x8b4   : > { %4072 = vst.msk [vmem:[%s11268_s17 + $0xf2] sm:$0x1] %vm1933_vm7, %v4007_v13 }
 0x8b5   : > { %v4547_v49 = vpop.permute.xlu0 %4546 }
 0x8b6   : > { %10787 = vmatprep.subr.bf16.mxu1 %v4547_v49 }
 0x8b7   : > { %10788 = vmatpush3.bf16.msra.mxu1 %v4547_v49 }
 0x8ba   : > { %10790 = vmatmul.mubr.msk.bf16.vlgmr.msra.gmra.mrb[68].mxu1 %vm887_vm6, %v13434_v16 }
 0x8bb   : > { %10797 = vmatprep.mubr.msk.bf16.mxu1 %vm887_vm6, %v11030_v43  ;;  %v4495_v43 = vadd.f32 %v13233_v2, %v4287_v21  ;;  %v4083_v21 = vunpack.c.h.bf16 %v13148_v63 }
 0x95b   : > { %v10287_v12 = vpop.f32.mrb[64].mxu0 }
 0x95c   : > { %v10288_v5 = vpop.f32.mrb[65].mxu0 }
 0x95d   : > { %v10289_v61 = vadd.f32 %v10288_v5, %v10287_v12  ;;  %v10290_v17 = vpop.f32.mrb[66].mxu0 }
 0x95e   : > { %v10291_v45 = vpop.f32.mrb[67].mxu0 }
 0x95f   : > { %v10292_v29 = vadd.f32 %v10291_v45, %v10290_v17  ;;  %v4585_v14 = vadd.f32 %v10289_v61, %v12084_v20 }
 0x961   : > { %v4588_v40 = vadd.f32 %v10292_v29, %v12089_v47 }
 0x963   : > { %v10293_v39 = vpop.f32.mrb[68].mxu0 }
 0x964   : > { %v10294_v22 = vpop.f32.mrb[69].mxu0 }
 0x965   : > { %v10295_v35 = vadd.f32 %v10294_v22, %v10293_v39  ;;  %v10296_v54 = vpop.f32.mrb[70].mxu0 }
 0x966   : > { %v10297_v55 = vpop.f32.mrb[71].mxu0 }
 0x967   : > { %v10298_v60 = vadd.f32 %v10297_v55, %v10296_v54  ;;  %v4593_v24 = vadd.f32 %v10295_v35, %v12087_v46 }
 0x969   : > { %v4596_v3 = vadd.f32 %v10298_v60, %v12091_v48 }
 0x98d   : > { %v10791_v44 = vpop.f32.mrb[68].mxu1 }
 0x98e   : > { %v4642_v31 = vadd.f32 %v10791_v44, %v4593_v24  ;;  %v4633_v41 = vpop.f32.mrb[69].mxu1  ;;  %v4082_v44 = vunpack.c.l.bf16 %v13148_v63 }
 0x98f   : > { %v4634_v37 = vadd.f32 %v4633_v41, %v4585_v14  ;;  %v10792_v19 = vpop.f32.mrb[70].mxu1 }
 0x990   : > { %v4645_v36 = vadd.f32 %v10792_v19, %v4596_v3  ;;  %v4636_v53 = vpop.f32.mrb[71].mxu1  ;;  %v4650_v51 = vmax.f32 %v4642_v31, 0.0  ;;  %v4288_v19 = vadd.f32 %v13217_v56, %v4082_v44 }
 0x991   : > { %v4648_v15 = vmax.f32 %v4634_v37, 0.0  ;;  %v4637_v1 = vadd.f32 %v4636_v53, %v4588_v40 }
 0x992   : > { %v4651_v10 = vmax.f32 %v4645_v36, 0.0 }
 0x993   : > { %v4649_v11 = vmax.f32 %v4637_v1, 0.0  ;;  %4656 = vrot.lane.b32.xlu1 %v4648_v15, %s15500_s23  ;;  %v4496_v1 = vadd.f32 %v13248_v42, %v4288_v19 }
 0x995   : > { %4658 = vrot.lane.b32.xlu0 %v4649_v11, %s15500_s23 }
 0x997   : > { %4660 = vrot.lane.b32.xlu1 %v4650_v51, %s15500_s23 }
 0x999   : > { %4662 = vrot.lane.b32.xlu0 %v4651_v10, %s15500_s23 }
 0xa05   : > { %v4657_v52 = vpop.permute.xlu1 %4656 }
 0xa06   : > { %v4668_v59 = vadd.f32 %v4657_v52, %v4494_v18 }
 0xa07   : > { %v4659_v49 = vpop.permute.xlu0 %4658 }
 0xa08   : > { %v4676_v26 = vcombine.high %v4668_v59, %v4668_v59  ;;  %v4683_v13 = vrot.slane %v4668_v59, %v12797_v34  ;;  %v4669_v61 = vadd.f32 %v4659_v49, %v4495_v43 }
 0xa09   : > { %v4661_v15 = vpop.permute.xlu1 %4660 }
 0xa0a   : > { %v4691_v12 = vcombine.high %v4683_v13, %v4683_v13  ;;  %v4699_v5 = vrot.slane %v4683_v13, %v12797_v34  ;;  %v4690_v0 = vrot.slane %v4676_v26, %v12797_v34  ;;  %v4732_v62 = vrot.slane %v4669_v61, %v12797_v34 }
 0xa0b   : > { %v4725_v14 = vcombine.high %v4669_v61, %v4669_v61  ;;  %v4670_v4 = vadd.f32 %v4661_v15, %v4496_v1 }
 0xa0c   : > { %v4713_v58 = vrot.slane %v4691_v12, %v12797_v34  ;;  %v4721_v17 = vcombine.high %v4699_v5, %v4699_v5  ;;  %v4875_v38 = vrot.slane %v4699_v5, %v12807_v32  ;;  %v4692_v29 = vcombine.high %v4690_v0, %v4690_v0 }
 0xa0d   : > { %v4706_v39 = vrot.slane %v4690_v0, %v12797_v34  ;;  %v4740_v35 = vcombine.high %v4732_v62, %v4732_v62  ;;  %v4748_v60 = vrot.slane %v4732_v62, %v12797_v34  ;;  %v4739_v40 = vrot.slane %v4725_v14, %v12797_v34 }
 0xa0e   : > { %v4879_v45 = vrot.slane %v4713_v58, %v12807_v32  ;;  %5000 = vrot.lane.b32.xlu1 %v4875_v38, %s15508_s26  ;;  %v4723_v2 = vcombine.high %v4713_v58, %v4713_v58  ;;  %v4883_v22 = vrot.slane %v4721_v17, %v12807_v32  ;;  %v4720_v55 = vrot.slane %v4692_v29, %v12797_v34 }
 0xa0f   : > { %v4891_v24 = vrot.slane %v4706_v39, %v12807_v32  ;;  %v4762_v31 = vrot.slane %v4740_v35, %v12797_v34  ;;  %v4907_v3 = vrot.slane %v4748_v60, %v12807_v32  ;;  %v4722_v37 = vcombine.high %v4706_v39, %v4706_v39 }
 0xa10   : > { %5002 = vrot.lane.b32.xlu0 %v4879_v45, %s15508_s26  ;;  %v4887_v54 = vrot.slane %v4723_v2, %v12807_v32  ;;  %v4895_v41 = vrot.slane %v4720_v55, %v12807_v32  ;;  %v4724_v53 = vcombine.high %v4720_v55, %v4720_v55  ;;  %v4770_v11 = vcombine.high %v4748_v60, %v4748_v60  ;;  %v4663_v45 = vpop.permute.xlu0 %4662 }
 0xa11   : > { %v4911_v36 = vrot.slane %v4762_v31, %v12807_v32  ;;  %v4899_v51 = vrot.slane %v4722_v37, %v12807_v32  ;;  %v4741_v10 = vcombine.high %v4739_v40, %v4739_v40  ;;  %v4772_v56 = vcombine.high %v4762_v31, %v4762_v31 }
 0xa12   : > { %5004 = vrot.lane.b32.xlu1 %v4883_v22, %s15508_s26  ;;  %v4903_v28 = vrot.slane %v4724_v53, %v12807_v32  ;;  %v4755_v50 = vrot.slane %v4739_v40, %v12797_v34  ;;  %v4915_v18 = vrot.slane %v4770_v11, %v12807_v32  ;;  %v4781_v42 = vrot.slane %v4670_v4, %v12797_v34 }
 0xa13   : > { %v4919_v52 = vrot.slane %v4772_v56, %v12807_v32  ;;  %v4769_v59 = vrot.slane %v4741_v10, %v12797_v34  ;;  %v4774_v49 = vcombine.high %v4670_v4, %v4670_v4  ;;  %v4289_v58 = vadd.f32 %v13223_v25, %v4083_v21 }
 0xa14   : > { %5006 = vrot.lane.b32.xlu0 %v4887_v54, %s15508_s26  ;;  %v4923_v26 = vrot.slane %v4755_v50, %v12807_v32  ;;  %v4771_v13 = vcombine.high %v4755_v50, %v4755_v50  ;;  %v4789_v43 = vcombine.high %v4781_v42, %v4781_v42  ;;  %v4797_v61 = vrot.slane %v4781_v42, %v12797_v34 }
 0xa15   : > { %v4927_v12 = vrot.slane %v4769_v59, %v12807_v32  ;;  %v4773_v5 = vcombine.high %v4769_v59, %v4769_v59  ;;  %v4788_v63 = vrot.slane %v4774_v49, %v12797_v34  ;;  %v4497_v62 = vadd.f32 %v13252_v57, %v4289_v58  ;;  %v9789_v49 = vld [vmem:[%s11749_s21 + $0xc0] sm:$0xff] }
 0xa16   : > { %5008 = vrot.lane.b32.xlu1 %v4891_v24, %s15508_s26  ;;  %v4931_v0 = vrot.slane %v4771_v13, %v12807_v32  ;;  %v4811_v17 = vrot.slane %v4789_v43, %v12797_v34  ;;  %v4819_v29 = vcombine.high %v4797_v61, %v4797_v61  ;;  %v4939_v2 = vrot.slane %v4797_v61, %v12807_v32  ;;  %v9790_v43 = vld [vmem:[%s11749_s21 + $0xc8] sm:$0xff]  ;;  %v9791_v61 = vld [vmem:[%s11749_s21 + $0x140] sm:$0xff] }
 0xa17   : > { %v4935_v38 = vrot.slane %v4773_v5, %v12807_v32  ;;  %v4790_v39 = vcombine.high %v4788_v63, %v4788_v63  ;;  %v4671_v22 = vadd.f32 %v4663_v45, %v4497_v62  ;;  %v4804_v54 = vrot.slane %v4788_v63, %v12797_v34  ;;  %v13560_v5 = vld [vmem:[%s11749_s21 + $0x108] sm:$0xff] }
 0xa18   : > { %5010 = vrot.lane.b32.xlu0 %v4895_v41, %s15508_s26  ;;  %v4943_v25 = vrot.slane %v4811_v17, %v12807_v32  ;;  %v4821_v35 = vcombine.high %v4811_v17, %v4811_v17  ;;  %v4947_v55 = vrot.slane %v4819_v29, %v12807_v32 }
 0xa19   : > { %v4830_v57 = vrot.slane %v4671_v22, %v12797_v34  ;;  %v4818_v24 = vrot.slane %v4790_v39, %v12797_v34  ;;  %v4955_v44 = vrot.slane %v4804_v54, %v12807_v32  ;;  %v4820_v14 = vcombine.high %v4804_v54, %v4804_v54 }
 0xa1a   : > { %5016 = vrot.lane.b32.xlu1 %v4907_v3, %s15508_s26  ;;  %v4951_v60 = vrot.slane %v4821_v35, %v12807_v32  ;;  %v4823_v31 = vcombine.high %v4671_v22, %v4671_v22 }
 0xa1b   : > { %v4838_v41 = vcombine.high %v4830_v57, %v4830_v57  ;;  %v4959_v3 = vrot.slane %v4818_v24, %v12807_v32  ;;  %v4822_v37 = vcombine.high %v4818_v24, %v4818_v24  ;;  %v4846_v19 = vrot.slane %v4830_v57, %v12797_v34 }
 0xa1c   : > { %5018 = vrot.lane.b32.xlu0 %v4911_v36, %s15508_s26  ;;  %v4963_v40 = vrot.slane %v4820_v14, %v12807_v32  ;;  %v4837_v36 = vrot.slane %v4823_v31, %v12797_v34 }
 0xa1d   : > { %v4860_v53 = vrot.slane %v4838_v41, %v12797_v34  ;;  %v4967_v15 = vrot.slane %v4822_v37, %v12807_v32  ;;  %v4868_v1 = vcombine.high %v4846_v19, %v4846_v19  ;;  %v4971_v11 = vrot.slane %v4846_v19, %v12807_v32 }
 0xa1e   : > { %5012 = vrot.lane.b32.xlu1 %v4899_v51, %s15508_s26  ;;  %v4839_v51 = vcombine.high %v4837_v36, %v4837_v36 }
 0xa1f   : > { %v4975_v10 = vrot.slane %v4860_v53, %v12807_v32  ;;  %v4870_v4 = vcombine.high %v4860_v53, %v4860_v53  ;;  %v4979_v56 = vrot.slane %v4868_v1, %v12807_v32 }
 0xa20   : > { %5014 = vrot.lane.b32.xlu0 %v4903_v28, %s15508_s26  ;;  %v4853_v28 = vrot.slane %v4837_v36, %v12797_v34 }
 0xa21   : > { %v4983_v50 = vrot.slane %v4870_v4, %v12807_v32 }
 0xa22   : > { %5020 = vrot.lane.b32.xlu1 %v4915_v18, %s15508_s26  ;;  %v4867_v18 = vrot.slane %v4839_v51, %v12797_v34  ;;  %v4987_v42 = vrot.slane %v4853_v28, %v12807_v32 }
 0xa24   : > { %5022 = vrot.lane.b32.xlu0 %v4919_v52, %s15508_s26  ;;  %v4869_v52 = vcombine.high %v4853_v28, %v4853_v28  ;;  %v4991_v59 = vrot.slane %v4867_v18, %v12807_v32  ;;  %v4871_v21 = vcombine.high %v4867_v18, %v4867_v18 }
 0xa26   : > { %5024 = vrot.lane.b32.xlu1 %v4923_v26, %s15508_s26  ;;  %v4995_v26 = vrot.slane %v4869_v52, %v12807_v32  ;;  %v4999_v13 = vrot.slane %v4871_v21, %v12807_v32 }
 0xa28   : > { %5026 = vrot.lane.b32.xlu0 %v4927_v12, %s15508_s26  ;;  %v13556_v12 = vld [vmem:[%s11749_s21 + $0x100] sm:$0xff] }
 0xa2a   : > { %5028 = vrot.lane.b32.xlu1 %v4931_v0, %s15508_s26  ;;  %v9792_v0 = vld [vmem:[%s11749_s21 + $0x148] sm:$0xff] }
 0xa2c   : > { %5030 = vrot.lane.b32.xlu0 %v4935_v38, %s15508_s26 }
 0xa2e   : > { %5032 = vrot.lane.b32.xlu1 %v4939_v2, %s15508_s26 }
 0xa30   : > { %5034 = vrot.lane.b32.xlu0 %v4943_v25, %s15508_s26 }
 0xa32   : > { %5036 = vrot.lane.b32.xlu1 %v4947_v55, %s15508_s26 }
 0xa34   : > { %5038 = vrot.lane.b32.xlu0 %v4951_v60, %s15508_s26 }
 0xa36   : > { %5040 = vrot.lane.b32.xlu1 %v4955_v44, %s15508_s26 }
 0xa38   : > { %5042 = vrot.lane.b32.xlu0 %v4959_v3, %s15508_s26 }
 0xa3a   : > { %5044 = vrot.lane.b32.xlu1 %v4963_v40, %s15508_s26 }
 0xa3c   : > { %5046 = vrot.lane.b32.xlu0 %v4967_v15, %s15508_s26 }
 0xa3e   : > { %5048 = vrot.lane.b32.xlu1 %v4971_v11, %s15508_s26 }
 0xa40   : > { %5050 = vrot.lane.b32.xlu0 %v4975_v10, %s15508_s26 }
 0xa42   : > { %5052 = vrot.lane.b32.xlu1 %v4979_v56, %s15508_s26 }
 0xa44   : > { %5054 = vrot.lane.b32.xlu0 %v4983_v50, %s15508_s26 }
 0xa46   : > { %5056 = vrot.lane.b32.xlu1 %v4987_v42, %s15508_s26 }
 0xa48   : > { %5058 = vrot.lane.b32.xlu0 %v4991_v59, %s15508_s26 }
 0xa4a   : > { %5060 = vrot.lane.b32.xlu1 %v4995_v26, %s15508_s26 }
 0xa4c   : > { %5062 = vrot.lane.b32.xlu0 %v4999_v13, %s15508_s26 }
 0xa4e   : > { %5140 = vrot.lane.b32.xlu1 %v9789_v49, %s15494_s22 }
 0xa50   : > { %5142 = vrot.lane.b32.xlu0 %v9790_v43, %s15494_s22 }
 0xa52   : > { %5144 = vrot.lane.b32.xlu1 %v9789_v49, %s15498_s30 }
 0xa54   : > { %5146 = vrot.lane.b32.xlu0 %v9790_v43, %s15498_s30 }
 0xa56   : > { %5150 = vrot.lane.b32.xlu1 %v13556_v12, %s15494_s22 }
 0xa58   : > { %5152 = vrot.lane.b32.xlu0 %v13560_v5, %s15494_s22 }
 0xa5a   : > { %5154 = vrot.lane.b32.xlu1 %v13556_v12, %s15498_s30 }
 0xa5c   : > { %5156 = vrot.lane.b32.xlu0 %v13560_v5, %s15498_s30 }
 0xa5e   : > { %5160 = vrot.lane.b32.xlu1 %v9791_v61, %s15494_s22 }
 0xa60   : > { %5162 = vrot.lane.b32.xlu0 %v9792_v0, %s15494_s22  ;;  %s15526_s22 = smov 112  }
 0xa62   : > { %5164 = vrot.lane.b32.xlu1 %v9791_v61, %s15498_s30 }
 0xa64   : > { %5166 = vrot.lane.b32.xlu0 %v9792_v0, %s15498_s30 }
 0xa80   : > { %v5001_v58 = vpop.permute.xlu1 %5000 }
 0xa81   : > { %5096 = vst.msk [vmem:[%s11268_s17 + $0x3] sm:$0x1] %vm1933_vm7, %v5001_v58 }
 0xa82   : > { %v5003_v63 = vpop.permute.xlu0 %5002 }
 0xa83   : > { %5097 = vst.msk [vmem:[%s11268_s17 + $0xb] sm:$0x1] %vm1933_vm7, %v5003_v63 }
 0xa84   : > { %v5005_v17 = vpop.permute.xlu1 %5004 }
 0xa85   : > { %5098 = vst.msk [vmem:[%s11268_s17 + $0x13] sm:$0x1] %vm1933_vm7, %v5005_v17 }
 0xa86   : > { %v5007_v38 = vpop.permute.xlu0 %5006 }
 0xa87   : > { %5099 = vst.msk [vmem:[%s11268_s17 + $0x1b] sm:$0x1] %vm1933_vm7, %v5007_v38 }
 0xa88   : > { %v5009_v45 = vpop.permute.xlu1 %5008 }
 0xa89   : > { %5100 = vst.msk [vmem:[%s11268_s17 + $0x23] sm:$0x1] %vm1933_vm7, %v5009_v45 }
 0xa8a   : > { %v5011_v62 = vpop.permute.xlu0 %5010 }
 0xa8b   : > { %5101 = vst.msk [vmem:[%s11268_s17 + $0x2b] sm:$0x1] %vm1933_vm7, %v5011_v62 }
 0xa8c   : > { %v5017_v29 = vpop.permute.xlu1 %5016 }
 0xa8d   : > { %5104 = vst.msk [vmem:[%s11268_s17 + $0x43] sm:$0x1] %vm1933_vm7, %v5017_v29 }
 0xa8e   : > { %v5019_v2 = vpop.permute.xlu0 %5018 }
 0xa8f   : > { %5105 = vst.msk [vmem:[%s11268_s17 + $0x4b] sm:$0x1] %vm1933_vm7, %v5019_v2 }
 0xa90   : > { %v5013_v39 = vpop.permute.xlu1 %5012 }
 0xa91   : > { %5102 = vst.msk [vmem:[%s11268_s17 + $0x33] sm:$0x1] %vm1933_vm7, %v5013_v39 }
 0xa92   : > { %v5015_v22 = vpop.permute.xlu0 %5014 }
 0xa93   : > { %5103 = vst.msk [vmem:[%s11268_s17 + $0x3b] sm:$0x1] %vm1933_vm7, %v5015_v22  ;;  %v11031_v22 = vld [vmem:[%s15476_s3 + $0x20] ss:$12 sps:$4 sm:$0xff]  }
 0xa94   : > { %v5021_v25 = vpop.permute.xlu1 %5020 }
 0xa95   : > { %5106 = vst.msk [vmem:[%s11268_s17 + $0x53] sm:$0x1] %vm1933_vm7, %v5021_v25  ;;  %v11032_v25 = vld [vmem:[%s15478_s5 + $0x4] ss:$12 sps:$4 sm:$0xff]  }
 0xa96   : > { %v5023_v35 = vpop.permute.xlu0 %5022 }
 0xa97   : > { %5107 = vst.msk [vmem:[%s11268_s17 + $0x5b] sm:$0x1] %vm1933_vm7, %v5023_v35  ;;  %v11033_v35 = vld [vmem:[%s15476_s3] ss:$12 sps:$4 sm:$0xff]  }
 0xa98   : > { %v5025_v54 = vpop.permute.xlu1 %5024 }
 0xa99   : > { %5108 = vst.msk [vmem:[%s11268_s17 + $0x63] sm:$0x1] %vm1933_vm7, %v5025_v54  ;;  %v11034_v54 = vld [vmem:[%s15476_s3 + $0x1c] ss:$12 sps:$4 sm:$0xff]  }
 0xa9a   : > { %v5027_v55 = vpop.permute.xlu0 %5026 }
 0xa9b   : > { %5109 = vst.msk [vmem:[%s11268_s17 + $0x6b] sm:$0x1] %vm1933_vm7, %v5027_v55  ;;  %v11035_v55 = vld [vmem:[%s15476_s3 + $0x18] ss:$12 sps:$4 sm:$0xff]  }
 0xa9c   : > { %v5029_v57 = vpop.permute.xlu1 %5028 }
 0xa9d   : > { %5110 = vst.msk [vmem:[%s11268_s17 + $0x73] sm:$0x1] %vm1933_vm7, %v5029_v57  ;;  %v11036_v57 = vld [vmem:[%s15478_s5 + $0x8] ss:$12 sps:$4 sm:$0xff]  }
 0xa9e   : > { %v5031_v60 = vpop.permute.xlu0 %5030 }
 0xa9f   : > { %5111 = vst.msk [vmem:[%s11268_s17 + $0x7b] sm:$0x1] %vm1933_vm7, %v5031_v60 }
 0xaa0   : > { %v5033_v24 = vpop.permute.xlu1 %5032 }
 0xaa1   : > { %5112 = vst.msk [vmem:[%s11268_s17 + $0x83] sm:$0x1] %vm1933_vm7, %v5033_v24 }
 0xaa2   : > { %v5035_v44 = vpop.permute.xlu0 %5034 }
 0xaa3   : > { %5113 = vst.msk [vmem:[%s11268_s17 + $0x8b] sm:$0x1] %vm1933_vm7, %v5035_v44 }
 0xaa4   : > { %v5037_v14 = vpop.permute.xlu1 %5036 }
 0xaa5   : > { %5114 = vst.msk [vmem:[%s11268_s17 + $0x93] sm:$0x1] %vm1933_vm7, %v5037_v14 }
 0xaa6   : > { %v5039_v31 = vpop.permute.xlu0 %5038 }
 0xaa7   : > { %5115 = vst.msk [vmem:[%s11268_s17 + $0x9b] sm:$0x1] %vm1933_vm7, %v5039_v31 }
 0xaa8   : > { %v5041_v41 = vpop.permute.xlu1 %5040 }
 0xaa9   : > { %5116 = vst.msk [vmem:[%s11268_s17 + $0xa3] sm:$0x1] %vm1933_vm7, %v5041_v41 }
 0xaaa   : > { %v5043_v3 = vpop.permute.xlu0 %5042 }
 0xaab   : > { %5117 = vst.msk [vmem:[%s11268_s17 + $0xab] sm:$0x1] %vm1933_vm7, %v5043_v3 }
 0xaac   : > { %v5045_v37 = vpop.permute.xlu1 %5044 }
 0xaad   : > { %5118 = vst.msk [vmem:[%s11268_s17 + $0xb3] sm:$0x1] %vm1933_vm7, %v5045_v37 }
 0xaae   : > { %v5047_v19 = vpop.permute.xlu0 %5046 }
 0xaaf   : > { %5119 = vst.msk [vmem:[%s11268_s17 + $0xbb] sm:$0x1] %vm1933_vm7, %v5047_v19 }
 0xab0   : > { %v5049_v40 = vpop.permute.xlu1 %5048 }
 0xab1   : > { %5120 = vst.msk [vmem:[%s11268_s17 + $0xc3] sm:$0x1] %vm1933_vm7, %v5049_v40 }
 0xab2   : > { %v5051_v36 = vpop.permute.xlu0 %5050 }
 0xab3   : > { %5121 = vst.msk [vmem:[%s11268_s17 + $0xcb] sm:$0x1] %vm1933_vm7, %v5051_v36 }
 0xab4   : > { %v5053_v53 = vpop.permute.xlu1 %5052 }
 0xab5   : > { %5122 = vst.msk [vmem:[%s11268_s17 + $0xd3] sm:$0x1] %vm1933_vm7, %v5053_v53 }
 0xab6   : > { %v5055_v15 = vpop.permute.xlu0 %5054 }
 0xab7   : > { %5123 = vst.msk [vmem:[%s11268_s17 + $0xdb] sm:$0x1] %vm1933_vm7, %v5055_v15 }
 0xab8   : > { %v5057_v1 = vpop.permute.xlu1 %5056 }
 0xab9   : > { %5124 = vst.msk [vmem:[%s11268_s17 + $0xe3] sm:$0x1] %vm1933_vm7, %v5057_v1 }
 0xaba   : > { %v5059_v11 = vpop.permute.xlu0 %5058 }
 0xabb   : > { %5125 = vst.msk [vmem:[%s11268_s17 + $0xeb] sm:$0x1] %vm1933_vm7, %v5059_v11 }
 0xabc   : > { %v5061_v51 = vpop.permute.xlu1 %5060 }
 0xabd   : > { %5126 = vst.msk [vmem:[%s11268_s17 + $0xf3] sm:$0x1] %vm1933_vm7, %v5061_v51 }
 0xabe   : > { %v5063_v10 = vpop.permute.xlu0 %5062 }
 0xabf   : > { %5127 = vst.msk [vmem:[%s11268_s17 + $0xfb] sm:$0x1] %vm1933_vm7, %v5063_v10 }
 0xac0   : > { %v5141_v4 = vpop.permute.xlu1 %5140 }
 0xac1   : > { %5168 = vrot.lane.b32.xlu1 %v5141_v4, %s15498_s30 }
 0xac2   : > { %v5143_v28 = vpop.permute.xlu0 %5142 }
 0xac3   : > { %5170 = vrot.lane.b32.xlu0 %v5143_v28, %s15498_s30 }
 0xac4   : > { %v5145_v56 = vpop.permute.xlu1 %5144 }
 0xac5   : > { %5172 = vrot.lane.b32.xlu1 %v5145_v56, %s15498_s30 }
 0xac6   : > { %v5147_v50 = vpop.permute.xlu0 %5146 }
 0xac7   : > { %5174 = vrot.lane.b32.xlu0 %v5147_v50, %s15498_s30 }
 0xac8   : > { %v13644_v18 = vpop.permute.xlu1 %5150 }
 0xac9   : > { %5176 = vrot.lane.b32.xlu1 %v13644_v18, %s15498_s30 }
 0xaca   : > { %v13648_v42 = vpop.permute.xlu0 %5152 }
 0xacb   : > { %5178 = vrot.lane.b32.xlu0 %v13648_v42, %s15498_s30 }
 0xacc   : > { %v13652_v52 = vpop.permute.xlu1 %5154 }
 0xacd   : > { %5180 = vrot.lane.b32.xlu1 %v13652_v52, %s15498_s30 }
 0xace   : > { %v13656_v59 = vpop.permute.xlu0 %5156 }
 0xacf   : > { %5182 = vrot.lane.b32.xlu0 %v13656_v59, %s15498_s30 }
 0xad0   : > { %v5161_v21 = vpop.permute.xlu1 %5160 }
 0xad1   : > { %5184 = vrot.lane.b32.xlu1 %v5161_v21, %s15498_s30 }
 0xad2   : > { %v5163_v26 = vpop.permute.xlu0 %5162 }
 0xad3   : > { %5186 = vrot.lane.b32.xlu0 %v5163_v26, %s15498_s30 }
 0xad4   : > { %v5165_v13 = vpop.permute.xlu1 %5164 }
 0xad5   : > { %5188 = vrot.lane.b32.xlu1 %v5165_v13, %s15498_s30 }
 0xad6   : > { %v5167_v49 = vpop.permute.xlu0 %5166 }
 0xad7   : > { %5190 = vrot.lane.b32.xlu0 %v5167_v49, %s15498_s30 }
 0xb33   : > { %v5169_v43 = vpop.permute.xlu1 %5168 }
 0xb35   : > { %v5171_v61 = vpop.permute.xlu0 %5170 }
 0xb37   : > { %v5173_v0 = vpop.permute.xlu1 %5172 }
 0xb39   : > { %v5175_v58 = vpop.permute.xlu0 %5174 }
 0xb3b   : > { %v5177_v63 = vpop.permute.xlu1 %5176 }
 0xb3c   : > { %10303 = vmatprep.subr.bf16.mxu0 %v5177_v63  ;;  %v9796_v63 = vld [vmem:[%s11749_s21 + $0x88] sm:$0xff] }
 0xb3d   : > { %v5179_v17 = vpop.permute.xlu0 %5178  ;;  %10304 = vmatpush3.bf16.msra.mxu0 %v5145_v56 }
 0xb3e   : > { %10305 = vmatprep.subr.bf16.mxu0 %v5179_v17  ;;  %v9797_v17 = vld [vmem:[%s11749_s21 + $0x180] sm:$0xff] }
 0xb3f   : > { %v5181_v38 = vpop.permute.xlu1 %5180 }
 0xb41   : > { %v5183_v45 = vpop.permute.xlu0 %5182  ;;  %10306 = vmatpush3.bf16.msra.mxu0 %v5147_v50 }
 0xb42   : > { %10307 = vmatprep.subr.bf16.mxu0 %v5181_v38  ;;  %v9798_v38 = vld [vmem:[%s11749_s21 + $0x188] sm:$0xff] }
 0xb43   : > { %v5185_v62 = vpop.permute.xlu1 %5184 }
 0xb45   : > { %v5187_v29 = vpop.permute.xlu0 %5186  ;;  %10308 = vmatpush3.bf16.msra.mxu0 %v5169_v43 }
 0xb46   : > { %10309 = vmatprep.subr.bf16.mxu0 %v5183_v45 }
 0xb47   : > { %v5189_v2 = vpop.permute.xlu1 %5188 }
 0xb48   : > { %10793 = vmatprep.subr.bf16.mxu1 %v5189_v2 }
 0xb49   : > { %v5191_v39 = vpop.permute.xlu0 %5190  ;;  %10310 = vmatpush3.bf16.msra.mxu0 %v5171_v61  ;;  %10794 = vmatpush3.bf16.msra.mxu1 %v5189_v2 }
 0xb4a   : > { %10311 = vmatprep.subr.bf16.mxu0 %v5165_v13  ;;  %10795 = vmatprep.subr.bf16.mxu1 %v5191_v39 }
 0xb4d   : > { %10312 = vmatpush3.bf16.msra.mxu0 %v5173_v0  ;;  %10796 = vmatpush3.bf16.msra.mxu1 %v5191_v39 }
 0xb4e   : > { %10313 = vmatprep.subr.bf16.mxu0 %v5167_v49 }
 0xb50   : > { %10798 = vmatmul.mubr.msk.bf16.vlgmr.msra.gmra.mrb[72].mxu1 %vm887_vm6, %v11031_v22 }
 0xb51   : > { %10314 = vmatpush3.bf16.msra.mxu0 %v5175_v58  ;;  %5442 = vmatprep.mubr.bf16.mxu1 %v11032_v25  ;;  %v9795_v58 = vld [vmem:[%s11749_s21 + $0x80] sm:$0xff] }
 0xb52   : > { %10315 = vmatprep.subr.bf16.mxu0 %v5185_v62 }
 0xb55   : > { %10316 = vmatpush3.bf16.msra.mxu0 %v13652_v52 }
 0xb56   : > { %10317 = vmatprep.subr.bf16.mxu0 %v5187_v29 }
 0xb59   : > { %10318 = vmatpush3.bf16.msra.mxu0 %v13656_v59 }
 0xb5c   : > { %5243 = vmatmul.mubr.bf16.vlgmr.msra.gmra.mrb[72].mxu0 %v11033_v35 }
 0xb5d   : > { %5250 = vmatprep.mubr.bf16.mxu0 %v11034_v54 }
 0xb64   : > { %5251 = vmatmul.mubr.bf16.gmra.mrb[76].mxu0 %v11035_v55 }
 0xb65   : > { %10805 = vmatprep.mubr.msk.bf16.mxu0 %vm887_vm6, %v11036_v57 }
 0xc23   : > { %v10799_v60 = vpop.f32.mrb[72].mxu1 }
 0xc24   : > { %v5293_v24 = vpop.f32.mrb[73].mxu1 }
 0xc25   : > { %v10800_v44 = vpop.f32.mrb[74].mxu1 }
 0xc26   : > { %v5296_v14 = vpop.f32.mrb[75].mxu1 }
 0xc2f   : > { %v10319_v31 = vpop.f32.mrb[72].mxu0 }
 0xc30   : > { %v10320_v41 = vpop.f32.mrb[73].mxu0 }
 0xc31   : > { %v10321_v3 = vadd.f32 %v10320_v41, %v10319_v31  ;;  %v10322_v37 = vpop.f32.mrb[74].mxu0 }
 0xc32   : > { %v10323_v19 = vpop.f32.mrb[75].mxu0 }
 0xc33   : > { %v10324_v40 = vadd.f32 %v10323_v19, %v10322_v37  ;;  %v5245_v36 = vadd.f32 %v10321_v3, %v11877_v7 }
 0xc35   : > { %v5294_v53 = vadd.f32 %v5293_v24, %v5245_v36  ;;  %v5248_v15 = vadd.f32 %v10324_v40, %v11875_v6 }
 0xc37   : > { %v5308_v1 = vmax.f32 %v5294_v53, 0.0  ;;  %v5297_v11 = vadd.f32 %v5296_v14, %v5248_v15  ;;  %v10325_v51 = vpop.f32.mrb[76].mxu0 }
 0xc38   : > { %v10326_v10 = vpop.f32.mrb[77].mxu0 }
 0xc39   : > { %v5309_v4 = vmax.f32 %v5297_v11, 0.0  ;;  %v10327_v28 = vadd.f32 %v10326_v10, %v10325_v51  ;;  %v10328_v56 = vpop.f32.mrb[78].mxu0  ;;  %5316 = vrot.lane.b32.xlu1 %v5308_v1, %s15500_s23 }
 0xc3a   : > { %v10329_v50 = vpop.f32.mrb[79].mxu0 }
 0xc3b   : > { %v5253_v21 = vadd.f32 %v10327_v28, %v11879_v8  ;;  %v10330_v26 = vadd.f32 %v10329_v50, %v10328_v56  ;;  %5318 = vrot.lane.b32.xlu0 %v5309_v4, %s15500_s23  ;;  %v13739_v4 = vld [vmem:[%s15478_s5 + $0x20] ss:$12 sps:$4 sm:$0xff]   ;;  %v11038_v28 = vld [vmem:[%s15480_s7 + $0x8] ss:$12 sps:$4 sm:$0xff]  }
 0xc3c   : > { %v11039_v56 = vld [vmem:[%s15478_s5] ss:$12 sps:$4 sm:$0xff]   ;;  %v11040_v50 = vld [vmem:[%s15478_s5 + $0x1c] ss:$12 sps:$4 sm:$0xff]  }
 0xc3d   : > { %v5302_v13 = vadd.f32 %v10799_v60, %v5253_v21  ;;  %v5256_v49 = vadd.f32 %v10330_v26, %v11881_v9  ;;  %v13761_v21 = vld [vmem:[%s15480_s7 + $0x4] ss:$12 sps:$4 sm:$0xff]  }
 0xc3f   : > { %v5310_v43 = vmax.f32 %v5302_v13, 0.0  ;;  %v5305_v61 = vadd.f32 %v10800_v44, %v5256_v49 }
 0xc41   : > { %v5311_v0 = vmax.f32 %v5305_v61, 0.0  ;;  %5320 = vrot.lane.b32.xlu1 %v5310_v43, %s15500_s23 }
 0xc43   : > { %5322 = vrot.lane.b32.xlu0 %v5311_v0, %s15500_s23  ;;  %s15529_s23 = smov 104  }
 0xc45   : > { %5338 = vrot.lane.b32.xlu1 %v9795_v58, %s15498_s30 }
 0xc47   : > { %5340 = vrot.lane.b32.xlu0 %v9796_v63, %s15498_s30 }
 0xc49   : > { %5342 = vrot.lane.b32.xlu1 %v9795_v58, %s15526_s22 }
 0xc4b   : > { %5344 = vrot.lane.b32.xlu0 %v9796_v63, %s15526_s22 }
 0xc4d   : > { %5346 = vrot.lane.b32.xlu1 %v13556_v12, %s15526_s22 }
 0xc4f   : > { %5348 = vrot.lane.b32.xlu0 %v13560_v5, %s15526_s22 }
 0xc51   : > { %5352 = vrot.lane.b32.xlu1 %v9797_v17, %s15498_s30 }
 0xc53   : > { %5354 = vrot.lane.b32.xlu0 %v9798_v38, %s15498_s30  ;;  %s15528_s30 = smov 12  }
 0xc55   : > { %5356 = vrot.lane.b32.xlu1 %v9797_v17, %s15526_s22 }
 0xc57   : > { %5358 = vrot.lane.b32.xlu0 %v9798_v38, %s15526_s22 }
 0xc59   : > { %5360 = vrot.lane.b32.xlu1 %v9795_v58, %s15527_s19 }
 0xc5b   : > { %5362 = vrot.lane.b32.xlu0 %v9796_v63, %s15527_s19 }
 0xcab   : > { %v13712_v45 = vpop.permute.xlu1 %5316 }
 0xcad   : > { %v13714_v62 = vpop.permute.xlu0 %5318 }
 0xcb3   : > { %v13716_v29 = vpop.permute.xlu1 %5320 }
 0xcb5   : > { %v13718_v2 = vpop.permute.xlu0 %5322 }
 0xcb7   : > { %v5339_v39 = vpop.permute.xlu1 %5338 }
 0xcb8   : > { %5364 = vrot.lane.b32.xlu1 %v5339_v39, %s15527_s19 }
 0xcb9   : > { %v5341_v22 = vpop.permute.xlu0 %5340 }
 0xcba   : > { %5366 = vrot.lane.b32.xlu0 %v5341_v22, %s15527_s19 }
 0xcbb   : > { %v5343_v25 = vpop.permute.xlu1 %5342 }
 0xcbc   : > { %5368 = vrot.lane.b32.xlu1 %v5343_v25, %s15527_s19 }
 0xcbd   : > { %v5345_v35 = vpop.permute.xlu0 %5344 }
 0xcbe   : > { %5370 = vrot.lane.b32.xlu0 %v5345_v35, %s15527_s19 }
 0xcbf   : > { %v5347_v54 = vpop.permute.xlu1 %5346 }
 0xcc0   : > { %5372 = vrot.lane.b32.xlu1 %v13652_v52, %s15527_s19 }
 0xcc1   : > { %v5349_v55 = vpop.permute.xlu0 %5348 }
 0xcc2   : > { %5374 = vrot.lane.b32.xlu0 %v13656_v59, %s15527_s19 }
 0xcc3   : > { %v5353_v57 = vpop.permute.xlu1 %5352 }
 0xcc4   : > { %5376 = vrot.lane.b32.xlu1 %v5347_v54, %s15527_s19 }
 0xcc5   : > { %v5355_v60 = vpop.permute.xlu0 %5354 }
 0xcc6   : > { %5378 = vrot.lane.b32.xlu0 %v5349_v55, %s15527_s19 }
 0xcc7   : > { %v5357_v24 = vpop.permute.xlu1 %5356 }
 0xcc8   : > { %5380 = vrot.lane.b32.xlu1 %v9797_v17, %s15527_s19 }
 0xcc9   : > { %v5359_v52 = vpop.permute.xlu0 %5358 }
 0xcca   : > { %5382 = vrot.lane.b32.xlu0 %v9798_v38, %s15527_s19 }
 0xccb   : > { %v5361_v59 = vpop.permute.xlu1 %5360 }
 0xccc   : > { %5384 = vrot.lane.b32.xlu1 %v5353_v57, %s15527_s19 }
 0xccd   : > { %v5363_v44 = vpop.permute.xlu0 %5362 }
 0xcce   : > { %5386 = vrot.lane.b32.xlu0 %v5355_v60, %s15527_s19 }
 0xcd0   : > { %5388 = vrot.lane.b32.xlu1 %v5357_v24, %s15527_s19 }
 0xcd2   : > { %5390 = vrot.lane.b32.xlu0 %v5359_v52, %s15527_s19 }
 0xd2a   : > { %v5365_v14 = vpop.permute.xlu1 %5364 }
 0xd2c   : > { %v5367_v31 = vpop.permute.xlu0 %5366 }
 0xd2e   : > { %v5369_v41 = vpop.permute.xlu1 %5368 }
 0xd30   : > { %v5371_v3 = vpop.permute.xlu0 %5370 }
 0xd32   : > { %v5373_v37 = vpop.permute.xlu1 %5372 }
 0xd33   : > { %10335 = vmatprep.subr.bf16.mxu1 %v5373_v37 }
 0xd34   : > { %v5375_v19 = vpop.permute.xlu0 %5374  ;;  %10336 = vmatpush3.bf16.msra.mxu1 %v5361_v59 }
 0xd35   : > { %10337 = vmatprep.subr.bf16.mxu1 %v5375_v19  ;;  %v9801_v19 = vld [vmem:[%s11749_s21 + $0x40] sm:$0xff] }
 0xd36   : > { %v5377_v40 = vpop.permute.xlu1 %5376 }
 0xd38   : > { %10338 = vmatpush3.bf16.msra.mxu1 %v5363_v44  ;;  %v5379_v36 = vpop.permute.xlu0 %5378 }
 0xd39   : > { %10339 = vmatprep.subr.bf16.mxu1 %v5377_v40  ;;  %v9802_v40 = vld [vmem:[%s11749_s21 + $0x48] sm:$0xff] }
 0xd3a   : > { %v5381_v53 = vpop.permute.xlu1 %5380 }
 0xd3c   : > { %10340 = vmatpush3.bf16.msra.mxu1 %v5365_v14  ;;  %v5383_v15 = vpop.permute.xlu0 %5382 }
 0xd3d   : > { %10341 = vmatprep.subr.bf16.mxu1 %v5379_v36  ;;  %v9805_v36 = vld [vmem:[%s11749_s21 + $0x1c0] sm:$0xff] }
 0xd3e   : > { %v5385_v1 = vpop.permute.xlu1 %5384 }
 0xd40   : > { %10342 = vmatpush3.bf16.msra.mxu1 %v5367_v31  ;;  %v5387_v11 = vpop.permute.xlu0 %5386 }
 0xd41   : > { %10343 = vmatprep.subr.bf16.mxu1 %v5381_v53  ;;  %v9806_v53 = vld [vmem:[%s11749_s21 + $0x1c8] sm:$0xff] }
 0xd42   : > { %v5389_v51 = vpop.permute.xlu1 %5388 }
 0xd43   : > { %10801 = vmatprep.subr.bf16.mxu0 %v5389_v51 }
 0xd44   : > { %10344 = vmatpush3.bf16.msra.mxu1 %v5369_v41  ;;  %10802 = vmatpush3.bf16.msra.mxu0 %v5389_v51  ;;  %v5391_v10 = vpop.permute.xlu0 %5390 }
 0xd45   : > { %10345 = vmatprep.subr.bf16.mxu1 %v5383_v15  ;;  %10803 = vmatprep.subr.bf16.mxu0 %v5391_v10 }
 0xd48   : > { %10346 = vmatpush3.bf16.msra.mxu1 %v5371_v3  ;;  %10804 = vmatpush3.bf16.msra.mxu0 %v5391_v10 }
 0xd49   : > { %10347 = vmatprep.subr.bf16.mxu1 %v5385_v1 }
 0xd4b   : > { %10806 = vmatmul.mubr.msk.bf16.vlgmr.msra.gmra.mrb[80].mxu0 %vm887_vm6, %v13739_v4 }
 0xd4c   : > { %10348 = vmatpush3.bf16.msra.mxu1 %v13644_v18  ;;  %10813 = vmatprep.mubr.msk.bf16.mxu0 %vm887_vm6, %v11038_v28  ;;  %v11041_v18 = vld [vmem:[%s15478_s5 + $0x18] ss:$12 sps:$4 sm:$0xff]  }
 0xd4d   : > { %10349 = vmatprep.subr.bf16.mxu1 %v5387_v11 }
 0xd50   : > { %10350 = vmatpush3.bf16.msra.mxu1 %v13648_v42 }
 0xd53   : > { %5443 = vmatmul.mubr.bf16.vlgmr.msra.gmra.mrb[76].mxu1 %v11039_v56 }
 0xd54   : > { %5450 = vmatprep.mubr.bf16.mxu1 %v11040_v50 }
 0xd5b   : > { %5451 = vmatmul.mubr.bf16.gmra.mrb[80].mxu1 %v11041_v18 }
 0xd5c   : > { %5612 = vmatprep.mubr.bf16.mxu1 %v13761_v21 }
 0xe1e   : > { %v10807_v42 = vpop.f32.mrb[80].mxu0 }
 0xe1f   : > { %v5493_v26 = vpop.f32.mrb[81].mxu0 }
 0xe20   : > { %v10808_v13 = vpop.f32.mrb[82].mxu0 }
 0xe21   : > { %v5496_v49 = vpop.f32.mrb[83].mxu0 }
 0xe26   : > { %v10351_v43 = vpop.f32.mrb[76].mxu1 }
 0xe27   : > { %v10352_v61 = vpop.f32.mrb[77].mxu1 }
 0xe28   : > { %v10353_v0 = vadd.f32 %v10352_v61, %v10351_v43  ;;  %v10354_v58 = vpop.f32.mrb[78].mxu1 }
 0xe29   : > { %v10355_v63 = vpop.f32.mrb[79].mxu1 }
 0xe2a   : > { %v10356_v17 = vadd.f32 %v10355_v63, %v10354_v58  ;;  %v5445_v38 = vadd.f32 %v10353_v0, %v11926_v23  ;;  %v11043_v58 = vld [vmem:[%s15476_s3 + $0x4] ss:$12 sps:$4 sm:$0xff]   ;;  %v13810_v63 = vld [vmem:[%s15480_s7] ss:$12 sps:$4 sm:$0xff]  }
 0xe2c   : > { %v5494_v39 = vadd.f32 %v5493_v26, %v5445_v38  ;;  %v5448_v22 = vadd.f32 %v10356_v17, %v11945_v30  ;;  %v13822_v17 = vld [vmem:[%s15480_s7 + $0x18] ss:$12 sps:$4 sm:$0xff]   ;;  %v13828_v38 = vld [vmem:[%s15476_s3 + $0x8] ss:$12 sps:$4 sm:$0xff]  }
 0xe2e   : > { %v5508_v25 = vmax.f32 %v5494_v39, 0.0  ;;  %v5497_v35 = vadd.f32 %v5496_v49, %v5448_v22  ;;  %v10357_v54 = vpop.f32.mrb[80].mxu1 }
 0xe2f   : > { %v10358_v55 = vpop.f32.mrb[81].mxu1 }
 0xe30   : > { %v5509_v57 = vmax.f32 %v5497_v35, 0.0  ;;  %v10359_v60 = vadd.f32 %v10358_v55, %v10357_v54  ;;  %v10360_v24 = vpop.f32.mrb[82].mxu1  ;;  %5516 = vrot.lane.b32.xlu1 %v5508_v25, %s15528_s30 }
 0xe31   : > { %v10361_v52 = vpop.f32.mrb[83].mxu1 }
 0xe32   : > { %v5453_v59 = vadd.f32 %v10359_v60, %v11939_v27  ;;  %v10362_v44 = vadd.f32 %v10361_v52, %v10360_v24  ;;  %5518 = vrot.lane.b32.xlu0 %v5509_v57, %s15528_s30 }
 0xe34   : > { %v5502_v14 = vadd.f32 %v10807_v42, %v5453_v59  ;;  %v5456_v31 = vadd.f32 %v10362_v44, %v11953_v33 }
 0xe36   : > { %v5510_v41 = vmax.f32 %v5502_v14, 0.0  ;;  %v5505_v3 = vadd.f32 %v10808_v13, %v5456_v31 }
 0xe38   : > { %v5511_v37 = vmax.f32 %v5505_v3, 0.0  ;;  %5520 = vrot.lane.b32.xlu1 %v5510_v41, %s15528_s30 }
 0xe3a   : > { %5522 = vrot.lane.b32.xlu0 %v5511_v37, %s15528_s30 }
 0xe3c   : > { %5542 = vrot.lane.b32.xlu1 %v9801_v19, %s15508_s26 }
 0xe3e   : > { %5544 = vrot.lane.b32.xlu0 %v9802_v40, %s15508_s26 }
 0xe40   : > { %5548 = vrot.lane.b32.xlu1 %v9801_v19, %s15529_s23 }
 0xe42   : > { %5550 = vrot.lane.b32.xlu0 %v9802_v40, %s15529_s23 }
 0xe44   : > { %5554 = vrot.lane.b32.xlu1 %v13556_v12, %s15508_s26 }
 0xe46   : > { %5556 = vrot.lane.b32.xlu0 %v13560_v5, %s15508_s26 }
 0xe48   : > { %5560 = vrot.lane.b32.xlu1 %v13556_v12, %s15529_s23 }
 0xe4a   : > { %5562 = vrot.lane.b32.xlu0 %v13560_v5, %s15529_s23 }
 0xe4c   : > { %5568 = vrot.lane.b32.xlu1 %v9805_v36, %s15508_s26 }
 0xe4e   : > { %5570 = vrot.lane.b32.xlu0 %v9806_v53, %s15508_s26 }
 0xe50   : > { %5574 = vrot.lane.b32.xlu1 %v9805_v36, %s15529_s23 }
 0xe52   : > { %5576 = vrot.lane.b32.xlu0 %v9806_v53, %s15529_s23 }
 0xea2   : > { %v13792_v15 = vpop.permute.xlu1 %5516 }
 0xea4   : > { %v13794_v1 = vpop.permute.xlu0 %5518 }
 0xeaa   : > { %v13796_v11 = vpop.permute.xlu1 %5520 }
 0xeac   : > { %v13798_v51 = vpop.permute.xlu0 %5522 }
 0xeae   : > { %v5543_v10 = vpop.permute.xlu1 %5542 }
 0xeb0   : > { %v5545_v28 = vpop.permute.xlu0 %5544 }
 0xeb2   : > { %v5549_v56 = vpop.permute.xlu1 %5548 }
 0xeb4   : > { %v5551_v50 = vpop.permute.xlu0 %5550 }
 0xeb6   : > { %v5555_v18 = vpop.permute.xlu1 %5554 }
 0xeb7   : > { %10367 = vmatprep.subr.bf16.mxu1 %v5555_v18 }
 0xeb8   : > { %10368 = vmatpush3.bf16.msra.mxu1 %v9801_v19  ;;  %v5557_v42 = vpop.permute.xlu0 %5556 }
 0xeb9   : > { %10369 = vmatprep.subr.bf16.mxu1 %v5557_v42 }
 0xeba   : > { %v5561_v26 = vpop.permute.xlu1 %5560 }
 0xebc   : > { %10370 = vmatpush3.bf16.msra.mxu1 %v9802_v40  ;;  %v5563_v13 = vpop.permute.xlu0 %5562 }
 0xebd   : > { %10371 = vmatprep.subr.bf16.mxu1 %v5561_v26 }
 0xebe   : > { %v5569_v49 = vpop.permute.xlu1 %5568 }
 0xec0   : > { %10372 = vmatpush3.bf16.msra.mxu1 %v5543_v10  ;;  %v5571_v43 = vpop.permute.xlu0 %5570 }
 0xec1   : > { %10373 = vmatprep.subr.bf16.mxu1 %v5563_v13  ;;  %v5130_v13 = vunpack.c.l.bf16 %v13556_v12 }
 0xec2   : > { %v5575_v61 = vpop.permute.xlu1 %5574 }
 0xec3   : > { %10809 = vmatprep.subr.bf16.mxu0 %v5575_v61 }
 0xec4   : > { %10374 = vmatpush3.bf16.msra.mxu1 %v5545_v28  ;;  %10810 = vmatpush3.bf16.msra.mxu0 %v5575_v61  ;;  %v5577_v0 = vpop.permute.xlu0 %5576 }
 0xec5   : > { %10375 = vmatprep.subr.bf16.mxu1 %v9805_v36  ;;  %10811 = vmatprep.subr.bf16.mxu0 %v5577_v0 }
 0xec8   : > { %10376 = vmatpush3.bf16.msra.mxu1 %v5549_v56  ;;  %10812 = vmatpush3.bf16.msra.mxu0 %v5577_v0 }
 0xec9   : > { %10377 = vmatprep.subr.bf16.mxu1 %v9806_v53 }
 0xecb   : > { %10814 = vmatmul.mubr.msk.bf16.vlgmr.msra.gmra.mrb[84].mxu0 %vm887_vm6, %v13434_v16  ;;  %v13816_v16 = vld [vmem:[%s15480_s7 + $0x1c] ss:$12 sps:$4 sm:$0xff]  }
 0xecc   : > { %10378 = vmatpush3.bf16.msra.mxu1 %v5551_v50  ;;  %6272 = vmatprep.mubr.bf16.mxu0 %v11043_v58 }
 0xecd   : > { %10379 = vmatprep.subr.bf16.mxu1 %v5569_v49  ;;  %v5328_v49 = vadd.f32 %v13712_v45, %v5130_v13  ;;  %v13880_v13 = vld [vmem:[%s11749_s21 + $0x118] sm:$0xff] }
 0xed0   : > { %10380 = vmatpush3.bf16.msra.mxu1 %v13556_v12 }
 0xed1   : > { %10381 = vmatprep.subr.bf16.mxu1 %v5571_v43  ;;  %v5528_v43 = vadd.f32 %v13792_v15, %v5328_v49 }
 0xed4   : > { %10382 = vmatpush3.bf16.msra.mxu1 %v13560_v5 }
 0xed7   : > { %5613 = vmatmul.mubr.bf16.vlgmr.msra.gmra.mrb[84].mxu1 %v13810_v63 }
 0xed8   : > { %5620 = vmatprep.mubr.bf16.mxu1 %v13816_v16 }
 0xedf   : > { %5621 = vmatmul.mubr.bf16.gmra.mrb[88].mxu1 %v13822_v17 }
 0xee0   : > { %10821 = vmatprep.mubr.msk.bf16.mxu1 %vm887_vm6, %v13828_v38 }
 0xf9e   : > { %v10815_v39 = vpop.f32.mrb[84].mxu0 }
 0xf9f   : > { %v5663_v22 = vpop.f32.mrb[85].mxu0 }
 0xfa0   : > { %v10816_v25 = vpop.f32.mrb[86].mxu0 }
 0xfa1   : > { %v5666_v35 = vpop.f32.mrb[87].mxu0 }
 0xfaa   : > { %v10383_v54 = vpop.f32.mrb[84].mxu1 }
 0xfab   : > { %v10384_v55 = vpop.f32.mrb[85].mxu1 }
 0xfac   : > { %v10385_v57 = vadd.f32 %v10384_v55, %v10383_v54  ;;  %v10386_v60 = vpop.f32.mrb[86].mxu1 }
 0xfad   : > { %v10387_v24 = vpop.f32.mrb[87].mxu1 }
 0xfae   : > { %v10388_v52 = vadd.f32 %v10387_v24, %v10386_v60  ;;  %v5615_v59 = vadd.f32 %v10385_v57, %v12084_v20 }
 0xfb0   : > { %v5664_v44 = vadd.f32 %v5663_v22, %v5615_v59  ;;  %v5618_v14 = vadd.f32 %v10388_v52, %v12089_v47  ;;  %v5131_v22 = vunpack.c.h.bf16 %v13556_v12 }
 0xfb2   : > { %v5678_v31 = vmax.f32 %v5664_v44, 0.0  ;;  %v5667_v41 = vadd.f32 %v5666_v35, %v5618_v14  ;;  %v10389_v3 = vpop.f32.mrb[88].mxu1  ;;  %v5329_v57 = vadd.f32 %v13714_v62, %v5131_v22  ;;  %v5132_v22 = vunpack.c.l.bf16 %v13560_v5 }
 0xfb3   : > { %v10390_v37 = vpop.f32.mrb[89].mxu1 }
 0xfb4   : > { %v5679_v19 = vmax.f32 %v5667_v41, 0.0  ;;  %v10391_v40 = vadd.f32 %v10390_v37, %v10389_v3  ;;  %v10392_v36 = vpop.f32.mrb[90].mxu1  ;;  %5686 = vrot.lane.b32.xlu1 %v5678_v31, %s15528_s30  ;;  %v5529_v44 = vadd.f32 %v13794_v1, %v5329_v57 }
 0xfb5   : > { %v10393_v53 = vpop.f32.mrb[91].mxu1 }
 0xfb6   : > { %v5623_v10 = vadd.f32 %v10391_v40, %v12087_v46  ;;  %v10394_v28 = vadd.f32 %v10393_v53, %v10392_v36  ;;  %5688 = vrot.lane.b32.xlu0 %v5679_v19, %s15528_s30 }
 0xfb8   : > { %v5672_v56 = vadd.f32 %v10815_v39, %v5623_v10  ;;  %v5626_v50 = vadd.f32 %v10394_v28, %v12091_v48 }
 0xfba   : > { %v5680_v18 = vmax.f32 %v5672_v56, 0.0  ;;  %v5675_v42 = vadd.f32 %v10816_v25, %v5626_v50 }
 0xfbc   : > { %v5681_v26 = vmax.f32 %v5675_v42, 0.0  ;;  %5690 = vrot.lane.b32.xlu1 %v5680_v18, %s15528_s30  ;;  %v13873_v18 = vld [vmem:[%s11749_s21 + $0x110] sm:$0xff] }
 0xfbe   : > { %5692 = vrot.lane.b32.xlu0 %v5681_v26, %s15528_s30 }
0x1026   : > { %v5687_v61 = vpop.permute.xlu1 %5686 }
0x1027   : > { %v5698_v0 = vadd.f32 %v5687_v61, %v5528_v43  ;;  %v9811_v43 = vld [vmem:[%s11749_s21 + $0xd0] sm:$0xff] }
0x1028   : > { %v5689_v24 = vpop.permute.xlu0 %5688 }
0x1029   : > { %v5706_v58 = vcombine.high %v5698_v0, %v5698_v0  ;;  %v5713_v39 = vrot.slane %v5698_v0, %v12797_v34  ;;  %v5699_v14 = vadd.f32 %v5689_v24, %v5529_v44  ;;  %v9812_v0 = vld [vmem:[%s11749_s21 + $0xd8] sm:$0xff] }
0x102b   : > { %v5720_v25 = vrot.slane %v5706_v58, %v12797_v34  ;;  %v5721_v35 = vcombine.high %v5713_v39, %v5713_v39  ;;  %v5729_v54 = vrot.slane %v5713_v39, %v12797_v34  ;;  %v5762_v1 = vrot.slane %v5699_v14, %v12797_v34 }
0x102c   : > { %v5755_v61 = vcombine.high %v5699_v14, %v5699_v14 }
0x102d   : > { %v5743_v55 = vrot.slane %v5721_v35, %v12797_v34  ;;  %v5751_v60 = vcombine.high %v5729_v54, %v5729_v54  ;;  %v5905_v45 = vrot.slane %v5729_v54, %v12807_v32  ;;  %v5722_v15 = vcombine.high %v5720_v25, %v5720_v25 }
0x102e   : > { %v5736_v12 = vrot.slane %v5720_v25, %v12797_v34  ;;  %v5770_v36 = vcombine.high %v5762_v1, %v5762_v1  ;;  %v5778_v53 = vrot.slane %v5762_v1, %v12797_v34  ;;  %v5769_v58 = vrot.slane %v5755_v61, %v12797_v34  ;;  %v5691_v57 = vpop.permute.xlu1 %5690  ;;  %v13935_v1 = vld [vmem:[%s11749_s21 + $0x90] sm:$0xff] }
0x102f   : > { %v5909_v52 = vrot.slane %v5743_v55, %v12807_v32  ;;  %v5753_v59 = vcombine.high %v5743_v55, %v5743_v55  ;;  %6030 = vrot.lane.b32.xlu1 %v5905_v45, %s15508_s26  ;;  %v5913_v31 = vrot.slane %v5751_v60, %v12807_v32  ;;  %v5750_v41 = vrot.slane %v5722_v15, %v12797_v34  ;;  %v9813_v45 = vld [vmem:[%s11749_s21 + $0x150] sm:$0xff] }
0x1030   : > { %v5921_v3 = vrot.slane %v5736_v12, %v12807_v32  ;;  %v5752_v37 = vcombine.high %v5736_v12, %v5736_v12  ;;  %v5792_v56 = vrot.slane %v5770_v36, %v12797_v34  ;;  %v5937_v50 = vrot.slane %v5778_v53, %v12807_v32 }
0x1031   : > { %6032 = vrot.lane.b32.xlu0 %v5909_v52, %s15508_s26  ;;  %v5917_v62 = vrot.slane %v5753_v59, %v12807_v32  ;;  %v5925_v19 = vrot.slane %v5750_v41, %v12807_v32  ;;  %v5754_v40 = vcombine.high %v5750_v41, %v5750_v41  ;;  %v5800_v42 = vcombine.high %v5778_v53, %v5778_v53  ;;  %v9814_v52 = vld [vmem:[%s11749_s21 + $0x158] sm:$0xff]  ;;  %v13932_v41 = vld [vmem:[%s11749_s21 + $0x190] sm:$0xff]  ;;  %v13967_v53 = vpop.permute.xlu0 %5692 }
0x1032   : > { %v5929_v10 = vrot.slane %v5752_v37, %v12807_v32  ;;  %v5941_v26 = vrot.slane %v5792_v56, %v12807_v32  ;;  %v5802_v39 = vcombine.high %v5792_v56, %v5792_v56  ;;  %v5771_v25 = vcombine.high %v5769_v58, %v5769_v58  ;;  %v13949_v37 = vld [vmem:[%s11749_s21 + $0x198] sm:$0xff] }
0x1033   : > { %6034 = vrot.lane.b32.xlu1 %v5913_v31, %s15508_s26  ;;  %v5933_v28 = vrot.slane %v5754_v40, %v12807_v32  ;;  %v5945_v49 = vrot.slane %v5800_v42, %v12807_v32  ;;  %v5785_v35 = vrot.slane %v5769_v58, %v12797_v34  ;;  %v5330_v55 = vadd.f32 %v13716_v29, %v5132_v22 }
0x1034   : > { %v5949_v54 = vrot.slane %v5802_v39, %v12807_v32  ;;  %v5799_v15 = vrot.slane %v5771_v25, %v12797_v34 }
0x1035   : > { %6036 = vrot.lane.b32.xlu0 %v5917_v62, %s15508_s26  ;;  %v5530_v60 = vadd.f32 %v13796_v11, %v5330_v55  ;;  %v5953_v5 = vrot.slane %v5785_v35, %v12807_v32  ;;  %v5801_v59 = vcombine.high %v5785_v35, %v5785_v35 }
0x1036   : > { %v5957_v29 = vrot.slane %v5799_v15, %v12807_v32  ;;  %v5803_v44 = vcombine.high %v5799_v15, %v5799_v15 }
0x1037   : > { %6038 = vrot.lane.b32.xlu1 %v5921_v3, %s15508_s26  ;;  %v13907_v24 = vadd.f32 %v5691_v57, %v5530_v60  ;;  %v5961_v12 = vrot.slane %v5801_v59, %v12807_v32  ;;  %v13942_v3 = vld [vmem:[%s11749_s21 + $0x98] sm:$0xff] }
0x1038   : > { %v5965_v31 = vrot.slane %v5803_v44, %v12807_v32  ;;  %v14035_v44 = vld [vmem:[%s11749_s21 + $0x168] sm:$0xff] }
0x1039   : > { %6040 = vrot.lane.b32.xlu0 %v5925_v19, %s15508_s26  ;;  %v5811_v11 = vrot.slane %v13907_v24, %v12797_v34 }
0x103b   : > { %6042 = vrot.lane.b32.xlu1 %v5929_v10, %s15508_s26  ;;  %v13919_v14 = vrot.slane %v5811_v11, %v12797_v34  ;;  %v5819_v19 = vcombine.high %v5811_v11, %v5811_v11  ;;  %v14032_v11 = vld [vmem:[%s11749_s21 + $0x120] sm:$0xff] }
0x103d   : > { %6044 = vrot.lane.b32.xlu0 %v5933_v28, %s15508_s26  ;;  %v5969_v62 = vrot.slane %v13919_v14, %v12807_v32  ;;  %v13960_v40 = vrot.slane %v5819_v19, %v12797_v34  ;;  %v5849_v55 = vcombine.high %v13919_v14, %v13919_v14 }
0x103f   : > { %6046 = vrot.lane.b32.xlu1 %v5937_v50, %s15508_s26  ;;  %v5973_v36 = vrot.slane %v13960_v40, %v12807_v32 }
0x1041   : > { %6180 = vrot.lane.b32.xlu0 %v13873_v18, %s15527_s19 }
0x1043   : > { %6048 = vrot.lane.b32.xlu1 %v5941_v26, %s15508_s26 }
0x1045   : > { %6182 = vrot.lane.b32.xlu0 %v13880_v13, %s15527_s19 }
0x1047   : > { %6050 = vrot.lane.b32.xlu1 %v5945_v49, %s15508_s26 }
0x1049   : > { %6184 = vrot.lane.b32.xlu0 %v13873_v18, %s15530_s0 }
0x104b   : > { %6170 = vrot.lane.b32.xlu1 %v9811_v43, %s15527_s19 }
0x104d   : > { %6186 = vrot.lane.b32.xlu0 %v13880_v13, %s15530_s0 }
0x104f   : > { %6172 = vrot.lane.b32.xlu1 %v9812_v0, %s15527_s19 }
0x1051   : > { %6174 = vrot.lane.b32.xlu0 %v9811_v43, %s15530_s0 }
0x1053   : > { %6052 = vrot.lane.b32.xlu1 %v5949_v54, %s15508_s26 }
0x1055   : > { %6176 = vrot.lane.b32.xlu0 %v9812_v0, %s15530_s0 }
0x1057   : > { %6054 = vrot.lane.b32.xlu1 %v5953_v5, %s15508_s26  ;;  %v5977_v5 = vrot.slane %v5849_v55, %v12807_v32 }
0x1059   : > { %6190 = vrot.lane.b32.xlu0 %v9813_v45, %s15527_s19 }
0x105b   : > { %6056 = vrot.lane.b32.xlu1 %v5957_v29, %s15508_s26  ;;  %v14024_v29 = vld [vmem:[%s11749_s21 + $0x160] sm:$0xff] }
0x105d   : > { %6192 = vrot.lane.b32.xlu0 %v9814_v52, %s15527_s19 }
0x105f   : > { %6058 = vrot.lane.b32.xlu1 %v5961_v12, %s15508_s26 }
0x1061   : > { %6060 = vrot.lane.b32.xlu0 %v5965_v31, %s15508_s26  ;;  %v14044_v31 = vld [vmem:[%s11749_s21 + $0x128] sm:$0xff] }
0x1063   : > { %6194 = vrot.lane.b32.xlu1 %v9813_v45, %s15530_s0 }
0x1065   : > { %6062 = vrot.lane.b32.xlu0 %v5969_v62, %s15508_s26 }
0x1067   : > { %6196 = vrot.lane.b32.xlu1 %v9814_v52, %s15530_s0 }
0x1069   : > { %6376 = vrot.lane.b32.xlu0 %v13873_v18, %s15526_s22 }
0x106b   : > { %6368 = vrot.lane.b32.xlu1 %v13935_v1, %s15530_s0 }
0x106d   : > { %6386 = vrot.lane.b32.xlu0 %v13932_v41, %s15526_s22 }
0x106f   : > { %6378 = vrot.lane.b32.xlu1 %v13880_v13, %s15526_s22 }
0x1071   : > { %6370 = vrot.lane.b32.xlu0 %v13942_v3, %s15530_s0 }
0x1073   : > { %6388 = vrot.lane.b32.xlu1 %v13949_v37, %s15526_s22 }
0x1075   : > { %6372 = vrot.lane.b32.xlu0 %v13935_v1, %s15526_s22 }
0x1077   : > { %6374 = vrot.lane.b32.xlu1 %v13942_v3, %s15526_s22 }
0x1079   : > { %6382 = vrot.lane.b32.xlu0 %v13932_v41, %s15530_s0 }
0x107d   : > { %6384 = vrot.lane.b32.xlu0 %v13949_v37, %s15530_s0 }
0x1081   : > { %6064 = vrot.lane.b32.xlu0 %v5973_v36, %s15508_s26 }
0x10a1   : > { %v6031_v10 = vpop.permute.xlu1 %6030 }
0x10a2   : > { %6126 = vst.msk [vmem:[%s11268_s17 + $0x4] sm:$0x1] %vm1933_vm7, %v6031_v10 }
0x10a3   : > { %v6033_v28 = vpop.permute.xlu0 %6032 }
0x10a4   : > { %6127 = vst.msk [vmem:[%s11268_s17 + $0xc] sm:$0x1] %vm1933_vm7, %v6033_v28  ;;  %v9833_v28 = vld [vmem:[%s11749_s21 + $0xe0] sm:$0xff] }
0x10a5   : > { %v6035_v56 = vpop.permute.xlu1 %6034 }
0x10a6   : > { %6128 = vst.msk [vmem:[%s11268_s17 + $0x14] sm:$0x1] %vm1933_vm7, %v6035_v56 }
0x10a7   : > { %v6037_v50 = vpop.permute.xlu0 %6036 }
0x10a8   : > { %6129 = vst.msk [vmem:[%s11268_s17 + $0x1c] sm:$0x1] %vm1933_vm7, %v6037_v50 }
0x10a9   : > { %v6039_v42 = vpop.permute.xlu1 %6038 }
0x10aa   : > { %6130 = vst.msk [vmem:[%s11268_s17 + $0x24] sm:$0x1] %vm1933_vm7, %v6039_v42 }
0x10ab   : > { %v6041_v26 = vpop.permute.xlu0 %6040 }
0x10ac   : > { %6131 = vst.msk [vmem:[%s11268_s17 + $0x2c] sm:$0x1] %vm1933_vm7, %v6041_v26 }
0x10ad   : > { %v6043_v49 = vpop.permute.xlu1 %6042 }
0x10ae   : > { %6132 = vst.msk [vmem:[%s11268_s17 + $0x34] sm:$0x1] %vm1933_vm7, %v6043_v49 }
0x10af   : > { %v6045_v43 = vpop.permute.xlu0 %6044 }
0x10b0   : > { %6133 = vst.msk [vmem:[%s11268_s17 + $0x3c] sm:$0x1] %vm1933_vm7, %v6045_v43  ;;  %v14080_v43 = vld [vmem:[%s11749_s21 + $0xa0] sm:$0xff] }
0x10b1   : > { %v6047_v61 = vpop.permute.xlu1 %6046 }
0x10b2   : > { %6134 = vst.msk [vmem:[%s11268_s17 + $0x44] sm:$0x1] %vm1933_vm7, %v6047_v61 }
0x10b3   : > { %v13987_v0 = vpop.permute.xlu0 %6180 }
0x10b4   : > { %6206 = vrot.lane.b32.xlu1 %v13987_v0, %s15530_s0 }
0x10b5   : > { %v6049_v58 = vpop.permute.xlu1 %6048 }
0x10b6   : > { %6135 = vst.msk [vmem:[%s11268_s17 + $0x4c] sm:$0x1] %vm1933_vm7, %v6049_v58 }
0x10b7   : > { %v13993_v39 = vpop.permute.xlu0 %6182 }
0x10b8   : > { %6208 = vrot.lane.b32.xlu1 %v13993_v39, %s15530_s0 }
0x10b9   : > { %v6051_v22 = vpop.permute.xlu1 %6050 }
0x10ba   : > { %6136 = vst.msk [vmem:[%s11268_s17 + $0x54] sm:$0x1] %vm1933_vm7, %v6051_v22 }
0x10bb   : > { %v13999_v25 = vpop.permute.xlu0 %6184 }
0x10bc   : > { %6210 = vrot.lane.b32.xlu1 %v13999_v25, %s15530_s0 }
0x10bd   : > { %v6171_v35 = vpop.permute.xlu1 %6170 }
0x10be   : > { %6198 = vrot.lane.b32.xlu0 %v6171_v35, %s15530_s0  ;;  %v14094_v35 = vld [vmem:[%s11749_s21 + $0xa8] sm:$0xff] }
0x10bf   : > { %v14004_v54 = vpop.permute.xlu0 %6186 }
0x10c0   : > { %6212 = vrot.lane.b32.xlu1 %v14004_v54, %s15530_s0 }
0x10c1   : > { %v6173_v57 = vpop.permute.xlu1 %6172 }
0x10c2   : > { %6200 = vrot.lane.b32.xlu0 %v6173_v57, %s15530_s0 }
0x10c3   : > { %v14011_v60 = vpop.permute.xlu0 %6174 }
0x10c4   : > { %6202 = vrot.lane.b32.xlu1 %v14011_v60, %s15530_s0 }
0x10c5   : > { %v6053_v45 = vpop.permute.xlu1 %6052 }
0x10c6   : > { %6137 = vst.msk [vmem:[%s11268_s17 + $0x5c] sm:$0x1] %vm1933_vm7, %v6053_v45  ;;  %6066 = vrot.lane.b32.xlu0 %v5977_v5, %s15508_s26  ;;  %v14128_v45 = vld [vmem:[%s11749_s21 + $0x1a8] sm:$0xff] }
0x10c7   : > { %v14019_v15 = vpop.permute.xlu0 %6176 }
0x10c8   : > { %6204 = vrot.lane.b32.xlu1 %v14019_v15, %s15530_s0 }
0x10c9   : > { %v6055_v52 = vpop.permute.xlu1 %6054 }
0x10ca   : > { %6138 = vst.msk [vmem:[%s11268_s17 + $0x64] sm:$0x1] %vm1933_vm7, %v6055_v52  ;;  %7224 = vrot.lane.b32.xlu0 %v14024_v29, %s15530_s0 }
0x10cb   : > { %v6191_v59 = vpop.permute.xlu0 %6190 }
0x10cc   : > { %6214 = vrot.lane.b32.xlu1 %v6191_v59, %s15530_s0  ;;  %v14153_v59 = vld [vmem:[%s11749_s21 + $0x1d0] sm:$0xff] }
0x10cd   : > { %v6057_v12 = vpop.permute.xlu1 %6056 }
0x10ce   : > { %6139 = vst.msk [vmem:[%s11268_s17 + $0x6c] sm:$0x1] %vm1933_vm7, %v6057_v12  ;;  %7210 = vrot.lane.b32.xlu0 %v14032_v11, %s15527_s19 }
0x10cf   : > { %v6193_v14 = vpop.permute.xlu0 %6192 }
0x10d0   : > { %7226 = vrot.lane.b32.xlu1 %v14035_v44, %s15530_s0 }
0x10d1   : > { %v6059_v62 = vpop.permute.xlu1 %6058 }
0x10d2   : > { %6140 = vst.msk [vmem:[%s11268_s17 + $0x74] sm:$0x1] %vm1933_vm7, %v6059_v62  ;;  %6216 = vrot.lane.b32.xlu0 %v6193_v14, %s15530_s0 }
0x10d3   : > { %v6061_v19 = vpop.permute.xlu0 %6060 }
0x10d4   : > { %6141 = vst.msk [vmem:[%s11268_s17 + $0x7c] sm:$0x1] %vm1933_vm7, %v6061_v19  ;;  %7212 = vrot.lane.b32.xlu1 %v14044_v31, %s15527_s19  ;;  %v14172_v19 = vld [vmem:[%s11749_s21 + $0x130] sm:$0xff] }
0x10d5   : > { %v14064_v56 = vpop.permute.xlu1 %6194 }
0x10d6   : > { %7214 = vrot.lane.b32.xlu0 %v14032_v11, %s15530_s0 }
0x10d7   : > { %v6063_v36 = vpop.permute.xlu0 %6062 }
0x10d8   : > { %6142 = vst.msk [vmem:[%s11268_s17 + $0x84] sm:$0x1] %vm1933_vm7, %v6063_v36  ;;  %6402 = vrot.lane.b32.xlu1 %v13999_v25, %s15527_s19 }
0x10d9   : > { %v14076_v49 = vpop.permute.xlu1 %6196 }
0x10da   : > { %6390 = vrot.lane.b32.xlu0 %v13935_v1, %s15527_s19  ;;  %v9834_v1 = vld [vmem:[%s11749_s21 + $0xe8] sm:$0xff] }
0x10db   : > { %v6377_v10 = vpop.permute.xlu0 %6376 }
0x10dc   : > { %7216 = vrot.lane.b32.xlu1 %v14044_v31, %s15530_s0 }
0x10de   : > { %7200 = vrot.lane.b32.xlu0 %v9833_v28, %s15527_s19 }
0x10df   : > { %v6387_v50 = vpop.permute.xlu0 %6386 }
0x10e0   : > { %6218 = vrot.lane.b32.xlu1 %v14064_v56, %s15530_s0 }
0x10e2   : > { %6404 = vrot.lane.b32.xlu0 %v14004_v54, %s15527_s19 }
0x10e3   : > { %v6371_v42 = vpop.permute.xlu0 %6370 }
0x10e4   : > { %6392 = vrot.lane.b32.xlu1 %v13942_v3, %s15527_s19  ;;  %v6369_v3 = vpop.permute.xlu1 %6368 }
0x10e6   : > { %7406 = vrot.lane.b32.xlu0 %v14032_v11, %s15526_s22 }
0x10e7   : > { %v6373_v26 = vpop.permute.xlu0 %6372 }
0x10e8   : > { %7202 = vrot.lane.b32.xlu1 %v9834_v1, %s15527_s19  ;;  %v6379_v55 = vpop.permute.xlu1 %6378 }
0x10ea   : > { %7398 = vrot.lane.b32.xlu0 %v14080_v43, %s15530_s0 }
0x10eb   : > { %v6383_v61 = vpop.permute.xlu0 %6382 }
0x10ec   : > { %6220 = vrot.lane.b32.xlu1 %v14076_v49, %s15530_s0  ;;  %v6389_v57 = vpop.permute.xlu1 %6388 }
0x10ee   : > { %6406 = vrot.lane.b32.xlu0 %v6377_v10, %s15527_s19 }
0x10ef   : > { %v6385_v58 = vpop.permute.xlu0 %6384 }
0x10f0   : > { %6394 = vrot.lane.b32.xlu1 %v6369_v3, %s15527_s19  ;;  %v6375_v5 = vpop.permute.xlu1 %6374  ;;  %v14210_v3 = vld [vmem:[%s15476_s3] ss:$12 sps:$4 sm:$0xff]  }
0x10f2   : > { %7408 = vrot.lane.b32.xlu0 %v14044_v31, %s15526_s22 }
0x10f3   : > { %v6065_v22 = vpop.permute.xlu0 %6064 }
0x10f4   : > { %6143 = vst.msk [vmem:[%s11268_s17 + $0x8c] sm:$0x1] %vm1933_vm7, %v6065_v22  ;;  %7204 = vrot.lane.b32.xlu1 %v9833_v28, %s15530_s0  ;;  %v14219_v22 = vld [vmem:[%s15476_s3 + $0x1c] ss:$12 sps:$4 sm:$0xff]  }
0x10f6   : > { %7400 = vrot.lane.b32.xlu0 %v14094_v35, %s15530_s0 }
0x10f8   : > { %6418 = vrot.lane.b32.xlu1 %v6387_v50, %s15527_s19 }
0x10fa   : > { %6408 = vrot.lane.b32.xlu0 %v6379_v55, %s15527_s19 }
0x10fc   : > { %6396 = vrot.lane.b32.xlu1 %v6371_v42, %s15527_s19 }
0x10fe   : > { %7206 = vrot.lane.b32.xlu0 %v9834_v1, %s15530_s0 }
0x1100   : > { %7402 = vrot.lane.b32.xlu1 %v14080_v43, %s15526_s22 }
0x1102   : > { %6420 = vrot.lane.b32.xlu0 %v6389_v57, %s15527_s19 }
0x1104   : > { %6410 = vrot.lane.b32.xlu1 %v13932_v41, %s15527_s19  ;;  %v14118_v41 = vld [vmem:[%s11749_s21 + $0x1a0] sm:$0xff] }
0x1106   : > { %6398 = vrot.lane.b32.xlu0 %v6373_v26, %s15527_s19  ;;  %v14194_v26 = vld [vmem:[%s11749_s21 + $0x138] sm:$0xff] }
0x1108   : > { %7220 = vrot.lane.b32.xlu1 %v14024_v29, %s15527_s19  ;;  %v14141_v29 = vld [vmem:[%s11749_s21 + $0x58] sm:$0xff] }
0x110a   : > { %7404 = vrot.lane.b32.xlu0 %v14094_v35, %s15526_s22 }
0x110c   : > { %6584 = vrot.lane.b32.xlu1 %v13873_v18, %s15508_s26 }
0x110e   : > { %6412 = vrot.lane.b32.xlu0 %v13949_v37, %s15527_s19  ;;  %v14135_v37 = vld [vmem:[%s11749_s21 + $0x50] sm:$0xff] }
0x1110   : > { %6400 = vrot.lane.b32.xlu1 %v6375_v5, %s15527_s19 }
0x1112   : > { %7222 = vrot.lane.b32.xlu0 %v14035_v44, %s15527_s19 }
0x1114   : > { %7412 = vrot.lane.b32.xlu1 %v14118_v41, %s15530_s0 }
0x1116   : > { %6586 = vrot.lane.b32.xlu0 %v13880_v13, %s15508_s26 }
0x1118   : > { %6414 = vrot.lane.b32.xlu1 %v6383_v61, %s15527_s19 }
0x111a   : > { %7414 = vrot.lane.b32.xlu0 %v14128_v45, %s15530_s0 }
0x111c   : > { %6590 = vrot.lane.b32.xlu1 %v13873_v18, %s15529_s23 }
0x111e   : > { %6416 = vrot.lane.b32.xlu0 %v6385_v58, %s15527_s19 }
0x1120   : > { %6572 = vrot.lane.b32.xlu1 %v14135_v37, %s15508_s26 }
0x1122   : > { %6592 = vrot.lane.b32.xlu0 %v13880_v13, %s15529_s23 }
0x1124   : > { %6574 = vrot.lane.b32.xlu1 %v14141_v29, %s15508_s26 }
0x1126   : > { %v6207_v52 = vpop.permute.xlu1 %6206  ;;  %7416 = vrot.lane.b32.xlu0 %v14118_v41, %s15526_s22 }
0x1127   : > { %10399 = vmatprep.subr.bf16.mxu0 %v6207_v52 }
0x1128   : > { %10400 = vmatpush3.bf16.msra.mxu0 %v14011_v60  ;;  %6578 = vrot.lane.b32.xlu1 %v14135_v37, %s15529_s23  ;;  %v14165_v60 = vld [vmem:[%s11749_s21 + $0x1d8] sm:$0xff] }
0x112a   : > { %v6209_v44 = vpop.permute.xlu1 %6208  ;;  %7418 = vrot.lane.b32.xlu0 %v14128_v45, %s15526_s22 }
0x112b   : > { %10401 = vmatprep.subr.bf16.mxu0 %v6209_v44  ;;  %v14240_v44 = vld [vmem:[%s15478_s5 + $0x4] ss:$12 sps:$4 sm:$0xff]  }
0x112c   : > { %10402 = vmatpush3.bf16.msra.mxu0 %v14019_v15  ;;  %6604 = vrot.lane.b32.xlu1 %v14153_v59, %s15529_s23 }
0x112e   : > { %v6211_v12 = vpop.permute.xlu1 %6210  ;;  %6580 = vrot.lane.b32.xlu0 %v14141_v29, %s15529_s23 }
0x112f   : > { %10403 = vmatprep.subr.bf16.mxu0 %v6211_v12 }
0x1130   : > { %6598 = vrot.lane.b32.xlu1 %v14153_v59, %s15508_s26  ;;  %v6199_v14 = vpop.permute.xlu0 %6198 }
0x1131   : > { %10404 = vmatpush3.bf16.msra.mxu0 %v6199_v14 }
0x1132   : > { %v6213_v62 = vpop.permute.xlu1 %6212  ;;  %6606 = vrot.lane.b32.xlu0 %v14165_v60, %s15529_s23 }
0x1133   : > { %10405 = vmatprep.subr.bf16.mxu0 %v6213_v62  ;;  %v9856_v62 = vld [vmem:[%s11749_s21 + $0xf8] sm:$0xff] }
0x1134   : > { %6600 = vrot.lane.b32.xlu1 %v14165_v60, %s15508_s26  ;;  %v6201_v15 = vpop.permute.xlu0 %6200 }
0x1135   : > { %10406 = vmatpush3.bf16.msra.mxu0 %v6201_v15 }
0x1136   : > { %v6203_v36 = vpop.permute.xlu1 %6202  ;;  %10407 = vmatprep.subr.bf16.mxu0 %v14064_v56 }
0x1138   : > { %8240 = vrot.lane.b32.xlu1 %v14172_v19, %s15527_s19  ;;  %v6067_v10 = vpop.permute.xlu0 %6066 }
0x1139   : > { %6144 = vst.msk [vmem:[%s11268_s17 + $0x94] sm:$0x1] %vm1933_vm7, %v6067_v10  ;;  %10408 = vmatpush3.bf16.msra.mxu0 %v6203_v36 }
0x113a   : > { %v6205_v28 = vpop.permute.xlu1 %6204  ;;  %10409 = vmatprep.subr.bf16.mxu0 %v14076_v49 }
0x113c   : > { %v14180_v50 = vpop.permute.xlu0 %7224 }
0x113d   : > { %7248 = vrot.lane.b32.xlu0 %v14180_v50, %s15530_s0  ;;  %10410 = vmatpush3.bf16.msra.mxu0 %v6205_v28 }
0x113e   : > { %v6215_v42 = vpop.permute.xlu1 %6214 }
0x113f   : > { %10411 = vmatprep.subr.bf16.mxu0 %v6215_v42 }
0x1140   : > { %v14184_v56 = vpop.permute.xlu0 %7210 }
0x1141   : > { %7236 = vrot.lane.b32.xlu0 %v14184_v56, %s15530_s0  ;;  %10412 = vmatpush3.bf16.msra.mxu0 %v13999_v25 }
0x1142   : > { %v14189_v1 = vpop.permute.xlu1 %7226 }
0x1143   : > { %7250 = vrot.lane.b32.xlu1 %v14189_v1, %s15530_s0 }
0x1144   : > { %v6217_v49 = vpop.permute.xlu0 %6216 }
0x1145   : > { %8242 = vrot.lane.b32.xlu0 %v14194_v26, %s15527_s19  ;;  %10413 = vmatprep.subr.bf16.mxu0 %v6217_v49  ;;  %v14258_v49 = vld [vmem:[%s15476_s3 + $0x20] ss:$12 sps:$4 sm:$0xff]  }
0x1146   : > { %v14198_v61 = vpop.permute.xlu1 %7212  ;;  %10414 = vmatpush3.bf16.msra.mxu0 %v14004_v54  ;;  %v9855_v54 = vld [vmem:[%s11749_s21 + $0xf0] sm:$0xff] }
0x1147   : > { %7238 = vrot.lane.b32.xlu1 %v14198_v61, %s15530_s0 }
0x1148   : > { %v14203_v25 = vpop.permute.xlu0 %7214 }
0x1149   : > { %7432 = vrot.lane.b32.xlu0 %v14203_v25, %s15527_s19  ;;  %6273 = vmatmul.mubr.bf16.vlgmr.msra.gmra.mrb[88].mxu0 %v14210_v3 }
0x114a   : > { %v6403_v58 = vpop.permute.xlu1 %6402  ;;  %6280 = vmatprep.mubr.bf16.mxu0 %v14219_v22 }
0x114b   : > { %7420 = vrot.lane.b32.xlu1 %v14080_v43, %s15527_s19  ;;  %10431 = vmatprep.subr.bf16.mxu0 %v6403_v58  ;;  %v14232_v43 = vld [vmem:[%s15476_s3 + $0x18] ss:$12 sps:$4 sm:$0xff]   ;;  %v14265_v58 = vld [vmem:[%s15478_s5 + $0x8] ss:$12 sps:$4 sm:$0xff]  }
0x114c   : > { %v6391_v55 = vpop.permute.xlu0 %6390 }
0x114d   : > { %8244 = vrot.lane.b32.xlu0 %v14172_v19, %s15530_s0  ;;  %10432 = vmatpush3.bf16.msra.mxu0 %v6391_v55 }
0x114e   : > { %v14224_v57 = vpop.permute.xlu1 %7216 }
0x114f   : > { %8230 = vrot.lane.b32.xlu1 %v9855_v54, %s15527_s19 }
0x1150   : > { %v7201_v5 = vpop.permute.xlu0 %7200 }
0x1151   : > { %7240 = vrot.lane.b32.xlu0 %v14203_v25, %s15530_s0  ;;  %6281 = vmatmul.mubr.bf16.gmra.mrb[92].mxu0 %v14232_v43 }
0x1152   : > { %v6219_v52 = vpop.permute.xlu1 %6218  ;;  %6472 = vmatprep.mubr.bf16.mxu0 %v14240_v44 }
0x1153   : > { %7434 = vrot.lane.b32.xlu1 %v14224_v57, %s15527_s19  ;;  %10817 = vmatprep.subr.bf16.mxu1 %v6219_v52 }
0x1154   : > { %10818 = vmatpush3.bf16.msra.mxu1 %v6219_v52  ;;  %v6405_v12 = vpop.permute.xlu0 %6404 }
0x1155   : > { %7228 = vrot.lane.b32.xlu0 %v7201_v5, %s15530_s0  ;;  %10433 = vmatprep.subr.bf16.mxu0 %v6405_v12 }
0x1156   : > { %v6393_v14 = vpop.permute.xlu1 %6392 }
0x1157   : > { %7422 = vrot.lane.b32.xlu1 %v14094_v35, %s15527_s19  ;;  %10434 = vmatpush3.bf16.msra.mxu0 %v6393_v14  ;;  %v9857_v14 = vld [vmem:[%s11749_s21 + $0x170] sm:$0xff] }
0x1158   : > { %v7407_v15 = vpop.permute.xlu0 %7406 }
0x1159   : > { %8246 = vrot.lane.b32.xlu0 %v14194_v26, %s15530_s0 }
0x115a   : > { %v7203_v36 = vpop.permute.xlu1 %7202 }
0x115b   : > { %8232 = vrot.lane.b32.xlu1 %v9856_v62, %s15527_s19 }
0x115c   : > { %v7399_v10 = vpop.permute.xlu0 %7398 }
0x115d   : > { %7242 = vrot.lane.b32.xlu0 %v14224_v57, %s15530_s0 }
0x115e   : > { %v6221_v28 = vpop.permute.xlu1 %6220 }
0x115f   : > { %7436 = vrot.lane.b32.xlu1 %v7407_v15, %s15527_s19  ;;  %10819 = vmatprep.subr.bf16.mxu1 %v6221_v28 }
0x1160   : > { %10820 = vmatpush3.bf16.msra.mxu1 %v6221_v28  ;;  %v6407_v42 = vpop.permute.xlu0 %6406 }
0x1161   : > { %7230 = vrot.lane.b32.xlu0 %v7203_v36, %s15530_s0  ;;  %10435 = vmatprep.subr.bf16.mxu0 %v6407_v42 }
0x1162   : > { %v6395_v35 = vpop.permute.xlu1 %6394 }
0x1163   : > { %7424 = vrot.lane.b32.xlu1 %v7399_v10, %s15527_s19  ;;  %10822 = vmatmul.mubr.msk.bf16.vlgmr.msra.gmra.mrb[92].mxu1 %vm887_vm6, %v14258_v49 }
0x1164   : > { %10436 = vmatpush3.bf16.msra.mxu0 %v6395_v35  ;;  %10829 = vmatprep.mubr.msk.bf16.mxu1 %vm887_vm6, %v14265_v58  ;;  %v7409_v55 = vpop.permute.xlu0 %7408  ;;  %v9858_v35 = vld [vmem:[%s11749_s21 + $0x178] sm:$0xff] }
0x1165   : > { %8234 = vrot.lane.b32.xlu0 %v9855_v54, %s15530_s0 }
0x1166   : > { %v14270_v5 = vpop.permute.xlu1 %7204 }
0x1167   : > { %7438 = vrot.lane.b32.xlu1 %v7409_v55, %s15527_s19 }
0x1168   : > { %v7401_v52 = vpop.permute.xlu0 %7400 }
0x1169   : > { %7232 = vrot.lane.b32.xlu0 %v14270_v5, %s15530_s0 }
0x116a   : > { %v6419_v12 = vpop.permute.xlu1 %6418 }
0x116b   : > { %7426 = vrot.lane.b32.xlu1 %v7401_v52, %s15527_s19  ;;  %10825 = vmatprep.subr.bf16.mxu1 %v6419_v12 }
0x116c   : > { %10826 = vmatpush3.bf16.msra.mxu1 %v6419_v12  ;;  %v6409_v15 = vpop.permute.xlu0 %6408  ;;  %v14297_v12 = vld [vmem:[%s11749_s21 + $0x1b0] sm:$0xff] }
0x116d   : > { %8254 = vrot.lane.b32.xlu0 %v9857_v14, %s15530_s0  ;;  %10437 = vmatprep.subr.bf16.mxu0 %v6409_v15 }
0x116e   : > { %v6397_v36 = vpop.permute.xlu1 %6396 }
0x116f   : > { %8236 = vrot.lane.b32.xlu1 %v9856_v62, %s15530_s0  ;;  %10438 = vmatpush3.bf16.msra.mxu0 %v6397_v36 }
0x1170   : > { %v14279_v54 = vpop.permute.xlu0 %7206 }
0x1171   : > { %7440 = vrot.lane.b32.xlu0 %v14118_v41, %s15527_s19 }
0x1172   : > { %v7403_v10 = vpop.permute.xlu1 %7402 }
0x1173   : > { %7234 = vrot.lane.b32.xlu1 %v14279_v54, %s15530_s0 }
0x1174   : > { %v6421_v28 = vpop.permute.xlu0 %6420 }
0x1175   : > { %7428 = vrot.lane.b32.xlu0 %v7403_v10, %s15527_s19  ;;  %10827 = vmatprep.subr.bf16.mxu1 %v6421_v28 }
0x1176   : > { %v6411_v42 = vpop.permute.xlu1 %6410  ;;  %10828 = vmatpush3.bf16.msra.mxu1 %v6421_v28 }
0x1177   : > { %8250 = vrot.lane.b32.xlu1 %v9857_v14, %s15527_s19  ;;  %10439 = vmatprep.subr.bf16.mxu0 %v6411_v42  ;;  %v14316_v42 = vld [vmem:[%s11749_s21 + $0xb0] sm:$0xff] }
0x1178   : > { %v6399_v62 = vpop.permute.xlu0 %6398 }
0x1179   : > { %8256 = vrot.lane.b32.xlu0 %v9858_v35, %s15530_s0  ;;  %10440 = vmatpush3.bf16.msra.mxu0 %v6399_v62 }
0x117a   : > { %v7221_v55 = vpop.permute.xlu1 %7220  ;;  %10830 = vmatmul.mubr.msk.bf16.vlgmr.msra.gmra.mrb[96].mxu1 %vm887_vm6, %v13739_v4 }
0x117b   : > { %7244 = vrot.lane.b32.xlu1 %v7221_v55, %s15530_s0  ;;  %6642 = vmatprep.mubr.bf16.mxu1 %v13761_v21 }
0x117c   : > { %v7405_v41 = vpop.permute.xlu0 %7404 }
0x117d   : > { %7442 = vrot.lane.b32.xlu0 %v14128_v45, %s15527_s19  ;;  %v14306_v45 = vld [vmem:[%s11749_s21 + $0x1b8] sm:$0xff] }
0x117e   : > { %v6585_v52 = vpop.permute.xlu1 %6584 }
0x117f   : > { %7430 = vrot.lane.b32.xlu1 %v7405_v41, %s15527_s19  ;;  %10463 = vmatprep.subr.bf16.mxu1 %v6585_v52  ;;  %v14332_v41 = vld [vmem:[%s11749_s21 + $0xb8] sm:$0xff] }
0x1180   : > { %10464 = vmatpush3.bf16.msra.mxu1 %v14135_v37  ;;  %v6413_v14 = vpop.permute.xlu0 %6412 }
0x1181   : > { %8252 = vrot.lane.b32.xlu0 %v9858_v35, %s15527_s19  ;;  %10441 = vmatprep.subr.bf16.mxu0 %v6413_v14 }
0x1182   : > { %v6401_v15 = vpop.permute.xlu1 %6400 }
0x1183   : > { %8446 = vrot.lane.b32.xlu1 %v14297_v12, %s15526_s22  ;;  %10442 = vmatpush3.bf16.msra.mxu0 %v6401_v15 }
0x1184   : > { %v7223_v4 = vpop.permute.xlu0 %7222 }
0x1185   : > { %7246 = vrot.lane.b32.xlu0 %v7223_v4, %s15530_s0  ;;  %v14350_v4 = vld [vmem:[%s15478_s5 + $0x18] ss:$12 sps:$4 sm:$0xff]  }
0x1186   : > { %v7413_v21 = vpop.permute.xlu1 %7412 }
0x1187   : > { %7444 = vrot.lane.b32.xlu1 %v7413_v21, %s15527_s19 }
0x1188   : > { %v6587_v36 = vpop.permute.xlu0 %6586 }
0x1189   : > { %8448 = vrot.lane.b32.xlu0 %v14306_v45, %s15526_s22  ;;  %10465 = vmatprep.subr.bf16.mxu1 %v6587_v36 }
0x118a   : > { %v6415_v37 = vpop.permute.xlu1 %6414  ;;  %10466 = vmatpush3.bf16.msra.mxu1 %v14141_v29  ;;  %v14326_v29 = vld [vmem:[%s15478_s5] ss:$12 sps:$4 sm:$0xff]  }
0x118b   : > { %10443 = vmatprep.subr.bf16.mxu0 %v6415_v37  ;;  %v14366_v37 = vld [vmem:[%s11749_s21 + $0x60] sm:$0xff] }
0x118c   : > { %10444 = vmatpush3.bf16.msra.mxu0 %v13987_v0  ;;  %v7415_v10 = vpop.permute.xlu0 %7414 }
0x118d   : > { %7446 = vrot.lane.b32.xlu1 %v7415_v10, %s15527_s19  ;;  %7614 = vrot.lane.b32.xlu0 %v14032_v11, %s15508_s26 }
0x118e   : > { %v6591_v28 = vpop.permute.xlu1 %6590 }
0x118f   : > { %10467 = vmatprep.subr.bf16.mxu1 %v6591_v28 }
0x1190   : > { %v6417_v35 = vpop.permute.xlu0 %6416 }
0x1191   : > { %10445 = vmatprep.subr.bf16.mxu0 %v6417_v35  ;;  %8428 = vrot.lane.b32.xlu0 %v14316_v42, %s15530_s0  ;;  %v14374_v35 = vld [vmem:[%s11749_s21 + $0x1e0] sm:$0xff] }
0x1192   : > { %v6573_v62 = vpop.permute.xlu1 %6572  ;;  %10446 = vmatpush3.bf16.msra.mxu0 %v13993_v39  ;;  %8436 = vrot.lane.b32.xlu1 %v14172_v19, %s15526_s22  ;;  %v14337_v39 = vld [vmem:[%s15478_s5 + $0x1c] ss:$12 sps:$4 sm:$0xff]  }
0x1193   : > { %10468 = vmatpush3.bf16.msra.mxu1 %v6573_v62  ;;  %v14382_v62 = vld [vmem:[%s11749_s21 + $0x68] sm:$0xff] }
0x1194   : > { %v6593_v0 = vpop.permute.xlu0 %6592 }
0x1195   : > { %6473 = vmatmul.mubr.bf16.vlgmr.msra.gmra.mrb[96].mxu0 %v14326_v29  ;;  %7616 = vrot.lane.b32.xlu0 %v14044_v31, %s15508_s26 }
0x1196   : > { %v6575_v55 = vpop.permute.xlu1 %6574  ;;  %10469 = vmatprep.subr.bf16.mxu1 %v6593_v0  ;;  %6480 = vmatprep.mubr.bf16.mxu0 %v14337_v39 }
0x1197   : > { %10470 = vmatpush3.bf16.msra.mxu1 %v6575_v55  ;;  %v14419_v55 = vld [vmem:[%s15476_s3 + $0x4] ss:$12 sps:$4 sm:$0xff]  }
0x1198   : > { %v7417_v52 = vpop.permute.xlu0 %7416  ;;  %10471 = vmatprep.subr.bf16.mxu1 %v14153_v59 }
0x1199   : > { %7448 = vrot.lane.b32.xlu1 %v7417_v52, %s15527_s19  ;;  %8430 = vrot.lane.b32.xlu0 %v14332_v41, %s15530_s0 }
0x119a   : > { %v6579_v14 = vpop.permute.xlu1 %6578 }
0x119b   : > { %10472 = vmatpush3.bf16.msra.mxu1 %v6579_v14 }
0x119c   : > { %v7419_v15 = vpop.permute.xlu0 %7418  ;;  %10473 = vmatprep.subr.bf16.mxu1 %v14165_v60  ;;  %v14358_v60 = vld [vmem:[%s15480_s7 + $0x8] ss:$12 sps:$4 sm:$0xff]  }
0x119d   : > { %8438 = vrot.lane.b32.xlu1 %v14194_v26, %s15526_s22  ;;  %6481 = vmatmul.mubr.bf16.gmra.mrb[100].mxu0 %v14350_v4 }
0x119e   : > { %v6605_v59 = vpop.permute.xlu1 %6604  ;;  %7620 = vrot.lane.b32.xlu0 %v14032_v11, %s15529_s23  ;;  %10837 = vmatprep.mubr.msk.bf16.mxu0 %vm887_vm6, %v14358_v60 }
0x119f   : > { %10833 = vmatprep.subr.bf16.mxu0 %v6605_v59 }
0x11a0   : > { %10834 = vmatpush3.bf16.msra.mxu0 %v6605_v59  ;;  %v6581_v21 = vpop.permute.xlu0 %6580 }
0x11a1   : > { %7450 = vrot.lane.b32.xlu1 %v7419_v15, %s15527_s19  ;;  %10474 = vmatpush3.bf16.msra.mxu1 %v6581_v21 }
0x11a2   : > { %v6599_v36 = vpop.permute.xlu1 %6598  ;;  %8432 = vrot.lane.b32.xlu0 %v14316_v42, %s15526_s22 }
0x11a3   : > { %10475 = vmatprep.subr.bf16.mxu1 %v6599_v36 }
0x11a4   : > { %v6607_v10 = vpop.permute.xlu0 %6606 }
0x11a5   : > { %7602 = vrot.lane.b32.xlu1 %v14366_v37, %s15508_s26  ;;  %10476 = vmatpush3.bf16.msra.mxu1 %v13873_v18  ;;  %v14387_v18 = vld [vmem:[%s15480_s7 + $0x20] ss:$12 sps:$4 sm:$0xff]  }
0x11a6   : > { %v6601_v28 = vpop.permute.xlu1 %6600  ;;  %7622 = vrot.lane.b32.xlu0 %v14044_v31, %s15529_s23  ;;  %10835 = vmatprep.subr.bf16.mxu0 %v6607_v10 }
0x11a7   : > { %10477 = vmatprep.subr.bf16.mxu1 %v6601_v28  ;;  %10836 = vmatpush3.bf16.msra.mxu0 %v6607_v10 }
0x11a9   : > { %7634 = vrot.lane.b32.xlu1 %v14374_v35, %s15529_s23  ;;  %10478 = vmatpush3.bf16.msra.mxu1 %v13880_v13  ;;  %v14400_v13 = vld [vmem:[%s11749_s21 + $0x1e8] sm:$0xff] }
0x11aa   : > { %8434 = vrot.lane.b32.xlu0 %v14332_v41, %s15526_s22  ;;  %10838 = vmatmul.mubr.msk.bf16.vlgmr.msra.gmra.mrb[104].mxu0 %vm887_vm6, %v14387_v18  ;;  %v14402_v31 = vpop.permute.xlu1 %8240 }
0x11ab   : > { %10845 = vmatprep.mubr.msk.bf16.mxu0 %vm887_vm6, %v13828_v38 }
0x11ac   : > { %6643 = vmatmul.mubr.bf16.vlgmr.msra.gmra.mrb[100].mxu1 %v13810_v63 }
0x11ad   : > { %7604 = vrot.lane.b32.xlu1 %v14382_v62, %s15508_s26  ;;  %6650 = vmatprep.mubr.bf16.mxu1 %v13816_v16 }
0x11ae   : > { %7608 = vrot.lane.b32.xlu0 %v14366_v37, %s15529_s23 }
0x11af   : > { %v7249_v0 = vpop.permute.xlu0 %7248 }
0x11b0   : > { %10841 = vmatprep.subr.bf16.mxu0 %v7249_v0 }
0x11b1   : > { %7636 = vrot.lane.b32.xlu1 %v14400_v13, %s15529_s23  ;;  %10842 = vmatpush3.bf16.msra.mxu0 %v7249_v0 }
0x11b2   : > { %8266 = vrot.lane.b32.xlu0 %v14402_v31, %s15530_s0 }
0x11b3   : > { %v7237_v63 = vpop.permute.xlu0 %7236 }
0x11b4   : > { %6651 = vmatmul.mubr.bf16.gmra.mrb[104].mxu1 %v13822_v17  ;;  %10495 = vmatprep.subr.bf16.mxu1 %v7237_v63 }
0x11b5   : > { %v7251_v16 = vpop.permute.xlu1 %7250  ;;  %8442 = vrot.lane.b32.xlu1 %v14297_v12, %s15530_s0  ;;  %10496 = vmatpush3.bf16.msra.mxu1 %v14270_v5 }
0x11b6   : > { %8444 = vrot.lane.b32.xlu0 %v14306_v45, %s15530_s0  ;;  %10843 = vmatprep.subr.bf16.mxu0 %v7251_v16 }
0x11b7   : > { %v14414_v38 = vpop.permute.xlu0 %8242  ;;  %10844 = vmatpush3.bf16.msra.mxu0 %v7251_v16  ;;  %7302 = vmatprep.mubr.bf16.mxu1 %v14419_v55 }
0x11b9   : > { %v7239_v17 = vpop.permute.xlu1 %7238  ;;  %7610 = vrot.lane.b32.xlu1 %v14382_v62, %s15529_s23 }
0x11ba   : > { %10497 = vmatprep.subr.bf16.mxu1 %v7239_v17  ;;  %7628 = vrot.lane.b32.xlu0 %v14374_v35, %s15508_s26 }
0x11bb   : > { %10498 = vmatpush3.bf16.msra.mxu1 %v14279_v54  ;;  %v7433_v5 = vpop.permute.xlu0 %7432  ;;  %10846 = vmatmul.mubr.msk.bf16.vlgmr.msra.gmra.mrb[108].mxu0 %vm887_vm6, %v14258_v49 }
0x11bc   : > { %10527 = vmatprep.subr.bf16.mxu0 %v7433_v5  ;;  %7502 = vmatprep.mubr.bf16.mxu0 %v14240_v44 }
0x11bd   : > { %v7421_v52 = vpop.permute.xlu1 %7420  ;;  %8268 = vrot.lane.b32.xlu1 %v14414_v38, %s15530_s0 }
0x11be   : > { %10528 = vmatpush3.bf16.msra.mxu0 %v7421_v52  ;;  %7630 = vrot.lane.b32.xlu0 %v14400_v13, %s15508_s26 }
0x11bf   : > { %v14434_v14 = vpop.permute.xlu0 %8244 }
0x11c1   : > { %v8231_v54 = vpop.permute.xlu1 %8230  ;;  %8270 = vrot.lane.b32.xlu1 %v14434_v14, %s15530_s0 }
0x11c3   : > { %v7241_v15 = vpop.permute.xlu0 %7240 }
0x11c4   : > { %10499 = vmatprep.subr.bf16.mxu1 %v7241_v15 }
0x11c5   : > { %v7435_v59 = vpop.permute.xlu1 %7434  ;;  %8258 = vrot.lane.b32.xlu1 %v8231_v54, %s15530_s0 }
0x11c6   : > { %10529 = vmatprep.subr.bf16.mxu0 %v7435_v59 }
0x11c7   : > { %v7229_v21 = vpop.permute.xlu0 %7228 }
0x11c8   : > { %10500 = vmatpush3.bf16.msra.mxu1 %v7229_v21 }
0x11c9   : > { %v7423_v36 = vpop.permute.xlu1 %7422 }
0x11ca   : > { %10530 = vmatpush3.bf16.msra.mxu0 %v7423_v36 }
0x11cb   : > { %v14439_v10 = vpop.permute.xlu0 %8246 }
0x11cc   : > { %8272 = vrot.lane.b32.xlu0 %v14439_v10, %s15530_s0 }
0x11cd   : > { %v8233_v28 = vpop.permute.xlu1 %8232 }
0x11ce   : > { %8260 = vrot.lane.b32.xlu1 %v8233_v28, %s15530_s0 }
0x11cf   : > { %v7243_v0 = vpop.permute.xlu0 %7242 }
0x11d0   : > { %10501 = vmatprep.subr.bf16.mxu1 %v7243_v0 }
0x11d1   : > { %v7437_v63 = vpop.permute.xlu1 %7436 }
0x11d2   : > { %10531 = vmatprep.subr.bf16.mxu0 %v7437_v63 }
0x11d3   : > { %v7231_v16 = vpop.permute.xlu0 %7230 }
0x11d4   : > { %10502 = vmatpush3.bf16.msra.mxu1 %v7231_v16 }
0x11d5   : > { %v7425_v17 = vpop.permute.xlu1 %7424  ;;  %10503 = vmatprep.subr.bf16.mxu1 %v14180_v50 }
0x11d6   : > { %10532 = vmatpush3.bf16.msra.mxu0 %v7425_v17 }
0x11d7   : > { %v14445_v5 = vpop.permute.xlu0 %8234 }
0x11d8   : > { %8262 = vrot.lane.b32.xlu0 %v14445_v5, %s15530_s0 }
0x11d9   : > { %v7439_v52 = vpop.permute.xlu1 %7438 }
0x11da   : > { %10533 = vmatprep.subr.bf16.mxu0 %v7439_v52 }
0x11db   : > { %v7233_v54 = vpop.permute.xlu0 %7232 }
0x11dc   : > { %10504 = vmatpush3.bf16.msra.mxu1 %v7233_v54 }
0x11dd   : > { %v7427_v15 = vpop.permute.xlu1 %7426  ;;  %10505 = vmatprep.subr.bf16.mxu1 %v14189_v1 }
0x11de   : > { %10534 = vmatpush3.bf16.msra.mxu0 %v7427_v15 }
0x11df   : > { %v14450_v59 = vpop.permute.xlu0 %8254 }
0x11e0   : > { %8278 = vrot.lane.b32.xlu1 %v14450_v59, %s15530_s0 }
0x11e1   : > { %v14452_v21 = vpop.permute.xlu1 %8236 }
0x11e2   : > { %8264 = vrot.lane.b32.xlu0 %v14452_v21, %s15530_s0 }
0x11e3   : > { %v7441_v50 = vpop.permute.xlu0 %7440 }
0x11e4   : > { %10535 = vmatprep.subr.bf16.mxu0 %v7441_v50 }
0x11e5   : > { %v7235_v36 = vpop.permute.xlu1 %7234 }
0x11e6   : > { %10506 = vmatpush3.bf16.msra.mxu1 %v7235_v36 }
0x11e7   : > { %v7429_v28 = vpop.permute.xlu0 %7428 }
0x11e8   : > { %10536 = vmatpush3.bf16.msra.mxu0 %v7429_v28 }
0x11e9   : > { %v8251_v0 = vpop.permute.xlu1 %8250 }
0x11ea   : > { %8274 = vrot.lane.b32.xlu1 %v8251_v0, %s15530_s0 }
0x11eb   : > { %v14459_v1 = vpop.permute.xlu0 %8256 }
0x11ec   : > { %8280 = vrot.lane.b32.xlu0 %v14459_v1, %s15530_s0 }
0x11ed   : > { %v7245_v63 = vpop.permute.xlu1 %7244 }
0x11ee   : > { %10507 = vmatprep.subr.bf16.mxu1 %v7245_v63  ;;  %v14503_v63 = vld [vmem:[%s11749_s21 + $0x70] sm:$0xff] }
0x11ef   : > { %10508 = vmatpush3.bf16.msra.mxu1 %v14203_v25  ;;  %v7443_v16 = vpop.permute.xlu0 %7442 }
0x11f0   : > { %10537 = vmatprep.subr.bf16.mxu0 %v7443_v16 }
0x11f1   : > { %v7431_v17 = vpop.permute.xlu1 %7430 }
0x11f2   : > { %10538 = vmatpush3.bf16.msra.mxu0 %v7431_v17 }
0x11f3   : > { %v8253_v52 = vpop.permute.xlu0 %8252 }
0x11f4   : > { %8276 = vrot.lane.b32.xlu1 %v8253_v52, %s15530_s0  ;;  %v14512_v52 = vld [vmem:[%s11749_s21 + $0x78] sm:$0xff] }
0x11f5   : > { %v8447_v54 = vpop.permute.xlu1 %8446 }
0x11f6   : > { %8478 = vrot.lane.b32.xlu0 %v8447_v54, %s15527_s19  ;;  %v14519_v54 = vld [vmem:[%s15478_s5 + $0x20] ss:$12 sps:$4 sm:$0xff]  }
0x11f7   : > { %v7247_v15 = vpop.permute.xlu0 %7246 }
0x11f8   : > { %8462 = vrot.lane.b32.xlu1 %v14434_v14, %s15527_s19  ;;  %10509 = vmatprep.subr.bf16.mxu1 %v7247_v15 }
0x11f9   : > { %v7445_v50 = vpop.permute.xlu1 %7444  ;;  %10510 = vmatpush3.bf16.msra.mxu1 %v14224_v57 }
0x11fa   : > { %10539 = vmatprep.subr.bf16.mxu0 %v7445_v50 }
0x11fb   : > { %10540 = vmatpush3.bf16.msra.mxu0 %v14184_v56  ;;  %v8449_v25 = vpop.permute.xlu0 %8448 }
0x11fc   : > { %7303 = vmatmul.mubr.bf16.vlgmr.msra.gmra.mrb[108].mxu1 %v14210_v3  ;;  %8480 = vrot.lane.b32.xlu0 %v8449_v25, %s15527_s19 }
0x11fd   : > { %8450 = vrot.lane.b32.xlu1 %v14316_v42, %s15527_s19  ;;  %7310 = vmatprep.mubr.bf16.mxu1 %v14219_v22 }
0x11ff   : > { %v7447_v36 = vpop.permute.xlu1 %7446  ;;  %v7615_v28 = vpop.permute.xlu0 %7614 }
0x1200   : > { %8464 = vrot.lane.b32.xlu0 %v14439_v10, %s15527_s19  ;;  %10541 = vmatprep.subr.bf16.mxu0 %v7447_v36 }
0x1201   : > { %10542 = vmatpush3.bf16.msra.mxu0 %v14198_v61  ;;  %8644 = vrot.lane.b32.xlu1 %v14172_v19, %s15508_s26 }
0x1202   : > { %10559 = vmatprep.subr.bf16.mxu0 %v7615_v28 }
0x1203   : > { %v8429_v56 = vpop.permute.xlu0 %8428 }
0x1204   : > { %7311 = vmatmul.mubr.bf16.gmra.mrb[112].mxu1 %v14232_v43  ;;  %7503 = vmatmul.mubr.bf16.vlgmr.msra.gmra.mrb[112].mxu0 %v14326_v29  ;;  %v8437_v57 = vpop.permute.xlu1 %8436 }
0x1205   : > { %8452 = vrot.lane.b32.xlu0 %v14332_v41, %s15527_s19  ;;  %7510 = vmatprep.mubr.bf16.mxu0 %v14337_v39  ;;  %v14497_v41 = vld [vmem:[%s15480_s7 + $0x4] ss:$12 sps:$4 sm:$0xff]  }
0x1206   : > { %8466 = vrot.lane.b32.xlu1 %v8437_v57, %s15527_s19  ;;  %10853 = vmatprep.mubr.msk.bf16.mxu1 %vm887_vm6, %v14265_v58 }
0x1207   : > { %v7617_v61 = vpop.permute.xlu0 %7616  ;;  %10560 = vmatpush3.bf16.msra.mxu0 %v14366_v37 }
0x1208   : > { %10561 = vmatprep.subr.bf16.mxu0 %v7617_v61 }
0x1209   : > { %8646 = vrot.lane.b32.xlu0 %v14194_v26, %s15508_s26 }
0x120a   : > { %8454 = vrot.lane.b32.xlu1 %v8429_v56, %s15527_s19 }
0x120b   : > { %v7449_v42 = vpop.permute.xlu1 %7448  ;;  %v8431_v0 = vpop.permute.xlu0 %8430  ;;  %10562 = vmatpush3.bf16.msra.mxu0 %v14382_v62 }
0x120c   : > { %7511 = vmatmul.mubr.bf16.gmra.mrb[116].mxu0 %v14350_v4  ;;  %10849 = vmatprep.subr.bf16.mxu1 %v7449_v42 }
0x120d   : > { %10850 = vmatpush3.bf16.msra.mxu1 %v7449_v42  ;;  %7672 = vmatprep.mubr.bf16.mxu0 %v14497_v41 }
0x120e   : > { %8650 = vrot.lane.b32.xlu1 %v14172_v19, %s15529_s23 }
0x120f   : > { %v8439_v37 = vpop.permute.xlu1 %8438 }
0x1210   : > { %8468 = vrot.lane.b32.xlu0 %v8439_v37, %s15527_s19  ;;  %v7621_v62 = vpop.permute.xlu0 %7620 }
0x1211   : > { %10563 = vmatprep.subr.bf16.mxu0 %v7621_v62 }
0x1212   : > { %8632 = vrot.lane.b32.xlu1 %v14503_v63, %s15508_s26 }
0x1213   : > { %v7451_v16 = vpop.permute.xlu1 %7450 }
0x1214   : > { %8456 = vrot.lane.b32.xlu0 %v8431_v0, %s15527_s19  ;;  %10851 = vmatprep.subr.bf16.mxu1 %v7451_v16  ;;  %v8433_v17 = vpop.permute.xlu0 %8432 }
0x1215   : > { %10852 = vmatpush3.bf16.msra.mxu1 %v7451_v16  ;;  %v11062_v16 = vld [vmem:[%s11749_s21 + $0x108] sm:$0xff] }
0x1216   : > { %8652 = vrot.lane.b32.xlu1 %v14194_v26, %s15529_s23 }
0x1217   : > { %v7603_v19 = vpop.permute.xlu1 %7602 }
0x1218   : > { %8470 = vrot.lane.b32.xlu0 %v14297_v12, %s15527_s19  ;;  %10854 = vmatmul.mubr.msk.bf16.vlgmr.msra.gmra.mrb[116].mxu1 %vm887_vm6, %v14519_v54  ;;  %v7623_v15 = vpop.permute.xlu0 %7622 }
0x1219   : > { %10564 = vmatpush3.bf16.msra.mxu0 %v7603_v19  ;;  %10861 = vmatprep.mubr.msk.bf16.mxu1 %vm887_vm6, %v14358_v60 }
0x121a   : > { %8634 = vrot.lane.b32.xlu1 %v14512_v52, %s15508_s26  ;;  %10565 = vmatprep.subr.bf16.mxu0 %v7623_v15 }
0x121b   : > { %v7635_v26 = vpop.permute.xlu1 %7634 }
0x121c   : > { %v10415_v50 = vpop.f32.mrb[88].mxu0  ;;  %8458 = vrot.lane.b32.xlu0 %v8433_v17, %s15527_s19  ;;  %v8435_v12 = vpop.permute.xlu0 %8434  ;;  %10857 = vmatprep.subr.bf16.mxu1 %v7635_v26  ;;  %v5133_v17 = vunpack.c.h.bf16 %v11062_v16 }
0x121d   : > { %v10416_v25 = vpop.f32.mrb[89].mxu0  ;;  %10858 = vmatpush3.bf16.msra.mxu1 %v7635_v26 }
0x121e   : > { %v14528_v36 = vadd.f32 %v10416_v25, %v10415_v50  ;;  %v10418_v28 = vpop.f32.mrb[90].mxu0  ;;  %8460 = vrot.lane.b32.xlu1 %v8435_v12, %s15527_s19 }
0x121f   : > { %v10419_v56 = vpop.f32.mrb[91].mxu0  ;;  %v7605_v57 = vpop.permute.xlu1 %7604 }
0x1220   : > { %v14531_v61 = vadd.f32 %v10419_v56, %v10418_v28  ;;  %8472 = vrot.lane.b32.xlu0 %v14306_v45, %s15527_s19  ;;  %v7609_v42 = vpop.permute.xlu0 %7608  ;;  %10566 = vmatpush3.bf16.msra.mxu0 %v7605_v57  ;;  %v5804_v45 = vcombine.high %v13907_v24, %v13907_v24  ;;  %v5331_v28 = vadd.f32 %v13718_v2, %v5133_v17  ;;  %v14549_v24 = vld [vmem:[%s11749_s21 + $0x1f0] sm:$0xff] }
0x1221   : > { %10567 = vmatprep.subr.bf16.mxu0 %v14374_v35 }
0x1222   : > { %v5818_v56 = vrot.slane %v5804_v45, %v12797_v34 }
0x1223   : > { %v7637_v0 = vpop.permute.xlu1 %7636 }
0x1224   : > { %v10421_v37 = vpop.f32.mrb[92].mxu0  ;;  %8638 = vrot.lane.b32.xlu0 %v14503_v63, %s15529_s23  ;;  %10859 = vmatprep.subr.bf16.mxu1 %v7637_v0  ;;  %v8267_v62 = vpop.permute.xlu0 %8266  ;;  %v5834_v16 = vrot.slane %v5818_v56, %v12797_v34 }
0x1225   : > { %v10422_v19 = vpop.f32.mrb[93].mxu0  ;;  %10860 = vmatpush3.bf16.msra.mxu1 %v7637_v0  ;;  %10568 = vmatpush3.bf16.msra.mxu0 %v7609_v42  ;;  %v14560_v0 = vld [vmem:[%s11749_s21 + $0x1f8] sm:$0xff] }
0x1226   : > { %v10423_v15 = vadd.f32 %v10422_v19, %v10421_v37  ;;  %v10424_v26 = vpop.f32.mrb[94].mxu0  ;;  %10591 = vmatprep.subr.bf16.mxu1 %v8267_v62  ;;  %10569 = vmatprep.subr.bf16.mxu0 %v14400_v13  ;;  %v5531_v13 = vadd.f32 %v13798_v51, %v5331_v28  ;;  %v5820_v37 = vcombine.high %v5818_v56, %v5818_v56 }
0x1227   : > { %v10425_v35 = vpop.f32.mrb[95].mxu0  ;;  %v8443_v50 = vpop.permute.xlu1 %8442 }
0x1228   : > { %v10426_v12 = vadd.f32 %v10425_v35, %v10424_v26  ;;  %8640 = vrot.lane.b32.xlu0 %v14512_v52, %s15529_s23  ;;  %8474 = vrot.lane.b32.xlu1 %v8443_v50, %s15527_s19  ;;  %v8445_v25 = vpop.permute.xlu0 %8444  ;;  %v5701_v42 = vadd.f32 %v13967_v53, %v5531_v13  ;;  %v6283_v19 = vadd.f32 %v10423_v15, %v11879_v8  ;;  %v11063_v26 = vld [vmem:[%s11749_s21 + $0x128] sm:$0xff] }
0x1229   : > { %10862 = vmatmul.mubr.msk.bf16.vlgmr.msra.gmra.mrb[120].mxu1 %vm887_vm6, %v14387_v18  ;;  %v6275_v35 = vadd.f32 %v14528_v36, %v11877_v7  ;;  %v14593_v36 = vld [vmem:[%s15480_s7] ss:$12 sps:$4 sm:$0xff]  }
0x122a   : > { %10592 = vmatpush3.bf16.msra.mxu1 %v14445_v5  ;;  %8332 = vmatprep.mubr.bf16.mxu1 %v14419_v55  ;;  %v5851_v5 = vcombine.high %v13960_v40, %v13960_v40  ;;  %v5860_v62 = vrot.slane %v5701_v42, %v12797_v34  ;;  %v5848_v40 = vrot.slane %v5820_v37, %v12797_v34 }
0x122b   : > { %v7611_v57 = vpop.permute.xlu1 %7610  ;;  %v5853_v45 = vcombine.high %v5701_v42, %v5701_v42  ;;  %v6286_v28 = vadd.f32 %v10426_v12, %v11881_v9  ;;  %v6278_v42 = vadd.f32 %v14531_v61, %v11875_v6  ;;  %v5850_v37 = vcombine.high %v5834_v16, %v5834_v16 }
0x122c   : > { %8658 = vrot.lane.b32.xlu0 %v14549_v24, %s15508_s26  ;;  %8476 = vrot.lane.b32.xlu1 %v8445_v25, %s15527_s19  ;;  %v7629_v2 = vpop.permute.xlu0 %7628  ;;  %v5981_v53 = vrot.slane %v5851_v5, %v12807_v32  ;;  %v5989_v56 = vrot.slane %v5848_v40, %v12807_v32  ;;  %v5852_v13 = vcombine.high %v5848_v40, %v5848_v40 }
0x122d   : > { %10570 = vmatpush3.bf16.msra.mxu0 %v7611_v57  ;;  %v5867_v61 = vrot.slane %v5853_v45, %v12797_v34 }
0x122e   : > { %10571 = vmatprep.subr.bf16.mxu0 %v7629_v2  ;;  %v5985_v2 = vrot.slane %v5834_v16, %v12807_v32  ;;  %v5997_v40 = vrot.slane %v5852_v13, %v12807_v32  ;;  %v14606_v16 = vld [vmem:[%s15480_s7 + $0x1c] ss:$12 sps:$4 sm:$0xff]  }
0x122f   : > { %v8269_v55 = vpop.permute.xlu1 %8268  ;;  %v5869_v45 = vcombine.high %v5867_v61, %v5867_v61 }
0x1230   : > { %8664 = vrot.lane.b32.xlu0 %v14549_v24, %s15529_s23  ;;  %8660 = vrot.lane.b32.xlu1 %v14560_v0, %s15508_s26  ;;  %v7631_v51 = vpop.permute.xlu0 %7630 }
0x1231   : > { %10572 = vmatpush3.bf16.msra.mxu0 %v14032_v11  ;;  %10593 = vmatprep.subr.bf16.mxu1 %v8269_v55  ;;  %v5868_v11 = vcombine.high %v5860_v62, %v5860_v62  ;;  %v5897_v13 = vrot.slane %v5869_v45, %v12797_v34 }
0x1232   : > { %10594 = vmatpush3.bf16.msra.mxu1 %v14452_v21  ;;  %10573 = vmatprep.subr.bf16.mxu0 %v7631_v51 }
0x1233   : > { %v8271_v17 = vpop.permute.xlu1 %8270 }
0x1234   : > { %6068 = vrot.lane.b32.xlu0 %v5981_v53, %s15508_s26  ;;  %8666 = vrot.lane.b32.xlu1 %v14560_v0, %s15529_s23  ;;  %v5890_v53 = vrot.slane %v5868_v11, %v12797_v34 }
0x1235   : > { %10574 = vmatpush3.bf16.msra.mxu0 %v11063_v26  ;;  %10595 = vmatprep.subr.bf16.mxu1 %v8271_v17  ;;  %v5876_v17 = vrot.slane %v5860_v62, %v12797_v34  ;;  %v14618_v62 = vld [vmem:[%s15480_s7 + $0x18] ss:$12 sps:$4 sm:$0xff]  }
0x1236   : > { %v10823_v21 = vpop.f32.mrb[92].mxu1  ;;  %v6005_v11 = vrot.slane %v5890_v53, %v12807_v32 }
0x1237   : > { %v14581_v50 = vadd.f32 %v10823_v21, %v6283_v19  ;;  %v6323_v25 = vpop.f32.mrb[93].mxu1  ;;  %v8259_v5 = vpop.permute.xlu1 %8258  ;;  %v5993_v19 = vrot.slane %v5850_v37, %v12807_v32  ;;  %v5900_v21 = vcombine.high %v5890_v53, %v5890_v53  ;;  %v5901_v37 = vcombine.high %v5897_v13, %v5897_v13 }
0x1238   : > { %v14585_v57 = vadd.f32 %v6323_v25, %v6275_v35  ;;  %v10824_v15 = vpop.f32.mrb[94].mxu1  ;;  %7673 = vmatmul.mubr.bf16.vlgmr.msra.gmra.mrb[120].mxu0 %v14593_v36  ;;  %6072 = vrot.lane.b32.xlu0 %v5989_v56, %s15508_s26  ;;  %v5898_v35 = vcombine.high %v5876_v17, %v5876_v17  ;;  %v6001_v25 = vrot.slane %v5876_v17, %v12807_v32 }
0x1239   : > { %v14596_v12 = vadd.f32 %v10824_v15, %v6286_v28  ;;  %v6326_v55 = vpop.f32.mrb[95].mxu1  ;;  %6070 = vrot.lane.b32.xlu1 %v5985_v2, %s15508_s26  ;;  %10596 = vmatpush3.bf16.msra.mxu1 %v8259_v5  ;;  %v6013_v56 = vrot.slane %v5900_v21, %v12807_v32  ;;  %v11067_v15 = vld [vmem:[%s15476_s3 + $0x8] ss:$12 sps:$4 sm:$0xff]   ;;  %v5883_v2 = vrot.slane %v5867_v61, %v12797_v34 }
0x123a   : > { %v6327_v51 = vadd.f32 %v6326_v55, %v6278_v42  ;;  %7680 = vmatprep.mubr.bf16.mxu0 %v14606_v16  ;;  %v6009_v42 = vrot.slane %v5898_v35, %v12807_v32 }
0x123b   : > { %v6017_v5 = vrot.slane %v5883_v2, %v12807_v32  ;;  %v5899_v55 = vcombine.high %v5883_v2, %v5883_v2  ;;  %v6341_v35 = vmax.f32 %v14596_v12, 0.0 }
0x123c   : > { %6076 = vrot.lane.b32.xlu0 %v5997_v40, %s15508_s26  ;;  %v6029_v40 = vrot.slane %v5901_v37, %v12807_v32 }
0x123d   : > { %6074 = vrot.lane.b32.xlu1 %v5993_v19, %s15508_s26  ;;  %v6025_v61 = vrot.slane %v5899_v55, %v12807_v32  ;;  %v6339_v19 = vmax.f32 %v6327_v51, 0.0 }
0x123e   : > { %v8273_v26 = vpop.permute.xlu0 %8272 }
0x123f   : > { %10597 = vmatprep.subr.bf16.mxu1 %v8273_v26  ;;  %v6338_v26 = vmax.f32 %v14585_v57, 0.0 }
0x1240   : > { %v8261_v28 = vpop.permute.xlu1 %8260  ;;  %7681 = vmatmul.mubr.bf16.gmra.mrb[124].mxu0 %v14618_v62  ;;  %6080 = vrot.lane.b32.xlu0 %v6005_v11, %s15508_s26 }
0x1241   : > { %6078 = vrot.lane.b32.xlu1 %v6001_v25, %s15508_s26  ;;  %10598 = vmatpush3.bf16.msra.mxu1 %v8261_v28 }
0x1242   : > { %10599 = vmatprep.subr.bf16.mxu1 %v14450_v59  ;;  %10869 = vmatprep.mubr.msk.bf16.mxu0 %vm887_vm6, %v11067_v15  ;;  %v6021_v59 = vrot.slane %v5897_v13, %v12807_v32 }
0x1244   : > { %6084 = vrot.lane.b32.xlu0 %v6013_v56, %s15508_s26 }
0x1245   : > { %6082 = vrot.lane.b32.xlu1 %v6009_v42, %s15508_s26 }
0x1248   : > { %6088 = vrot.lane.b32.xlu0 %v6021_v59, %s15508_s26 }
0x1249   : > { %6086 = vrot.lane.b32.xlu1 %v6017_v5, %s15508_s26 }
0x124a   : > { %v8263_v53 = vpop.permute.xlu0 %8262 }
0x124b   : > { %10600 = vmatpush3.bf16.msra.mxu1 %v8263_v53 }
0x124c   : > { %6092 = vrot.lane.b32.xlu0 %v6029_v40, %s15508_s26  ;;  %10601 = vmatprep.subr.bf16.mxu1 %v14459_v1  ;;  %v6340_v1 = vmax.f32 %v14581_v50, 0.0 }
0x124d   : > { %6090 = vrot.lane.b32.xlu1 %v6025_v61, %s15508_s26  ;;  %v14643_v17 = vpop.f32.mrb[96].mxu1 }
0x124e   : > { %v6523_v45 = vpop.f32.mrb[97].mxu1 }
0x124f   : > { %v14646_v11 = vpop.f32.mrb[98].mxu1 }
0x1250   : > { %6348 = vrot.lane.b32.xlu0 %v6339_v19, %s15528_s30  ;;  %v6526_v21 = vpop.f32.mrb[99].mxu1 }
0x1251   : > { %6346 = vrot.lane.b32.xlu1 %v6338_v26, %s15528_s30 }
0x1252   : > { %v8279_v25 = vpop.permute.xlu1 %8278 }
0x1253   : > { %10865 = vmatprep.subr.bf16.mxu0 %v8279_v25 }
0x1254   : > { %v8265_v28 = vpop.permute.xlu0 %8264  ;;  %6352 = vrot.lane.b32.xlu0 %v6341_v35, %s15528_s30  ;;  %10866 = vmatpush3.bf16.msra.mxu0 %v8279_v25 }
0x1255   : > { %10602 = vmatpush3.bf16.msra.mxu1 %v8265_v28  ;;  %6350 = vrot.lane.b32.xlu1 %v6340_v1, %s15528_s30 }
0x125c   : > { %v8275_v57 = vpop.permute.xlu1 %8274 }
0x125d   : > { %10603 = vmatprep.subr.bf16.mxu1 %v8275_v57 }
0x125e   : > { %10604 = vmatpush3.bf16.msra.mxu1 %v14434_v14  ;;  %v8281_v51 = vpop.permute.xlu0 %8280 }
0x125f   : > { %10867 = vmatprep.subr.bf16.mxu0 %v8281_v51 }
0x1260   : > { %10868 = vmatpush3.bf16.msra.mxu0 %v8281_v51 }
0x1263   : > { %10870 = vmatmul.mubr.msk.bf16.vlgmr.msra.gmra.mrb[128].mxu0 %vm887_vm6, %v14258_v49 }
0x1264   : > { %10877 = vmatprep.mubr.msk.bf16.mxu0 %vm887_vm6, %v14265_v58 }
0x1266   : > { %v8277_v50 = vpop.permute.xlu1 %8276 }
0x1267   : > { %10605 = vmatprep.subr.bf16.mxu1 %v8277_v50 }
0x1268   : > { %v8479_v12 = vpop.permute.xlu0 %8478  ;;  %v10447_v56 = vpop.f32.mrb[96].mxu0  ;;  %10606 = vmatpush3.bf16.msra.mxu1 %v14439_v10 }
0x1269   : > { %10873 = vmatprep.subr.bf16.mxu0 %v8479_v12  ;;  %v10448_v13 = vpop.f32.mrb[97].mxu0 }
0x126a   : > { %10874 = vmatpush3.bf16.msra.mxu0 %v8479_v12  ;;  %v10449_v15 = vadd.f32 %v10448_v13, %v10447_v56  ;;  %v10450_v14 = vpop.f32.mrb[98].mxu0  ;;  %v8463_v2 = vpop.permute.xlu1 %8462 }
0x126b   : > { %v10451_v42 = vpop.f32.mrb[99].mxu0  ;;  %8333 = vmatmul.mubr.bf16.vlgmr.msra.gmra.mrb[124].mxu1 %v14210_v3  ;;  %10623 = vmatprep.subr.bf16.mxu1 %v8463_v2 }
0x126c   : > { %v6475_v49 = vadd.f32 %v10449_v15, %v11926_v23  ;;  %v10452_v59 = vadd.f32 %v10451_v42, %v10450_v14  ;;  %8340 = vmatprep.mubr.bf16.mxu1 %v14219_v22 }
0x126e   : > { %v6524_v58 = vadd.f32 %v6523_v45, %v6475_v49  ;;  %v6478_v37 = vadd.f32 %v10452_v59, %v11945_v30  ;;  %v8481_v5 = vpop.permute.xlu0 %8480 }
0x126f   : > { %v8451_v10 = vpop.permute.xlu1 %8450  ;;  %10875 = vmatprep.subr.bf16.mxu0 %v8481_v5 }
0x1270   : > { %v6538_v55 = vmax.f32 %v6524_v58, 0.0  ;;  %v6527_v53 = vadd.f32 %v6526_v21, %v6478_v37  ;;  %v10453_v40 = vpop.f32.mrb[100].mxu0  ;;  %10624 = vmatpush3.bf16.msra.mxu1 %v8451_v10  ;;  %10876 = vmatpush3.bf16.msra.mxu0 %v8481_v5 }
0x1271   : > { %v10454_v61 = vpop.f32.mrb[101].mxu0 }
0x1272   : > { %v6539_v19 = vmax.f32 %v6527_v53, 0.0  ;;  %v10455_v3 = vadd.f32 %v10454_v61, %v10453_v40  ;;  %v10456_v26 = vpop.f32.mrb[102].mxu0  ;;  %v8465_v35 = vpop.permute.xlu0 %8464  ;;  %6546 = vrot.lane.b32.xlu1 %v6538_v55, %s15528_s30 }
0x1273   : > { %v10457_v25 = vpop.f32.mrb[103].mxu0  ;;  %8341 = vmatmul.mubr.bf16.gmra.mrb[128].mxu1 %v14232_v43  ;;  %10625 = vmatprep.subr.bf16.mxu1 %v8465_v35  ;;  %v8645_v22 = vpop.permute.xlu1 %8644 }
0x1274   : > { %v6483_v45 = vadd.f32 %v10455_v3, %v11939_v27  ;;  %v10458_v1 = vadd.f32 %v10457_v25, %v10456_v26  ;;  %6548 = vrot.lane.b32.xlu0 %v6539_v19, %s15528_s30  ;;  %10655 = vmatprep.subr.bf16.mxu0 %v8645_v22 }
0x1275   : > { %10878 = vmatmul.mubr.msk.bf16.vlgmr.msra.gmra.mrb[132].mxu0 %vm887_vm6, %v14519_v54  ;;  %8532 = vmatprep.mubr.bf16.mxu1 %v14240_v44 }
0x1276   : > { %v6532_v21 = vadd.f32 %v14643_v17, %v6483_v45  ;;  %v6486_v28 = vadd.f32 %v10458_v1, %v11953_v33  ;;  %10656 = vmatpush3.bf16.msra.mxu0 %v14503_v63  ;;  %8702 = vmatprep.mubr.bf16.mxu0 %v14497_v41 }
0x1277   : > { %v8453_v43 = vpop.permute.xlu0 %8452 }
0x1278   : > { %v6540_v57 = vmax.f32 %v6532_v21, 0.0  ;;  %v6535_v51 = vadd.f32 %v14646_v11, %v6486_v28  ;;  %v8467_v50 = vpop.permute.xlu1 %8466  ;;  %10626 = vmatpush3.bf16.msra.mxu1 %v8453_v43 }
0x1279   : > { %10627 = vmatprep.subr.bf16.mxu1 %v8467_v50 }
0x127a   : > { %v6541_v12 = vmax.f32 %v6535_v51, 0.0  ;;  %6550 = vrot.lane.b32.xlu1 %v6540_v57, %s15528_s30 }
0x127b   : > { %v8647_v54 = vpop.permute.xlu0 %8646 }
0x127c   : > { %6552 = vrot.lane.b32.xlu0 %v6541_v12, %s15528_s30  ;;  %v8455_v44 = vpop.permute.xlu1 %8454  ;;  %10657 = vmatprep.subr.bf16.mxu0 %v8647_v54 }
0x127d   : > { %10628 = vmatpush3.bf16.msra.mxu1 %v8455_v44  ;;  %10658 = vmatpush3.bf16.msra.mxu0 %v14512_v52  ;;  %v10839_v63 = vpop.f32.mrb[104].mxu0 }
0x127e   : > { %v6693_v17 = vpop.f32.mrb[105].mxu0 }
0x127f   : > { %v10479_v41 = vpop.f32.mrb[100].mxu1  ;;  %v10840_v13 = vpop.f32.mrb[106].mxu0 }
0x1280   : > { %v10480_v56 = vpop.f32.mrb[101].mxu1  ;;  %v6696_v14 = vpop.f32.mrb[107].mxu0 }
0x1281   : > { %v10481_v11 = vadd.f32 %v10480_v56, %v10479_v41  ;;  %v10482_v15 = vpop.f32.mrb[102].mxu1  ;;  %v8651_v58 = vpop.permute.xlu1 %8650 }
0x1282   : > { %v10483_v2 = vpop.f32.mrb[103].mxu1  ;;  %v8469_v42 = vpop.permute.xlu0 %8468  ;;  %10659 = vmatprep.subr.bf16.mxu0 %v8651_v58 }
0x1283   : > { %v10484_v49 = vadd.f32 %v10483_v2, %v10482_v15  ;;  %v6645_v59 = vadd.f32 %v10481_v11, %v12084_v20  ;;  %10629 = vmatprep.subr.bf16.mxu1 %v8469_v42  ;;  %v11068_v2 = vld [vmem:[%s11749_s21 + $0x130] sm:$0xff] }
0x1285   : > { %v6694_v37 = vadd.f32 %v6693_v17, %v6645_v59  ;;  %v6648_v5 = vadd.f32 %v10484_v49, %v12089_v47  ;;  %v8633_v40 = vpop.permute.xlu1 %8632 }
0x1286   : > { %v8457_v52 = vpop.permute.xlu0 %8456  ;;  %10660 = vmatpush3.bf16.msra.mxu0 %v8633_v40 }
0x1287   : > { %v6708_v10 = vmax.f32 %v6694_v37, 0.0  ;;  %v6697_v55 = vadd.f32 %v6696_v14, %v6648_v5  ;;  %v10485_v53 = vpop.f32.mrb[104].mxu1  ;;  %10630 = vmatpush3.bf16.msra.mxu1 %v8457_v52 }
0x1288   : > { %v10486_v61 = vpop.f32.mrb[105].mxu1 }
0x1289   : > { %v6709_v19 = vmax.f32 %v6697_v55, 0.0  ;;  %v10487_v3 = vadd.f32 %v10486_v61, %v10485_v53  ;;  %v10488_v26 = vpop.f32.mrb[106].mxu1  ;;  %6716 = vrot.lane.b32.xlu1 %v6708_v10, %s15528_s30  ;;  %v8653_v1 = vpop.permute.xlu1 %8652 }
0x128a   : > { %v10489_v35 = vpop.f32.mrb[107].mxu1  ;;  %v8471_v25 = vpop.permute.xlu0 %8470  ;;  %10661 = vmatprep.subr.bf16.mxu0 %v8653_v1 }
0x128b   : > { %v6653_v22 = vadd.f32 %v10487_v3, %v12087_v46  ;;  %v10490_v45 = vadd.f32 %v10489_v35, %v10488_v26  ;;  %6718 = vrot.lane.b32.xlu0 %v6709_v19, %s15528_s30  ;;  %10631 = vmatprep.subr.bf16.mxu1 %v8471_v25 }
0x128d   : > { %v6702_v21 = vadd.f32 %v10839_v63, %v6653_v22  ;;  %v6656_v28 = vadd.f32 %v10490_v45, %v12091_v48  ;;  %v8635_v12 = vpop.permute.xlu1 %8634 }
0x128e   : > { %v8459_v43 = vpop.permute.xlu0 %8458  ;;  %v14685_v57 = vpop.f32.mrb[108].mxu0  ;;  %10662 = vmatpush3.bf16.msra.mxu0 %v8635_v12 }
0x128f   : > { %v6710_v51 = vmax.f32 %v6702_v21, 0.0  ;;  %v6705_v50 = vadd.f32 %v10840_v13, %v6656_v28  ;;  %10632 = vmatpush3.bf16.msra.mxu1 %v8459_v43  ;;  %v14687_v54 = vpop.f32.mrb[109].mxu0  ;;  %10663 = vmatprep.subr.bf16.mxu0 %v14549_v24 }
0x1290   : > { %v14689_v44 = vpop.f32.mrb[110].mxu0 }
0x1291   : > { %v6711_v41 = vmax.f32 %v6705_v50, 0.0  ;;  %6720 = vrot.lane.b32.xlu1 %v6710_v51, %s15528_s30  ;;  %v14693_v63 = vpop.f32.mrb[111].mxu0  ;;  %v8461_v56 = vpop.permute.xlu1 %8460 }
0x1292   : > { %v8473_v17 = vpop.permute.xlu0 %8472 }
0x1293   : > { %6722 = vrot.lane.b32.xlu0 %v6711_v41, %s15528_s30  ;;  %10633 = vmatprep.subr.bf16.mxu1 %v8473_v17 }
0x1294   : > { %10634 = vmatpush3.bf16.msra.mxu1 %v8461_v56 }
0x1296   : > { %v8639_v13 = vpop.permute.xlu0 %8638 }
0x1297   : > { %10664 = vmatpush3.bf16.msra.mxu0 %v8639_v13 }
0x1298   : > { %10665 = vmatprep.subr.bf16.mxu0 %v14560_v0  ;;  %v11069_v0 = vld [vmem:[%s11749_s21 + $0x138] sm:$0xff] }
0x129a   : > { %v8641_v11 = vpop.permute.xlu0 %8640  ;;  %v8475_v15 = vpop.permute.xlu1 %8474 }
0x129b   : > { %10635 = vmatprep.subr.bf16.mxu1 %v8475_v15  ;;  %10666 = vmatpush3.bf16.msra.mxu0 %v8641_v11 }
0x129c   : > { %10636 = vmatpush3.bf16.msra.mxu1 %v14402_v31 }
0x129e   : > { %v8659_v24 = vpop.permute.xlu0 %8658  ;;  %v8477_v14 = vpop.permute.xlu1 %8476 }
0x129f   : > { %10637 = vmatprep.subr.bf16.mxu1 %v8477_v14  ;;  %10667 = vmatprep.subr.bf16.mxu0 %v8659_v24 }
0x12a0   : > { %10638 = vmatpush3.bf16.msra.mxu1 %v14414_v38  ;;  %10668 = vmatpush3.bf16.msra.mxu0 %v11068_v2 }
0x12a2   : > { %v8665_v42 = vpop.permute.xlu0 %8664  ;;  %v8661_v49 = vpop.permute.xlu1 %8660 }
0x12a3   : > { %8533 = vmatmul.mubr.bf16.vlgmr.msra.gmra.mrb[132].mxu1 %v14326_v29  ;;  %10669 = vmatprep.subr.bf16.mxu0 %v8661_v49 }
0x12a4   : > { %10670 = vmatpush3.bf16.msra.mxu0 %v11069_v0  ;;  %8540 = vmatprep.mubr.bf16.mxu1 %v14337_v39 }
0x12a5   : > { %10881 = vmatprep.subr.bf16.mxu1 %v8665_v42 }
0x12a6   : > { %v6069_v31 = vpop.permute.xlu0 %6068  ;;  %v8667_v59 = vpop.permute.xlu1 %8666  ;;  %10882 = vmatpush3.bf16.msra.mxu1 %v8665_v42 }
0x12a7   : > { %6145 = vst.msk [vmem:[%s11268_s17 + $0x9c] sm:$0x1] %vm1933_vm7, %v6069_v31  ;;  %8703 = vmatmul.mubr.bf16.vlgmr.msra.gmra.mrb[136].mxu0 %v14593_v36  ;;  %10883 = vmatprep.subr.bf16.mxu1 %v8667_v59 }
0x12a8   : > { %8710 = vmatprep.mubr.bf16.mxu0 %v14606_v16 }
0x12aa   : > { %v6073_v29 = vpop.permute.xlu0 %6072  ;;  %10884 = vmatpush3.bf16.msra.mxu1 %v8667_v59 }
0x12ab   : > { %6147 = vst.msk [vmem:[%s11268_s17 + $0xac] sm:$0x1] %vm1933_vm7, %v6073_v29  ;;  %v6071_v39 = vpop.permute.xlu1 %6070  ;;  %8541 = vmatmul.mubr.bf16.gmra.mrb[136].mxu1 %v14350_v4 }
0x12ac   : > { %6146 = vst.msk [vmem:[%s11268_s17 + $0xa4] sm:$0x1] %vm1933_vm7, %v6071_v39  ;;  %10885 = vmatprep.mubr.msk.bf16.mxu1 %vm887_vm6, %v14358_v60 }
0x12ae   : > { %v6077_v38 = vpop.permute.xlu0 %6076 }
0x12af   : > { %6149 = vst.msk [vmem:[%s11268_s17 + $0xbc] sm:$0x1] %vm1933_vm7, %v6077_v38  ;;  %v6075_v36 = vpop.permute.xlu1 %6074  ;;  %8711 = vmatmul.mubr.bf16.gmra.mrb[140].mxu0 %v14618_v62 }
0x12b0   : > { %6148 = vst.msk [vmem:[%s11268_s17 + $0xb4] sm:$0x1] %vm1933_vm7, %v6075_v36 }
0x12b2   : > { %v6081_v16 = vpop.permute.xlu0 %6080 }
0x12b3   : > { %6151 = vst.msk [vmem:[%s11268_s17 + $0xcc] sm:$0x1] %vm1933_vm7, %v6081_v16  ;;  %v6079_v4 = vpop.permute.xlu1 %6078  ;;  %10886 = vmatmul.mubr.msk.bf16.vlgmr.msra.gmra.mrb[140].mxu1 %vm887_vm6, %v14387_v18 }
0x12b4   : > { %6150 = vst.msk [vmem:[%s11268_s17 + $0xc4] sm:$0x1] %vm1933_vm7, %v6079_v4 }
0x12b6   : > { %v6085_v60 = vpop.permute.xlu0 %6084 }
0x12b7   : > { %6153 = vst.msk [vmem:[%s11268_s17 + $0xdc] sm:$0x1] %vm1933_vm7, %v6085_v60  ;;  %v6083_v58 = vpop.permute.xlu1 %6082 }
0x12b8   : > { %6152 = vst.msk [vmem:[%s11268_s17 + $0xd4] sm:$0x1] %vm1933_vm7, %v6083_v58 }
0x12ba   : > { %v6089_v62 = vpop.permute.xlu0 %6088 }
0x12bb   : > { %6155 = vst.msk [vmem:[%s11268_s17 + $0xec] sm:$0x1] %vm1933_vm7, %v6089_v62  ;;  %v6087_v37 = vpop.permute.xlu1 %6086 }
0x12bc   : > { %6154 = vst.msk [vmem:[%s11268_s17 + $0xe4] sm:$0x1] %vm1933_vm7, %v6087_v37 }
0x12be   : > { %v6093_v5 = vpop.permute.xlu0 %6092 }
0x12bf   : > { %6157 = vst.msk [vmem:[%s11268_s17 + $0xfc] sm:$0x1] %vm1933_vm7, %v6093_v5  ;;  %v6091_v52 = vpop.permute.xlu1 %6090  ;;  %v11070_v5 = vld [vmem:[%s11749_s21 + $0x110] sm:$0xff] }
0x12c0   : > { %6156 = vst.msk [vmem:[%s11268_s17 + $0xf4] sm:$0x1] %vm1933_vm7, %v6091_v52  ;;  %v6160_v52 = vunpack.c.l.bf16 %v11070_v5 }
0x12c2   : > { %v6349_v60 = vpop.permute.xlu0 %6348 }
0x12c3   : > { %v6347_v49 = vpop.permute.xlu1 %6346 }
0x12c7   : > { %v6351_v58 = vpop.permute.xlu1 %6350 }
0x12cf   : > { %v10511_v18 = vpop.f32.mrb[108].mxu1 }
0x12d0   : > { %v10512_v10 = vpop.f32.mrb[109].mxu1 }
0x12d1   : > { %v10513_v55 = vadd.f32 %v10512_v10, %v10511_v18  ;;  %v10514_v53 = vpop.f32.mrb[110].mxu1  ;;  %v14766_v18 = vpop.permute.xlu0 %6352 }
0x12d2   : > { %v10515_v40 = vpop.f32.mrb[111].mxu1 }
0x12d3   : > { %v10516_v61 = vadd.f32 %v10515_v40, %v10514_v53  ;;  %v7305_v19 = vadd.f32 %v10513_v55, %v11877_v7  ;;  %v6358_v55 = vadd.f32 %v6347_v49, %v6160_v52 }
0x12d5   : > { %v14739_v3 = vadd.f32 %v14687_v54, %v7305_v19  ;;  %v7308_v26 = vadd.f32 %v10516_v61, %v11875_v6  ;;  %v6161_v19 = vunpack.c.h.bf16 %v11070_v5 }
0x12d7   : > { %v14743_v35 = vadd.f32 %v14693_v63, %v7308_v26  ;;  %v10517_v25 = vpop.f32.mrb[112].mxu1  ;;  %v10543_v22 = vpop.f32.mrb[112].mxu0 }
0x12d8   : > { %v10518_v45 = vpop.f32.mrb[113].mxu1  ;;  %v10544_v1 = vpop.f32.mrb[113].mxu0 }
0x12d9   : > { %v10519_v21 = vadd.f32 %v10518_v45, %v10517_v25  ;;  %v10545_v28 = vadd.f32 %v10544_v1, %v10543_v22  ;;  %v10520_v43 = vpop.f32.mrb[114].mxu1  ;;  %v10546_v51 = vpop.f32.mrb[114].mxu0 }
0x12da   : > { %v10521_v50 = vpop.f32.mrb[115].mxu1  ;;  %v10547_v12 = vpop.f32.mrb[115].mxu0 }
0x12db   : > { %v7313_v41 = vadd.f32 %v10519_v21, %v11879_v8  ;;  %v10522_v17 = vadd.f32 %v10521_v50, %v10520_v43  ;;  %v10548_v54 = vadd.f32 %v10547_v12, %v10546_v51  ;;  %v7505_v59 = vadd.f32 %v10545_v28, %v11926_v23 }
0x12dc   : > { %v6359_v51 = vadd.f32 %v6349_v60, %v6161_v19 }
0x12dd   : > { %v14747_v56 = vadd.f32 %v14685_v57, %v7313_v41  ;;  %v7316_v63 = vadd.f32 %v10522_v17, %v11881_v9  ;;  %v7508_v36 = vadd.f32 %v10548_v54, %v11945_v30 }
0x12df   : > { %v14751_v13 = vadd.f32 %v14689_v44, %v7316_v63  ;;  %v10549_v11 = vpop.f32.mrb[116].mxu0 }
0x12e0   : > { %v10550_v15 = vpop.f32.mrb[117].mxu0 }
0x12e1   : > { %v10551_v24 = vadd.f32 %v10550_v15, %v10549_v11  ;;  %v10552_v14 = vpop.f32.mrb[118].mxu0 }
0x12e2   : > { %v10553_v2 = vpop.f32.mrb[119].mxu0 }
0x12e3   : > { %v10554_v42 = vadd.f32 %v10553_v2, %v10552_v14  ;;  %v7513_v0 = vadd.f32 %v10551_v24, %v11939_v27 }
0x12e4   : > { %v6547_v37 = vpop.permute.xlu1 %6546 }
0x12e5   : > { %v7516_v39 = vadd.f32 %v10554_v42, %v11953_v33  ;;  %v6558_v40 = vadd.f32 %v6547_v37, %v6358_v55 }
0x12e6   : > { %v6549_v53 = vpop.permute.xlu0 %6548 }
0x12e7   : > { %v6559_v54 = vadd.f32 %v6549_v53, %v6359_v51 }
0x12eb   : > { %v10855_v31 = vpop.f32.mrb[116].mxu1 }
0x12ec   : > { %v14755_v57 = vadd.f32 %v10855_v31, %v7513_v0  ;;  %v7553_v29 = vpop.f32.mrb[117].mxu1  ;;  %v6551_v10 = vpop.permute.xlu1 %6550 }
0x12ed   : > { %v14758_v44 = vadd.f32 %v7553_v29, %v7505_v59  ;;  %v10856_v38 = vpop.f32.mrb[118].mxu1 }
0x12ee   : > { %v14761_v16 = vadd.f32 %v10856_v38, %v7516_v39  ;;  %v7556_v4 = vpop.f32.mrb[119].mxu1  ;;  %v14770_v22 = vpop.permute.xlu0 %6552  ;;  %v14790_v39 = vld [vmem:[%s11749_s21 + $0x118] sm:$0xff] }
0x12ef   : > { %v14763_v62 = vadd.f32 %v7556_v4, %v7508_v36  ;;  %v6162_v38 = vunpack.c.l.bf16 %v14790_v39 }
0x12fb   : > { %v6717_v61 = vpop.permute.xlu1 %6716 }
0x12fc   : > { %v6728_v26 = vadd.f32 %v6717_v61, %v6558_v40  ;;  %v14768_v25 = vpop.f32.mrb[120].mxu1 }
0x12fd   : > { %v7723_v45 = vpop.f32.mrb[121].mxu1  ;;  %v6719_v17 = vpop.permute.xlu0 %6718 }
0x12fe   : > { %v6736_v1 = vcombine.high %v6728_v26, %v6728_v26  ;;  %v6743_v21 = vrot.slane %v6728_v26, %v12797_v34  ;;  %v14773_v28 = vpop.f32.mrb[122].mxu1  ;;  %v6729_v14 = vadd.f32 %v6719_v17, %v6559_v54  ;;  %v6360_v26 = vadd.f32 %v6351_v58, %v6162_v38 }
0x12ff   : > { %v7726_v43 = vpop.f32.mrb[123].mxu1 }
0x1300   : > { %v6750_v50 = vrot.slane %v6736_v1, %v12797_v34  ;;  %v6751_v12 = vcombine.high %v6743_v21, %v6743_v21  ;;  %v6759_v41 = vrot.slane %v6743_v21, %v12797_v34  ;;  %v6792_v31 = vrot.slane %v6729_v14, %v12797_v34 }
0x1301   : > { %v6785_v37 = vcombine.high %v6729_v14, %v6729_v14 }
0x1302   : > { %v6773_v63 = vrot.slane %v6751_v12, %v12797_v34  ;;  %v6781_v11 = vcombine.high %v6759_v41, %v6759_v41  ;;  %v6935_v15 = vrot.slane %v6759_v41, %v12807_v32  ;;  %v6752_v24 = vcombine.high %v6750_v50, %v6750_v50 }
0x1303   : > { %v6766_v49 = vrot.slane %v6750_v50, %v12797_v34  ;;  %v6800_v5 = vcombine.high %v6792_v31, %v6792_v31  ;;  %v6808_v1 = vrot.slane %v6792_v31, %v12797_v34  ;;  %v6799_v50 = vrot.slane %v6785_v37, %v12797_v34  ;;  %v6721_v54 = vpop.permute.xlu1 %6720 }
0x1304   : > { %v6939_v2 = vrot.slane %v6773_v63, %v12807_v32  ;;  %v6783_v42 = vcombine.high %v6773_v63, %v6773_v63  ;;  %7060 = vrot.lane.b32.xlu1 %v6935_v15, %s15508_s26  ;;  %v6943_v0 = vrot.slane %v6781_v11, %v12807_v32  ;;  %v6780_v29 = vrot.slane %v6752_v24, %v12797_v34 }
0x1305   : > { %v6951_v4 = vrot.slane %v6766_v49, %v12807_v32  ;;  %v6782_v60 = vcombine.high %v6766_v49, %v6766_v49  ;;  %v6822_v12 = vrot.slane %v6800_v5, %v12797_v34  ;;  %v6560_v11 = vadd.f32 %v6551_v10, %v6360_v26 }
0x1306   : > { %7062 = vrot.lane.b32.xlu0 %v6939_v2, %s15508_s26  ;;  %v6947_v59 = vrot.slane %v6783_v42, %v12807_v32  ;;  %v6955_v55 = vrot.slane %v6780_v29, %v12807_v32  ;;  %v6784_v53 = vcombine.high %v6780_v29, %v6780_v29  ;;  %v6830_v15 = vcombine.high %v6808_v1, %v6808_v1 }
0x1307   : > { %v6959_v51 = vrot.slane %v6782_v60, %v12807_v32  ;;  %v6967_v2 = vrot.slane %v6808_v1, %v12807_v32  ;;  %v6801_v42 = vcombine.high %v6799_v50, %v6799_v50  ;;  %v6730_v49 = vadd.f32 %v6721_v54, %v6560_v11 }
0x1308   : > { %7064 = vrot.lane.b32.xlu1 %v6943_v0, %s15508_s26  ;;  %v6963_v17 = vrot.slane %v6784_v53, %v12807_v32  ;;  %v6971_v31 = vrot.slane %v6822_v12, %v12807_v32  ;;  %v6163_v53 = vunpack.c.h.bf16 %v14790_v39 }
0x1309   : > { %v6841_v60 = vrot.slane %v6730_v49, %v12797_v34  ;;  %v6829_v5 = vrot.slane %v6801_v42, %v12797_v34  ;;  %v6834_v26 = vcombine.high %v6730_v49, %v6730_v49 }
0x130a   : > { %7066 = vrot.lane.b32.xlu0 %v6947_v59, %s15508_s26  ;;  %v6832_v59 = vcombine.high %v6822_v12, %v6822_v12  ;;  %v6361_v39 = vadd.f32 %v14766_v18, %v6163_v53 }
0x130b   : > { %v10575_v36 = vpop.f32.mrb[120].mxu0  ;;  %v6849_v1 = vcombine.high %v6841_v60, %v6841_v60 }
0x130c   : > { %v10576_v52 = vpop.f32.mrb[121].mxu0  ;;  %7068 = vrot.lane.b32.xlu1 %v6951_v4, %s15508_s26  ;;  %v6975_v4 = vrot.slane %v6830_v15, %v12807_v32  ;;  %v6979_v37 = vrot.slane %v6832_v59, %v12807_v32  ;;  %v6561_v54 = vadd.f32 %v14770_v22, %v6361_v39 }
0x130d   : > { %v10578_v40 = vpop.f32.mrb[122].mxu0  ;;  %v10577_v61 = vadd.f32 %v10576_v52, %v10575_v36  ;;  %v6871_v12 = vrot.slane %v6849_v1, %v12797_v34 }
0x130e   : > { %v10579_v19 = vpop.f32.mrb[123].mxu0  ;;  %7070 = vrot.lane.b32.xlu0 %v6955_v55, %s15508_s26 }
0x130f   : > { %v10580_v21 = vadd.f32 %v10579_v19, %v10578_v40  ;;  %v7675_v41 = vadd.f32 %v10577_v61, %v12084_v20  ;;  %v7003_v18 = vrot.slane %v6871_v12, %v12807_v32 }
0x1310   : > { %7072 = vrot.lane.b32.xlu1 %v6959_v51, %s15508_s26  ;;  %v6857_v51 = vrot.slane %v6841_v60, %v12797_v34 }
0x1311   : > { %v7678_v63 = vadd.f32 %v10580_v21, %v12089_v47  ;;  %v14805_v58 = vadd.f32 %v7723_v45, %v7675_v41  ;;  %v6815_v45 = vrot.slane %v6799_v50, %v12797_v34  ;;  %v6987_v21 = vrot.slane %v6829_v5, %v12807_v32 }
0x1312   : > { %7074 = vrot.lane.b32.xlu0 %v6963_v17, %s15508_s26  ;;  %v6723_v17 = vpop.permute.xlu0 %6722  ;;  %v6999_v11 = vrot.slane %v6857_v51, %v12807_v32 }
0x1313   : > { %v14808_v24 = vadd.f32 %v7726_v43, %v7678_v63  ;;  %v10581_v14 = vpop.f32.mrb[124].mxu0  ;;  %v6983_v61 = vrot.slane %v6815_v45, %v12807_v32  ;;  %v6831_v19 = vcombine.high %v6815_v45, %v6815_v45  ;;  %v6879_v63 = vcombine.high %v6857_v51, %v6857_v51 }
0x1314   : > { %v10582_v0 = vpop.f32.mrb[125].mxu0  ;;  %7076 = vrot.lane.b32.xlu1 %v6967_v2, %s15508_s26  ;;  %v6881_v2 = vcombine.high %v6871_v12, %v6871_v12 }
0x1315   : > { %v10583_v29 = vadd.f32 %v10582_v0, %v10581_v14  ;;  %v10584_v38 = vpop.f32.mrb[126].mxu0  ;;  %v6991_v50 = vrot.slane %v6831_v19, %v12807_v32  ;;  %v6731_v14 = vadd.f32 %v6723_v17, %v6561_v54  ;;  %v7007_v49 = vrot.slane %v6879_v63, %v12807_v32 }
0x1316   : > { %v10585_v10 = vpop.f32.mrb[127].mxu0  ;;  %7078 = vrot.lane.b32.xlu0 %v6971_v31, %s15508_s26  ;;  %v7011_v0 = vrot.slane %v6881_v2, %v12807_v32 }
0x1317   : > { %v7683_v43 = vadd.f32 %v10583_v29, %v12087_v46  ;;  %v10586_v36 = vadd.f32 %v10585_v10, %v10584_v38  ;;  %v6890_v22 = vrot.slane %v6731_v14, %v12797_v34  ;;  %v6883_v38 = vcombine.high %v6731_v14, %v6731_v14 }
0x1318   : > { %7080 = vrot.lane.b32.xlu1 %v6975_v4, %s15508_s26 }
0x1319   : > { %v14821_v52 = vadd.f32 %v14768_v25, %v7683_v43  ;;  %v7686_v55 = vadd.f32 %v10586_v36, %v12091_v48  ;;  %v6833_v25 = vcombine.high %v6829_v5, %v6829_v5  ;;  %v6898_v10 = vcombine.high %v6890_v22, %v6890_v22 }
0x131a   : > { %7082 = vrot.lane.b32.xlu0 %v6979_v37, %s15508_s26  ;;  %v6906_v36 = vrot.slane %v6890_v22, %v12797_v34  ;;  %v6897_v60 = vrot.slane %v6883_v38, %v12797_v34 }
0x131b   : > { %v14828_v40 = vadd.f32 %v14773_v28, %v7686_v55  ;;  %v6848_v28 = vrot.slane %v6834_v26, %v12797_v34  ;;  %v6995_v41 = vrot.slane %v6833_v25, %v12807_v32  ;;  %v6920_v37 = vrot.slane %v6898_v10, %v12797_v34 }
0x131c   : > { %7084 = vrot.lane.b32.xlu1 %v6983_v61, %s15508_s26  ;;  %v6928_v55 = vcombine.high %v6906_v36, %v6906_v36  ;;  %v7031_v53 = vrot.slane %v6906_v36, %v12807_v32  ;;  %v6899_v61 = vcombine.high %v6897_v60, %v6897_v60 }
0x131d   : > { %v6850_v15 = vcombine.high %v6848_v28, %v6848_v28  ;;  %v6864_v42 = vrot.slane %v6848_v28, %v12797_v34  ;;  %v7035_v19 = vrot.slane %v6920_v37, %v12807_v32  ;;  %v6930_v26 = vcombine.high %v6920_v37, %v6920_v37 }
0x131e   : > { %7086 = vrot.lane.b32.xlu0 %v6987_v21, %s15508_s26  ;;  %v6913_v21 = vrot.slane %v6897_v60, %v12797_v34  ;;  %v7039_v25 = vrot.slane %v6928_v55, %v12807_v32  ;;  %v6927_v39 = vrot.slane %v6899_v61, %v12797_v34 }
0x131f   : > { %v6878_v31 = vrot.slane %v6850_v15, %v12797_v34  ;;  %v7015_v59 = vrot.slane %v6864_v42, %v12807_v32  ;;  %v6880_v29 = vcombine.high %v6864_v42, %v6864_v42 }
0x1320   : > { %7088 = vrot.lane.b32.xlu1 %v6991_v50, %s15508_s26  ;;  %v7043_v50 = vrot.slane %v6930_v26, %v12807_v32  ;;  %v6929_v17 = vcombine.high %v6913_v21, %v6913_v21  ;;  %v7051_v54 = vrot.slane %v6927_v39, %v12807_v32  ;;  %v6931_v63 = vcombine.high %v6927_v39, %v6927_v39 }
0x1321   : > { %v7019_v45 = vrot.slane %v6878_v31, %v12807_v32  ;;  %v6882_v43 = vcombine.high %v6878_v31, %v6878_v31  ;;  %v7023_v4 = vrot.slane %v6880_v29, %v12807_v32  ;;  %v7368_v31 = vmax.f32 %v14739_v3, 0.0 }
0x1322   : > { %7090 = vrot.lane.b32.xlu0 %v6995_v41, %s15508_s26  ;;  %v7047_v41 = vrot.slane %v6913_v21, %v12807_v32  ;;  %v7055_v14 = vrot.slane %v6929_v17, %v12807_v32  ;;  %v7059_v42 = vrot.slane %v6931_v63, %v12807_v32  ;;  %v7571_v21 = vmax.f32 %v14761_v16, 0.0 }
0x1323   : > { %v7027_v5 = vrot.slane %v6882_v43, %v12807_v32  ;;  %v7370_v43 = vmax.f32 %v14747_v56, 0.0  ;;  %v7568_v56 = vmax.f32 %v14758_v44, 0.0  ;;  %v7738_v44 = vmax.f32 %v14805_v58, 0.0 }
0x1324   : > { %7092 = vrot.lane.b32.xlu1 %v6999_v11, %s15508_s26 }
0x1326   : > { %7094 = vrot.lane.b32.xlu0 %v7003_v18, %s15508_s26 }
0x1328   : > { %7096 = vrot.lane.b32.xlu1 %v7007_v49, %s15508_s26 }
0x132a   : > { %7098 = vrot.lane.b32.xlu0 %v7011_v0, %s15508_s26 }
0x132c   : > { %7100 = vrot.lane.b32.xlu1 %v7015_v59, %s15508_s26  ;;  %v7369_v59 = vmax.f32 %v14743_v35, 0.0 }
0x132e   : > { %7102 = vrot.lane.b32.xlu0 %v7019_v45, %s15508_s26 }
0x1330   : > { %7104 = vrot.lane.b32.xlu1 %v7023_v4, %s15508_s26 }
0x1332   : > { %7106 = vrot.lane.b32.xlu0 %v7027_v5, %s15508_s26 }
0x1334   : > { %7108 = vrot.lane.b32.xlu1 %v7031_v53, %s15508_s26 }
0x1336   : > { %7110 = vrot.lane.b32.xlu0 %v7035_v19, %s15508_s26  ;;  %v10871_v1 = vpop.f32.mrb[128].mxu0 }
0x1337   : > { %v8383_v51 = vpop.f32.mrb[129].mxu0 }
0x1338   : > { %v10872_v28 = vpop.f32.mrb[130].mxu0  ;;  %7112 = vrot.lane.b32.xlu1 %v7039_v25, %s15508_s26 }
0x1339   : > { %v8386_v12 = vpop.f32.mrb[131].mxu0 }
0x133a   : > { %7114 = vrot.lane.b32.xlu0 %v7043_v50, %s15508_s26 }
0x133c   : > { %7116 = vrot.lane.b32.xlu1 %v7047_v41, %s15508_s26 }
0x133e   : > { %v10607_v11 = vpop.f32.mrb[124].mxu1  ;;  %7118 = vrot.lane.b32.xlu0 %v7051_v54, %s15508_s26 }
0x133f   : > { %v10608_v15 = vpop.f32.mrb[125].mxu1 }
0x1340   : > { %v10609_v18 = vadd.f32 %v10608_v15, %v10607_v11  ;;  %v10610_v2 = vpop.f32.mrb[126].mxu1  ;;  %7120 = vrot.lane.b32.xlu1 %v7055_v14, %s15508_s26 }
0x1341   : > { %v10611_v49 = vpop.f32.mrb[127].mxu1 }
0x1342   : > { %v10612_v22 = vadd.f32 %v10611_v49, %v10610_v2  ;;  %7122 = vrot.lane.b32.xlu0 %v7059_v42, %s15508_s26  ;;  %v8335_v0 = vadd.f32 %v10609_v18, %v11877_v7  ;;  %v7371_v7 = vmax.f32 %v14751_v13, 0.0  ;;  %v7569_v13 = vmax.f32 %v14763_v62, 0.0 }
0x1343   : > { %v7740_v62 = vmax.f32 %v14821_v52, 0.0 }
0x1344   : > { %v14886_v29 = vadd.f32 %v8383_v51, %v8335_v0  ;;  %v8338_v38 = vadd.f32 %v10612_v22, %v11875_v6  ;;  %7376 = vrot.lane.b32.xlu1 %v7368_v31, %s15528_s30 }
0x1346   : > { %v14890_v10 = vadd.f32 %v8386_v12, %v8338_v38  ;;  %v10613_v45 = vpop.f32.mrb[128].mxu1  ;;  %7378 = vrot.lane.b32.xlu0 %v7369_v59, %s15528_s30 }
0x1347   : > { %v10614_v36 = vpop.f32.mrb[129].mxu1 }
0x1348   : > { %v10615_v4 = vadd.f32 %v10614_v36, %v10613_v45  ;;  %v10616_v3 = vpop.f32.mrb[130].mxu1  ;;  %v14895_v60 = vpop.f32.mrb[132].mxu0  ;;  %7380 = vrot.lane.b32.xlu1 %v7370_v43, %s15528_s30 }
0x1349   : > { %v10617_v35 = vpop.f32.mrb[131].mxu1  ;;  %v8583_v6 = vpop.f32.mrb[133].mxu0 }
0x134a   : > { %v8343_v37 = vadd.f32 %v10615_v4, %v11879_v8  ;;  %v10618_v5 = vadd.f32 %v10617_v35, %v10616_v3  ;;  %7382 = vrot.lane.b32.xlu0 %v7371_v7, %s15528_s30  ;;  %v14900_v55 = vpop.f32.mrb[134].mxu0  ;;  %v7570_v8 = vmax.f32 %v14755_v57, 0.0 }
0x134b   : > { %v8586_v53 = vpop.f32.mrb[135].mxu0 }
0x134c   : > { %v14904_v61 = vadd.f32 %v10871_v1, %v8343_v37  ;;  %v8346_v19 = vadd.f32 %v10618_v5, %v11881_v9  ;;  %7576 = vrot.lane.b32.xlu1 %v7568_v56, %s15528_s30  ;;  %v7739_v9 = vmax.f32 %v14808_v24, 0.0  ;;  %v7741_v1 = vmax.f32 %v14828_v40, 0.0 }
0x134e   : > { %v14908_v26 = vadd.f32 %v10872_v28, %v8346_v19  ;;  %7578 = vrot.lane.b32.xlu0 %v7569_v13, %s15528_s30 }
0x1350   : > { %7580 = vrot.lane.b32.xlu1 %v7570_v8, %s15528_s30 }
0x1352   : > { %7582 = vrot.lane.b32.xlu0 %v7571_v21, %s15528_s30 }
0x1354   : > { %7746 = vrot.lane.b32.xlu1 %v7738_v44, %s15528_s30 }
0x1356   : > { %7748 = vrot.lane.b32.xlu0 %v7739_v9, %s15528_s30 }
0x1358   : > { %7750 = vrot.lane.b32.xlu1 %v7740_v62, %s15528_s30 }
0x135a   : > { %7752 = vrot.lane.b32.xlu0 %v7741_v1, %s15528_s30 }
0x1376   : > { %v10639_v57 = vpop.f32.mrb[132].mxu1  ;;  %v7061_v16 = vpop.permute.xlu1 %7060 }
0x1377   : > { %v10640_v25 = vpop.f32.mrb[133].mxu1  ;;  %7156 = vst.msk [vmem:[%s11268_s17 + $0x5] sm:$0x1] %vm1933_vm7, %v7061_v16 }
0x1378   : > { %v10641_v58 = vadd.f32 %v10640_v25, %v10639_v57  ;;  %v10642_v24 = vpop.f32.mrb[134].mxu1  ;;  %v7063_v51 = vpop.permute.xlu0 %7062 }
0x1379   : > { %7157 = vst.msk [vmem:[%s11268_s17 + $0xd] sm:$0x1] %vm1933_vm7, %v7063_v51  ;;  %v10643_v50 = vpop.f32.mrb[135].mxu1 }
0x137a   : > { %v8535_v52 = vadd.f32 %v10641_v58, %v11926_v23  ;;  %v10644_v40 = vadd.f32 %v10643_v50, %v10642_v24  ;;  %v10671_v39 = vpop.f32.mrb[136].mxu0  ;;  %v7065_v28 = vpop.permute.xlu1 %7064 }
0x137b   : > { %v10672_v12 = vpop.f32.mrb[137].mxu0  ;;  %7158 = vst.msk [vmem:[%s11268_s17 + $0x15] sm:$0x1] %vm1933_vm7, %v7065_v28 }
0x137c   : > { %v14928_v41 = vadd.f32 %v8583_v6, %v8535_v52  ;;  %v8538_v17 = vadd.f32 %v10644_v40, %v11945_v30  ;;  %v10673_v54 = vadd.f32 %v10672_v12, %v10671_v39  ;;  %v10674_v63 = vpop.f32.mrb[138].mxu0  ;;  %v7067_v11 = vpop.permute.xlu0 %7066 }
0x137d   : > { %7159 = vst.msk [vmem:[%s11268_s17 + $0x1d] sm:$0x1] %vm1933_vm7, %v7067_v11  ;;  %v10675_v15 = vpop.f32.mrb[139].mxu0 }
0x137e   : > { %v14935_v14 = vadd.f32 %v8586_v53, %v8538_v17  ;;  %v10676_v23 = vadd.f32 %v10675_v15, %v10674_v63  ;;  %v10645_v18 = vpop.f32.mrb[136].mxu1  ;;  %v7069_v2 = vpop.permute.xlu1 %7068  ;;  %v8705_v56 = vadd.f32 %v10673_v54, %v12084_v20 }
0x137f   : > { %v10646_v42 = vpop.f32.mrb[137].mxu1  ;;  %7160 = vst.msk [vmem:[%s11268_s17 + $0x25] sm:$0x1] %vm1933_vm7, %v7069_v2 }
0x1380   : > { %v10647_v49 = vadd.f32 %v10646_v42, %v10645_v18  ;;  %v10648_v30 = vpop.f32.mrb[138].mxu1  ;;  %v7071_v22 = vpop.permute.xlu0 %7070  ;;  %v8708_v21 = vadd.f32 %v10676_v23, %v12089_v47 }
0x1381   : > { %7161 = vst.msk [vmem:[%s11268_s17 + $0x2d] sm:$0x1] %vm1933_vm7, %v7071_v22  ;;  %v10649_v0 = vpop.f32.mrb[139].mxu1  ;;  %v11072_v22 = vld [vmem:[%s11749_s21 + $0x120] sm:$0xff] }
0x1382   : > { %v8543_v31 = vadd.f32 %v10647_v49, %v11939_v27  ;;  %v10650_v59 = vadd.f32 %v10649_v0, %v10648_v30  ;;  %v10677_v38 = vpop.f32.mrb[140].mxu0  ;;  %v7073_v45 = vpop.permute.xlu1 %7072  ;;  %v7190_v0 = vunpack.c.l.bf16 %v11072_v22 }
0x1383   : > { %v10678_v43 = vpop.f32.mrb[141].mxu0  ;;  %7162 = vst.msk [vmem:[%s11268_s17 + $0x35] sm:$0x1] %vm1933_vm7, %v7073_v45 }
0x1384   : > { %v14943_v36 = vadd.f32 %v14895_v60, %v8543_v31  ;;  %v8546_v7 = vadd.f32 %v10650_v59, %v11953_v33  ;;  %v10679_v4 = vadd.f32 %v10678_v43, %v10677_v38  ;;  %v10680_v3 = vpop.f32.mrb[142].mxu0  ;;  %v7075_v35 = vpop.permute.xlu0 %7074 }
0x1385   : > { %7163 = vst.msk [vmem:[%s11268_s17 + $0x3d] sm:$0x1] %vm1933_vm7, %v7075_v35  ;;  %v10681_v6 = vpop.f32.mrb[143].mxu0 }
0x1386   : > { %v14951_v27 = vadd.f32 %v14900_v55, %v8546_v7  ;;  %v10682_v37 = vadd.f32 %v10681_v6, %v10680_v3  ;;  %v8713_v5 = vadd.f32 %v10679_v4, %v12087_v46  ;;  %v10887_v60 = vpop.f32.mrb[140].mxu1  ;;  %v7077_v33 = vpop.permute.xlu1 %7076  ;;  %v7191_v6 = vunpack.c.h.bf16 %v11072_v22 }
0x1387   : > { %v8753_v53 = vpop.f32.mrb[141].mxu1  ;;  %7164 = vst.msk [vmem:[%s11268_s17 + $0x45] sm:$0x1] %vm1933_vm7, %v7077_v33 }
0x1388   : > { %v14955_v13 = vadd.f32 %v10887_v60, %v8713_v5  ;;  %v14959_v19 = vadd.f32 %v8753_v53, %v8705_v56  ;;  %v8716_v55 = vadd.f32 %v10682_v37, %v12091_v48  ;;  %v10888_v8 = vpop.f32.mrb[142].mxu1  ;;  %v7079_v46 = vpop.permute.xlu0 %7078 }
0x1389   : > { %7165 = vst.msk [vmem:[%s11268_s17 + $0x4d] sm:$0x1] %vm1933_vm7, %v7079_v46  ;;  %v8756_v20 = vpop.f32.mrb[143].mxu1 }
0x138a   : > { %v14965_v44 = vadd.f32 %v10888_v8, %v8716_v55  ;;  %v14967_v9 = vadd.f32 %v8756_v20, %v8708_v21  ;;  %v7081_v62 = vpop.permute.xlu1 %7080 }
0x138b   : > { %7166 = vst.msk [vmem:[%s11268_s17 + $0x55] sm:$0x1] %vm1933_vm7, %v7081_v62 }
0x138c   : > { %v7083_v48 = vpop.permute.xlu0 %7082 }
0x138d   : > { %7167 = vst.msk [vmem:[%s11268_s17 + $0x5d] sm:$0x1] %vm1933_vm7, %v7083_v48 }
0x138e   : > { %v7085_v1 = vpop.permute.xlu1 %7084 }
0x138f   : > { %7168 = vst.msk [vmem:[%s11268_s17 + $0x65] sm:$0x1] %vm1933_vm7, %v7085_v1 }
0x1390   : > { %v7087_v47 = vpop.permute.xlu0 %7086 }
0x1391   : > { %7169 = vst.msk [vmem:[%s11268_s17 + $0x6d] sm:$0x1] %vm1933_vm7, %v7087_v47 }
0x1392   : > { %v7089_v57 = vpop.permute.xlu1 %7088 }
0x1393   : > { %7170 = vst.msk [vmem:[%s11268_s17 + $0x75] sm:$0x1] %vm1933_vm7, %v7089_v57 }
0x1394   : > { %v7091_v16 = vpop.permute.xlu0 %7090 }
0x1395   : > { %7171 = vst.msk [vmem:[%s11268_s17 + $0x7d] sm:$0x1] %vm1933_vm7, %v7091_v16 }
0x1396   : > { %v7093_v25 = vpop.permute.xlu1 %7092 }
0x1397   : > { %7172 = vst.msk [vmem:[%s11268_s17 + $0x85] sm:$0x1] %vm1933_vm7, %v7093_v25 }
0x1398   : > { %v7095_v58 = vpop.permute.xlu0 %7094 }
0x1399   : > { %7173 = vst.msk [vmem:[%s11268_s17 + $0x8d] sm:$0x1] %vm1933_vm7, %v7095_v58 }
0x139a   : > { %v7097_v24 = vpop.permute.xlu1 %7096 }
0x139b   : > { %7174 = vst.msk [vmem:[%s11268_s17 + $0x95] sm:$0x1] %vm1933_vm7, %v7097_v24 }
0x139c   : > { %v7099_v51 = vpop.permute.xlu0 %7098 }
0x139d   : > { %7175 = vst.msk [vmem:[%s11268_s17 + $0x9d] sm:$0x1] %vm1933_vm7, %v7099_v51 }
0x139e   : > { %v7101_v50 = vpop.permute.xlu1 %7100 }
0x139f   : > { %7176 = vst.msk [vmem:[%s11268_s17 + $0xa5] sm:$0x1] %vm1933_vm7, %v7101_v50 }
0x13a0   : > { %v7103_v52 = vpop.permute.xlu0 %7102 }
0x13a1   : > { %7177 = vst.msk [vmem:[%s11268_s17 + $0xad] sm:$0x1] %vm1933_vm7, %v7103_v52 }
0x13a2   : > { %v7105_v40 = vpop.permute.xlu1 %7104 }
0x13a3   : > { %7178 = vst.msk [vmem:[%s11268_s17 + $0xb5] sm:$0x1] %vm1933_vm7, %v7105_v40 }
0x13a4   : > { %v7107_v39 = vpop.permute.xlu0 %7106 }
0x13a5   : > { %7179 = vst.msk [vmem:[%s11268_s17 + $0xbd] sm:$0x1] %vm1933_vm7, %v7107_v39 }
0x13a6   : > { %v7109_v28 = vpop.permute.xlu1 %7108 }
0x13a7   : > { %7180 = vst.msk [vmem:[%s11268_s17 + $0xc5] sm:$0x1] %vm1933_vm7, %v7109_v28 }
0x13a8   : > { %v7111_v12 = vpop.permute.xlu0 %7110 }
0x13a9   : > { %7181 = vst.msk [vmem:[%s11268_s17 + $0xcd] sm:$0x1] %vm1933_vm7, %v7111_v12  ;;  %v8398_v12 = vmax.f32 %v14886_v29, 0.0  ;;  %v8600_v29 = vmax.f32 %v14943_v36, 0.0  ;;  %v8770_v36 = vmax.f32 %v14955_v13, 0.0 }
0x13aa   : > { %v7113_v17 = vpop.permute.xlu1 %7112 }
0x13ab   : > { %7182 = vst.msk [vmem:[%s11268_s17 + $0xd5] sm:$0x1] %vm1933_vm7, %v7113_v17  ;;  %v8399_v17 = vmax.f32 %v14890_v10, 0.0  ;;  %v8601_v10 = vmax.f32 %v14951_v27, 0.0 }
0x13ac   : > { %v7115_v54 = vpop.permute.xlu0 %7114 }
0x13ad   : > { %7183 = vst.msk [vmem:[%s11268_s17 + $0xdd] sm:$0x1] %vm1933_vm7, %v7115_v54  ;;  %v8400_v54 = vmax.f32 %v14904_v61, 0.0  ;;  %v8768_v61 = vmax.f32 %v14959_v19, 0.0  ;;  %v8771_v19 = vmax.f32 %v14965_v44, 0.0 }
0x13ae   : > { %v7117_v63 = vpop.permute.xlu1 %7116 }
0x13af   : > { %7184 = vst.msk [vmem:[%s11268_s17 + $0xe5] sm:$0x1] %vm1933_vm7, %v7117_v63  ;;  %v8401_v63 = vmax.f32 %v14908_v26, 0.0  ;;  %v11073_v26 = vld [vmem:[%s11749_s21 + $0x128] sm:$0xff] }
0x13b0   : > { %v7119_v11 = vpop.permute.xlu0 %7118 }
0x13b1   : > { %7185 = vst.msk [vmem:[%s11268_s17 + $0xed] sm:$0x1] %vm1933_vm7, %v7119_v11  ;;  %v8598_v11 = vmax.f32 %v14928_v41, 0.0 }
0x13b2   : > { %v7121_v15 = vpop.permute.xlu1 %7120 }
0x13b3   : > { %7186 = vst.msk [vmem:[%s11268_s17 + $0xf5] sm:$0x1] %vm1933_vm7, %v7121_v15  ;;  %v8599_v15 = vmax.f32 %v14935_v14, 0.0  ;;  %v8769_v14 = vmax.f32 %v14967_v9, 0.0 }
0x13b4   : > { %v7123_v23 = vpop.permute.xlu0 %7122 }
0x13b5   : > { %7187 = vst.msk [vmem:[%s11268_s17 + $0xfd] sm:$0x1] %vm1933_vm7, %v7123_v23  ;;  %v7192_v23 = vunpack.c.l.bf16 %v11073_v26 }
0x13b6   : > { %v7377_v18 = vpop.permute.xlu1 %7376 }
0x13b7   : > { %v7388_v59 = vadd.f32 %v7377_v18, %v7190_v0 }
0x13b8   : > { %v7379_v2 = vpop.permute.xlu0 %7378 }
0x13b9   : > { %v7389_v55 = vadd.f32 %v7379_v2, %v7191_v6  ;;  %v7193_v6 = vunpack.c.h.bf16 %v11073_v26 }
0x13ba   : > { %v15013_v42 = vpop.permute.xlu1 %7380 }
0x13bb   : > { %v7390_v27 = vadd.f32 %v15013_v42, %v7192_v23 }
0x13bc   : > { %v15015_v49 = vpop.permute.xlu0 %7382 }
0x13be   : > { %v7577_v30 = vpop.permute.xlu1 %7576 }
0x13bf   : > { %v7588_v45 = vadd.f32 %v7577_v30, %v7388_v59 }
0x13c0   : > { %v7579_v38 = vpop.permute.xlu0 %7578 }
0x13c1   : > { %v7589_v46 = vadd.f32 %v7579_v38, %v7389_v55  ;;  %v7391_v55 = vadd.f32 %v15015_v49, %v7193_v6 }
0x13c2   : > { %v15018_v31 = vpop.permute.xlu1 %7580 }
0x13c3   : > { %v7590_v59 = vadd.f32 %v15018_v31, %v7390_v27 }
0x13c4   : > { %v15021_v3 = vpop.permute.xlu0 %7582 }
0x13c6   : > { %v7747_v43 = vpop.permute.xlu1 %7746 }
0x13c7   : > { %v7758_v7 = vadd.f32 %v7747_v43, %v7588_v45 }
0x13c8   : > { %v7749_v8 = vpop.permute.xlu0 %7748 }
0x13c9   : > { %v7773_v4 = vrot.slane %v7758_v7, %v12797_v34  ;;  %v7766_v35 = vcombine.high %v7758_v7, %v7758_v7  ;;  %v7759_v47 = vadd.f32 %v7749_v8, %v7589_v46 }
0x13ca   : > { %v7751_v0 = vpop.permute.xlu1 %7750 }
0x13cb   : > { %v7781_v37 = vcombine.high %v7773_v4, %v7773_v4  ;;  %v7789_v5 = vrot.slane %v7773_v4, %v12797_v34  ;;  %v7780_v60 = vrot.slane %v7766_v35, %v12797_v34  ;;  %v7822_v58 = vrot.slane %v7759_v47, %v12797_v34 }
0x13cc   : > { %v7815_v18 = vcombine.high %v7759_v47, %v7759_v47  ;;  %v7760_v45 = vadd.f32 %v7751_v0, %v7590_v59 }
0x13cd   : > { %v7803_v56 = vrot.slane %v7781_v37, %v12797_v34  ;;  %v7811_v33 = vcombine.high %v7789_v5, %v7789_v5  ;;  %v7965_v53 = vrot.slane %v7789_v5, %v12807_v32  ;;  %v7782_v21 = vcombine.high %v7780_v60, %v7780_v60 }
0x13ce   : > { %v7796_v1 = vrot.slane %v7780_v60, %v12797_v34  ;;  %v7838_v52 = vrot.slane %v7822_v58, %v12797_v34  ;;  %v7830_v41 = vcombine.high %v7822_v58, %v7822_v58  ;;  %v7829_v2 = vrot.slane %v7815_v18, %v12797_v34 }
0x13cf   : > { %8090 = vrot.lane.b32.xlu1 %v7965_v53, %s15508_s26  ;;  %v7813_v20 = vcombine.high %v7803_v56, %v7803_v56  ;;  %v7969_v62 = vrot.slane %v7803_v56, %v12807_v32  ;;  %v7973_v48 = vrot.slane %v7811_v33, %v12807_v32  ;;  %v7810_v57 = vrot.slane %v7782_v21, %v12797_v34 }
0x13d0   : > { %v7812_v25 = vcombine.high %v7796_v1, %v7796_v1  ;;  %v7981_v24 = vrot.slane %v7796_v1, %v12807_v32  ;;  %v7997_v28 = vrot.slane %v7838_v52, %v12807_v32  ;;  %v7852_v30 = vrot.slane %v7830_v41, %v12797_v34 }
0x13d1   : > { %8092 = vrot.lane.b32.xlu0 %v7969_v62, %s15508_s26  ;;  %v7977_v16 = vrot.slane %v7813_v20, %v12807_v32  ;;  %v7985_v51 = vrot.slane %v7810_v57, %v12807_v32  ;;  %v7814_v50 = vcombine.high %v7810_v57, %v7810_v57  ;;  %v7860_v22 = vcombine.high %v7838_v52, %v7838_v52 }
0x13d2   : > { %v7989_v40 = vrot.slane %v7812_v25, %v12807_v32  ;;  %v7831_v9 = vcombine.high %v7829_v2, %v7829_v2  ;;  %v7862_v38 = vcombine.high %v7852_v30, %v7852_v30  ;;  %v8001_v13 = vrot.slane %v7852_v30, %v12807_v32 }
0x13d3   : > { %8094 = vrot.lane.b32.xlu1 %v7973_v48, %s15508_s26  ;;  %v7993_v39 = vrot.slane %v7814_v50, %v12807_v32  ;;  %v7845_v42 = vrot.slane %v7829_v2, %v12797_v34  ;;  %v8005_v43 = vrot.slane %v7860_v22, %v12807_v32  ;;  %v7871_v31 = vrot.slane %v7760_v45, %v12797_v34  ;;  %v7753_v48 = vpop.permute.xlu0 %7752 }
0x13d4   : > { %v7859_v44 = vrot.slane %v7831_v9, %v12797_v34  ;;  %v8009_v7 = vrot.slane %v7862_v38, %v12807_v32  ;;  %v7864_v37 = vcombine.high %v7760_v45, %v7760_v45  ;;  %v7591_v1 = vadd.f32 %v15021_v3, %v7391_v55 }
0x13d5   : > { %8096 = vrot.lane.b32.xlu0 %v7977_v16, %s15508_s26  ;;  %v7861_v4 = vcombine.high %v7845_v42, %v7845_v42  ;;  %v8013_v35 = vrot.slane %v7845_v42, %v12807_v32  ;;  %v7879_v5 = vcombine.high %v7871_v31, %v7871_v31  ;;  %v7887_v33 = vrot.slane %v7871_v31, %v12797_v34 }
0x13d6   : > { %v8017_v60 = vrot.slane %v7859_v44, %v12807_v32  ;;  %v7863_v56 = vcombine.high %v7859_v44, %v7859_v44  ;;  %v7878_v8 = vrot.slane %v7864_v37, %v12797_v34  ;;  %v7761_v16 = vadd.f32 %v7753_v48, %v7591_v1 }
0x13d7   : > { %8098 = vrot.lane.b32.xlu1 %v7981_v24, %s15508_s26  ;;  %v8021_v53 = vrot.slane %v7861_v4, %v12807_v32  ;;  %v7901_v46 = vrot.slane %v7879_v5, %v12797_v34  ;;  %v7909_v20 = vcombine.high %v7887_v33, %v7887_v33  ;;  %v8029_v62 = vrot.slane %v7887_v33, %v12807_v32  ;;  %v11074_v5 = vld [vmem:[%s11749_s21 + $0x130] sm:$0xff] }
0x13d8   : > { %v8025_v21 = vrot.slane %v7863_v56, %v12807_v32  ;;  %v7880_v47 = vcombine.high %v7878_v8, %v7878_v8  ;;  %v7894_v25 = vrot.slane %v7878_v8, %v12797_v34  ;;  %v7920_v3 = vrot.slane %v7761_v16, %v12797_v34 }
0x13d9   : > { %8100 = vrot.lane.b32.xlu0 %v7985_v51, %s15508_s26  ;;  %v7911_v57 = vcombine.high %v7901_v46, %v7901_v46  ;;  %v8033_v49 = vrot.slane %v7901_v46, %v12807_v32  ;;  %v8037_v58 = vrot.slane %v7909_v20, %v12807_v32 }
0x13da   : > { %v7908_v24 = vrot.slane %v7880_v47, %v12797_v34  ;;  %v7910_v50 = vcombine.high %v7894_v25, %v7894_v25  ;;  %v8045_v52 = vrot.slane %v7894_v25, %v12807_v32 }
0x13db   : > { %8102 = vrot.lane.b32.xlu1 %v7989_v40, %s15508_s26  ;;  %v8041_v51 = vrot.slane %v7911_v57, %v12807_v32  ;;  %v7913_v40 = vcombine.high %v7761_v16, %v7761_v16 }
0x13dd   : > { %8104 = vrot.lane.b32.xlu0 %v7993_v39, %s15508_s26  ;;  %v7928_v39 = vcombine.high %v7920_v3, %v7920_v3 }
0x13df   : > { %8106 = vrot.lane.b32.xlu1 %v7997_v28, %s15508_s26  ;;  %v8049_v28 = vrot.slane %v7908_v24, %v12807_v32 }
0x13e1   : > { %8406 = vrot.lane.b32.xlu0 %v8398_v12, %s15528_s30  ;;  %v7912_v12 = vcombine.high %v7908_v24, %v7908_v24 }
0x13e3   : > { %8408 = vrot.lane.b32.xlu1 %v8399_v17, %s15528_s30  ;;  %v7936_v17 = vrot.slane %v7920_v3, %v12797_v34 }
0x13e5   : > { %8410 = vrot.lane.b32.xlu0 %v8400_v54, %s15528_s30  ;;  %v8053_v54 = vrot.slane %v7910_v50, %v12807_v32 }
0x13e7   : > { %8412 = vrot.lane.b32.xlu1 %v8401_v63, %s15528_s30  ;;  %v7927_v63 = vrot.slane %v7913_v40, %v12797_v34 }
0x13e9   : > { %8606 = vrot.lane.b32.xlu0 %v8598_v11, %s15528_s30  ;;  %v7950_v11 = vrot.slane %v7928_v39, %v12797_v34  ;;  %v7943_v18 = vrot.slane %v7927_v63, %v12797_v34 }
0x13eb   : > { %8608 = vrot.lane.b32.xlu1 %v8599_v15, %s15528_s30  ;;  %v8057_v15 = vrot.slane %v7912_v12, %v12807_v32  ;;  %v7960_v26 = vcombine.high %v7950_v11, %v7950_v11  ;;  %v8065_v23 = vrot.slane %v7950_v11, %v12807_v32  ;;  %v7959_v27 = vcombine.high %v7943_v18, %v7943_v18 }
0x13ec   : > { %v8077_v2 = vrot.slane %v7943_v18, %v12807_v32 }
0x13ed   : > { %8610 = vrot.lane.b32.xlu0 %v8600_v29, %s15528_s30  ;;  %v7958_v29 = vcombine.high %v7936_v17, %v7936_v17  ;;  %v8085_v22 = vrot.slane %v7959_v27, %v12807_v32 }
0x13ef   : > { %8612 = vrot.lane.b32.xlu1 %v8601_v10, %s15528_s30  ;;  %v8061_v10 = vrot.slane %v7936_v17, %v12807_v32  ;;  %v8069_v41 = vrot.slane %v7958_v29, %v12807_v32 }
0x13f1   : > { %8776 = vrot.lane.b32.xlu0 %v8768_v61, %s15528_s30  ;;  %v7929_v61 = vcombine.high %v7927_v63, %v7927_v63 }
0x13f3   : > { %8778 = vrot.lane.b32.xlu1 %v8769_v14, %s15528_s30  ;;  %v7957_v14 = vrot.slane %v7929_v61, %v12797_v34 }
0x13f5   : > { %8780 = vrot.lane.b32.xlu0 %v8770_v36, %s15528_s30  ;;  %v8073_v36 = vrot.slane %v7960_v26, %v12807_v32  ;;  %v8081_v30 = vrot.slane %v7957_v14, %v12807_v32 }
0x13f7   : > { %8782 = vrot.lane.b32.xlu1 %v8771_v19, %s15528_s30  ;;  %v7961_v19 = vcombine.high %v7957_v14, %v7957_v14  ;;  %v15199_v14 = vld [vmem:[%s11749_s21 + $0x138] sm:$0xff]  ;;  %s9876_s21 = sshll.u32 (%p11247_p5), %s11122_s12, 6 }
0x13f8   : > { %s9256_s20 = sadd.s32 (%p11247_p5), %s11118_s11, %s9876_s21 }
0x13f9   : > { %8108 = vrot.lane.b32.xlu0 %v8001_v13, %s15508_s26  ;;  %v8089_v0 = vrot.slane %v7961_v19, %v12807_v32 }
0x13fb   : > { %8110 = vrot.lane.b32.xlu1 %v8005_v43, %s15508_s26 }
0x13fd   : > { %8112 = vrot.lane.b32.xlu0 %v8009_v7, %s15508_s26 }
0x13ff   : > { %8114 = vrot.lane.b32.xlu1 %v8013_v35, %s15508_s26 }
0x1401   : > { %8116 = vrot.lane.b32.xlu0 %v8017_v60, %s15508_s26  ;;  %v8220_v60 = vunpack.c.l.bf16 %v11074_v5 }
0x1403   : > { %8118 = vrot.lane.b32.xlu1 %v8021_v53, %s15508_s26 }
0x1405   : > { %8120 = vrot.lane.b32.xlu0 %v8025_v21, %s15508_s26 }
0x1407   : > { %8122 = vrot.lane.b32.xlu1 %v8029_v62, %s15508_s26  ;;  %v8221_v62 = vunpack.c.h.bf16 %v11074_v5 }
0x1409   : > { %8124 = vrot.lane.b32.xlu0 %v8033_v49, %s15508_s26 }
0x140b   : > { %8126 = vrot.lane.b32.xlu1 %v8037_v58, %s15508_s26 }
0x140d   : > { %8128 = vrot.lane.b32.xlu0 %v8041_v51, %s15508_s26 }
0x140f   : > { %8130 = vrot.lane.b32.xlu1 %v8045_v52, %s15508_s26 }
0x1411   : > { %8132 = vrot.lane.b32.xlu0 %v8049_v28, %s15508_s26 }
0x1413   : > { %8134 = vrot.lane.b32.xlu1 %v8053_v54, %s15508_s26 }
0x1415   : > { %8136 = vrot.lane.b32.xlu0 %v8057_v15, %s15508_s26 }
0x1417   : > { %8138 = vrot.lane.b32.xlu1 %v8061_v10, %s15508_s26 }
0x1419   : > { %8140 = vrot.lane.b32.xlu0 %v8065_v23, %s15508_s26 }
0x141b   : > { %8142 = vrot.lane.b32.xlu1 %v8069_v41, %s15508_s26 }
0x141d   : > { %8144 = vrot.lane.b32.xlu0 %v8073_v36, %s15508_s26  ;;  %v8222_v36 = vunpack.c.l.bf16 %v15199_v14 }
0x141f   : > { %8146 = vrot.lane.b32.xlu1 %v8077_v2, %s15508_s26 }
0x1421   : > { %8148 = vrot.lane.b32.xlu0 %v8081_v30, %s15508_s26 }
0x1423   : > { %8150 = vrot.lane.b32.xlu1 %v8085_v22, %s15508_s26 }
0x1425   : > { %8152 = vrot.lane.b32.xlu0 %v8089_v0, %s15508_s26 }
0x1441   : > { %v8091_v59 = vpop.permute.xlu1 %8090 }
0x1442   : > { %8186 = vst.msk [vmem:[%s11268_s17 + $0x6] sm:$0x1] %vm1933_vm7, %v8091_v59 }
0x1443   : > { %v8093_v9 = vpop.permute.xlu0 %8092 }
0x1444   : > { %8187 = vst.msk [vmem:[%s11268_s17 + $0xe] sm:$0x1] %vm1933_vm7, %v8093_v9 }
0x1445   : > { %v8095_v38 = vpop.permute.xlu1 %8094 }
0x1446   : > { %8188 = vst.msk [vmem:[%s11268_s17 + $0x16] sm:$0x1] %vm1933_vm7, %v8095_v38 }
0x1447   : > { %v8097_v45 = vpop.permute.xlu0 %8096 }
0x1448   : > { %8189 = vst.msk [vmem:[%s11268_s17 + $0x1e] sm:$0x1] %vm1933_vm7, %v8097_v45 }
0x1449   : > { %v8099_v13 = vpop.permute.xlu1 %8098 }
0x144a   : > { %8190 = vst.msk [vmem:[%s11268_s17 + $0x26] sm:$0x1] %vm1933_vm7, %v8099_v13 }
0x144b   : > { %v8101_v42 = vpop.permute.xlu0 %8100 }
0x144c   : > { %8191 = vst.msk [vmem:[%s11268_s17 + $0x2e] sm:$0x1] %vm1933_vm7, %v8101_v42 }
0x144d   : > { %v8103_v43 = vpop.permute.xlu1 %8102 }
0x144e   : > { %8192 = vst.msk [vmem:[%s11268_s17 + $0x36] sm:$0x1] %vm1933_vm7, %v8103_v43 }
0x144f   : > { %v8105_v44 = vpop.permute.xlu0 %8104 }
0x1450   : > { %8193 = vst.msk [vmem:[%s11268_s17 + $0x3e] sm:$0x1] %vm1933_vm7, %v8105_v44 }
0x1451   : > { %v8107_v31 = vpop.permute.xlu1 %8106 }
0x1452   : > { %8194 = vst.msk [vmem:[%s11268_s17 + $0x46] sm:$0x1] %vm1933_vm7, %v8107_v31 }
0x1453   : > { %v8407_v7 = vpop.permute.xlu0 %8406 }
0x1454   : > { %v8418_v53 = vadd.f32 %v8407_v7, %v8220_v60 }
0x1455   : > { %v8409_v4 = vpop.permute.xlu1 %8408 }
0x1456   : > { %v8419_v25 = vadd.f32 %v8409_v4, %v8221_v62 }
0x1457   : > { %v15157_v35 = vpop.permute.xlu0 %8410 }
0x1458   : > { %v8420_v38 = vadd.f32 %v15157_v35, %v8222_v36 }
0x1459   : > { %v15159_v6 = vpop.permute.xlu1 %8412 }
0x145b   : > { %v8607_v37 = vpop.permute.xlu0 %8606 }
0x145c   : > { %v8618_v8 = vadd.f32 %v8607_v37, %v8418_v53 }
0x145d   : > { %v8609_v56 = vpop.permute.xlu1 %8608 }
0x145e   : > { %v8619_v52 = vadd.f32 %v8609_v56, %v8419_v25 }
0x145f   : > { %v15162_v33 = vpop.permute.xlu0 %8610 }
0x1460   : > { %v8620_v4 = vadd.f32 %v15162_v33, %v8420_v38 }
0x1461   : > { %v15164_v55 = vpop.permute.xlu1 %8612 }
0x1463   : > { %v8777_v46 = vpop.permute.xlu0 %8776 }
0x1464   : > { %v8788_v21 = vadd.f32 %v8777_v46, %v8618_v8 }
0x1465   : > { %v8779_v20 = vpop.permute.xlu1 %8778 }
0x1466   : > { %v8803_v48 = vrot.slane %v8788_v21, %v12797_v34  ;;  %v8796_v1 = vcombine.high %v8788_v21, %v8788_v21  ;;  %v8789_v39 = vadd.f32 %v8779_v20, %v8619_v52 }
0x1467   : > { %v15167_v47 = vpop.permute.xlu0 %8780 }
0x1468   : > { %v8811_v57 = vcombine.high %v8803_v48, %v8803_v48  ;;  %v8819_v16 = vrot.slane %v8803_v48, %v12797_v34  ;;  %v8810_v58 = vrot.slane %v8796_v1, %v12797_v34  ;;  %v8852_v10 = vrot.slane %v8789_v39, %v12797_v34 }
0x1469   : > { %v15170_v49 = vpop.permute.xlu1 %8782  ;;  %v8845_v27 = vcombine.high %v8789_v39, %v8789_v39  ;;  %v8790_v5 = vadd.f32 %v15167_v47, %v8620_v4 }
0x146a   : > { %v8833_v24 = vrot.slane %v8811_v57, %v12797_v34  ;;  %v8841_v3 = vcombine.high %v8819_v16, %v8819_v16  ;;  %v8995_v51 = vrot.slane %v8819_v16, %v12807_v32  ;;  %v8812_v28 = vcombine.high %v8810_v58, %v8810_v58 }
0x146b   : > { %v8109_v50 = vpop.permute.xlu0 %8108  ;;  %v8826_v11 = vrot.slane %v8810_v58, %v12797_v34  ;;  %v8860_v2 = vcombine.high %v8852_v10, %v8852_v10  ;;  %v8868_v0 = vrot.slane %v8852_v10, %v12797_v34  ;;  %v8859_v45 = vrot.slane %v8845_v27, %v12797_v34 }
0x146c   : > { %8195 = vst.msk [vmem:[%s11268_s17 + $0x4e] sm:$0x1] %vm1933_vm7, %v8109_v50  ;;  %9120 = vrot.lane.b32.xlu1 %v8995_v51, %s15508_s26  ;;  %v8843_v12 = vcombine.high %v8833_v24, %v8833_v24  ;;  %v8999_v17 = vrot.slane %v8833_v24, %v12807_v32  ;;  %v9003_v63 = vrot.slane %v8841_v3, %v12807_v32  ;;  %v8223_v57 = vunpack.c.h.bf16 %v15199_v14 }
0x146d   : > { %v8111_v40 = vpop.permute.xlu1 %8110  ;;  %v8840_v29 = vrot.slane %v8812_v28, %v12797_v34  ;;  %v8842_v23 = vcombine.high %v8826_v11, %v8826_v11  ;;  %v9011_v18 = vrot.slane %v8826_v11, %v12807_v32  ;;  %v8882_v13 = vrot.slane %v8860_v2, %v12797_v34 }
0x146e   : > { %8196 = vst.msk [vmem:[%s11268_s17 + $0x56] sm:$0x1] %vm1933_vm7, %v8111_v40  ;;  %9122 = vrot.lane.b32.xlu0 %v8999_v17, %s15508_s26  ;;  %v9007_v61 = vrot.slane %v8843_v12, %v12807_v32  ;;  %v8890_v44 = vcombine.high %v8868_v0, %v8868_v0  ;;  %v9027_v31 = vrot.slane %v8868_v0, %v12807_v32 }
0x146f   : > { %v8113_v54 = vpop.permute.xlu0 %8112  ;;  %v9015_v30 = vrot.slane %v8840_v29, %v12807_v32  ;;  %v8844_v22 = vcombine.high %v8840_v29, %v8840_v29  ;;  %v9019_v59 = vrot.slane %v8842_v23, %v12807_v32  ;;  %v8861_v35 = vcombine.high %v8859_v45, %v8859_v45 }
0x1470   : > { %8197 = vst.msk [vmem:[%s11268_s17 + $0x5e] sm:$0x1] %vm1933_vm7, %v8113_v54  ;;  %9124 = vrot.lane.b32.xlu1 %v9003_v63, %s15508_s26  ;;  %v8892_v37 = vcombine.high %v8882_v13, %v8882_v13  ;;  %v9031_v60 = vrot.slane %v8882_v13, %v12807_v32  ;;  %v8875_v53 = vrot.slane %v8859_v45, %v12797_v34 }
0x1471   : > { %v8115_v15 = vpop.permute.xlu1 %8114  ;;  %v9023_v42 = vrot.slane %v8844_v22, %v12807_v32  ;;  %v9035_v33 = vrot.slane %v8890_v44, %v12807_v32  ;;  %v8889_v46 = vrot.slane %v8861_v35, %v12797_v34  ;;  %v8901_v21 = vrot.slane %v8790_v5, %v12797_v34 }
0x1472   : > { %8198 = vst.msk [vmem:[%s11268_s17 + $0x66] sm:$0x1] %vm1933_vm7, %v8115_v15  ;;  %9126 = vrot.lane.b32.xlu0 %v9007_v61, %s15508_s26  ;;  %v9039_v20 = vrot.slane %v8892_v37, %v12807_v32  ;;  %v8891_v48 = vcombine.high %v8875_v53, %v8875_v53  ;;  %v9043_v1 = vrot.slane %v8875_v53, %v12807_v32 }
0x1473   : > { %v8117_v26 = vpop.permute.xlu0 %8116  ;;  %v8894_v16 = vcombine.high %v8790_v5, %v8790_v5  ;;  %v8909_v25 = vcombine.high %v8901_v21, %v8901_v21  ;;  %v9047_v58 = vrot.slane %v8889_v46, %v12807_v32  ;;  %v8893_v3 = vcombine.high %v8889_v46, %v8889_v46 }
0x1474   : > { %8199 = vst.msk [vmem:[%s11268_s17 + $0x6e] sm:$0x1] %vm1933_vm7, %v8117_v26  ;;  %9128 = vrot.lane.b32.xlu1 %v9011_v18, %s15508_s26  ;;  %v8917_v51 = vrot.slane %v8901_v21, %v12797_v34  ;;  %v9051_v50 = vrot.slane %v8891_v48, %v12807_v32  ;;  %v8421_v40 = vadd.f32 %v15159_v6, %v8223_v57 }
0x1475   : > { %v8119_v41 = vpop.permute.xlu1 %8118  ;;  %v8908_v39 = vrot.slane %v8894_v16, %v12797_v34  ;;  %v8931_v28 = vrot.slane %v8909_v25, %v12797_v34  ;;  %v9055_v12 = vrot.slane %v8893_v3, %v12807_v32 }
0x1476   : > { %8200 = vst.msk [vmem:[%s11268_s17 + $0x76] sm:$0x1] %vm1933_vm7, %v8119_v41  ;;  %9130 = vrot.lane.b32.xlu0 %v9015_v30, %s15508_s26  ;;  %v8939_v54 = vcombine.high %v8917_v51, %v8917_v51  ;;  %v9059_v63 = vrot.slane %v8917_v51, %v12807_v32  ;;  %v8621_v15 = vadd.f32 %v15164_v55, %v8421_v40 }
0x1477   : > { %v8121_v19 = vpop.permute.xlu0 %8120  ;;  %v8910_v6 = vcombine.high %v8908_v39, %v8908_v39  ;;  %v8941_v29 = vcombine.high %v8931_v28, %v8931_v28  ;;  %v9063_v61 = vrot.slane %v8931_v28, %v12807_v32  ;;  %v8924_v23 = vrot.slane %v8908_v39, %v12797_v34 }
0x1478   : > { %8201 = vst.msk [vmem:[%s11268_s17 + $0x7e] sm:$0x1] %vm1933_vm7, %v8121_v19  ;;  %9132 = vrot.lane.b32.xlu1 %v9019_v59, %s15508_s26  ;;  %v8791_v10 = vadd.f32 %v15170_v49, %v8621_v15  ;;  %v9067_v55 = vrot.slane %v8939_v54, %v12807_v32 }
0x1479   : > { %v8123_v9 = vpop.permute.xlu1 %8122  ;;  %v8938_v41 = vrot.slane %v8910_v6, %v12797_v34  ;;  %v9071_v14 = vrot.slane %v8941_v29, %v12807_v32  ;;  %v8940_v27 = vcombine.high %v8924_v23, %v8924_v23  ;;  %v9075_v2 = vrot.slane %v8924_v23, %v12807_v32 }
0x147a   : > { %8202 = vst.msk [vmem:[%s11268_s17 + $0x86] sm:$0x1] %vm1933_vm7, %v8123_v9  ;;  %9134 = vrot.lane.b32.xlu0 %v9023_v42, %s15508_s26  ;;  %v8950_v49 = vrot.slane %v8791_v10, %v12797_v34  ;;  %v8943_v19 = vcombine.high %v8791_v10, %v8791_v10 }
0x147b   : > { %v8125_v43 = vpop.permute.xlu0 %8124  ;;  %v9079_v0 = vrot.slane %v8938_v41, %v12807_v32  ;;  %v8942_v9 = vcombine.high %v8938_v41, %v8938_v41  ;;  %v9083_v45 = vrot.slane %v8940_v27, %v12807_v32 }
0x147c   : > { %8203 = vst.msk [vmem:[%s11268_s17 + $0x8e] sm:$0x1] %vm1933_vm7, %v8125_v43  ;;  %9136 = vrot.lane.b32.xlu1 %v9027_v31, %s15508_s26  ;;  %v8958_v22 = vcombine.high %v8950_v49, %v8950_v49  ;;  %v8966_v38 = vrot.slane %v8950_v49, %v12797_v34  ;;  %v8957_v13 = vrot.slane %v8943_v19, %v12797_v34 }
0x147d   : > { %v8127_v7 = vpop.permute.xlu1 %8126  ;;  %v9087_v43 = vrot.slane %v8942_v9, %v12807_v32 }
0x147e   : > { %8204 = vst.msk [vmem:[%s11268_s17 + $0x96] sm:$0x1] %vm1933_vm7, %v8127_v7  ;;  %9138 = vrot.lane.b32.xlu0 %v9031_v60, %s15508_s26  ;;  %v8980_v42 = vrot.slane %v8958_v22, %v12797_v34  ;;  %v8988_v44 = vcombine.high %v8966_v38, %v8966_v38  ;;  %v9091_v31 = vrot.slane %v8966_v38, %v12807_v32 }
0x147f   : > { %v8129_v56 = vpop.permute.xlu0 %8128  ;;  %v8959_v7 = vcombine.high %v8957_v13, %v8957_v13  ;;  %v8973_v37 = vrot.slane %v8957_v13, %v12797_v34 }
0x1480   : > { %8205 = vst.msk [vmem:[%s11268_s17 + $0x9e] sm:$0x1] %vm1933_vm7, %v8129_v56  ;;  %9140 = vrot.lane.b32.xlu1 %v9035_v33, %s15508_s26  ;;  %v8990_v4 = vcombine.high %v8980_v42, %v8980_v42  ;;  %v9095_v35 = vrot.slane %v8980_v42, %v12807_v32  ;;  %v9099_v5 = vrot.slane %v8988_v44, %v12807_v32 }
0x1481   : > { %v8131_v8 = vpop.permute.xlu1 %8130  ;;  %v8987_v60 = vrot.slane %v8959_v7, %v12797_v34  ;;  %v8989_v53 = vcombine.high %v8973_v37, %v8973_v37  ;;  %v9107_v33 = vrot.slane %v8973_v37, %v12807_v32 }
0x1482   : > { %8206 = vst.msk [vmem:[%s11268_s17 + $0xa6] sm:$0x1] %vm1933_vm7, %v8131_v8  ;;  %9142 = vrot.lane.b32.xlu0 %v9039_v20, %s15508_s26  ;;  %v9103_v56 = vrot.slane %v8990_v4, %v12807_v32 }
0x1483   : > { %v8133_v62 = vpop.permute.xlu0 %8132  ;;  %v9111_v8 = vrot.slane %v8987_v60, %v12807_v32  ;;  %v8991_v46 = vcombine.high %v8987_v60, %v8987_v60  ;;  %v9115_v21 = vrot.slane %v8989_v53, %v12807_v32 }
0x1484   : > { %8207 = vst.msk [vmem:[%s11268_s17 + $0xae] sm:$0x1] %vm1933_vm7, %v8133_v62  ;;  %9144 = vrot.lane.b32.xlu1 %v9043_v1, %s15508_s26 }
0x1485   : > { %v8135_v47 = vpop.permute.xlu1 %8134  ;;  %v9119_v34 = vrot.slane %v8991_v46, %v12807_v32 }
0x1486   : > { %8208 = vst.msk [vmem:[%s11268_s17 + $0xb6] sm:$0x1] %vm1933_vm7, %v8135_v47  ;;  %9146 = vrot.lane.b32.xlu0 %v9047_v58, %s15508_s26 }
0x1487   : > { %v8137_v24 = vpop.permute.xlu0 %8136 }
0x1488   : > { %8209 = vst.msk [vmem:[%s11268_s17 + $0xbe] sm:$0x1] %vm1933_vm7, %v8137_v24  ;;  %9148 = vrot.lane.b32.xlu1 %v9051_v50, %s15508_s26 }
0x1489   : > { %v8139_v52 = vpop.permute.xlu1 %8138 }
0x148a   : > { %8210 = vst.msk [vmem:[%s11268_s17 + $0xc6] sm:$0x1] %vm1933_vm7, %v8139_v52  ;;  %9150 = vrot.lane.b32.xlu0 %v9055_v12, %s15508_s26 }
0x148b   : > { %v8141_v17 = vpop.permute.xlu0 %8140 }
0x148c   : > { %8211 = vst.msk [vmem:[%s11268_s17 + $0xce] sm:$0x1] %vm1933_vm7, %v8141_v17  ;;  %9152 = vrot.lane.b32.xlu1 %v9059_v63, %s15508_s26 }
0x148d   : > { %v8143_v11 = vpop.permute.xlu1 %8142 }
0x148e   : > { %8212 = vst.msk [vmem:[%s11268_s17 + $0xd6] sm:$0x1] %vm1933_vm7, %v8143_v11  ;;  %9154 = vrot.lane.b32.xlu0 %v9063_v61, %s15508_s26 }
0x148f   : > { %v8145_v26 = vpop.permute.xlu0 %8144 }
0x1490   : > { %8213 = vst.msk [vmem:[%s11268_s17 + $0xde] sm:$0x1] %vm1933_vm7, %v8145_v26  ;;  %9156 = vrot.lane.b32.xlu1 %v9067_v55, %s15508_s26 }
0x1491   : > { %v8147_v18 = vpop.permute.xlu1 %8146 }
0x1492   : > { %8214 = vst.msk [vmem:[%s11268_s17 + $0xe6] sm:$0x1] %vm1933_vm7, %v8147_v18  ;;  %9158 = vrot.lane.b32.xlu0 %v9071_v14, %s15508_s26 }
0x1493   : > { %v8149_v36 = vpop.permute.xlu0 %8148 }
0x1494   : > { %8215 = vst.msk [vmem:[%s11268_s17 + $0xee] sm:$0x1] %vm1933_vm7, %v8149_v36  ;;  %9160 = vrot.lane.b32.xlu1 %v9075_v2, %s15508_s26 }
0x1495   : > { %v8151_v30 = vpop.permute.xlu1 %8150 }
0x1496   : > { %8216 = vst.msk [vmem:[%s11268_s17 + $0xf6] sm:$0x1] %vm1933_vm7, %v8151_v30  ;;  %9162 = vrot.lane.b32.xlu0 %v9079_v0, %s15508_s26 }
0x1497   : > { %v8153_v59 = vpop.permute.xlu0 %8152 }
0x1498   : > { %8217 = vst.msk [vmem:[%s11268_s17 + $0xfe] sm:$0x1] %vm1933_vm7, %v8153_v59  ;;  %9164 = vrot.lane.b32.xlu1 %v9083_v45, %s15508_s26 }
0x149a   : > { %9166 = vrot.lane.b32.xlu0 %v9087_v43, %s15508_s26 }
0x149c   : > { %9168 = vrot.lane.b32.xlu1 %v9091_v31, %s15508_s26 }
0x149e   : > { %9170 = vrot.lane.b32.xlu0 %v9095_v35, %s15508_s26 }
0x14a0   : > { %9172 = vrot.lane.b32.xlu1 %v9099_v5, %s15508_s26 }
0x14a2   : > { %9174 = vrot.lane.b32.xlu0 %v9103_v56, %s15508_s26 }
0x14a4   : > { %9176 = vrot.lane.b32.xlu1 %v9107_v33, %s15508_s26 }
0x14a6   : > { %9178 = vrot.lane.b32.xlu0 %v9111_v8, %s15508_s26 }
0x14a8   : > { %9180 = vrot.lane.b32.xlu1 %v9115_v21, %s15508_s26 }
0x14aa   : > { %9182 = vrot.lane.b32.xlu0 %v9119_v34, %s15508_s26  ;;  %s9877_s26 = sshll.u32 (%p11247_p5), %s9256_s20, 3 }
0x14ab   : > { %s15395_s25 = scalar_lea.vmem (%p11247_p5), %s15482_s9, %s9877_s26 }
0x14de   : > { %v9121_v20 = vpop.permute.xlu1 %9120 }
0x14df   : > { %9216 = vst.msk [vmem:[%s11268_s17 + $0x7] sm:$0x1] %vm1933_vm7, %v9121_v20 }
0x14e0   : > { %v9123_v62 = vpop.permute.xlu0 %9122 }
0x14e1   : > { %9217 = vst.msk [vmem:[%s11268_s17 + $0xf] sm:$0x1] %vm1933_vm7, %v9123_v62 }
0x14e2   : > { %v9125_v48 = vpop.permute.xlu1 %9124 }
0x14e3   : > { %9218 = vst.msk [vmem:[%s11268_s17 + $0x17] sm:$0x1] %vm1933_vm7, %v9125_v48 }
0x14e4   : > { %v9127_v1 = vpop.permute.xlu0 %9126 }
0x14e5   : > { %9219 = vst.msk [vmem:[%s11268_s17 + $0x1f] sm:$0x1] %vm1933_vm7, %v9127_v1 }
0x14e6   : > { %v9129_v32 = vpop.permute.xlu1 %9128  ;;  %v9348_v41 = vld [vmem:[%s11268_s17] sm:$0xff] (%p11247_p5) }
0x14e7   : > { %9220 = vst.msk [vmem:[%s11268_s17 + $0x27] sm:$0x1] %vm1933_vm7, %v9129_v32  ;;  %9349 = vst [vmem:[%s15395_s25] sm:$0xff] (%p11247_p5), %v9348_v41 }
0x14e8   : > { %v9131_v47 = vpop.permute.xlu0 %9130  ;;  %v9350_v49 = vld [vmem:[%s11268_s17 + $0x8] sm:$0xff] (%p11247_p5) }
0x14e9   : > { %9221 = vst.msk [vmem:[%s11268_s17 + $0x2f] sm:$0x1] %vm1933_vm7, %v9131_v47  ;;  %9351 = vst [vmem:[%s15395_s25 + $0x10] sm:$0xff] (%p11247_p5), %v9350_v49 }
0x14ea   : > { %v9133_v57 = vpop.permute.xlu1 %9132  ;;  %v9352_v14 = vld [vmem:[%s11268_s17 + $0x10] sm:$0xff] (%p11247_p5) }
0x14eb   : > { %9222 = vst.msk [vmem:[%s11268_s17 + $0x37] sm:$0x1] %vm1933_vm7, %v9133_v57  ;;  %9353 = vst [vmem:[%s15395_s25 + $0x20] sm:$0xff] (%p11247_p5), %v9352_v14 }
0x14ec   : > { %v9135_v16 = vpop.permute.xlu0 %9134  ;;  %v9354_v36 = vld [vmem:[%s11268_s17 + $0x18] sm:$0xff] (%p11247_p5) }
0x14ed   : > { %9223 = vst.msk [vmem:[%s11268_s17 + $0x3f] sm:$0x1] %vm1933_vm7, %v9135_v16  ;;  %9355 = vst [vmem:[%s15395_s25 + $0x30] sm:$0xff] (%p11247_p5), %v9354_v36 }
0x14ee   : > { %v9137_v25 = vpop.permute.xlu1 %9136  ;;  %v9356_v27 = vld [vmem:[%s11268_s17 + $0x20] sm:$0xff] (%p11247_p5) }
0x14ef   : > { %9224 = vst.msk [vmem:[%s11268_s17 + $0x47] sm:$0x1] %vm1933_vm7, %v9137_v25  ;;  %9357 = vst [vmem:[%s15395_s25 + $0x40] sm:$0xff] (%p11247_p5), %v9356_v27 }
0x14f0   : > { %v9139_v58 = vpop.permute.xlu0 %9138  ;;  %v9358_v2 = vld [vmem:[%s11268_s17 + $0x28] sm:$0xff] (%p11247_p5) }
0x14f1   : > { %9225 = vst.msk [vmem:[%s11268_s17 + $0x4f] sm:$0x1] %vm1933_vm7, %v9139_v58  ;;  %9359 = vst [vmem:[%s15395_s25 + $0x50] sm:$0xff] (%p11247_p5), %v9358_v2 }
0x14f2   : > { %v9141_v24 = vpop.permute.xlu1 %9140  ;;  %v9360_v30 = vld [vmem:[%s11268_s17 + $0x30] sm:$0xff] (%p11247_p5) }
0x14f3   : > { %9226 = vst.msk [vmem:[%s11268_s17 + $0x57] sm:$0x1] %vm1933_vm7, %v9141_v24  ;;  %9361 = vst [vmem:[%s15395_s25 + $0x60] sm:$0xff] (%p11247_p5), %v9360_v30 }
0x14f4   : > { %v9143_v3 = vpop.permute.xlu0 %9142  ;;  %v9362_v19 = vld [vmem:[%s11268_s17 + $0x38] sm:$0xff] (%p11247_p5) }
0x14f5   : > { %9227 = vst.msk [vmem:[%s11268_s17 + $0x5f] sm:$0x1] %vm1933_vm7, %v9143_v3  ;;  %9363 = vst [vmem:[%s15395_s25 + $0x70] sm:$0xff] (%p11247_p5), %v9362_v19 }
0x14f6   : > { %v9145_v51 = vpop.permute.xlu1 %9144  ;;  %v9364_v22 = vld [vmem:[%s11268_s17 + $0x40] sm:$0xff] (%p11247_p5) }
0x14f7   : > { %9228 = vst.msk [vmem:[%s11268_s17 + $0x67] sm:$0x1] %vm1933_vm7, %v9145_v51  ;;  %9365 = vst [vmem:[%s15395_s25 + $0x80] sm:$0xff] (%p11247_p5), %v9364_v22 }
0x14f8   : > { %v9147_v50 = vpop.permute.xlu0 %9146  ;;  %v9366_v0 = vld [vmem:[%s11268_s17 + $0x48] sm:$0xff] (%p11247_p5) }
0x14f9   : > { %9229 = vst.msk [vmem:[%s11268_s17 + $0x6f] sm:$0x1] %vm1933_vm7, %v9147_v50  ;;  %9367 = vst [vmem:[%s15395_s25 + $0x90] sm:$0xff] (%p11247_p5), %v9366_v0 }
0x14fa   : > { %v9149_v52 = vpop.permute.xlu1 %9148  ;;  %v9368_v59 = vld [vmem:[%s11268_s17 + $0x50] sm:$0xff] (%p11247_p5) }
0x14fb   : > { %9230 = vst.msk [vmem:[%s11268_s17 + $0x77] sm:$0x1] %vm1933_vm7, %v9149_v52  ;;  %9369 = vst [vmem:[%s15395_s25 + $0xa0] sm:$0xff] (%p11247_p5), %v9368_v59 }
0x14fc   : > { %v9151_v40 = vpop.permute.xlu0 %9150  ;;  %v9370_v9 = vld [vmem:[%s11268_s17 + $0x58] sm:$0xff] (%p11247_p5) }
0x14fd   : > { %9231 = vst.msk [vmem:[%s11268_s17 + $0x7f] sm:$0x1] %vm1933_vm7, %v9151_v40  ;;  %9371 = vst [vmem:[%s15395_s25 + $0xb0] sm:$0xff] (%p11247_p5), %v9370_v9 }
0x14fe   : > { %v9153_v39 = vpop.permute.xlu1 %9152  ;;  %v9372_v38 = vld [vmem:[%s11268_s17 + $0x60] sm:$0xff] (%p11247_p5) }
0x14ff   : > { %9232 = vst.msk [vmem:[%s11268_s17 + $0x87] sm:$0x1] %vm1933_vm7, %v9153_v39  ;;  %9373 = vst [vmem:[%s15395_s25 + $0xc0] sm:$0xff] (%p11247_p5), %v9372_v38 }
0x1500   : > { %v9155_v28 = vpop.permute.xlu0 %9154  ;;  %v9374_v45 = vld [vmem:[%s11268_s17 + $0x68] sm:$0xff] (%p11247_p5) }
0x1501   : > { %9233 = vst.msk [vmem:[%s11268_s17 + $0x8f] sm:$0x1] %vm1933_vm7, %v9155_v28  ;;  %9375 = vst [vmem:[%s15395_s25 + $0xd0] sm:$0xff] (%p11247_p5), %v9374_v45 }
0x1502   : > { %v9157_v12 = vpop.permute.xlu1 %9156  ;;  %v9376_v13 = vld [vmem:[%s11268_s17 + $0x70] sm:$0xff] (%p11247_p5) }
0x1503   : > { %9234 = vst.msk [vmem:[%s11268_s17 + $0x97] sm:$0x1] %vm1933_vm7, %v9157_v12  ;;  %9377 = vst [vmem:[%s15395_s25 + $0xe0] sm:$0xff] (%p11247_p5), %v9376_v13 }
0x1504   : > { %v9159_v17 = vpop.permute.xlu0 %9158  ;;  %v9378_v42 = vld [vmem:[%s11268_s17 + $0x78] sm:$0xff] (%p11247_p5) }
0x1505   : > { %9235 = vst.msk [vmem:[%s11268_s17 + $0x9f] sm:$0x1] %vm1933_vm7, %v9159_v17  ;;  %9379 = vst [vmem:[%s15395_s25 + $0xf0] sm:$0xff] (%p11247_p5), %v9378_v42 }
0x1506   : > { %v9161_v54 = vpop.permute.xlu1 %9160  ;;  %v9380_v43 = vld [vmem:[%s11268_s17 + $0x80] sm:$0xff] (%p11247_p5) }
0x1507   : > { %9236 = vst.msk [vmem:[%s11268_s17 + $0xa7] sm:$0x1] %vm1933_vm7, %v9161_v54  ;;  %9381 = vst [vmem:[%s15395_s25 + $0x100] sm:$0xff] (%p11247_p5), %v9380_v43 }
0x1508   : > { %v9163_v63 = vpop.permute.xlu0 %9162  ;;  %v9382_v44 = vld [vmem:[%s11268_s17 + $0x88] sm:$0xff] (%p11247_p5) }
0x1509   : > { %9237 = vst.msk [vmem:[%s11268_s17 + $0xaf] sm:$0x1] %vm1933_vm7, %v9163_v63  ;;  %9383 = vst [vmem:[%s15395_s25 + $0x110] sm:$0xff] (%p11247_p5), %v9382_v44 }
0x150a   : > { %v9165_v11 = vpop.permute.xlu1 %9164  ;;  %v9384_v31 = vld [vmem:[%s11268_s17 + $0x90] sm:$0xff] (%p11247_p5) }
0x150b   : > { %9238 = vst.msk [vmem:[%s11268_s17 + $0xb7] sm:$0x1] %vm1933_vm7, %v9165_v11  ;;  %9385 = vst [vmem:[%s15395_s25 + $0x120] sm:$0xff] (%p11247_p5), %v9384_v31 }
0x150c   : > { %v9167_v15 = vpop.permute.xlu0 %9166  ;;  %v9386_v7 = vld [vmem:[%s11268_s17 + $0x98] sm:$0xff] (%p11247_p5) }
0x150d   : > { %9239 = vst.msk [vmem:[%s11268_s17 + $0xbf] sm:$0x1] %vm1933_vm7, %v9167_v15  ;;  %9387 = vst [vmem:[%s15395_s25 + $0x130] sm:$0xff] (%p11247_p5), %v9386_v7 }
0x150e   : > { %v9169_v6 = vpop.permute.xlu1 %9168  ;;  %v9388_v4 = vld [vmem:[%s11268_s17 + $0xa0] sm:$0xff] (%p11247_p5) }
0x150f   : > { %9240 = vst.msk [vmem:[%s11268_s17 + $0xc7] sm:$0x1] %vm1933_vm7, %v9169_v6  ;;  %9389 = vst [vmem:[%s15395_s25 + $0x140] sm:$0xff] (%p11247_p5), %v9388_v4 }
0x1510   : > { %v9171_v29 = vpop.permute.xlu0 %9170  ;;  %v9390_v35 = vld [vmem:[%s11268_s17 + $0xa8] sm:$0xff] (%p11247_p5) }
0x1511   : > { %9241 = vst.msk [vmem:[%s11268_s17 + $0xcf] sm:$0x1] %vm1933_vm7, %v9171_v29  ;;  %9391 = vst [vmem:[%s15395_s25 + $0x150] sm:$0xff] (%p11247_p5), %v9390_v35 }
0x1512   : > { %v9173_v10 = vpop.permute.xlu1 %9172  ;;  %v9392_v37 = vld [vmem:[%s11268_s17 + $0xb0] sm:$0xff] (%p11247_p5) }
0x1513   : > { %9242 = vst.msk [vmem:[%s11268_s17 + $0xd7] sm:$0x1] %vm1933_vm7, %v9173_v10  ;;  %9393 = vst [vmem:[%s15395_s25 + $0x160] sm:$0xff] (%p11247_p5), %v9392_v37 }
0x1514   : > { %v9175_v61 = vpop.permute.xlu0 %9174  ;;  %v9394_v5 = vld [vmem:[%s11268_s17 + $0xb8] sm:$0xff] (%p11247_p5) }
0x1515   : > { %9243 = vst.msk [vmem:[%s11268_s17 + $0xdf] sm:$0x1] %vm1933_vm7, %v9175_v61  ;;  %9395 = vst [vmem:[%s15395_s25 + $0x170] sm:$0xff] (%p11247_p5), %v9394_v5 }
0x1516   : > { %v9177_v26 = vpop.permute.xlu1 %9176  ;;  %v9396_v60 = vld [vmem:[%s11268_s17 + $0xc0] sm:$0xff] (%p11247_p5) }
0x1517   : > { %9244 = vst.msk [vmem:[%s11268_s17 + $0xe7] sm:$0x1] %vm1933_vm7, %v9177_v26  ;;  %9254 = sbr.rel (!%p11247_p5) target bundleno = 5414 (0x1526), region = 71  ;;  %9397 = vst [vmem:[%s15395_s25 + $0x180] sm:$0xff] (%p11247_p5), %v9396_v60 }
0x1518   : > { %v9179_v23 = vpop.permute.xlu0 %9178  ;;  %v9398_v56 = vld [vmem:[%s11268_s17 + $0xc8] sm:$0xff] (%p11247_p5) }
0x1519   : > { %9245 = vst.msk [vmem:[%s11268_s17 + $0xef] sm:$0x1] %vm1933_vm7, %v9179_v23  ;;  %9399 = vst [vmem:[%s15395_s25 + $0x190] sm:$0xff] (%p11247_p5), %v9398_v56 }
0x151a   : > { %v9181_v55 = vpop.permute.xlu1 %9180  ;;  %v9400_v53 = vld [vmem:[%s11268_s17 + $0xd0] sm:$0xff] (%p11247_p5) }
0x151b   : > { %9246 = vst.msk [vmem:[%s11268_s17 + $0xf7] sm:$0x1] %vm1933_vm7, %v9181_v55  ;;  %9401 = vst [vmem:[%s15395_s25 + $0x1a0] sm:$0xff] (%p11247_p5), %v9400_v53 }
0x151c   : > { %v9183_v18 = vpop.permute.xlu0 %9182  ;;  %v9402_v33 = vld [vmem:[%s11268_s17 + $0xd8] sm:$0xff] (%p11247_p5) }
0x151d   : > { %9247 = vst.msk [vmem:[%s11268_s17 + $0xff] sm:$0x1] %vm1933_vm7, %v9183_v18  ;;  %9403 = vst [vmem:[%s15395_s25 + $0x1b0] sm:$0xff] (%p11247_p5), %v9402_v33 }
0x151e   : > { %v9404_v8 = vld [vmem:[%s11268_s17 + $0xe0] sm:$0xff] }
0x151f   : > { %9405 = vst [vmem:[%s15395_s25 + $0x1c0] sm:$0xff] %v9404_v8 }
0x1520   : > { %v9406_v46 = vld [vmem:[%s11268_s17 + $0xe8] sm:$0xff] }
0x1521   : > { %9407 = vst [vmem:[%s15395_s25 + $0x1d0] sm:$0xff] %v9406_v46 }
0x1522   : > { %v9408_v21 = vld [vmem:[%s11268_s17 + $0xf0] sm:$0xff] }
0x1523   : > { %9409 = vst [vmem:[%s15395_s25 + $0x1e0] sm:$0xff] %v9408_v21 }
0x1524   : > { %v9410_v34 = vld [vmem:[%s11268_s17 + $0xf8] sm:$0xff] }
0x1525   : > { %9411 = vst [vmem:[%s15395_s25 + $0x1f0] sm:$0xff] %v9410_v34 }
0x1526 PF: > { %s19_s15 = sadd.s32 1, %s11134_s15   ;;  %s15531_s19 = sld [smem:[#allocation4_spill]] }
0x1527   : > { %p16_p12 = scmp.ge.s32.totalorder %s19_s15, 6   ;;  %s15532_s23 = sld [smem:[#allocation5_spill]] }
0x1528   : > { %s15533_s30 = smov %s11114_s10  ;;  %s15534_s10 = smov %s11258_s24 }
0x1529   : > { %s15535_s11 = smov %s11126_s13  ;;  %s15536_s12 = smov %s11130_s14 }
0x152a   :  { %18 = sbr.rel (!%p16_p12) target bundleno = 6 (0x6), region = 181 }
0x152c   : > { %s15537_s13 = smov %s15531_s19 }
0x152d   : > { %s15538_s14 = smov %s15532_s23 }

</bundles_post_ra>
